<compile_context>
chip_gen: v6e
topology: v6e:2x2x1
jax: 0.10.0
libtpu: 0.0.40
codegen_flags: <defaults>
</compile_context>

<pallas_src>
import functools

import jax
import jax.numpy as jnp
from jax.experimental import pallas as pl
from jax.experimental.pallas import tpu as pltpu


def _round_up(x, m):
    return ((x + m - 1) // m) * m


# ----------------------- fused tiled GEMM (conv core) -----------------------

def _mm_kernel(a_ref, b_ref, bias_ref, o_ref, acc_ref, *, nk, a_act, out_act):
    k = pl.program_id(2)

    @pl.when(k == 0)
    def _():
        acc_ref[...] = jnp.zeros_like(acc_ref)

    a = a_ref[...]
    if a_act == "leaky":            # LeakyReLU(0.2) fused on the patch operand
        a = jnp.where(a >= 0, a, 0.2 * a)
    elif a_act == "relu":
        a = jnp.maximum(a, 0)
    acc_ref[...] += jnp.dot(a, b_ref[...], preferred_element_type=jnp.float32)

    @pl.when(k == nk - 1)
    def _():
        y = acc_ref[...] + bias_ref[...]
        if out_act == "relu":
            y = jnp.maximum(y, 0.0)
        elif out_act == "tanh":
            y = jnp.tanh(y)
        o_ref[...] = y.astype(o_ref.dtype)


def pallas_matmul(a, b, bias, *, a_act=None, out_act=None):
    """(M, K) @ (K, N) + bias[N], bf16 operands, f32 accumulate, fused acts."""
    M, K = a.shape
    K2, N = b.shape
    assert K == K2
    a = a.astype(jnp.bfloat16)
    b = b.astype(jnp.bfloat16)
    bias2 = bias.reshape(1, N).astype(jnp.float32)

    tm = min(256, _round_up(M, 8))                # ragged last M tile is masked
    tn = min(N, 256) if N % 128 == 0 else N       # full-N block when N < 128
    tk = 512 if K % 512 == 0 else K               # K tiling only when it divides
    gm, gn, gk = pl.cdiv(M, tm), pl.cdiv(N, tn), pl.cdiv(K, tk)

    kernel = functools.partial(_mm_kernel, nk=gk, a_act=a_act, out_act=out_act)
    return pl.pallas_call(
        kernel,
        out_shape=jax.ShapeDtypeStruct((M, N), jnp.float32),
        grid=(gm, gn, gk),
        in_specs=[
            pl.BlockSpec((tm, tk), lambda m, n, k: (m, k)),
            pl.BlockSpec((tk, tn), lambda m, n, k: (k, n)),
            pl.BlockSpec((1, tn), lambda m, n, k: (0, n)),
        ],
        out_specs=pl.BlockSpec((tm, tn), lambda m, n, k: (m, n)),
        scratch_shapes=[pltpu.VMEM((tm, tn), jnp.float32)],
        compiler_params=pltpu.CompilerParams(
            dimension_semantics=("parallel", "parallel", "arbitrary")),
    )(a, b, bias2)


# ----------------------------- BatchNorm2d ----------------------------------

def _bn_stats_kernel(x_ref, sum_ref, sq_ref, *, m_total):
    i = pl.program_id(0)

    @pl.when(i == 0)
    def _():
        sum_ref[...] = jnp.zeros_like(sum_ref)
        sq_ref[...] = jnp.zeros_like(sq_ref)

    x = x_ref[...].astype(jnp.float32)
    tm = x.shape[0]
    rows = jax.lax.broadcasted_iota(jnp.int32, (tm, 1), 0) + i * tm
    xm = jnp.where(rows < m_total, x, 0.0)        # mask ragged last tile
    sum_ref[...] += jnp.sum(xm, axis=0, keepdims=True)
    sq_ref[...] += jnp.sum(xm * xm, axis=0, keepdims=True)


def _bn_apply_kernel(x_ref, scale_ref, shift_ref, o_ref):
    o_ref[...] = x_ref[...] * scale_ref[...] + shift_ref[...]


def pallas_batchnorm(x, gamma, beta, eps=1e-5):
    """BatchNorm2d with batch statistics over (N, H, W), per channel (f32)."""
    n, h, w, c = x.shape
    m = n * h * w
    x2 = x.reshape(m, c).astype(jnp.float32)
    tmb = min(512, _round_up(m, 8))
    grid = (pl.cdiv(m, tmb),)

    s, sq = pl.pallas_call(
        functools.partial(_bn_stats_kernel, m_total=m),
        out_shape=(jax.ShapeDtypeStruct((1, c), jnp.float32),
                   jax.ShapeDtypeStruct((1, c), jnp.float32)),
        grid=grid,
        in_specs=[pl.BlockSpec((tmb, c), lambda i: (i, 0))],
        out_specs=(pl.BlockSpec((1, c), lambda i: (0, 0)),
                   pl.BlockSpec((1, c), lambda i: (0, 0))),
        compiler_params=pltpu.CompilerParams(dimension_semantics=("arbitrary",)),
    )(x2)

    mean = s / m
    var = jnp.maximum(sq / m - mean * mean, 0.0)
    scale = gamma.reshape(1, c) * jax.lax.rsqrt(var + eps)
    shift = beta.reshape(1, c) - mean * scale

    y = pl.pallas_call(
        _bn_apply_kernel,
        out_shape=jax.ShapeDtypeStruct((m, c), jnp.float32),
        grid=grid,
        in_specs=[pl.BlockSpec((tmb, c), lambda i: (i, 0)),
                  pl.BlockSpec((1, c), lambda i: (0, 0)),
                  pl.BlockSpec((1, c), lambda i: (0, 0))],
        out_specs=pl.BlockSpec((tmb, c), lambda i: (i, 0)),
        compiler_params=pltpu.CompilerParams(dimension_semantics=("parallel",)),
    )(x2, scale, shift)
    return y.reshape(n, h, w, c)


# ----------------------- bilinear 2x upsample (VPU) --------------------------

def _upsample2_kernel(x_ref, p00_ref, p01_ref, p10_ref, p11_ref, *, pre_act):
    # torch Upsample(scale=2, mode='bilinear', align_corners=False):
    #   even out rows:  0.25*x[m-1] + 0.75*x[m]   (clamped at the border)
    #   odd  out rows:  0.75*x[m]   + 0.25*x[m+1] (clamped at the border)
    x = x_ref[...]                                   # (1, H, W, Ct)
    if pre_act == "relu":                            # fused uprelu
        x = jnp.maximum(x, 0.0)
    xm1 = jnp.concatenate([x[:, :1], x[:, :-1]], axis=1)
    xp1 = jnp.concatenate([x[:, 1:], x[:, -1:]], axis=1)
    r0 = 0.25 * xm1 + 0.75 * x
    r1 = 0.75 * x + 0.25 * xp1

    def col_blend(z):
        zl = jnp.concatenate([z[:, :, :1], z[:, :, :-1]], axis=2)
        zr = jnp.concatenate([z[:, :, 1:], z[:, :, -1:]], axis=2)
        return 0.25 * zl + 0.75 * z, 0.75 * z + 0.25 * zr

    p00_ref[...], p01_ref[...] = col_blend(r0)
    p10_ref[...], p11_ref[...] = col_blend(r1)


def bilinear_upsample2(x, pre_act=None):
    n, h, w, c = x.shape
    tc = min(c, 128)
    grid = (n, pl.cdiv(c, tc))
    spec = pl.BlockSpec((1, h, w, tc), lambda i, j: (i, 0, 0, j))
    p00, p01, p10, p11 = pl.pallas_call(
        functools.partial(_upsample2_kernel, pre_act=pre_act),
        out_shape=tuple(jax.ShapeDtypeStruct(x.shape, x.dtype) for _ in range(4)),
        grid=grid,
        in_specs=[spec],
        out_specs=tuple(pl.BlockSpec((1, h, w, tc), lambda i, j: (i, 0, 0, j))
                        for _ in range(4)),
        compiler_params=pltpu.CompilerParams(
            dimension_semantics=("parallel", "parallel")),
    )(x)
    # interleave the four parities: out[:, 2m+r, 2k+s, :] = p_rs[:, m, k, :]
    y = jnp.stack([p00, p01, p10, p11], axis=3).reshape(n, h, w, 2, 2, c)
    y = jnp.transpose(y, (0, 1, 3, 2, 4, 5)).reshape(n, 2 * h, 2 * w, c)
    return y


# ------------------------------- conv glue -----------------------------------

def _im2col(x, kh, kw, stride, pad):
    n, h, w, c = x.shape
    xp = jnp.pad(x, ((0, 0), (pad, pad), (pad, pad), (0, 0)))
    ho = (h + 2 * pad - kh) // stride + 1
    wo = (w + 2 * pad - kw) // stride + 1
    cols = []
    for i in range(kh):
        for j in range(kw):
            cols.append(xp[:, i:i + (ho - 1) * stride + 1:stride,
                            j:j + (wo - 1) * stride + 1:stride, :])
    patches = jnp.concatenate(cols, axis=-1).astype(jnp.bfloat16)
    return patches.reshape(n * ho * wo, kh * kw * c), (n, ho, wo)


def conv2d(x, w, b, stride, pad, a_act=None, out_act=None):
    # w: torch Conv2d layout (Cout, Cin, kh, kw); x: NHWC
    cout, cin, kh, kw = w.shape
    cols, (n, ho, wo) = _im2col(x, kh, kw, stride, pad)
    wmat = jnp.transpose(w, (2, 3, 1, 0)).reshape(kh * kw * cin, cout)
    y = pallas_matmul(cols, wmat, b, a_act=a_act, out_act=out_act)
    return y.reshape(n, ho, wo, cout)


# Phase decomposition of ConvTranspose2d(k=4, s=2, p=1):
#   output (2m+r, 2n+s) uses 2x2 sub-kernels of w indexed by (di, r) / (dj, s),
#   where di/dj index the 3x3 input window centered at (m, n).
_PHASE_TAPS = {(0, 0): 3, (1, 0): 1, (1, 1): 2, (2, 1): 0}   # (di, parity) -> kh


def _deconv_phase_weight(w):
    cin, cout, _, _ = w.shape                   # torch layout (Cin, Cout, 4, 4)
    wm = jnp.zeros((3, 3, cin, 2, 2, cout), jnp.float32)
    for (di, r), ki in _PHASE_TAPS.items():
        for (dj, s), kj in _PHASE_TAPS.items():
            wm = wm.at[di, dj, :, r, s, :].set(w[:, :, ki, kj])
    return wm.reshape(9 * cin, 4 * cout)


def conv_transpose2d(x, w, b, a_act=None):
    cout = w.shape[1]
    n, h, ww_, _ = x.shape
    cols, _ = _im2col(x, 3, 3, stride=1, pad=1)          # shared 3x3 patches
    wmat = _deconv_phase_weight(w)                       # (9*Cin, 4*Cout)
    y = pallas_matmul(cols, wmat, jnp.tile(b, 4), a_act=a_act)
    y = y.reshape(n, h, ww_, 2, 2, cout)                 # (.., r, s, Cout)
    y = jnp.transpose(y, (0, 1, 3, 2, 4, 5)).reshape(n, 2 * h, 2 * ww_, cout)
    return y


# ------------------------- parameter initialization --------------------------

def _init_conv(key, cout, cin, k, use_bias, scale=0.05):
    k1, k2 = jax.random.split(key)
    w = scale * jax.random.normal(k1, (cout, cin, k, k), jnp.float32)
    b = (scale * jax.random.normal(k2, (cout,), jnp.float32)
         if use_bias else jnp.zeros((cout,), jnp.float32))
    return {"w": w, "b": b}


def _init_convT(key, cin, cout, k, use_bias, scale=0.05):
    k1, k2 = jax.random.split(key)
    w = scale * jax.random.normal(k1, (cin, cout, k, k), jnp.float32)
    b = (scale * jax.random.normal(k2, (cout,), jnp.float32)
         if use_bias else jnp.zeros((cout,), jnp.float32))
    return {"w": w, "b": b}


def _init_bn(key, c):
    k1, k2 = jax.random.split(key)
    return {"g": 1.0 + 0.1 * jax.random.normal(k1, (c,), jnp.float32),
            "b": 0.1 * jax.random.normal(k2, (c,), jnp.float32)}


def init_block(key, outer_nc, inner_nc, input_nc=None, sub=None,
               outermost=False, innermost=False):
    if input_nc is None:
        input_nc = outer_nc
    ks = jax.random.split(key, 4)
    use_bias = False  # norm_layer == BatchNorm2d
    p = {"outermost": outermost, "innermost": innermost, "sub": sub}
    p["downconv"] = _init_conv(ks[0], inner_nc, input_nc, 4, use_bias)
    if outermost:
        # my_convT = Upsample(x2 bilinear) + Conv2d(inner_nc*2, outer_nc, 4, s=1, p=2, bias=True)
        p["upconv"] = _init_conv(ks[1], outer_nc, inner_nc * 2, 4, True)
    elif innermost:
        p["upconv"] = _init_convT(ks[1], inner_nc, outer_nc, 4, use_bias)
        p["upnorm"] = _init_bn(ks[2], outer_nc)
    else:
        p["downnorm"] = _init_bn(ks[3], inner_nc)
        p["upconv"] = _init_convT(ks[1], inner_nc * 2, outer_nc, 4, use_bias)
        p["upnorm"] = _init_bn(ks[2], outer_nc)
    return p


def init_generator(key, n_in_channel, num_downs, ngf):
    keys = list(jax.random.split(key, num_downs))
    it = iter(keys)
    block = init_block(next(it), ngf * 8, ngf * 8, innermost=True)
    for _ in range(num_downs - 5):
        block = init_block(next(it), ngf * 8, ngf * 8, sub=block)
    block = init_block(next(it), ngf * 4, ngf * 8, sub=block)
    block = init_block(next(it), ngf * 2, ngf * 4, sub=block)
    block = init_block(next(it), ngf, ngf * 2, sub=block)
    block = init_block(next(it), 3, ngf, input_nc=n_in_channel, sub=block,
                       outermost=True)
    return block


# ------------------------------ forward pass ---------------------------------

def block_forward(p, x):
    dw, db = p["downconv"]["w"], p["downconv"]["b"]
    if p["outermost"]:
        h = conv2d(x, dw, db, stride=2, pad=1)
        s = block_forward(p["sub"], h)
        u = bilinear_upsample2(s, pre_act="relu")                 # fused uprelu
        return conv2d(u, p["upconv"]["w"], p["upconv"]["b"], stride=1, pad=2,
                      out_act="tanh")                             # fused Tanh
    elif p["innermost"]:
        # leaky fused as GEMM prologue (x stays raw for the skip concat),
        # uprelu fused as GEMM epilogue.
        h = conv2d(x, dw, db, stride=2, pad=1, a_act="leaky", out_act="relu")
        u = conv_transpose2d(h, p["upconv"]["w"], p["upconv"]["b"])
        u = pallas_batchnorm(u, p["upnorm"]["g"], p["upnorm"]["b"])
        return jnp.concatenate([x, u], axis=-1)
    else:
        h = conv2d(x, dw, db, stride=2, pad=1, a_act="leaky")
        h = pallas_batchnorm(h, p["downnorm"]["g"], p["downnorm"]["b"])
        s = block_forward(p["sub"], h)
        u = conv_transpose2d(s, p["upconv"]["w"], p["upconv"]["b"],
                             a_act="relu")                        # fused uprelu
        u = pallas_batchnorm(u, p["upnorm"]["g"], p["upnorm"]["b"])
        return jnp.concatenate([x, u], axis=-1)


def generator_forward(params, x_nchw):
    side = x_nchw.shape[2]
    x = jnp.transpose(x_nchw, (0, 2, 3, 1)).astype(jnp.float32)   # NCHW -> NHWC
    y = block_forward(params, x)
    y = y[:, :side, :side, :]
    out = jnp.transpose(y, (0, 3, 1, 2))                          # NHWC -> NCHW
    return out, out


# ---------------------------------- main --------------------------------------

if __name__ == "__main__":
    n_in_channel, num_downs, ngf = 4, 5, 8
    batch, side = 2, 32                     # side must be divisible by 2**num_downs

    key = jax.random.PRNGKey(0)
    kparams, kx = jax.random.split(key)
    params = init_generator(kparams, n_in_channel, num_downs, ngf)
    x = jax.random.normal(kx, (batch, n_in_channel, side, side), jnp.float32)

    fwd = jax.jit(functools.partial(generator_forward, params))
    out1, out2 = fwd(x)
    jax.block_until_ready(out1)

    assert out1.shape == (batch, 3, side, side)
    assert out2.shape == (batch, 3, side, side)
    assert bool(jnp.all(jnp.isfinite(out1)))
    assert bool(jnp.all(jnp.abs(out1) <= 1.0))      # Tanh range
    print("KERNEL_OK")
</pallas_src>

<mosaic_0001>
module attributes {stable_mosaic.version = 11 : i64} {
  func.func @_mm_kernel(%arg0: i32, %arg1: i32, %arg2: i32, %arg3: memref<256x64xbf16, #tpu.memory_space<vmem>>, %arg4: memref<64x8xbf16, #tpu.memory_space<vmem>>, %arg5: memref<1x8xf32, #tpu.memory_space<vmem>>, %arg6: memref<256x8xf32, #tpu.memory_space<vmem>>, %arg7: memref<256x8xf32, #tpu.memory_space<vmem>>) attributes {dimension_semantics = [#tpu.dimension_semantics<parallel>, #tpu.dimension_semantics<parallel>, #tpu.dimension_semantics<arbitrary>], iteration_bounds = array<i64: 2, 1, 1>, scalar_prefetch = 0 : i64, scratch_operands = 1 : i64, tpu.core_type = #tpu.core_type<tc>, window_params = [{transform_indices = @transform_0, window_bounds = array<i64: 256, 64>}, {transform_indices = @transform_1, window_bounds = array<i64: 64, 8>}, {transform_indices = @transform_2, window_bounds = array<i64: 1, 8>}, {transform_indices = @transform_3, window_bounds = array<i64: 256, 8>}]} {
    %c0_i32 = arith.constant 0 : i32
    %0 = arith.cmpi eq, %arg2, %c0_i32 : i32
    %1 = arith.extui %0 : i1 to i32
    %c0_i32_0 = arith.constant 0 : i32
    %2 = arith.cmpi ne, %1, %c0_i32_0 : i32
    scf.if %2 {
      %cst_10 = arith.constant 0.000000e+00 : f32
      %12 = vector.broadcast %cst_10 : f32 to vector<256x8xf32>
      %c0_11 = arith.constant 0 : index
      %c0_12 = arith.constant 0 : index
      %13 = vector.load %arg7[%c0_11, %c0_12] : memref<256x8xf32, #tpu.memory_space<vmem>>, vector<256x8xf32>
      tpu.vector_store %arg7[%c0_11, %c0_12], %12 {strides = array<i32>} : memref<256x8xf32, #tpu.memory_space<vmem>>, vector<256x8xf32>,
    } else {
    }
    %c0 = arith.constant 0 : index
    %c0_1 = arith.constant 0 : index
    %3 = vector.load %arg3[%c0, %c0_1] : memref<256x64xbf16, #tpu.memory_space<vmem>>, vector<256x64xbf16>
    %c0_2 = arith.constant 0 : index
    %c0_3 = arith.constant 0 : index
    %4 = vector.load %arg7[%c0_2, %c0_3] : memref<256x8xf32, #tpu.memory_space<vmem>>, vector<256x8xf32>
    %c0_4 = arith.constant 0 : index
    %c0_5 = arith.constant 0 : index
    %5 = vector.load %arg4[%c0_4, %c0_5] : memref<64x8xbf16, #tpu.memory_space<vmem>>, vector<64x8xbf16>
    %cst = arith.constant dense<0.000000e+00> : vector<256x8xf32>
    %6 = tpu.matmul %3, %5, %cst {dimension_numbers = #tpu.dot_dimension_numbers<[1], [0], [0], [1], [0, 0, 1, 1], [], []>} : vector<256x64xbf16>, vector<64x8xbf16>, vector<256x8xf32> -> vector<256x8xf32>
    %7 = arith.addf %4, %6 : vector<256x8xf32>
    %c0_6 = arith.constant 0 : index
    %c0_7 = arith.constant 0 : index
    %8 = vector.load %arg7[%c0_6, %c0_7] : memref<256x8xf32, #tpu.memory_space<vmem>>, vector<256x8xf32>
    tpu.vector_store %arg7[%c0_6, %c0_7], %7 {strides = array<i32>} : memref<256x8xf32, #tpu.memory_space<vmem>>, vector<256x8xf32>,
    %c0_i32_8 = arith.constant 0 : i32
    %9 = arith.cmpi eq, %arg2, %c0_i32_8 : i32
    %10 = arith.extui %9 : i1 to i32
    %c0_i32_9 = arith.constant 0 : i32
    %11 = arith.cmpi ne, %10, %c0_i32_9 : i32
    scf.if %11 {
      %c0_10 = arith.constant 0 : index
      %c0_11 = arith.constant 0 : index
      %12 = vector.load %arg7[%c0_10, %c0_11] : memref<256x8xf32, #tpu.memory_space<vmem>>, vector<256x8xf32>
      %c0_12 = arith.constant 0 : index
      %c0_13 = arith.constant 0 : index
      %13 = vector.load %arg5[%c0_12, %c0_13] : memref<1x8xf32, #tpu.memory_space<vmem>>, vector<1x8xf32>
      %14 = vector.broadcast %13 : vector<1x8xf32> to vector<256x8xf32>
      %15 = arith.addf %12, %14 : vector<256x8xf32>
      %c0_14 = arith.constant 0 : index
      %c0_15 = arith.constant 0 : index
      %16 = vector.load %arg6[%c0_14, %c0_15] : memref<256x8xf32, #tpu.memory_space<vmem>>, vector<256x8xf32>
      tpu.vector_store %arg6[%c0_14, %c0_15], %15 {strides = array<i32>} : memref<256x8xf32, #tpu.memory_space<vmem>>, vector<256x8xf32>,
    } else {
    }
    return
  }
  func.func @transform_0(%arg0: i32, %arg1: i32, %arg2: i32) -> (i32, i32) {
    %c0_i32 = arith.constant 0 : i32
    return %arg0, %arg2 : i32, i32
  }
  func.func @transform_1(%arg0: i32, %arg1: i32, %arg2: i32) -> (i32, i32) {
    %c0_i32 = arith.constant 0 : i32
    return %arg2, %arg1 : i32, i32
  }
  func.func @transform_2(%arg0: i32, %arg1: i32, %arg2: i32) -> (i32, i32) {
    %c0_i32 = arith.constant 0 : i32
    %c0_i32_0 = arith.constant 0 : i32
    return %c0_i32, %arg1 : i32, i32
  }
  func.func @transform_3(%arg0: i32, %arg1: i32, %arg2: i32) -> (i32, i32) {
    %c0_i32 = arith.constant 0 : i32
    return %arg0, %arg1 : i32, i32
  }
}

module attributes {stable_mosaic.version = 11 : i64} {
  func.func @_mm_kernel(%arg0: i32, %arg1: i32, %arg2: i32, %arg3: memref<128x128xbf16, #tpu.memory_space<vmem>>, %arg4: memref<128x16xbf16, #tpu.memory_space<vmem>>, %arg5: memref<1x16xf32, #tpu.memory_space<vmem>>, %arg6: memref<128x16xf32, #tpu.memory_space<vmem>>, %arg7: memref<128x16xf32, #tpu.memory_space<vmem>>) attributes {dimension_semantics = [#tpu.dimension_semantics<parallel>, #tpu.dimension_semantics<parallel>, #tpu.dimension_semantics<arbitrary>], iteration_bounds = array<i64: 1, 1, 1>, scalar_prefetch = 0 : i64, scratch_operands = 1 : i64, tpu.core_type = #tpu.core_type<tc>, window_params = [{transform_indices = @transform_0, window_bounds = array<i64: 128, 128>}, {transform_indices = @transform_1, window_bounds = array<i64: 128, 16>}, {transform_indices = @transform_2, window_bounds = array<i64: 1, 16>}, {transform_indices = @transform_3, window_bounds = array<i64: 128, 16>}]} {
    %c0_i32 = arith.constant 0 : i32
    %0 = arith.cmpi eq, %arg2, %c0_i32 : i32
    %1 = arith.extui %0 : i1 to i32
    %c0_i32_0 = arith.constant 0 : i32
    %2 = arith.cmpi ne, %1, %c0_i32_0 : i32
    scf.if %2 {
      %cst_12 = arith.constant 0.000000e+00 : f32
      %17 = vector.broadcast %cst_12 : f32 to vector<128x16xf32>
      %c0_13 = arith.constant 0 : index
      %c0_14 = arith.constant 0 : index
      %18 = vector.load %arg7[%c0_13, %c0_14] : memref<128x16xf32, #tpu.memory_space<vmem>>, vector<128x16xf32>
      tpu.vector_store %arg7[%c0_13, %c0_14], %17 {strides = array<i32>} : memref<128x16xf32, #tpu.memory_space<vmem>>, vector<128x16xf32>,
    } else {
    }
    %c0 = arith.constant 0 : index
    %c0_1 = arith.constant 0 : index
    %3 = vector.load %arg3[%c0, %c0_1] : memref<128x128xbf16, #tpu.memory_space<vmem>>, vector<128x128xbf16>
    %cst = arith.constant 0.000000e+00 : bf16
    %4 = vector.broadcast %cst : bf16 to vector<128x128xbf16>
    %5 = arith.cmpf oge, %3, %4 : vector<128x128xbf16>
    %cst_2 = arith.constant 2.001950e-01 : bf16
    %6 = vector.broadcast %cst_2 : bf16 to vector<128x128xbf16>
    %7 = arith.mulf %6, %3 : vector<128x128xbf16>
    %8 = arith.select %5, %3, %7 : vector<128x128xi1>, vector<128x128xbf16>
    %c0_3 = arith.constant 0 : index
    %c0_4 = arith.constant 0 : index
    %9 = vector.load %arg7[%c0_3, %c0_4] : memref<128x16xf32, #tpu.memory_space<vmem>>, vector<128x16xf32>
    %c0_5 = arith.constant 0 : index
    %c0_6 = arith.constant 0 : index
    %10 = vector.load %arg4[%c0_5, %c0_6] : memref<128x16xbf16, #tpu.memory_space<vmem>>, vector<128x16xbf16>
    %cst_7 = arith.constant dense<0.000000e+00> : vector<128x16xf32>
    %11 = tpu.matmul %8, %10, %cst_7 {dimension_numbers = #tpu.dot_dimension_numbers<[1], [0], [0], [1], [0, 0, 1, 1], [], []>} : vector<128x128xbf16>, vector<128x16xbf16>, vector<128x16xf32> -> vector<128x16xf32>
    %12 = arith.addf %9, %11 : vector<128x16xf32>
    %c0_8 = arith.constant 0 : index
    %c0_9 = arith.constant 0 : index
    %13 = vector.load %arg7[%c0_8, %c0_9] : memref<128x16xf32, #tpu.memory_space<vmem>>, vector<128x16xf32>
    tpu.vector_store %arg7[%c0_8, %c0_9], %12 {strides = array<i32>} : memref<128x16xf32, #tpu.memory_space<vmem>>, vector<128x16xf32>,
    %c0_i32_10 = arith.constant 0 : i32
    %14 = arith.cmpi eq, %arg2, %c0_i32_10 : i32
    %15 = arith.extui %14 : i1 to i32
    %c0_i32_11 = arith.constant 0 : i32
    %16 = arith.cmpi ne, %15, %c0_i32_11 : i32
    scf.if %16 {
      %c0_12 = arith.constant 0 : index
      %c0_13 = arith.constant 0 : index
      %17 = vector.load %arg7[%c0_12, %c0_13] : memref<128x16xf32, #tpu.memory_space<vmem>>, vector<128x16xf32>
      %c0_14 = arith.constant 0 : index
      %c0_15 = arith.constant 0 : index
      %18 = vector.load %arg5[%c0_14, %c0_15] : memref<1x16xf32, #tpu.memory_space<vmem>>, vector<1x16xf32>
      %19 = vector.broadcast %18 : vector<1x16xf32> to vector<128x16xf32>
      %20 = arith.addf %17, %19 : vector<128x16xf32>
      %c0_16 = arith.constant 0 : index
      %c0_17 = arith.constant 0 : index
      %21 = vector.load %arg6[%c0_16, %c0_17] : memref<128x16xf32, #tpu.memory_space<vmem>>, vector<128x16xf32>
      tpu.vector_store %arg6[%c0_16, %c0_17], %20 {strides = array<i32>} : memref<128x16xf32, #tpu.memory_space<vmem>>, vector<128x16xf32>,
    } else {
    }
    return
  }
  func.func @transform_0(%arg0: i32, %arg1: i32, %arg2: i32) -> (i32, i32) {
    %c0_i32 = arith.constant 0 : i32
    return %arg0, %arg2 : i32, i32
  }
  func.func @transform_1(%arg0: i32, %arg1: i32, %arg2: i32) -> (i32, i32) {
    %c0_i32 = arith.constant 0 : i32
    return %arg2, %arg1 : i32, i32
  }
  func.func @transform_2(%arg0: i32, %arg1: i32, %arg2: i32) -> (i32, i32) {
    %c0_i32 = arith.constant 0 : i32
    %c0_i32_0 = arith.constant 0 : i32
    return %c0_i32, %arg1 : i32, i32
  }
  func.func @transform_3(%arg0: i32, %arg1: i32, %arg2: i32) -> (i32, i32) {
    %c0_i32 = arith.constant 0 : i32
    return %arg0, %arg1 : i32, i32
  }
}

module attributes {stable_mosaic.version = 11 : i64} {
  func.func @_bn_stats_kernel(%arg0: i32, %arg1: memref<128x16xf32, #tpu.memory_space<vmem>>, %arg2: memref<1x16xf32, #tpu.memory_space<vmem>>, %arg3: memref<1x16xf32, #tpu.memory_space<vmem>>) attributes {dimension_semantics = [#tpu.dimension_semantics<arbitrary>], iteration_bounds = array<i64: 1>, scalar_prefetch = 0 : i64, scratch_operands = 0 : i64, tpu.core_type = #tpu.core_type<tc>, window_params = [{transform_indices = @transform_0, window_bounds = array<i64: 128, 16>}, {pipeline_mode = #tpu.pipeline_mode<synchronous>, transform_indices = @transform_1, window_bounds = array<i64: 1, 16>}, {pipeline_mode = #tpu.pipeline_mode<synchronous>, transform_indices = @transform_2, window_bounds = array<i64: 1, 16>}]} {
    %c0_i32 = arith.constant 0 : i32
    %0 = arith.cmpi eq, %arg0, %c0_i32 : i32
    %1 = arith.extui %0 : i1 to i32
    %c0_i32_0 = arith.constant 0 : i32
    %2 = arith.cmpi ne, %1, %c0_i32_0 : i32
    scf.if %2 {
      %cst_13 = arith.constant 0.000000e+00 : f32
      %25 = vector.broadcast %cst_13 : f32 to vector<1x16xf32>
      %c0_14 = arith.constant 0 : index
      %c0_15 = arith.constant 0 : index
      %26 = vector.load %arg2[%c0_14, %c0_15] : memref<1x16xf32, #tpu.memory_space<vmem>>, vector<1x16xf32>
      tpu.vector_store %arg2[%c0_14, %c0_15], %25 {strides = array<i32>} : memref<1x16xf32, #tpu.memory_space<vmem>>, vector<1x16xf32>,
      %cst_16 = arith.constant 0.000000e+00 : f32
      %27 = vector.broadcast %cst_16 : f32 to vector<1x16xf32>
      %c0_17 = arith.constant 0 : index
      %c0_18 = arith.constant 0 : index
      %28 = vector.load %arg3[%c0_17, %c0_18] : memref<1x16xf32, #tpu.memory_space<vmem>>, vector<1x16xf32>
      tpu.vector_store %arg3[%c0_17, %c0_18], %27 {strides = array<i32>} : memref<1x16xf32, #tpu.memory_space<vmem>>, vector<1x16xf32>,
    } else {
    }
    %c0 = arith.constant 0 : index
    %c0_1 = arith.constant 0 : index
    %3 = vector.load %arg1[%c0, %c0_1] : memref<128x16xf32, #tpu.memory_space<vmem>>, vector<128x16xf32>
    %4 = tpu.iota {dimensions = array<i32: 0>} : vector<128x1xi32>
    %c128_i32 = arith.constant 128 : i32
    %5 = arith.muli %arg0, %c128_i32 : i32
    %6 = vector.broadcast %5 : i32 to vector<128x1xi32>
    %7 = arith.addi %4, %6 : vector<128x1xi32>
    %c128_i32_2 = arith.constant 128 : i32
    %8 = vector.broadcast %c128_i32_2 : i32 to vector<128x1xi32>
    %9 = arith.cmpi slt, %7, %8 : vector<128x1xi32>
    %cst = arith.constant 0.000000e+00 : f32
    %10 = vector.shape_cast %9 : vector<128x1xi1> to vector<128x1xi1>
    %11 = vector.broadcast %10 : vector<128x1xi1> to vector<128x16xi1>
    %12 = vector.broadcast %cst : f32 to vector<128x16xf32>
    %13 = arith.select %11, %3, %12 : vector<128x16xi1>, vector<128x16xf32>
    %c0_3 = arith.constant 0 : index
    %c0_4 = arith.constant 0 : index
    %14 = vector.load %arg2[%c0_3, %c0_4] : memref<1x16xf32, #tpu.memory_space<vmem>>, vector<1x16xf32>
    %cst_5 = arith.constant dense<0.000000e+00> : vector<16xf32>
    %15 = vector.multi_reduction <add>, %13, %cst_5 [0] : vector<128x16xf32> to vector<16xf32>
    %16 = vector.shape_cast %15 : vector<16xf32> to vector<1x16xf32>
    %17 = arith.addf %14, %16 : vector<1x16xf32>
    %c0_6 = arith.constant 0 : index
    %c0_7 = arith.constant 0 : index
    %18 = vector.load %arg2[%c0_6, %c0_7] : memref<1x16xf32, #tpu.memory_space<vmem>>, vector<1x16xf32>
    tpu.vector_store %arg2[%c0_6, %c0_7], %17 {strides = array<i32>} : memref<1x16xf32, #tpu.memory_space<vmem>>, vector<1x16xf32>,
    %c0_8 = arith.constant 0 : index
    %c0_9 = arith.constant 0 : index
    %19 = vector.load %arg3[%c0_8, %c0_9] : memref<1x16xf32, #tpu.memory_space<vmem>>, vector<1x16xf32>
    %20 = arith.mulf %13, %13 : vector<128x16xf32>
    %cst_10 = arith.constant dense<0.000000e+00> : vector<16xf32>
    %21 = vector.multi_reduction <add>, %20, %cst_10 [0] : vector<128x16xf32> to vector<16xf32>
    %22 = vector.shape_cast %21 : vector<16xf32> to vector<1x16xf32>
    %23 = arith.addf %19, %22 : vector<1x16xf32>
    %c0_11 = arith.constant 0 : index
    %c0_12 = arith.constant 0 : index
    %24 = vector.load %arg3[%c0_11, %c0_12] : memref<1x16xf32, #tpu.memory_space<vmem>>, vector<1x16xf32>
    tpu.vector_store %arg3[%c0_11, %c0_12], %23 {strides = array<i32>} : memref<1x16xf32, #tpu.memory_space<vmem>>, vector<1x16xf32>,
    return
  }
  func.func @transform_0(%arg0: i32) -> (i32, i32) {
    %c0_i32 = arith.constant 0 : i32
    %c0_i32_0 = arith.constant 0 : i32
    return %arg0, %c0_i32 : i32, i32
  }
  func.func @transform_1(%arg0: i32) -> (i32, i32) {
    %c0_i32 = arith.constant 0 : i32
    %c0_i32_0 = arith.constant 0 : i32
    %c0_i32_1 = arith.constant 0 : i32
    return %c0_i32, %c0_i32_0 : i32, i32
  }
  func.func @transform_2(%arg0: i32) -> (i32, i32) {
    %c0_i32 = arith.constant 0 : i32
    %c0_i32_0 = arith.constant 0 : i32
    %c0_i32_1 = arith.constant 0 : i32
    return %c0_i32, %c0_i32_0 : i32, i32
  }
}

module attributes {stable_mosaic.version = 11 : i64} {
  func.func @_bn_apply_kernel(%arg0: i32, %arg1: memref<128x16xf32, #tpu.memory_space<vmem>>, %arg2: memref<1x16xf32, #tpu.memory_space<vmem>>, %arg3: memref<1x16xf32, #tpu.memory_space<vmem>>, %arg4: memref<128x16xf32, #tpu.memory_space<vmem>>) attributes {dimension_semantics = [#tpu.dimension_semantics<parallel>], iteration_bounds = array<i64: 1>, scalar_prefetch = 0 : i64, scratch_operands = 0 : i64, tpu.core_type = #tpu.core_type<tc>, window_params = [{transform_indices = @transform_0, window_bounds = array<i64: 128, 16>}, {pipeline_mode = #tpu.pipeline_mode<synchronous>, transform_indices = @transform_1, window_bounds = array<i64: 1, 16>}, {pipeline_mode = #tpu.pipeline_mode<synchronous>, transform_indices = @transform_2, window_bounds = array<i64: 1, 16>}, {transform_indices = @transform_3, window_bounds = array<i64: 128, 16>}]} {
    %c0 = arith.constant 0 : index
    %c0_0 = arith.constant 0 : index
    %0 = vector.load %arg1[%c0, %c0_0] : memref<128x16xf32, #tpu.memory_space<vmem>>, vector<128x16xf32>
    %c0_1 = arith.constant 0 : index
    %c0_2 = arith.constant 0 : index
    %1 = vector.load %arg2[%c0_1, %c0_2] : memref<1x16xf32, #tpu.memory_space<vmem>>, vector<1x16xf32>
    %2 = vector.broadcast %1 : vector<1x16xf32> to vector<128x16xf32>
    %3 = arith.mulf %0, %2 : vector<128x16xf32>
    %c0_3 = arith.constant 0 : index
    %c0_4 = arith.constant 0 : index
    %4 = vector.load %arg3[%c0_3, %c0_4] : memref<1x16xf32, #tpu.memory_space<vmem>>, vector<1x16xf32>
    %5 = vector.broadcast %4 : vector<1x16xf32> to vector<128x16xf32>
    %6 = arith.addf %3, %5 : vector<128x16xf32>
    %c0_5 = arith.constant 0 : index
    %c0_6 = arith.constant 0 : index
    %7 = vector.load %arg4[%c0_5, %c0_6] : memref<128x16xf32, #tpu.memory_space<vmem>>, vector<128x16xf32>
    tpu.vector_store %arg4[%c0_5, %c0_6], %6 {strides = array<i32>} : memref<128x16xf32, #tpu.memory_space<vmem>>, vector<128x16xf32>,
    return
  }
  func.func @transform_0(%arg0: i32) -> (i32, i32) {
    %c0_i32 = arith.constant 0 : i32
    %c0_i32_0 = arith.constant 0 : i32
    return %arg0, %c0_i32 : i32, i32
  }
  func.func @transform_1(%arg0: i32) -> (i32, i32) {
    %c0_i32 = arith.constant 0 : i32
    %c0_i32_0 = arith.constant 0 : i32
    %c0_i32_1 = arith.constant 0 : i32
    return %c0_i32, %c0_i32_0 : i32, i32
  }
  func.func @transform_2(%arg0: i32) -> (i32, i32) {
    %c0_i32 = arith.constant 0 : i32
    %c0_i32_0 = arith.constant 0 : i32
    %c0_i32_1 = arith.constant 0 : i32
    return %c0_i32, %c0_i32_0 : i32, i32
  }
  func.func @transform_3(%arg0: i32) -> (i32, i32) {
    %c0_i32 = arith.constant 0 : i32
    %c0_i32_0 = arith.constant 0 : i32
    return %arg0, %c0_i32 : i32, i32
  }
}

module attributes {stable_mosaic.version = 11 : i64} {
  func.func @_bn_apply_kernel(%arg0: i32, %arg1: memref<32x32xf32, #tpu.memory_space<vmem>>, %arg2: memref<1x32xf32, #tpu.memory_space<vmem>>, %arg3: memref<1x32xf32, #tpu.memory_space<vmem>>, %arg4: memref<32x32xf32, #tpu.memory_space<vmem>>) attributes {dimension_semantics = [#tpu.dimension_semantics<parallel>], iteration_bounds = array<i64: 1>, scalar_prefetch = 0 : i64, scratch_operands = 0 : i64, tpu.core_type = #tpu.core_type<tc>, window_params = [{transform_indices = @transform_0, window_bounds = array<i64: 32, 32>}, {pipeline_mode = #tpu.pipeline_mode<synchronous>, transform_indices = @transform_1, window_bounds = array<i64: 1, 32>}, {pipeline_mode = #tpu.pipeline_mode<synchronous>, transform_indices = @transform_2, window_bounds = array<i64: 1, 32>}, {transform_indices = @transform_3, window_bounds = array<i64: 32, 32>}]} {
    %c0 = arith.constant 0 : index
    %c0_0 = arith.constant 0 : index
    %0 = vector.load %arg1[%c0, %c0_0] : memref<32x32xf32, #tpu.memory_space<vmem>>, vector<32x32xf32>
    %c0_1 = arith.constant 0 : index
    %c0_2 = arith.constant 0 : index
    %1 = vector.load %arg2[%c0_1, %c0_2] : memref<1x32xf32, #tpu.memory_space<vmem>>, vector<1x32xf32>
    %2 = vector.broadcast %1 : vector<1x32xf32> to vector<32x32xf32>
    %3 = arith.mulf %0, %2 : vector<32x32xf32>
    %c0_3 = arith.constant 0 : index
    %c0_4 = arith.constant 0 : index
    %4 = vector.load %arg3[%c0_3, %c0_4] : memref<1x32xf32, #tpu.memory_space<vmem>>, vector<1x32xf32>
    %5 = vector.broadcast %4 : vector<1x32xf32> to vector<32x32xf32>
    %6 = arith.addf %3, %5 : vector<32x32xf32>
    %c0_5 = arith.constant 0 : index
    %c0_6 = arith.constant 0 : index
    %7 = vector.load %arg4[%c0_5, %c0_6] : memref<32x32xf32, #tpu.memory_space<vmem>>, vector<32x32xf32>
    tpu.vector_store %arg4[%c0_5, %c0_6], %6 {strides = array<i32>} : memref<32x32xf32, #tpu.memory_space<vmem>>, vector<32x32xf32>,
    return
  }
  func.func @transform_0(%arg0: i32) -> (i32, i32) {
    %c0_i32 = arith.constant 0 : i32
    %c0_i32_0 = arith.constant 0 : i32
    return %arg0, %c0_i32 : i32, i32
  }
  func.func @transform_1(%arg0: i32) -> (i32, i32) {
    %c0_i32 = arith.constant 0 : i32
    %c0_i32_0 = arith.constant 0 : i32
    %c0_i32_1 = arith.constant 0 : i32
    return %c0_i32, %c0_i32_0 : i32, i32
  }
  func.func @transform_2(%arg0: i32) -> (i32, i32) {
    %c0_i32 = arith.constant 0 : i32
    %c0_i32_0 = arith.constant 0 : i32
    %c0_i32_1 = arith.constant 0 : i32
    return %c0_i32, %c0_i32_0 : i32, i32
  }
  func.func @transform_3(%arg0: i32) -> (i32, i32) {
    %c0_i32 = arith.constant 0 : i32
    %c0_i32_0 = arith.constant 0 : i32
    return %arg0, %c0_i32 : i32, i32
  }
}

module attributes {stable_mosaic.version = 11 : i64} {
  func.func @_mm_kernel(%arg0: i32, %arg1: i32, %arg2: i32, %arg3: memref<32x256xbf16, #tpu.memory_space<vmem>>, %arg4: memref<256x32xbf16, #tpu.memory_space<vmem>>, %arg5: memref<1x32xf32, #tpu.memory_space<vmem>>, %arg6: memref<32x32xf32, #tpu.memory_space<vmem>>, %arg7: memref<32x32xf32, #tpu.memory_space<vmem>>) attributes {dimension_semantics = [#tpu.dimension_semantics<parallel>, #tpu.dimension_semantics<parallel>, #tpu.dimension_semantics<arbitrary>], iteration_bounds = array<i64: 1, 1, 1>, scalar_prefetch = 0 : i64, scratch_operands = 1 : i64, tpu.core_type = #tpu.core_type<tc>, window_params = [{transform_indices = @transform_0, window_bounds = array<i64: 32, 256>}, {transform_indices = @transform_1, window_bounds = array<i64: 256, 32>}, {transform_indices = @transform_2, window_bounds = array<i64: 1, 32>}, {transform_indices = @transform_3, window_bounds = array<i64: 32, 32>}]} {
    %c0_i32 = arith.constant 0 : i32
    %0 = arith.cmpi eq, %arg2, %c0_i32 : i32
    %1 = arith.extui %0 : i1 to i32
    %c0_i32_0 = arith.constant 0 : i32
    %2 = arith.cmpi ne, %1, %c0_i32_0 : i32
    scf.if %2 {
      %cst_12 = arith.constant 0.000000e+00 : f32
      %17 = vector.broadcast %cst_12 : f32 to vector<32x32xf32>
      %c0_13 = arith.constant 0 : index
      %c0_14 = arith.constant 0 : index
      %18 = vector.load %arg7[%c0_13, %c0_14] : memref<32x32xf32, #tpu.memory_space<vmem>>, vector<32x32xf32>
      tpu.vector_store %arg7[%c0_13, %c0_14], %17 {strides = array<i32>} : memref<32x32xf32, #tpu.memory_space<vmem>>, vector<32x32xf32>,
    } else {
    }
    %c0 = arith.constant 0 : index
    %c0_1 = arith.constant 0 : index
    %3 = vector.load %arg3[%c0, %c0_1] : memref<32x256xbf16, #tpu.memory_space<vmem>>, vector<32x256xbf16>
    %cst = arith.constant 0.000000e+00 : bf16
    %4 = vector.broadcast %cst : bf16 to vector<32x256xbf16>
    %5 = arith.cmpf oge, %3, %4 : vector<32x256xbf16>
    %cst_2 = arith.constant 2.001950e-01 : bf16
    %6 = vector.broadcast %cst_2 : bf16 to vector<32x256xbf16>
    %7 = arith.mulf %6, %3 : vector<32x256xbf16>
    %8 = arith.select %5, %3, %7 : vector<32x256xi1>, vector<32x256xbf16>
    %c0_3 = arith.constant 0 : index
    %c0_4 = arith.constant 0 : index
    %9 = vector.load %arg7[%c0_3, %c0_4] : memref<32x32xf32, #tpu.memory_space<vmem>>, vector<32x32xf32>
    %c0_5 = arith.constant 0 : index
    %c0_6 = arith.constant 0 : index
    %10 = vector.load %arg4[%c0_5, %c0_6] : memref<256x32xbf16, #tpu.memory_space<vmem>>, vector<256x32xbf16>
    %cst_7 = arith.constant dense<0.000000e+00> : vector<32x32xf32>
    %11 = tpu.matmul %8, %10, %cst_7 {dimension_numbers = #tpu.dot_dimension_numbers<[1], [0], [0], [1], [0, 0, 1, 1], [], []>} : vector<32x256xbf16>, vector<256x32xbf16>, vector<32x32xf32> -> vector<32x32xf32>
    %12 = arith.addf %9, %11 : vector<32x32xf32>
    %c0_8 = arith.constant 0 : index
    %c0_9 = arith.constant 0 : index
    %13 = vector.load %arg7[%c0_8, %c0_9] : memref<32x32xf32, #tpu.memory_space<vmem>>, vector<32x32xf32>
    tpu.vector_store %arg7[%c0_8, %c0_9], %12 {strides = array<i32>} : memref<32x32xf32, #tpu.memory_space<vmem>>, vector<32x32xf32>,
    %c0_i32_10 = arith.constant 0 : i32
    %14 = arith.cmpi eq, %arg2, %c0_i32_10 : i32
    %15 = arith.extui %14 : i1 to i32
    %c0_i32_11 = arith.constant 0 : i32
    %16 = arith.cmpi ne, %15, %c0_i32_11 : i32
    scf.if %16 {
      %c0_12 = arith.constant 0 : index
      %c0_13 = arith.constant 0 : index
      %17 = vector.load %arg7[%c0_12, %c0_13] : memref<32x32xf32, #tpu.memory_space<vmem>>, vector<32x32xf32>
      %c0_14 = arith.constant 0 : index
      %c0_15 = arith.constant 0 : index
      %18 = vector.load %arg5[%c0_14, %c0_15] : memref<1x32xf32, #tpu.memory_space<vmem>>, vector<1x32xf32>
      %19 = vector.broadcast %18 : vector<1x32xf32> to vector<32x32xf32>
      %20 = arith.addf %17, %19 : vector<32x32xf32>
      %c0_16 = arith.constant 0 : index
      %c0_17 = arith.constant 0 : index
      %21 = vector.load %arg6[%c0_16, %c0_17] : memref<32x32xf32, #tpu.memory_space<vmem>>, vector<32x32xf32>
      tpu.vector_store %arg6[%c0_16, %c0_17], %20 {strides = array<i32>} : memref<32x32xf32, #tpu.memory_space<vmem>>, vector<32x32xf32>,
    } else {
    }
    return
  }
  func.func @transform_0(%arg0: i32, %arg1: i32, %arg2: i32) -> (i32, i32) {
    %c0_i32 = arith.constant 0 : i32
    return %arg0, %arg2 : i32, i32
  }
  func.func @transform_1(%arg0: i32, %arg1: i32, %arg2: i32) -> (i32, i32) {
    %c0_i32 = arith.constant 0 : i32
    return %arg2, %arg1 : i32, i32
  }
  func.func @transform_2(%arg0: i32, %arg1: i32, %arg2: i32) -> (i32, i32) {
    %c0_i32 = arith.constant 0 : i32
    %c0_i32_0 = arith.constant 0 : i32
    return %c0_i32, %arg1 : i32, i32
  }
  func.func @transform_3(%arg0: i32, %arg1: i32, %arg2: i32) -> (i32, i32) {
    %c0_i32 = arith.constant 0 : i32
    return %arg0, %arg1 : i32, i32
  }
}

module attributes {stable_mosaic.version = 11 : i64} {
  func.func @_bn_stats_kernel(%arg0: i32, %arg1: memref<32x32xf32, #tpu.memory_space<vmem>>, %arg2: memref<1x32xf32, #tpu.memory_space<vmem>>, %arg3: memref<1x32xf32, #tpu.memory_space<vmem>>) attributes {dimension_semantics = [#tpu.dimension_semantics<arbitrary>], iteration_bounds = array<i64: 1>, scalar_prefetch = 0 : i64, scratch_operands = 0 : i64, tpu.core_type = #tpu.core_type<tc>, window_params = [{transform_indices = @transform_0, window_bounds = array<i64: 32, 32>}, {pipeline_mode = #tpu.pipeline_mode<synchronous>, transform_indices = @transform_1, window_bounds = array<i64: 1, 32>}, {pipeline_mode = #tpu.pipeline_mode<synchronous>, transform_indices = @transform_2, window_bounds = array<i64: 1, 32>}]} {
    %c0_i32 = arith.constant 0 : i32
    %0 = arith.cmpi eq, %arg0, %c0_i32 : i32
    %1 = arith.extui %0 : i1 to i32
    %c0_i32_0 = arith.constant 0 : i32
    %2 = arith.cmpi ne, %1, %c0_i32_0 : i32
    scf.if %2 {
      %cst_13 = arith.constant 0.000000e+00 : f32
      %25 = vector.broadcast %cst_13 : f32 to vector<1x32xf32>
      %c0_14 = arith.constant 0 : index
      %c0_15 = arith.constant 0 : index
      %26 = vector.load %arg2[%c0_14, %c0_15] : memref<1x32xf32, #tpu.memory_space<vmem>>, vector<1x32xf32>
      tpu.vector_store %arg2[%c0_14, %c0_15], %25 {strides = array<i32>} : memref<1x32xf32, #tpu.memory_space<vmem>>, vector<1x32xf32>,
      %cst_16 = arith.constant 0.000000e+00 : f32
      %27 = vector.broadcast %cst_16 : f32 to vector<1x32xf32>
      %c0_17 = arith.constant 0 : index
      %c0_18 = arith.constant 0 : index
      %28 = vector.load %arg3[%c0_17, %c0_18] : memref<1x32xf32, #tpu.memory_space<vmem>>, vector<1x32xf32>
      tpu.vector_store %arg3[%c0_17, %c0_18], %27 {strides = array<i32>} : memref<1x32xf32, #tpu.memory_space<vmem>>, vector<1x32xf32>,
    } else {
    }
    %c0 = arith.constant 0 : index
    %c0_1 = arith.constant 0 : index
    %3 = vector.load %arg1[%c0, %c0_1] : memref<32x32xf32, #tpu.memory_space<vmem>>, vector<32x32xf32>
    %4 = tpu.iota {dimensions = array<i32: 0>} : vector<32x1xi32>
    %c32_i32 = arith.constant 32 : i32
    %5 = arith.muli %arg0, %c32_i32 : i32
    %6 = vector.broadcast %5 : i32 to vector<32x1xi32>
    %7 = arith.addi %4, %6 : vector<32x1xi32>
    %c32_i32_2 = arith.constant 32 : i32
    %8 = vector.broadcast %c32_i32_2 : i32 to vector<32x1xi32>
    %9 = arith.cmpi slt, %7, %8 : vector<32x1xi32>
    %cst = arith.constant 0.000000e+00 : f32
    %10 = vector.shape_cast %9 : vector<32x1xi1> to vector<32x1xi1>
    %11 = vector.broadcast %10 : vector<32x1xi1> to vector<32x32xi1>
    %12 = vector.broadcast %cst : f32 to vector<32x32xf32>
    %13 = arith.select %11, %3, %12 : vector<32x32xi1>, vector<32x32xf32>
    %c0_3 = arith.constant 0 : index
    %c0_4 = arith.constant 0 : index
    %14 = vector.load %arg2[%c0_3, %c0_4] : memref<1x32xf32, #tpu.memory_space<vmem>>, vector<1x32xf32>
    %cst_5 = arith.constant dense<0.000000e+00> : vector<32xf32>
    %15 = vector.multi_reduction <add>, %13, %cst_5 [0] : vector<32x32xf32> to vector<32xf32>
    %16 = vector.shape_cast %15 : vector<32xf32> to vector<1x32xf32>
    %17 = arith.addf %14, %16 : vector<1x32xf32>
    %c0_6 = arith.constant 0 : index
    %c0_7 = arith.constant 0 : index
    %18 = vector.load %arg2[%c0_6, %c0_7] : memref<1x32xf32, #tpu.memory_space<vmem>>, vector<1x32xf32>
    tpu.vector_store %arg2[%c0_6, %c0_7], %17 {strides = array<i32>} : memref<1x32xf32, #tpu.memory_space<vmem>>, vector<1x32xf32>,
    %c0_8 = arith.constant 0 : index
    %c0_9 = arith.constant 0 : index
    %19 = vector.load %arg3[%c0_8, %c0_9] : memref<1x32xf32, #tpu.memory_space<vmem>>, vector<1x32xf32>
    %20 = arith.mulf %13, %13 : vector<32x32xf32>
    %cst_10 = arith.constant dense<0.000000e+00> : vector<32xf32>
    %21 = vector.multi_reduction <add>, %20, %cst_10 [0] : vector<32x32xf32> to vector<32xf32>
    %22 = vector.shape_cast %21 : vector<32xf32> to vector<1x32xf32>
    %23 = arith.addf %19, %22 : vector<1x32xf32>
    %c0_11 = arith.constant 0 : index
    %c0_12 = arith.constant 0 : index
    %24 = vector.load %arg3[%c0_11, %c0_12] : memref<1x32xf32, #tpu.memory_space<vmem>>, vector<1x32xf32>
    tpu.vector_store %arg3[%c0_11, %c0_12], %23 {strides = array<i32>} : memref<1x32xf32, #tpu.memory_space<vmem>>, vector<1x32xf32>,
    return
  }
  func.func @transform_0(%arg0: i32) -> (i32, i32) {
    %c0_i32 = arith.constant 0 : i32
    %c0_i32_0 = arith.constant 0 : i32
    return %arg0, %c0_i32 : i32, i32
  }
  func.func @transform_1(%arg0: i32) -> (i32, i32) {
    %c0_i32 = arith.constant 0 : i32
    %c0_i32_0 = arith.constant 0 : i32
    %c0_i32_1 = arith.constant 0 : i32
    return %c0_i32, %c0_i32_0 : i32, i32
  }
  func.func @transform_2(%arg0: i32) -> (i32, i32) {
    %c0_i32 = arith.constant 0 : i32
    %c0_i32_0 = arith.constant 0 : i32
    %c0_i32_1 = arith.constant 0 : i32
    return %c0_i32, %c0_i32_0 : i32, i32
  }
}

module attributes {stable_mosaic.version = 11 : i64} {
  func.func @_bn_apply_kernel(%arg0: i32, %arg1: memref<8x64xf32, #tpu.memory_space<vmem>>, %arg2: memref<1x64xf32, #tpu.memory_space<vmem>>, %arg3: memref<1x64xf32, #tpu.memory_space<vmem>>, %arg4: memref<8x64xf32, #tpu.memory_space<vmem>>) attributes {dimension_semantics = [#tpu.dimension_semantics<parallel>], iteration_bounds = array<i64: 1>, scalar_prefetch = 0 : i64, scratch_operands = 0 : i64, tpu.core_type = #tpu.core_type<tc>, window_params = [{transform_indices = @transform_0, window_bounds = array<i64: 8, 64>}, {pipeline_mode = #tpu.pipeline_mode<synchronous>, transform_indices = @transform_1, window_bounds = array<i64: 1, 64>}, {pipeline_mode = #tpu.pipeline_mode<synchronous>, transform_indices = @transform_2, window_bounds = array<i64: 1, 64>}, {transform_indices = @transform_3, window_bounds = array<i64: 8, 64>}]} {
    %c0 = arith.constant 0 : index
    %c0_0 = arith.constant 0 : index
    %0 = vector.load %arg1[%c0, %c0_0] : memref<8x64xf32, #tpu.memory_space<vmem>>, vector<8x64xf32>
    %c0_1 = arith.constant 0 : index
    %c0_2 = arith.constant 0 : index
    %1 = vector.load %arg2[%c0_1, %c0_2] : memref<1x64xf32, #tpu.memory_space<vmem>>, vector<1x64xf32>
    %2 = vector.broadcast %1 : vector<1x64xf32> to vector<8x64xf32>
    %3 = arith.mulf %0, %2 : vector<8x64xf32>
    %c0_3 = arith.constant 0 : index
    %c0_4 = arith.constant 0 : index
    %4 = vector.load %arg3[%c0_3, %c0_4] : memref<1x64xf32, #tpu.memory_space<vmem>>, vector<1x64xf32>
    %5 = vector.broadcast %4 : vector<1x64xf32> to vector<8x64xf32>
    %6 = arith.addf %3, %5 : vector<8x64xf32>
    %c0_5 = arith.constant 0 : index
    %c0_6 = arith.constant 0 : index
    %7 = vector.load %arg4[%c0_5, %c0_6] : memref<8x64xf32, #tpu.memory_space<vmem>>, vector<8x64xf32>
    tpu.vector_store %arg4[%c0_5, %c0_6], %6 {strides = array<i32>} : memref<8x64xf32, #tpu.memory_space<vmem>>, vector<8x64xf32>,
    return
  }
  func.func @transform_0(%arg0: i32) -> (i32, i32) {
    %c0_i32 = arith.constant 0 : i32
    %c0_i32_0 = arith.constant 0 : i32
    return %arg0, %c0_i32 : i32, i32
  }
  func.func @transform_1(%arg0: i32) -> (i32, i32) {
    %c0_i32 = arith.constant 0 : i32
    %c0_i32_0 = arith.constant 0 : i32
    %c0_i32_1 = arith.constant 0 : i32
    return %c0_i32, %c0_i32_0 : i32, i32
  }
  func.func @transform_2(%arg0: i32) -> (i32, i32) {
    %c0_i32 = arith.constant 0 : i32
    %c0_i32_0 = arith.constant 0 : i32
    %c0_i32_1 = arith.constant 0 : i32
    return %c0_i32, %c0_i32_0 : i32, i32
  }
  func.func @transform_3(%arg0: i32) -> (i32, i32) {
    %c0_i32 = arith.constant 0 : i32
    %c0_i32_0 = arith.constant 0 : i32
    return %arg0, %c0_i32 : i32, i32
  }
}

module attributes {stable_mosaic.version = 11 : i64} {
  func.func @_mm_kernel(%arg0: i32, %arg1: i32, %arg2: i32, %arg3: memref<8x512xbf16, #tpu.memory_space<vmem>>, %arg4: memref<512x64xbf16, #tpu.memory_space<vmem>>, %arg5: memref<1x64xf32, #tpu.memory_space<vmem>>, %arg6: memref<8x64xf32, #tpu.memory_space<vmem>>, %arg7: memref<8x64xf32, #tpu.memory_space<vmem>>) attributes {dimension_semantics = [#tpu.dimension_semantics<parallel>, #tpu.dimension_semantics<parallel>, #tpu.dimension_semantics<arbitrary>], iteration_bounds = array<i64: 1, 1, 1>, scalar_prefetch = 0 : i64, scratch_operands = 1 : i64, tpu.core_type = #tpu.core_type<tc>, window_params = [{transform_indices = @transform_0, window_bounds = array<i64: 8, 512>}, {transform_indices = @transform_1, window_bounds = array<i64: 512, 64>}, {transform_indices = @transform_2, window_bounds = array<i64: 1, 64>}, {transform_indices = @transform_3, window_bounds = array<i64: 8, 64>}]} {
    %c0_i32 = arith.constant 0 : i32
    %0 = arith.cmpi eq, %arg2, %c0_i32 : i32
    %1 = arith.extui %0 : i1 to i32
    %c0_i32_0 = arith.constant 0 : i32
    %2 = arith.cmpi ne, %1, %c0_i32_0 : i32
    scf.if %2 {
      %cst_12 = arith.constant 0.000000e+00 : f32
      %17 = vector.broadcast %cst_12 : f32 to vector<8x64xf32>
      %c0_13 = arith.constant 0 : index
      %c0_14 = arith.constant 0 : index
      %18 = vector.load %arg7[%c0_13, %c0_14] : memref<8x64xf32, #tpu.memory_space<vmem>>, vector<8x64xf32>
      tpu.vector_store %arg7[%c0_13, %c0_14], %17 {strides = array<i32>} : memref<8x64xf32, #tpu.memory_space<vmem>>, vector<8x64xf32>,
    } else {
    }
    %c0 = arith.constant 0 : index
    %c0_1 = arith.constant 0 : index
    %3 = vector.load %arg3[%c0, %c0_1] : memref<8x512xbf16, #tpu.memory_space<vmem>>, vector<8x512xbf16>
    %cst = arith.constant 0.000000e+00 : bf16
    %4 = vector.broadcast %cst : bf16 to vector<8x512xbf16>
    %5 = arith.cmpf oge, %3, %4 : vector<8x512xbf16>
    %cst_2 = arith.constant 2.001950e-01 : bf16
    %6 = vector.broadcast %cst_2 : bf16 to vector<8x512xbf16>
    %7 = arith.mulf %6, %3 : vector<8x512xbf16>
    %8 = arith.select %5, %3, %7 : vector<8x512xi1>, vector<8x512xbf16>
    %c0_3 = arith.constant 0 : index
    %c0_4 = arith.constant 0 : index
    %9 = vector.load %arg7[%c0_3, %c0_4] : memref<8x64xf32, #tpu.memory_space<vmem>>, vector<8x64xf32>
    %c0_5 = arith.constant 0 : index
    %c0_6 = arith.constant 0 : index
    %10 = vector.load %arg4[%c0_5, %c0_6] : memref<512x64xbf16, #tpu.memory_space<vmem>>, vector<512x64xbf16>
    %cst_7 = arith.constant dense<0.000000e+00> : vector<8x64xf32>
    %11 = tpu.matmul %8, %10, %cst_7 {dimension_numbers = #tpu.dot_dimension_numbers<[1], [0], [0], [1], [0, 0, 1, 1], [], []>} : vector<8x512xbf16>, vector<512x64xbf16>, vector<8x64xf32> -> vector<8x64xf32>
    %12 = arith.addf %9, %11 : vector<8x64xf32>
    %c0_8 = arith.constant 0 : index
    %c0_9 = arith.constant 0 : index
    %13 = vector.load %arg7[%c0_8, %c0_9] : memref<8x64xf32, #tpu.memory_space<vmem>>, vector<8x64xf32>
    tpu.vector_store %arg7[%c0_8, %c0_9], %12 {strides = array<i32>} : memref<8x64xf32, #tpu.memory_space<vmem>>, vector<8x64xf32>,
    %c0_i32_10 = arith.constant 0 : i32
    %14 = arith.cmpi eq, %arg2, %c0_i32_10 : i32
    %15 = arith.extui %14 : i1 to i32
    %c0_i32_11 = arith.constant 0 : i32
    %16 = arith.cmpi ne, %15, %c0_i32_11 : i32
    scf.if %16 {
      %c0_12 = arith.constant 0 : index
      %c0_13 = arith.constant 0 : index
      %17 = vector.load %arg7[%c0_12, %c0_13] : memref<8x64xf32, #tpu.memory_space<vmem>>, vector<8x64xf32>
      %c0_14 = arith.constant 0 : index
      %c0_15 = arith.constant 0 : index
      %18 = vector.load %arg5[%c0_14, %c0_15] : memref<1x64xf32, #tpu.memory_space<vmem>>, vector<1x64xf32>
      %19 = vector.broadcast %18 : vector<1x64xf32> to vector<8x64xf32>
      %20 = arith.addf %17, %19 : vector<8x64xf32>
      %c0_16 = arith.constant 0 : index
      %c0_17 = arith.constant 0 : index
      %21 = vector.load %arg6[%c0_16, %c0_17] : memref<8x64xf32, #tpu.memory_space<vmem>>, vector<8x64xf32>
      tpu.vector_store %arg6[%c0_16, %c0_17], %20 {strides = array<i32>} : memref<8x64xf32, #tpu.memory_space<vmem>>, vector<8x64xf32>,
    } else {
    }
    return
  }
  func.func @transform_0(%arg0: i32, %arg1: i32, %arg2: i32) -> (i32, i32) {
    %c0_i32 = arith.constant 0 : i32
    return %arg0, %arg2 : i32, i32
  }
  func.func @transform_1(%arg0: i32, %arg1: i32, %arg2: i32) -> (i32, i32) {
    %c0_i32 = arith.constant 0 : i32
    return %arg2, %arg1 : i32, i32
  }
  func.func @transform_2(%arg0: i32, %arg1: i32, %arg2: i32) -> (i32, i32) {
    %c0_i32 = arith.constant 0 : i32
    %c0_i32_0 = arith.constant 0 : i32
    return %c0_i32, %arg1 : i32, i32
  }
  func.func @transform_3(%arg0: i32, %arg1: i32, %arg2: i32) -> (i32, i32) {
    %c0_i32 = arith.constant 0 : i32
    return %arg0, %arg1 : i32, i32
  }
}

module attributes {stable_mosaic.version = 11 : i64} {
  func.func @_bn_stats_kernel(%arg0: i32, %arg1: memref<8x64xf32, #tpu.memory_space<vmem>>, %arg2: memref<1x64xf32, #tpu.memory_space<vmem>>, %arg3: memref<1x64xf32, #tpu.memory_space<vmem>>) attributes {dimension_semantics = [#tpu.dimension_semantics<arbitrary>], iteration_bounds = array<i64: 1>, scalar_prefetch = 0 : i64, scratch_operands = 0 : i64, tpu.core_type = #tpu.core_type<tc>, window_params = [{transform_indices = @transform_0, window_bounds = array<i64: 8, 64>}, {pipeline_mode = #tpu.pipeline_mode<synchronous>, transform_indices = @transform_1, window_bounds = array<i64: 1, 64>}, {pipeline_mode = #tpu.pipeline_mode<synchronous>, transform_indices = @transform_2, window_bounds = array<i64: 1, 64>}]} {
    %c0_i32 = arith.constant 0 : i32
    %0 = arith.cmpi eq, %arg0, %c0_i32 : i32
    %1 = arith.extui %0 : i1 to i32
    %c0_i32_0 = arith.constant 0 : i32
    %2 = arith.cmpi ne, %1, %c0_i32_0 : i32
    scf.if %2 {
      %cst_13 = arith.constant 0.000000e+00 : f32
      %25 = vector.broadcast %cst_13 : f32 to vector<1x64xf32>
      %c0_14 = arith.constant 0 : index
      %c0_15 = arith.constant 0 : index
      %26 = vector.load %arg2[%c0_14, %c0_15] : memref<1x64xf32, #tpu.memory_space<vmem>>, vector<1x64xf32>
      tpu.vector_store %arg2[%c0_14, %c0_15], %25 {strides = array<i32>} : memref<1x64xf32, #tpu.memory_space<vmem>>, vector<1x64xf32>,
      %cst_16 = arith.constant 0.000000e+00 : f32
      %27 = vector.broadcast %cst_16 : f32 to vector<1x64xf32>
      %c0_17 = arith.constant 0 : index
      %c0_18 = arith.constant 0 : index
      %28 = vector.load %arg3[%c0_17, %c0_18] : memref<1x64xf32, #tpu.memory_space<vmem>>, vector<1x64xf32>
      tpu.vector_store %arg3[%c0_17, %c0_18], %27 {strides = array<i32>} : memref<1x64xf32, #tpu.memory_space<vmem>>, vector<1x64xf32>,
    } else {
    }
    %c0 = arith.constant 0 : index
    %c0_1 = arith.constant 0 : index
    %3 = vector.load %arg1[%c0, %c0_1] : memref<8x64xf32, #tpu.memory_space<vmem>>, vector<8x64xf32>
    %4 = tpu.iota {dimensions = array<i32: 0>} : vector<8x1xi32>
    %c8_i32 = arith.constant 8 : i32
    %5 = arith.muli %arg0, %c8_i32 : i32
    %6 = vector.broadcast %5 : i32 to vector<8x1xi32>
    %7 = arith.addi %4, %6 : vector<8x1xi32>
    %c8_i32_2 = arith.constant 8 : i32
    %8 = vector.broadcast %c8_i32_2 : i32 to vector<8x1xi32>
    %9 = arith.cmpi slt, %7, %8 : vector<8x1xi32>
    %cst = arith.constant 0.000000e+00 : f32
    %10 = vector.shape_cast %9 : vector<8x1xi1> to vector<8x1xi1>
    %11 = vector.broadcast %10 : vector<8x1xi1> to vector<8x64xi1>
    %12 = vector.broadcast %cst : f32 to vector<8x64xf32>
    %13 = arith.select %11, %3, %12 : vector<8x64xi1>, vector<8x64xf32>
    %c0_3 = arith.constant 0 : index
    %c0_4 = arith.constant 0 : index
    %14 = vector.load %arg2[%c0_3, %c0_4] : memref<1x64xf32, #tpu.memory_space<vmem>>, vector<1x64xf32>
    %cst_5 = arith.constant dense<0.000000e+00> : vector<64xf32>
    %15 = vector.multi_reduction <add>, %13, %cst_5 [0] : vector<8x64xf32> to vector<64xf32>
    %16 = vector.shape_cast %15 : vector<64xf32> to vector<1x64xf32>
    %17 = arith.addf %14, %16 : vector<1x64xf32>
    %c0_6 = arith.constant 0 : index
    %c0_7 = arith.constant 0 : index
    %18 = vector.load %arg2[%c0_6, %c0_7] : memref<1x64xf32, #tpu.memory_space<vmem>>, vector<1x64xf32>
    tpu.vector_store %arg2[%c0_6, %c0_7], %17 {strides = array<i32>} : memref<1x64xf32, #tpu.memory_space<vmem>>, vector<1x64xf32>,
    %c0_8 = arith.constant 0 : index
    %c0_9 = arith.constant 0 : index
    %19 = vector.load %arg3[%c0_8, %c0_9] : memref<1x64xf32, #tpu.memory_space<vmem>>, vector<1x64xf32>
    %20 = arith.mulf %13, %13 : vector<8x64xf32>
    %cst_10 = arith.constant dense<0.000000e+00> : vector<64xf32>
    %21 = vector.multi_reduction <add>, %20, %cst_10 [0] : vector<8x64xf32> to vector<64xf32>
    %22 = vector.shape_cast %21 : vector<64xf32> to vector<1x64xf32>
    %23 = arith.addf %19, %22 : vector<1x64xf32>
    %c0_11 = arith.constant 0 : index
    %c0_12 = arith.constant 0 : index
    %24 = vector.load %arg3[%c0_11, %c0_12] : memref<1x64xf32, #tpu.memory_space<vmem>>, vector<1x64xf32>
    tpu.vector_store %arg3[%c0_11, %c0_12], %23 {strides = array<i32>} : memref<1x64xf32, #tpu.memory_space<vmem>>, vector<1x64xf32>,
    return
  }
  func.func @transform_0(%arg0: i32) -> (i32, i32) {
    %c0_i32 = arith.constant 0 : i32
    %c0_i32_0 = arith.constant 0 : i32
    return %arg0, %c0_i32 : i32, i32
  }
  func.func @transform_1(%arg0: i32) -> (i32, i32) {
    %c0_i32 = arith.constant 0 : i32
    %c0_i32_0 = arith.constant 0 : i32
    %c0_i32_1 = arith.constant 0 : i32
    return %c0_i32, %c0_i32_0 : i32, i32
  }
  func.func @transform_2(%arg0: i32) -> (i32, i32) {
    %c0_i32 = arith.constant 0 : i32
    %c0_i32_0 = arith.constant 0 : i32
    %c0_i32_1 = arith.constant 0 : i32
    return %c0_i32, %c0_i32_0 : i32, i32
  }
}

module attributes {stable_mosaic.version = 11 : i64} {
  func.func @_mm_kernel(%arg0: i32, %arg1: i32, %arg2: i32, %arg3: memref<8x512xbf16, #tpu.memory_space<vmem>>, %arg4: memref<512x64xbf16, #tpu.memory_space<vmem>>, %arg5: memref<1x64xf32, #tpu.memory_space<vmem>>, %arg6: memref<8x64xf32, #tpu.memory_space<vmem>>, %arg7: memref<8x64xf32, #tpu.memory_space<vmem>>) attributes {dimension_semantics = [#tpu.dimension_semantics<parallel>, #tpu.dimension_semantics<parallel>, #tpu.dimension_semantics<arbitrary>], iteration_bounds = array<i64: 1, 1, 2>, scalar_prefetch = 0 : i64, scratch_operands = 1 : i64, tpu.core_type = #tpu.core_type<tc>, window_params = [{transform_indices = @transform_0, window_bounds = array<i64: 8, 512>}, {transform_indices = @transform_1, window_bounds = array<i64: 512, 64>}, {transform_indices = @transform_2, window_bounds = array<i64: 1, 64>}, {transform_indices = @transform_3, window_bounds = array<i64: 8, 64>}]} {
    %c0_i32 = arith.constant 0 : i32
    %0 = arith.cmpi eq, %arg2, %c0_i32 : i32
    %1 = arith.extui %0 : i1 to i32
    %c0_i32_0 = arith.constant 0 : i32
    %2 = arith.cmpi ne, %1, %c0_i32_0 : i32
    scf.if %2 {
      %cst_11 = arith.constant 0.000000e+00 : f32
      %17 = vector.broadcast %cst_11 : f32 to vector<8x64xf32>
      %c0_12 = arith.constant 0 : index
      %c0_13 = arith.constant 0 : index
      %18 = vector.load %arg7[%c0_12, %c0_13] : memref<8x64xf32, #tpu.memory_space<vmem>>, vector<8x64xf32>
      tpu.vector_store %arg7[%c0_12, %c0_13], %17 {strides = array<i32>} : memref<8x64xf32, #tpu.memory_space<vmem>>, vector<8x64xf32>,
    } else {
    }
    %c0 = arith.constant 0 : index
    %c0_1 = arith.constant 0 : index
    %3 = vector.load %arg3[%c0, %c0_1] : memref<8x512xbf16, #tpu.memory_space<vmem>>, vector<8x512xbf16>
    %cst = arith.constant 0.000000e+00 : bf16
    %4 = vector.broadcast %cst : bf16 to vector<8x512xbf16>
    %5 = arith.cmpf oge, %3, %4 : vector<8x512xbf16>
    %cst_2 = arith.constant 2.001950e-01 : bf16
    %6 = vector.broadcast %cst_2 : bf16 to vector<8x512xbf16>
    %7 = arith.mulf %6, %3 : vector<8x512xbf16>
    %8 = arith.select %5, %3, %7 : vector<8x512xi1>, vector<8x512xbf16>
    %c0_3 = arith.constant 0 : index
    %c0_4 = arith.constant 0 : index
    %9 = vector.load %arg7[%c0_3, %c0_4] : memref<8x64xf32, #tpu.memory_space<vmem>>, vector<8x64xf32>
    %c0_5 = arith.constant 0 : index
    %c0_6 = arith.constant 0 : index
    %10 = vector.load %arg4[%c0_5, %c0_6] : memref<512x64xbf16, #tpu.memory_space<vmem>>, vector<512x64xbf16>
    %cst_7 = arith.constant dense<0.000000e+00> : vector<8x64xf32>
    %11 = tpu.matmul %8, %10, %cst_7 {dimension_numbers = #tpu.dot_dimension_numbers<[1], [0], [0], [1], [0, 0, 1, 1], [], []>} : vector<8x512xbf16>, vector<512x64xbf16>, vector<8x64xf32> -> vector<8x64xf32>
    %12 = arith.addf %9, %11 : vector<8x64xf32>
    %c0_8 = arith.constant 0 : index
    %c0_9 = arith.constant 0 : index
    %13 = vector.load %arg7[%c0_8, %c0_9] : memref<8x64xf32, #tpu.memory_space<vmem>>, vector<8x64xf32>
    tpu.vector_store %arg7[%c0_8, %c0_9], %12 {strides = array<i32>} : memref<8x64xf32, #tpu.memory_space<vmem>>, vector<8x64xf32>,
    %c1_i32 = arith.constant 1 : i32
    %14 = arith.cmpi eq, %arg2, %c1_i32 : i32
    %15 = arith.extui %14 : i1 to i32
    %c0_i32_10 = arith.constant 0 : i32
    %16 = arith.cmpi ne, %15, %c0_i32_10 : i32
    scf.if %16 {
      %c0_11 = arith.constant 0 : index
      %c0_12 = arith.constant 0 : index
      %17 = vector.load %arg7[%c0_11, %c0_12] : memref<8x64xf32, #tpu.memory_space<vmem>>, vector<8x64xf32>
      %c0_13 = arith.constant 0 : index
      %c0_14 = arith.constant 0 : index
      %18 = vector.load %arg5[%c0_13, %c0_14] : memref<1x64xf32, #tpu.memory_space<vmem>>, vector<1x64xf32>
      %19 = vector.broadcast %18 : vector<1x64xf32> to vector<8x64xf32>
      %20 = arith.addf %17, %19 : vector<8x64xf32>
      %cst_15 = arith.constant 0.000000e+00 : f32
      %21 = vector.broadcast %cst_15 : f32 to vector<8x64xf32>
      %22 = arith.maximumf %20, %21 : vector<8x64xf32>
      %c0_16 = arith.constant 0 : index
      %c0_17 = arith.constant 0 : index
      %23 = vector.load %arg6[%c0_16, %c0_17] : memref<8x64xf32, #tpu.memory_space<vmem>>, vector<8x64xf32>
      tpu.vector_store %arg6[%c0_16, %c0_17], %22 {strides = array<i32>} : memref<8x64xf32, #tpu.memory_space<vmem>>, vector<8x64xf32>,
    } else {
    }
    return
  }
  func.func @transform_0(%arg0: i32, %arg1: i32, %arg2: i32) -> (i32, i32) {
    %c0_i32 = arith.constant 0 : i32
    return %arg0, %arg2 : i32, i32
  }
  func.func @transform_1(%arg0: i32, %arg1: i32, %arg2: i32) -> (i32, i32) {
    %c0_i32 = arith.constant 0 : i32
    return %arg2, %arg1 : i32, i32
  }
  func.func @transform_2(%arg0: i32, %arg1: i32, %arg2: i32) -> (i32, i32) {
    %c0_i32 = arith.constant 0 : i32
    %c0_i32_0 = arith.constant 0 : i32
    return %c0_i32, %arg1 : i32, i32
  }
  func.func @transform_3(%arg0: i32, %arg1: i32, %arg2: i32) -> (i32, i32) {
    %c0_i32 = arith.constant 0 : i32
    return %arg0, %arg1 : i32, i32
  }
}

module attributes {stable_mosaic.version = 11 : i64} {
  func.func @_mm_kernel(%arg0: i32, %arg1: i32, %arg2: i32, %arg3: memref<8x576xbf16, #tpu.memory_space<vmem>>, %arg4: memref<576x256xbf16, #tpu.memory_space<vmem>>, %arg5: memref<1x256xf32, #tpu.memory_space<vmem>>, %arg6: memref<8x256xf32, #tpu.memory_space<vmem>>, %arg7: memref<8x256xf32, #tpu.memory_space<vmem>>) attributes {dimension_semantics = [#tpu.dimension_semantics<parallel>, #tpu.dimension_semantics<parallel>, #tpu.dimension_semantics<arbitrary>], iteration_bounds = array<i64: 1, 1, 1>, scalar_prefetch = 0 : i64, scratch_operands = 1 : i64, tpu.core_type = #tpu.core_type<tc>, window_params = [{transform_indices = @transform_0, window_bounds = array<i64: 8, 576>}, {transform_indices = @transform_1, window_bounds = array<i64: 576, 256>}, {transform_indices = @transform_2, window_bounds = array<i64: 1, 256>}, {transform_indices = @transform_3, window_bounds = array<i64: 8, 256>}]} {
    %c0_i32 = arith.constant 0 : i32
    %0 = arith.cmpi eq, %arg2, %c0_i32 : i32
    %1 = arith.extui %0 : i1 to i32
    %c0_i32_0 = arith.constant 0 : i32
    %2 = arith.cmpi ne, %1, %c0_i32_0 : i32
    scf.if %2 {
      %cst_10 = arith.constant 0.000000e+00 : f32
      %12 = vector.broadcast %cst_10 : f32 to vector<8x256xf32>
      %c0_11 = arith.constant 0 : index
      %c0_12 = arith.constant 0 : index
      %13 = vector.load %arg7[%c0_11, %c0_12] : memref<8x256xf32, #tpu.memory_space<vmem>>, vector<8x256xf32>
      tpu.vector_store %arg7[%c0_11, %c0_12], %12 {strides = array<i32>} : memref<8x256xf32, #tpu.memory_space<vmem>>, vector<8x256xf32>,
    } else {
    }
    %c0 = arith.constant 0 : index
    %c0_1 = arith.constant 0 : index
    %3 = vector.load %arg3[%c0, %c0_1] : memref<8x576xbf16, #tpu.memory_space<vmem>>, vector<8x576xbf16>
    %c0_2 = arith.constant 0 : index
    %c0_3 = arith.constant 0 : index
    %4 = vector.load %arg7[%c0_2, %c0_3] : memref<8x256xf32, #tpu.memory_space<vmem>>, vector<8x256xf32>
    %c0_4 = arith.constant 0 : index
    %c0_5 = arith.constant 0 : index
    %5 = vector.load %arg4[%c0_4, %c0_5] : memref<576x256xbf16, #tpu.memory_space<vmem>>, vector<576x256xbf16>
    %cst = arith.constant dense<0.000000e+00> : vector<8x256xf32>
    %6 = tpu.matmul %3, %5, %cst {dimension_numbers = #tpu.dot_dimension_numbers<[1], [0], [0], [1], [0, 0, 1, 1], [], []>} : vector<8x576xbf16>, vector<576x256xbf16>, vector<8x256xf32> -> vector<8x256xf32>
    %7 = arith.addf %4, %6 : vector<8x256xf32>
    %c0_6 = arith.constant 0 : index
    %c0_7 = arith.constant 0 : index
    %8 = vector.load %arg7[%c0_6, %c0_7] : memref<8x256xf32, #tpu.memory_space<vmem>>, vector<8x256xf32>
    tpu.vector_store %arg7[%c0_6, %c0_7], %7 {strides = array<i32>} : memref<8x256xf32, #tpu.memory_space<vmem>>, vector<8x256xf32>,
    %c0_i32_8 = arith.constant 0 : i32
    %9 = arith.cmpi eq, %arg2, %c0_i32_8 : i32
    %10 = arith.extui %9 : i1 to i32
    %c0_i32_9 = arith.constant 0 : i32
    %11 = arith.cmpi ne, %10, %c0_i32_9 : i32
    scf.if %11 {
      %c0_10 = arith.constant 0 : index
      %c0_11 = arith.constant 0 : index
      %12 = vector.load %arg7[%c0_10, %c0_11] : memref<8x256xf32, #tpu.memory_space<vmem>>, vector<8x256xf32>
      %c0_12 = arith.constant 0 : index
      %c0_13 = arith.constant 0 : index
      %13 = vector.load %arg5[%c0_12, %c0_13] : memref<1x256xf32, #tpu.memory_space<vmem>>, vector<1x256xf32>
      %14 = vector.broadcast %13 : vector<1x256xf32> to vector<8x256xf32>
      %15 = arith.addf %12, %14 : vector<8x256xf32>
      %c0_14 = arith.constant 0 : index
      %c0_15 = arith.constant 0 : index
      %16 = vector.load %arg6[%c0_14, %c0_15] : memref<8x256xf32, #tpu.memory_space<vmem>>, vector<8x256xf32>
      tpu.vector_store %arg6[%c0_14, %c0_15], %15 {strides = array<i32>} : memref<8x256xf32, #tpu.memory_space<vmem>>, vector<8x256xf32>,
    } else {
    }
    return
  }
  func.func @transform_0(%arg0: i32, %arg1: i32, %arg2: i32) -> (i32, i32) {
    %c0_i32 = arith.constant 0 : i32
    return %arg0, %arg2 : i32, i32
  }
  func.func @transform_1(%arg0: i32, %arg1: i32, %arg2: i32) -> (i32, i32) {
    %c0_i32 = arith.constant 0 : i32
    return %arg2, %arg1 : i32, i32
  }
  func.func @transform_2(%arg0: i32, %arg1: i32, %arg2: i32) -> (i32, i32) {
    %c0_i32 = arith.constant 0 : i32
    %c0_i32_0 = arith.constant 0 : i32
    return %c0_i32, %arg1 : i32, i32
  }
  func.func @transform_3(%arg0: i32, %arg1: i32, %arg2: i32) -> (i32, i32) {
    %c0_i32 = arith.constant 0 : i32
    return %arg0, %arg1 : i32, i32
  }
}

module attributes {stable_mosaic.version = 11 : i64} {
  func.func @_mm_kernel(%arg0: i32, %arg1: i32, %arg2: i32, %arg3: memref<8x1152xbf16, #tpu.memory_space<vmem>>, %arg4: memref<1152x128xbf16, #tpu.memory_space<vmem>>, %arg5: memref<1x128xf32, #tpu.memory_space<vmem>>, %arg6: memref<8x128xf32, #tpu.memory_space<vmem>>, %arg7: memref<8x128xf32, #tpu.memory_space<vmem>>) attributes {dimension_semantics = [#tpu.dimension_semantics<parallel>, #tpu.dimension_semantics<parallel>, #tpu.dimension_semantics<arbitrary>], iteration_bounds = array<i64: 1, 1, 1>, scalar_prefetch = 0 : i64, scratch_operands = 1 : i64, tpu.core_type = #tpu.core_type<tc>, window_params = [{transform_indices = @transform_0, window_bounds = array<i64: 8, 1152>}, {transform_indices = @transform_1, window_bounds = array<i64: 1152, 128>}, {transform_indices = @transform_2, window_bounds = array<i64: 1, 128>}, {transform_indices = @transform_3, window_bounds = array<i64: 8, 128>}]} {
    %c0_i32 = arith.constant 0 : i32
    %0 = arith.cmpi eq, %arg2, %c0_i32 : i32
    %1 = arith.extui %0 : i1 to i32
    %c0_i32_0 = arith.constant 0 : i32
    %2 = arith.cmpi ne, %1, %c0_i32_0 : i32
    scf.if %2 {
      %cst_11 = arith.constant 0.000000e+00 : f32
      %14 = vector.broadcast %cst_11 : f32 to vector<8x128xf32>
      %c0_12 = arith.constant 0 : index
      %c0_13 = arith.constant 0 : index
      %15 = vector.load %arg7[%c0_12, %c0_13] : memref<8x128xf32, #tpu.memory_space<vmem>>, vector<8x128xf32>
      tpu.vector_store %arg7[%c0_12, %c0_13], %14 {strides = array<i32>} : memref<8x128xf32, #tpu.memory_space<vmem>>, vector<8x128xf32>,
    } else {
    }
    %c0 = arith.constant 0 : index
    %c0_1 = arith.constant 0 : index
    %3 = vector.load %arg3[%c0, %c0_1] : memref<8x1152xbf16, #tpu.memory_space<vmem>>, vector<8x1152xbf16>
    %cst = arith.constant 0.000000e+00 : bf16
    %4 = vector.broadcast %cst : bf16 to vector<8x1152xbf16>
    %5 = arith.maximumf %3, %4 : vector<8x1152xbf16>
    %c0_2 = arith.constant 0 : index
    %c0_3 = arith.constant 0 : index
    %6 = vector.load %arg7[%c0_2, %c0_3] : memref<8x128xf32, #tpu.memory_space<vmem>>, vector<8x128xf32>
    %c0_4 = arith.constant 0 : index
    %c0_5 = arith.constant 0 : index
    %7 = vector.load %arg4[%c0_4, %c0_5] : memref<1152x128xbf16, #tpu.memory_space<vmem>>, vector<1152x128xbf16>
    %cst_6 = arith.constant dense<0.000000e+00> : vector<8x128xf32>
    %8 = tpu.matmul %5, %7, %cst_6 {dimension_numbers = #tpu.dot_dimension_numbers<[1], [0], [0], [1], [0, 0, 1, 1], [], []>} : vector<8x1152xbf16>, vector<1152x128xbf16>, vector<8x128xf32> -> vector<8x128xf32>
    %9 = arith.addf %6, %8 : vector<8x128xf32>
    %c0_7 = arith.constant 0 : index
    %c0_8 = arith.constant 0 : index
    %10 = vector.load %arg7[%c0_7, %c0_8] : memref<8x128xf32, #tpu.memory_space<vmem>>, vector<8x128xf32>
    tpu.vector_store %arg7[%c0_7, %c0_8], %9 {strides = array<i32>} : memref<8x128xf32, #tpu.memory_space<vmem>>, vector<8x128xf32>,
    %c0_i32_9 = arith.constant 0 : i32
    %11 = arith.cmpi eq, %arg2, %c0_i32_9 : i32
    %12 = arith.extui %11 : i1 to i32
    %c0_i32_10 = arith.constant 0 : i32
    %13 = arith.cmpi ne, %12, %c0_i32_10 : i32
    scf.if %13 {
      %c0_11 = arith.constant 0 : index
      %c0_12 = arith.constant 0 : index
      %14 = vector.load %arg7[%c0_11, %c0_12] : memref<8x128xf32, #tpu.memory_space<vmem>>, vector<8x128xf32>
      %c0_13 = arith.constant 0 : index
      %c0_14 = arith.constant 0 : index
      %15 = vector.load %arg5[%c0_13, %c0_14] : memref<1x128xf32, #tpu.memory_space<vmem>>, vector<1x128xf32>
      %16 = vector.broadcast %15 : vector<1x128xf32> to vector<8x128xf32>
      %17 = arith.addf %14, %16 : vector<8x128xf32>
      %c0_15 = arith.constant 0 : index
      %c0_16 = arith.constant 0 : index
      %18 = vector.load %arg6[%c0_15, %c0_16] : memref<8x128xf32, #tpu.memory_space<vmem>>, vector<8x128xf32>
      tpu.vector_store %arg6[%c0_15, %c0_16], %17 {strides = array<i32>} : memref<8x128xf32, #tpu.memory_space<vmem>>, vector<8x128xf32>,
    } else {
    }
    return
  }
  func.func @transform_0(%arg0: i32, %arg1: i32, %arg2: i32) -> (i32, i32) {
    %c0_i32 = arith.constant 0 : i32
    return %arg0, %arg2 : i32, i32
  }
  func.func @transform_1(%arg0: i32, %arg1: i32, %arg2: i32) -> (i32, i32) {
    %c0_i32 = arith.constant 0 : i32
    return %arg2, %arg1 : i32, i32
  }
  func.func @transform_2(%arg0: i32, %arg1: i32, %arg2: i32) -> (i32, i32) {
    %c0_i32 = arith.constant 0 : i32
    %c0_i32_0 = arith.constant 0 : i32
    return %c0_i32, %arg1 : i32, i32
  }
  func.func @transform_3(%arg0: i32, %arg1: i32, %arg2: i32) -> (i32, i32) {
    %c0_i32 = arith.constant 0 : i32
    return %arg0, %arg1 : i32, i32
  }
}

module attributes {stable_mosaic.version = 11 : i64} {
  func.func @_mm_kernel(%arg0: i32, %arg1: i32, %arg2: i32, %arg3: memref<32x576xbf16, #tpu.memory_space<vmem>>, %arg4: memref<576x64xbf16, #tpu.memory_space<vmem>>, %arg5: memref<1x64xf32, #tpu.memory_space<vmem>>, %arg6: memref<32x64xf32, #tpu.memory_space<vmem>>, %arg7: memref<32x64xf32, #tpu.memory_space<vmem>>) attributes {dimension_semantics = [#tpu.dimension_semantics<parallel>, #tpu.dimension_semantics<parallel>, #tpu.dimension_semantics<arbitrary>], iteration_bounds = array<i64: 1, 1, 1>, scalar_prefetch = 0 : i64, scratch_operands = 1 : i64, tpu.core_type = #tpu.core_type<tc>, window_params = [{transform_indices = @transform_0, window_bounds = array<i64: 32, 576>}, {transform_indices = @transform_1, window_bounds = array<i64: 576, 64>}, {transform_indices = @transform_2, window_bounds = array<i64: 1, 64>}, {transform_indices = @transform_3, window_bounds = array<i64: 32, 64>}]} {
    %c0_i32 = arith.constant 0 : i32
    %0 = arith.cmpi eq, %arg2, %c0_i32 : i32
    %1 = arith.extui %0 : i1 to i32
    %c0_i32_0 = arith.constant 0 : i32
    %2 = arith.cmpi ne, %1, %c0_i32_0 : i32
    scf.if %2 {
      %cst_11 = arith.constant 0.000000e+00 : f32
      %14 = vector.broadcast %cst_11 : f32 to vector<32x64xf32>
      %c0_12 = arith.constant 0 : index
      %c0_13 = arith.constant 0 : index
      %15 = vector.load %arg7[%c0_12, %c0_13] : memref<32x64xf32, #tpu.memory_space<vmem>>, vector<32x64xf32>
      tpu.vector_store %arg7[%c0_12, %c0_13], %14 {strides = array<i32>} : memref<32x64xf32, #tpu.memory_space<vmem>>, vector<32x64xf32>,
    } else {
    }
    %c0 = arith.constant 0 : index
    %c0_1 = arith.constant 0 : index
    %3 = vector.load %arg3[%c0, %c0_1] : memref<32x576xbf16, #tpu.memory_space<vmem>>, vector<32x576xbf16>
    %cst = arith.constant 0.000000e+00 : bf16
    %4 = vector.broadcast %cst : bf16 to vector<32x576xbf16>
    %5 = arith.maximumf %3, %4 : vector<32x576xbf16>
    %c0_2 = arith.constant 0 : index
    %c0_3 = arith.constant 0 : index
    %6 = vector.load %arg7[%c0_2, %c0_3] : memref<32x64xf32, #tpu.memory_space<vmem>>, vector<32x64xf32>
    %c0_4 = arith.constant 0 : index
    %c0_5 = arith.constant 0 : index
    %7 = vector.load %arg4[%c0_4, %c0_5] : memref<576x64xbf16, #tpu.memory_space<vmem>>, vector<576x64xbf16>
    %cst_6 = arith.constant dense<0.000000e+00> : vector<32x64xf32>
    %8 = tpu.matmul %5, %7, %cst_6 {dimension_numbers = #tpu.dot_dimension_numbers<[1], [0], [0], [1], [0, 0, 1, 1], [], []>} : vector<32x576xbf16>, vector<576x64xbf16>, vector<32x64xf32> -> vector<32x64xf32>
    %9 = arith.addf %6, %8 : vector<32x64xf32>
    %c0_7 = arith.constant 0 : index
    %c0_8 = arith.constant 0 : index
    %10 = vector.load %arg7[%c0_7, %c0_8] : memref<32x64xf32, #tpu.memory_space<vmem>>, vector<32x64xf32>
    tpu.vector_store %arg7[%c0_7, %c0_8], %9 {strides = array<i32>} : memref<32x64xf32, #tpu.memory_space<vmem>>, vector<32x64xf32>,
    %c0_i32_9 = arith.constant 0 : i32
    %11 = arith.cmpi eq, %arg2, %c0_i32_9 : i32
    %12 = arith.extui %11 : i1 to i32
    %c0_i32_10 = arith.constant 0 : i32
    %13 = arith.cmpi ne, %12, %c0_i32_10 : i32
    scf.if %13 {
      %c0_11 = arith.constant 0 : index
      %c0_12 = arith.constant 0 : index
      %14 = vector.load %arg7[%c0_11, %c0_12] : memref<32x64xf32, #tpu.memory_space<vmem>>, vector<32x64xf32>
      %c0_13 = arith.constant 0 : index
      %c0_14 = arith.constant 0 : index
      %15 = vector.load %arg5[%c0_13, %c0_14] : memref<1x64xf32, #tpu.memory_space<vmem>>, vector<1x64xf32>
      %16 = vector.broadcast %15 : vector<1x64xf32> to vector<32x64xf32>
      %17 = arith.addf %14, %16 : vector<32x64xf32>
      %c0_15 = arith.constant 0 : index
      %c0_16 = arith.constant 0 : index
      %18 = vector.load %arg6[%c0_15, %c0_16] : memref<32x64xf32, #tpu.memory_space<vmem>>, vector<32x64xf32>
      tpu.vector_store %arg6[%c0_15, %c0_16], %17 {strides = array<i32>} : memref<32x64xf32, #tpu.memory_space<vmem>>, vector<32x64xf32>,
    } else {
    }
    return
  }
  func.func @transform_0(%arg0: i32, %arg1: i32, %arg2: i32) -> (i32, i32) {
    %c0_i32 = arith.constant 0 : i32
    return %arg0, %arg2 : i32, i32
  }
  func.func @transform_1(%arg0: i32, %arg1: i32, %arg2: i32) -> (i32, i32) {
    %c0_i32 = arith.constant 0 : i32
    return %arg2, %arg1 : i32, i32
  }
  func.func @transform_2(%arg0: i32, %arg1: i32, %arg2: i32) -> (i32, i32) {
    %c0_i32 = arith.constant 0 : i32
    %c0_i32_0 = arith.constant 0 : i32
    return %c0_i32, %arg1 : i32, i32
  }
  func.func @transform_3(%arg0: i32, %arg1: i32, %arg2: i32) -> (i32, i32) {
    %c0_i32 = arith.constant 0 : i32
    return %arg0, %arg1 : i32, i32
  }
}

module attributes {stable_mosaic.version = 11 : i64} {
  func.func @_mm_kernel(%arg0: i32, %arg1: i32, %arg2: i32, %arg3: memref<128x288xbf16, #tpu.memory_space<vmem>>, %arg4: memref<288x32xbf16, #tpu.memory_space<vmem>>, %arg5: memref<1x32xf32, #tpu.memory_space<vmem>>, %arg6: memref<128x32xf32, #tpu.memory_space<vmem>>, %arg7: memref<128x32xf32, #tpu.memory_space<vmem>>) attributes {dimension_semantics = [#tpu.dimension_semantics<parallel>, #tpu.dimension_semantics<parallel>, #tpu.dimension_semantics<arbitrary>], iteration_bounds = array<i64: 1, 1, 1>, scalar_prefetch = 0 : i64, scratch_operands = 1 : i64, tpu.core_type = #tpu.core_type<tc>, window_params = [{transform_indices = @transform_0, window_bounds = array<i64: 128, 288>}, {transform_indices = @transform_1, window_bounds = array<i64: 288, 32>}, {transform_indices = @transform_2, window_bounds = array<i64: 1, 32>}, {transform_indices = @transform_3, window_bounds = array<i64: 128, 32>}]} {
    %c0_i32 = arith.constant 0 : i32
    %0 = arith.cmpi eq, %arg2, %c0_i32 : i32
    %1 = arith.extui %0 : i1 to i32
    %c0_i32_0 = arith.constant 0 : i32
    %2 = arith.cmpi ne, %1, %c0_i32_0 : i32
    scf.if %2 {
      %cst_11 = arith.constant 0.000000e+00 : f32
      %14 = vector.broadcast %cst_11 : f32 to vector<128x32xf32>
      %c0_12 = arith.constant 0 : index
      %c0_13 = arith.constant 0 : index
      %15 = vector.load %arg7[%c0_12, %c0_13] : memref<128x32xf32, #tpu.memory_space<vmem>>, vector<128x32xf32>
      tpu.vector_store %arg7[%c0_12, %c0_13], %14 {strides = array<i32>} : memref<128x32xf32, #tpu.memory_space<vmem>>, vector<128x32xf32>,
    } else {
    }
    %c0 = arith.constant 0 : index
    %c0_1 = arith.constant 0 : index
    %3 = vector.load %arg3[%c0, %c0_1] : memref<128x288xbf16, #tpu.memory_space<vmem>>, vector<128x288xbf16>
    %cst = arith.constant 0.000000e+00 : bf16
    %4 = vector.broadcast %cst : bf16 to vector<128x288xbf16>
    %5 = arith.maximumf %3, %4 : vector<128x288xbf16>
    %c0_2 = arith.constant 0 : index
    %c0_3 = arith.constant 0 : index
    %6 = vector.load %arg7[%c0_2, %c0_3] : memref<128x32xf32, #tpu.memory_space<vmem>>, vector<128x32xf32>
    %c0_4 = arith.constant 0 : index
    %c0_5 = arith.constant 0 : index
    %7 = vector.load %arg4[%c0_4, %c0_5] : memref<288x32xbf16, #tpu.memory_space<vmem>>, vector<288x32xbf16>
    %cst_6 = arith.constant dense<0.000000e+00> : vector<128x32xf32>
    %8 = tpu.matmul %5, %7, %cst_6 {dimension_numbers = #tpu.dot_dimension_numbers<[1], [0], [0], [1], [0, 0, 1, 1], [], []>} : vector<128x288xbf16>, vector<288x32xbf16>, vector<128x32xf32> -> vector<128x32xf32>
    %9 = arith.addf %6, %8 : vector<128x32xf32>
    %c0_7 = arith.constant 0 : index
    %c0_8 = arith.constant 0 : index
    %10 = vector.load %arg7[%c0_7, %c0_8] : memref<128x32xf32, #tpu.memory_space<vmem>>, vector<128x32xf32>
    tpu.vector_store %arg7[%c0_7, %c0_8], %9 {strides = array<i32>} : memref<128x32xf32, #tpu.memory_space<vmem>>, vector<128x32xf32>,
    %c0_i32_9 = arith.constant 0 : i32
    %11 = arith.cmpi eq, %arg2, %c0_i32_9 : i32
    %12 = arith.extui %11 : i1 to i32
    %c0_i32_10 = arith.constant 0 : i32
    %13 = arith.cmpi ne, %12, %c0_i32_10 : i32
    scf.if %13 {
      %c0_11 = arith.constant 0 : index
      %c0_12 = arith.constant 0 : index
      %14 = vector.load %arg7[%c0_11, %c0_12] : memref<128x32xf32, #tpu.memory_space<vmem>>, vector<128x32xf32>
      %c0_13 = arith.constant 0 : index
      %c0_14 = arith.constant 0 : index
      %15 = vector.load %arg5[%c0_13, %c0_14] : memref<1x32xf32, #tpu.memory_space<vmem>>, vector<1x32xf32>
      %16 = vector.broadcast %15 : vector<1x32xf32> to vector<128x32xf32>
      %17 = arith.addf %14, %16 : vector<128x32xf32>
      %c0_15 = arith.constant 0 : index
      %c0_16 = arith.constant 0 : index
      %18 = vector.load %arg6[%c0_15, %c0_16] : memref<128x32xf32, #tpu.memory_space<vmem>>, vector<128x32xf32>
      tpu.vector_store %arg6[%c0_15, %c0_16], %17 {strides = array<i32>} : memref<128x32xf32, #tpu.memory_space<vmem>>, vector<128x32xf32>,
    } else {
    }
    return
  }
  func.func @transform_0(%arg0: i32, %arg1: i32, %arg2: i32) -> (i32, i32) {
    %c0_i32 = arith.constant 0 : i32
    return %arg0, %arg2 : i32, i32
  }
  func.func @transform_1(%arg0: i32, %arg1: i32, %arg2: i32) -> (i32, i32) {
    %c0_i32 = arith.constant 0 : i32
    return %arg2, %arg1 : i32, i32
  }
  func.func @transform_2(%arg0: i32, %arg1: i32, %arg2: i32) -> (i32, i32) {
    %c0_i32 = arith.constant 0 : i32
    %c0_i32_0 = arith.constant 0 : i32
    return %c0_i32, %arg1 : i32, i32
  }
  func.func @transform_3(%arg0: i32, %arg1: i32, %arg2: i32) -> (i32, i32) {
    %c0_i32 = arith.constant 0 : i32
    return %arg0, %arg1 : i32, i32
  }
}

module attributes {stable_mosaic.version = 11 : i64} {
  func.func @_bn_stats_kernel(%arg0: i32, %arg1: memref<512x8xf32, #tpu.memory_space<vmem>>, %arg2: memref<1x8xf32, #tpu.memory_space<vmem>>, %arg3: memref<1x8xf32, #tpu.memory_space<vmem>>) attributes {dimension_semantics = [#tpu.dimension_semantics<arbitrary>], iteration_bounds = array<i64: 1>, scalar_prefetch = 0 : i64, scratch_operands = 0 : i64, tpu.core_type = #tpu.core_type<tc>, window_params = [{transform_indices = @transform_0, window_bounds = array<i64: 512, 8>}, {pipeline_mode = #tpu.pipeline_mode<synchronous>, transform_indices = @transform_1, window_bounds = array<i64: 1, 8>}, {pipeline_mode = #tpu.pipeline_mode<synchronous>, transform_indices = @transform_2, window_bounds = array<i64: 1, 8>}]} {
    %c0_i32 = arith.constant 0 : i32
    %0 = arith.cmpi eq, %arg0, %c0_i32 : i32
    %1 = arith.extui %0 : i1 to i32
    %c0_i32_0 = arith.constant 0 : i32
    %2 = arith.cmpi ne, %1, %c0_i32_0 : i32
    scf.if %2 {
      %cst_13 = arith.constant 0.000000e+00 : f32
      %25 = vector.broadcast %cst_13 : f32 to vector<1x8xf32>
      %c0_14 = arith.constant 0 : index
      %c0_15 = arith.constant 0 : index
      %26 = vector.load %arg2[%c0_14, %c0_15] : memref<1x8xf32, #tpu.memory_space<vmem>>, vector<1x8xf32>
      tpu.vector_store %arg2[%c0_14, %c0_15], %25 {strides = array<i32>} : memref<1x8xf32, #tpu.memory_space<vmem>>, vector<1x8xf32>,
      %cst_16 = arith.constant 0.000000e+00 : f32
      %27 = vector.broadcast %cst_16 : f32 to vector<1x8xf32>
      %c0_17 = arith.constant 0 : index
      %c0_18 = arith.constant 0 : index
      %28 = vector.load %arg3[%c0_17, %c0_18] : memref<1x8xf32, #tpu.memory_space<vmem>>, vector<1x8xf32>
      tpu.vector_store %arg3[%c0_17, %c0_18], %27 {strides = array<i32>} : memref<1x8xf32, #tpu.memory_space<vmem>>, vector<1x8xf32>,
    } else {
    }
    %c0 = arith.constant 0 : index
    %c0_1 = arith.constant 0 : index
    %3 = vector.load %arg1[%c0, %c0_1] : memref<512x8xf32, #tpu.memory_space<vmem>>, vector<512x8xf32>
    %4 = tpu.iota {dimensions = array<i32: 0>} : vector<512x1xi32>
    %c512_i32 = arith.constant 512 : i32
    %5 = arith.muli %arg0, %c512_i32 : i32
    %6 = vector.broadcast %5 : i32 to vector<512x1xi32>
    %7 = arith.addi %4, %6 : vector<512x1xi32>
    %c512_i32_2 = arith.constant 512 : i32
    %8 = vector.broadcast %c512_i32_2 : i32 to vector<512x1xi32>
    %9 = arith.cmpi slt, %7, %8 : vector<512x1xi32>
    %cst = arith.constant 0.000000e+00 : f32
    %10 = vector.shape_cast %9 : vector<512x1xi1> to vector<512x1xi1>
    %11 = vector.broadcast %10 : vector<512x1xi1> to vector<512x8xi1>
    %12 = vector.broadcast %cst : f32 to vector<512x8xf32>
    %13 = arith.select %11, %3, %12 : vector<512x8xi1>, vector<512x8xf32>
    %c0_3 = arith.constant 0 : index
    %c0_4 = arith.constant 0 : index
    %14 = vector.load %arg2[%c0_3, %c0_4] : memref<1x8xf32, #tpu.memory_space<vmem>>, vector<1x8xf32>
    %cst_5 = arith.constant dense<0.000000e+00> : vector<8xf32>
    %15 = vector.multi_reduction <add>, %13, %cst_5 [0] : vector<512x8xf32> to vector<8xf32>
    %16 = vector.shape_cast %15 : vector<8xf32> to vector<1x8xf32>
    %17 = arith.addf %14, %16 : vector<1x8xf32>
    %c0_6 = arith.constant 0 : index
    %c0_7 = arith.constant 0 : index
    %18 = vector.load %arg2[%c0_6, %c0_7] : memref<1x8xf32, #tpu.memory_space<vmem>>, vector<1x8xf32>
    tpu.vector_store %arg2[%c0_6, %c0_7], %17 {strides = array<i32>} : memref<1x8xf32, #tpu.memory_space<vmem>>, vector<1x8xf32>,
    %c0_8 = arith.constant 0 : index
    %c0_9 = arith.constant 0 : index
    %19 = vector.load %arg3[%c0_8, %c0_9] : memref<1x8xf32, #tpu.memory_space<vmem>>, vector<1x8xf32>
    %20 = arith.mulf %13, %13 : vector<512x8xf32>
    %cst_10 = arith.constant dense<0.000000e+00> : vector<8xf32>
    %21 = vector.multi_reduction <add>, %20, %cst_10 [0] : vector<512x8xf32> to vector<8xf32>
    %22 = vector.shape_cast %21 : vector<8xf32> to vector<1x8xf32>
    %23 = arith.addf %19, %22 : vector<1x8xf32>
    %c0_11 = arith.constant 0 : index
    %c0_12 = arith.constant 0 : index
    %24 = vector.load %arg3[%c0_11, %c0_12] : memref<1x8xf32, #tpu.memory_space<vmem>>, vector<1x8xf32>
    tpu.vector_store %arg3[%c0_11, %c0_12], %23 {strides = array<i32>} : memref<1x8xf32, #tpu.memory_space<vmem>>, vector<1x8xf32>,
    return
  }
  func.func @transform_0(%arg0: i32) -> (i32, i32) {
    %c0_i32 = arith.constant 0 : i32
    %c0_i32_0 = arith.constant 0 : i32
    return %arg0, %c0_i32 : i32, i32
  }
  func.func @transform_1(%arg0: i32) -> (i32, i32) {
    %c0_i32 = arith.constant 0 : i32
    %c0_i32_0 = arith.constant 0 : i32
    %c0_i32_1 = arith.constant 0 : i32
    return %c0_i32, %c0_i32_0 : i32, i32
  }
  func.func @transform_2(%arg0: i32) -> (i32, i32) {
    %c0_i32 = arith.constant 0 : i32
    %c0_i32_0 = arith.constant 0 : i32
    %c0_i32_1 = arith.constant 0 : i32
    return %c0_i32, %c0_i32_0 : i32, i32
  }
}

module attributes {stable_mosaic.version = 11 : i64} {
  func.func @_bn_apply_kernel(%arg0: i32, %arg1: memref<512x8xf32, #tpu.memory_space<vmem>>, %arg2: memref<1x8xf32, #tpu.memory_space<vmem>>, %arg3: memref<1x8xf32, #tpu.memory_space<vmem>>, %arg4: memref<512x8xf32, #tpu.memory_space<vmem>>) attributes {dimension_semantics = [#tpu.dimension_semantics<parallel>], iteration_bounds = array<i64: 1>, scalar_prefetch = 0 : i64, scratch_operands = 0 : i64, tpu.core_type = #tpu.core_type<tc>, window_params = [{transform_indices = @transform_0, window_bounds = array<i64: 512, 8>}, {pipeline_mode = #tpu.pipeline_mode<synchronous>, transform_indices = @transform_1, window_bounds = array<i64: 1, 8>}, {pipeline_mode = #tpu.pipeline_mode<synchronous>, transform_indices = @transform_2, window_bounds = array<i64: 1, 8>}, {transform_indices = @transform_3, window_bounds = array<i64: 512, 8>}]} {
    %c0 = arith.constant 0 : index
    %c0_0 = arith.constant 0 : index
    %0 = vector.load %arg1[%c0, %c0_0] : memref<512x8xf32, #tpu.memory_space<vmem>>, vector<512x8xf32>
    %c0_1 = arith.constant 0 : index
    %c0_2 = arith.constant 0 : index
    %1 = vector.load %arg2[%c0_1, %c0_2] : memref<1x8xf32, #tpu.memory_space<vmem>>, vector<1x8xf32>
    %2 = vector.broadcast %1 : vector<1x8xf32> to vector<512x8xf32>
    %3 = arith.mulf %0, %2 : vector<512x8xf32>
    %c0_3 = arith.constant 0 : index
    %c0_4 = arith.constant 0 : index
    %4 = vector.load %arg3[%c0_3, %c0_4] : memref<1x8xf32, #tpu.memory_space<vmem>>, vector<1x8xf32>
    %5 = vector.broadcast %4 : vector<1x8xf32> to vector<512x8xf32>
    %6 = arith.addf %3, %5 : vector<512x8xf32>
    %c0_5 = arith.constant 0 : index
    %c0_6 = arith.constant 0 : index
    %7 = vector.load %arg4[%c0_5, %c0_6] : memref<512x8xf32, #tpu.memory_space<vmem>>, vector<512x8xf32>
    tpu.vector_store %arg4[%c0_5, %c0_6], %6 {strides = array<i32>} : memref<512x8xf32, #tpu.memory_space<vmem>>, vector<512x8xf32>,
    return
  }
  func.func @transform_0(%arg0: i32) -> (i32, i32) {
    %c0_i32 = arith.constant 0 : i32
    %c0_i32_0 = arith.constant 0 : i32
    return %arg0, %c0_i32 : i32, i32
  }
  func.func @transform_1(%arg0: i32) -> (i32, i32) {
    %c0_i32 = arith.constant 0 : i32
    %c0_i32_0 = arith.constant 0 : i32
    %c0_i32_1 = arith.constant 0 : i32
    return %c0_i32, %c0_i32_0 : i32, i32
  }
  func.func @transform_2(%arg0: i32) -> (i32, i32) {
    %c0_i32 = arith.constant 0 : i32
    %c0_i32_0 = arith.constant 0 : i32
    %c0_i32_1 = arith.constant 0 : i32
    return %c0_i32, %c0_i32_0 : i32, i32
  }
  func.func @transform_3(%arg0: i32) -> (i32, i32) {
    %c0_i32 = arith.constant 0 : i32
    %c0_i32_0 = arith.constant 0 : i32
    return %arg0, %c0_i32 : i32, i32
  }
}

module attributes {stable_mosaic.version = 11 : i64} {
  func.func @_upsample2_kernel(%arg0: i32, %arg1: i32, %arg2: memref<1x16x16x16xf32, #tpu.memory_space<vmem>>, %arg3: memref<1x16x16x16xf32, #tpu.memory_space<vmem>>, %arg4: memref<1x16x16x16xf32, #tpu.memory_space<vmem>>, %arg5: memref<1x16x16x16xf32, #tpu.memory_space<vmem>>, %arg6: memref<1x16x16x16xf32, #tpu.memory_space<vmem>>) attributes {dimension_semantics = [#tpu.dimension_semantics<parallel>, #tpu.dimension_semantics<parallel>], iteration_bounds = array<i64: 2, 1>, scalar_prefetch = 0 : i64, scratch_operands = 0 : i64, tpu.core_type = #tpu.core_type<tc>, window_params = [{transform_indices = @transform_0, window_bounds = array<i64: 1, 16, 16, 16>}, {transform_indices = @transform_1, window_bounds = array<i64: 1, 16, 16, 16>}, {transform_indices = @transform_2, window_bounds = array<i64: 1, 16, 16, 16>}, {transform_indices = @transform_3, window_bounds = array<i64: 1, 16, 16, 16>}, {transform_indices = @transform_4, window_bounds = array<i64: 1, 16, 16, 16>}]} {
    %c0 = arith.constant 0 : index
    %c0_0 = arith.constant 0 : index
    %c0_1 = arith.constant 0 : index
    %c0_2 = arith.constant 0 : index
    %0 = vector.load %arg2[%c0, %c0_0, %c0_1, %c0_2] : memref<1x16x16x16xf32, #tpu.memory_space<vmem>>, vector<1x16x16x16xf32>
    %cst = arith.constant 0.000000e+00 : f32
    %1 = vector.broadcast %cst : f32 to vector<1x16x16x16xf32>
    %2 = arith.maximumf %0, %1 : vector<1x16x16x16xf32>
    %3 = vector.extract_strided_slice %2 {offsets = [0, 0, 0, 0], sizes = [1, 1, 16, 16], strides = [1, 1, 1, 1]} : vector<1x16x16x16xf32> to vector<1x1x16x16xf32>
    %4 = vector.extract_strided_slice %2 {offsets = [0, 0, 0, 0], sizes = [1, 15, 16, 16], strides = [1, 1, 1, 1]} : vector<1x16x16x16xf32> to vector<1x15x16x16xf32>
    %5 = tpu.concatenate %3, %4 in 1 : vector<1x1x16x16xf32>, vector<1x15x16x16xf32> -> vector<1x16x16x16xf32>
    %6 = vector.extract_strided_slice %2 {offsets = [0, 1, 0, 0], sizes = [1, 15, 16, 16], strides = [1, 1, 1, 1]} : vector<1x16x16x16xf32> to vector<1x15x16x16xf32>
    %7 = vector.extract_strided_slice %2 {offsets = [0, 15, 0, 0], sizes = [1, 1, 16, 16], strides = [1, 1, 1, 1]} : vector<1x16x16x16xf32> to vector<1x1x16x16xf32>
    %8 = tpu.concatenate %6, %7 in 1 : vector<1x15x16x16xf32>, vector<1x1x16x16xf32> -> vector<1x16x16x16xf32>
    %cst_3 = arith.constant 2.500000e-01 : f32
    %9 = vector.broadcast %cst_3 : f32 to vector<1x16x16x16xf32>
    %10 = arith.mulf %9, %5 : vector<1x16x16x16xf32>
    %cst_4 = arith.constant 7.500000e-01 : f32
    %11 = vector.broadcast %cst_4 : f32 to vector<1x16x16x16xf32>
    %12 = arith.mulf %11, %2 : vector<1x16x16x16xf32>
    %13 = arith.addf %10, %12 : vector<1x16x16x16xf32>
    %cst_5 = arith.constant 7.500000e-01 : f32
    %14 = vector.broadcast %cst_5 : f32 to vector<1x16x16x16xf32>
    %15 = arith.mulf %14, %2 : vector<1x16x16x16xf32>
    %cst_6 = arith.constant 2.500000e-01 : f32
    %16 = vector.broadcast %cst_6 : f32 to vector<1x16x16x16xf32>
    %17 = arith.mulf %16, %8 : vector<1x16x16x16xf32>
    %18 = arith.addf %15, %17 : vector<1x16x16x16xf32>
    %19 = vector.extract_strided_slice %13 {offsets = [0, 0, 0, 0], sizes = [1, 16, 1, 16], strides = [1, 1, 1, 1]} : vector<1x16x16x16xf32> to vector<1x16x1x16xf32>
    %20 = vector.extract_strided_slice %13 {offsets = [0, 0, 0, 0], sizes = [1, 16, 15, 16], strides = [1, 1, 1, 1]} : vector<1x16x16x16xf32> to vector<1x16x15x16xf32>
    %21 = tpu.concatenate %19, %20 in 2 : vector<1x16x1x16xf32>, vector<1x16x15x16xf32> -> vector<1x16x16x16xf32>
    %22 = vector.extract_strided_slice %13 {offsets = [0, 0, 1, 0], sizes = [1, 16, 15, 16], strides = [1, 1, 1, 1]} : vector<1x16x16x16xf32> to vector<1x16x15x16xf32>
    %23 = vector.extract_strided_slice %13 {offsets = [0, 0, 15, 0], sizes = [1, 16, 1, 16], strides = [1, 1, 1, 1]} : vector<1x16x16x16xf32> to vector<1x16x1x16xf32>
    %24 = tpu.concatenate %22, %23 in 2 : vector<1x16x15x16xf32>, vector<1x16x1x16xf32> -> vector<1x16x16x16xf32>
    %cst_7 = arith.constant 2.500000e-01 : f32
    %25 = vector.broadcast %cst_7 : f32 to vector<1x16x16x16xf32>
    %26 = arith.mulf %25, %21 : vector<1x16x16x16xf32>
    %cst_8 = arith.constant 7.500000e-01 : f32
    %27 = vector.broadcast %cst_8 : f32 to vector<1x16x16x16xf32>
    %28 = arith.mulf %27, %13 : vector<1x16x16x16xf32>
    %29 = arith.addf %26, %28 : vector<1x16x16x16xf32>
    %cst_9 = arith.constant 7.500000e-01 : f32
    %30 = vector.broadcast %cst_9 : f32 to vector<1x16x16x16xf32>
    %31 = arith.mulf %30, %13 : vector<1x16x16x16xf32>
    %cst_10 = arith.constant 2.500000e-01 : f32
    %32 = vector.broadcast %cst_10 : f32 to vector<1x16x16x16xf32>
    %33 = arith.mulf %32, %24 : vector<1x16x16x16xf32>
    %34 = arith.addf %31, %33 : vector<1x16x16x16xf32>
    %c0_11 = arith.constant 0 : index
    %c0_12 = arith.constant 0 : index
    %c0_13 = arith.constant 0 : index
    %c0_14 = arith.constant 0 : index
    %35 = vector.load %arg3[%c0_11, %c0_12, %c0_13, %c0_14] : memref<1x16x16x16xf32, #tpu.memory_space<vmem>>, vector<1x16x16x16xf32>
    tpu.vector_store %arg3[%c0_11, %c0_12, %c0_13, %c0_14], %29 {strides = array<i32>} : memref<1x16x16x16xf32, #tpu.memory_space<vmem>>, vector<1x16x16x16xf32>,
    %c0_15 = arith.constant 0 : index
    %c0_16 = arith.constant 0 : index
    %c0_17 = arith.constant 0 : index
    %c0_18 = arith.constant 0 : index
    %36 = vector.load %arg4[%c0_15, %c0_16, %c0_17, %c0_18] : memref<1x16x16x16xf32, #tpu.memory_space<vmem>>, vector<1x16x16x16xf32>
    tpu.vector_store %arg4[%c0_15, %c0_16, %c0_17, %c0_18], %34 {strides = array<i32>} : memref<1x16x16x16xf32, #tpu.memory_space<vmem>>, vector<1x16x16x16xf32>,
    %37 = vector.extract_strided_slice %18 {offsets = [0, 0, 0, 0], sizes = [1, 16, 1, 16], strides = [1, 1, 1, 1]} : vector<1x16x16x16xf32> to vector<1x16x1x16xf32>
    %38 = vector.extract_strided_slice %18 {offsets = [0, 0, 0, 0], sizes = [1, 16, 15, 16], strides = [1, 1, 1, 1]} : vector<1x16x16x16xf32> to vector<1x16x15x16xf32>
    %39 = tpu.concatenate %37, %38 in 2 : vector<1x16x1x16xf32>, vector<1x16x15x16xf32> -> vector<1x16x16x16xf32>
    %40 = vector.extract_strided_slice %18 {offsets = [0, 0, 1, 0], sizes = [1, 16, 15, 16], strides = [1, 1, 1, 1]} : vector<1x16x16x16xf32> to vector<1x16x15x16xf32>
    %41 = vector.extract_strided_slice %18 {offsets = [0, 0, 15, 0], sizes = [1, 16, 1, 16], strides = [1, 1, 1, 1]} : vector<1x16x16x16xf32> to vector<1x16x1x16xf32>
    %42 = tpu.concatenate %40, %41 in 2 : vector<1x16x15x16xf32>, vector<1x16x1x16xf32> -> vector<1x16x16x16xf32>
    %cst_19 = arith.constant 2.500000e-01 : f32
    %43 = vector.broadcast %cst_19 : f32 to vector<1x16x16x16xf32>
    %44 = arith.mulf %43, %39 : vector<1x16x16x16xf32>
    %cst_20 = arith.constant 7.500000e-01 : f32
    %45 = vector.broadcast %cst_20 : f32 to vector<1x16x16x16xf32>
    %46 = arith.mulf %45, %18 : vector<1x16x16x16xf32>
    %47 = arith.addf %44, %46 : vector<1x16x16x16xf32>
    %cst_21 = arith.constant 7.500000e-01 : f32
    %48 = vector.broadcast %cst_21 : f32 to vector<1x16x16x16xf32>
    %49 = arith.mulf %48, %18 : vector<1x16x16x16xf32>
    %cst_22 = arith.constant 2.500000e-01 : f32
    %50 = vector.broadcast %cst_22 : f32 to vector<1x16x16x16xf32>
    %51 = arith.mulf %50, %42 : vector<1x16x16x16xf32>
    %52 = arith.addf %49, %51 : vector<1x16x16x16xf32>
    %c0_23 = arith.constant 0 : index
    %c0_24 = arith.constant 0 : index
    %c0_25 = arith.constant 0 : index
    %c0_26 = arith.constant 0 : index
    %53 = vector.load %arg5[%c0_23, %c0_24, %c0_25, %c0_26] : memref<1x16x16x16xf32, #tpu.memory_space<vmem>>, vector<1x16x16x16xf32>
    tpu.vector_store %arg5[%c0_23, %c0_24, %c0_25, %c0_26], %47 {strides = array<i32>} : memref<1x16x16x16xf32, #tpu.memory_space<vmem>>, vector<1x16x16x16xf32>,
    %c0_27 = arith.constant 0 : index
    %c0_28 = arith.constant 0 : index
    %c0_29 = arith.constant 0 : index
    %c0_30 = arith.constant 0 : index
    %54 = vector.load %arg6[%c0_27, %c0_28, %c0_29, %c0_30] : memref<1x16x16x16xf32, #tpu.memory_space<vmem>>, vector<1x16x16x16xf32>
    tpu.vector_store %arg6[%c0_27, %c0_28, %c0_29, %c0_30], %52 {strides = array<i32>} : memref<1x16x16x16xf32, #tpu.memory_space<vmem>>, vector<1x16x16x16xf32>,
    return
  }
  func.func @transform_0(%arg0: i32, %arg1: i32) -> (i32, i32, i32, i32) {
    %c0_i32 = arith.constant 0 : i32
    %c0_i32_0 = arith.constant 0 : i32
    %c0_i32_1 = arith.constant 0 : i32
    return %arg0, %c0_i32, %c0_i32_0, %arg1 : i32, i32, i32, i32
  }
  func.func @transform_1(%arg0: i32, %arg1: i32) -> (i32, i32, i32, i32) {
    %c0_i32 = arith.constant 0 : i32
    %c0_i32_0 = arith.constant 0 : i32
    %c0_i32_1 = arith.constant 0 : i32
    return %arg0, %c0_i32, %c0_i32_0, %arg1 : i32, i32, i32, i32
  }
  func.func @transform_2(%arg0: i32, %arg1: i32) -> (i32, i32, i32, i32) {
    %c0_i32 = arith.constant 0 : i32
    %c0_i32_0 = arith.constant 0 : i32
    %c0_i32_1 = arith.constant 0 : i32
    return %arg0, %c0_i32, %c0_i32_0, %arg1 : i32, i32, i32, i32
  }
  func.func @transform_3(%arg0: i32, %arg1: i32) -> (i32, i32, i32, i32) {
    %c0_i32 = arith.constant 0 : i32
    %c0_i32_0 = arith.constant 0 : i32
    %c0_i32_1 = arith.constant 0 : i32
    return %arg0, %c0_i32, %c0_i32_0, %arg1 : i32, i32, i32, i32
  }
  func.func @transform_4(%arg0: i32, %arg1: i32) -> (i32, i32, i32, i32) {
    %c0_i32 = arith.constant 0 : i32
    %c0_i32_0 = arith.constant 0 : i32
    %c0_i32_1 = arith.constant 0 : i32
    return %arg0, %c0_i32, %c0_i32_0, %arg1 : i32, i32, i32, i32
  }
}

module attributes {stable_mosaic.version = 11 : i64} {
  func.func @_mm_kernel(%arg0: i32, %arg1: i32, %arg2: i32, %arg3: memref<256x256xbf16, #tpu.memory_space<vmem>>, %arg4: memref<256x3xbf16, #tpu.memory_space<vmem>>, %arg5: memref<1x3xf32, #tpu.memory_space<vmem>>, %arg6: memref<256x3xf32, #tpu.memory_space<vmem>>, %arg7: memref<256x3xf32, #tpu.memory_space<vmem>>) attributes {dimension_semantics = [#tpu.dimension_semantics<parallel>, #tpu.dimension_semantics<parallel>, #tpu.dimension_semantics<arbitrary>], iteration_bounds = array<i64: 9, 1, 1>, scalar_prefetch = 0 : i64, scratch_operands = 1 : i64, tpu.core_type = #tpu.core_type<tc>, window_params = [{transform_indices = @transform_0, window_bounds = array<i64: 256, 256>}, {transform_indices = @transform_1, window_bounds = array<i64: 256, 3>}, {transform_indices = @transform_2, window_bounds = array<i64: 1, 3>}, {transform_indices = @transform_3, window_bounds = array<i64: 256, 3>}]} {
    %c0_i32 = arith.constant 0 : i32
    %0 = arith.cmpi eq, %arg2, %c0_i32 : i32
    %1 = arith.extui %0 : i1 to i32
    %c0_i32_0 = arith.constant 0 : i32
    %2 = arith.cmpi ne, %1, %c0_i32_0 : i32
    scf.if %2 {
      %cst_10 = arith.constant 0.000000e+00 : f32
      %12 = vector.broadcast %cst_10 : f32 to vector<256x3xf32>
      %c0_11 = arith.constant 0 : index
      %c0_12 = arith.constant 0 : index
      %13 = vector.load %arg7[%c0_11, %c0_12] : memref<256x3xf32, #tpu.memory_space<vmem>>, vector<256x3xf32>
      tpu.vector_store %arg7[%c0_11, %c0_12], %12 {strides = array<i32>} : memref<256x3xf32, #tpu.memory_space<vmem>>, vector<256x3xf32>,
    } else {
    }
    %c0 = arith.constant 0 : index
    %c0_1 = arith.constant 0 : index
    %3 = vector.load %arg3[%c0, %c0_1] : memref<256x256xbf16, #tpu.memory_space<vmem>>, vector<256x256xbf16>
    %c0_2 = arith.constant 0 : index
    %c0_3 = arith.constant 0 : index
    %4 = vector.load %arg7[%c0_2, %c0_3] : memref<256x3xf32, #tpu.memory_space<vmem>>, vector<256x3xf32>
    %c0_4 = arith.constant 0 : index
    %c0_5 = arith.constant 0 : index
    %5 = vector.load %arg4[%c0_4, %c0_5] : memref<256x3xbf16, #tpu.memory_space<vmem>>, vector<256x3xbf16>
    %cst = arith.constant dense<0.000000e+00> : vector<256x3xf32>
    %6 = tpu.matmul %3, %5, %cst {dimension_numbers = #tpu.dot_dimension_numbers<[1], [0], [0], [1], [0, 0, 1, 1], [], []>} : vector<256x256xbf16>, vector<256x3xbf16>, vector<256x3xf32> -> vector<256x3xf32>
    %7 = arith.addf %4, %6 : vector<256x3xf32>
    %c0_6 = arith.constant 0 : index
    %c0_7 = arith.constant 0 : index
    %8 = vector.load %arg7[%c0_6, %c0_7] : memref<256x3xf32, #tpu.memory_space<vmem>>, vector<256x3xf32>
    tpu.vector_store %arg7[%c0_6, %c0_7], %7 {strides = array<i32>} : memref<256x3xf32, #tpu.memory_space<vmem>>, vector<256x3xf32>,
    %c0_i32_8 = arith.constant 0 : i32
    %9 = arith.cmpi eq, %arg2, %c0_i32_8 : i32
    %10 = arith.extui %9 : i1 to i32
    %c0_i32_9 = arith.constant 0 : i32
    %11 = arith.cmpi ne, %10, %c0_i32_9 : i32
    scf.if %11 {
      %c0_10 = arith.constant 0 : index
      %c0_11 = arith.constant 0 : index
      %12 = vector.load %arg7[%c0_10, %c0_11] : memref<256x3xf32, #tpu.memory_space<vmem>>, vector<256x3xf32>
      %c0_12 = arith.constant 0 : index
      %c0_13 = arith.constant 0 : index
      %13 = vector.load %arg5[%c0_12, %c0_13] : memref<1x3xf32, #tpu.memory_space<vmem>>, vector<1x3xf32>
      %14 = vector.broadcast %13 : vector<1x3xf32> to vector<256x3xf32>
      %15 = arith.addf %12, %14 : vector<256x3xf32>
      %16 = math.tanh %15 : vector<256x3xf32>
      %c0_14 = arith.constant 0 : index
      %c0_15 = arith.constant 0 : index
      %17 = vector.load %arg6[%c0_14, %c0_15] : memref<256x3xf32, #tpu.memory_space<vmem>>, vector<256x3xf32>
      tpu.vector_store %arg6[%c0_14, %c0_15], %16 {strides = array<i32>} : memref<256x3xf32, #tpu.memory_space<vmem>>, vector<256x3xf32>,
    } else {
    }
    return
  }
  func.func @transform_0(%arg0: i32, %arg1: i32, %arg2: i32) -> (i32, i32) {
    %c0_i32 = arith.constant 0 : i32
    return %arg0, %arg2 : i32, i32
  }
  func.func @transform_1(%arg0: i32, %arg1: i32, %arg2: i32) -> (i32, i32) {
    %c0_i32 = arith.constant 0 : i32
    return %arg2, %arg1 : i32, i32
  }
  func.func @transform_2(%arg0: i32, %arg1: i32, %arg2: i32) -> (i32, i32) {
    %c0_i32 = arith.constant 0 : i32
    %c0_i32_0 = arith.constant 0 : i32
    return %c0_i32, %arg1 : i32, i32
  }
  func.func @transform_3(%arg0: i32, %arg1: i32, %arg2: i32) -> (i32, i32) {
    %c0_i32 = arith.constant 0 : i32
    return %arg0, %arg1 : i32, i32
  }
}

</mosaic_0001>

<bundles_post_ra>
// kernel: generator_forward.25
= control target key start
LH: loop header
LB: loop body
LE: loop exit
PB: predicated region body
PF: predicated region fallthrough
CT: control target
= control target key end

     0   :  { %s1173_s12 = smov 0   ;;  %s1175_s13 = smov 0   ;;  %s1425_s0 = inlined_call_operand.vmem [shape: bf16[512,64], index: 0, kind: input, shape index: {}]   ;;  %s1426_s1 = inlined_call_operand.vmem [shape: bf16[64,8], index: 1, kind: input, shape index: {}]   ;;  %s1427_s2 = inlined_call_operand.vmem [shape: f32[1,8], index: 2, kind: input, shape index: {}]   ;;  %s1428_s3 = inlined_call_operand.vmem [shape: f32[512,8], index: 3, kind: output, shape index: {}]  }
   0x1   :  { %s1177_s14 = smov 0  }
   0x2 LB: > { %s32_s15 = sadd.s32 1, %s1146_s13  ;;  %p971_p0 = scmp.ge.s32.totalorder %s1150_s14, 1  ;;  %s1150_s14 = sphi %s1177_s14, %s13_s14   ;;  %s1146_s13 = sphi %s1175_s13, %s1430_s13   ;;  %s1142_s12 = sphi %s1173_s12, %s1429_s12  }
   0x3   : > { %p34_p1 = scmp.ge.s32.totalorder %s32_s15, 2  ;;  %p188_p2 = scmp.lt.s32.totalorder %s1150_s14, 3 }
   0x5   : > { %s1432_s15 = smov (%p34_p1, %s32_s15), 0  ;;  %p189_p3 = pnand %p971_p0, %p188_p2 }
   0x6   : > { %s972_s18 = sshll.u32 (!%p189_p3), %s1142_s12, 5 }
   0x7   : > { %192 = sbr.rel (%p189_p3) target bundleno = 266 (0x10a), region = 32  ;;  %p230_p4 = scmp.lt.s32.totalorder (!%p189_p3), %s972_s18, 63 }
   0xc   : > { %v1108_v0 = vld [vmem:[%s1426_s1 + $0x18] sm:$0xff]   ;;  %v1109_v1 = vld [vmem:[%s1426_s1 + $0x10] sm:$0xff]   ;;  %s1434_s18 = smov (!%p230_p4, %s972_s18), 63  ;;  %v1110_v2 = vld [vmem:[%s1426_s1 + $0x8] sm:$0xff]   ;;  %vm264_vm0 = vcmask 64512   ;;  %v1152_v3 = vmov 0.0  }
   0xd   : > { %1035 = vmatprep.subr.bf16.mxu0 %v1108_v0  ;;  %1075 = vmatprep.subr.bf16.mxu1 %v1108_v0  ;;  %s973_s23 = sshll.u32 %s1434_s18, 2  ;;  %267 = vst.msk [vmem:[#allocation2 + $0x10] sm:$0xff] %vm264_vm0, %v1152_v3  ;;  %265 = vst.msk [vmem:[#allocation2] sm:$0xff] %vm264_vm0, %v1152_v3  ;;  %v1111_v4 = vld [vmem:[%s1426_s1] sm:$0xff]   ;;  %vm473_vm1 = vcmask 523264   ;;  %s975_s29 = sshll.u32 %s1434_s18, 3 }
   0xe   : > { %1036 = vmatpush3.bf16.msra.mxu0 %v1108_v0  ;;  %1079 = vmatpush3.bf16.msra.mxu1 %v1108_v0  ;;  %266 = vst.msk [vmem:[#allocation2 + $0x8] sm:$0xff] %vm264_vm0, %v1152_v3  ;;  %268 = vst.msk [vmem:[#allocation2 + $0x18] sm:$0xff] %vm264_vm0, %v1152_v3  ;;  %s1243_s28 = scalar_lea.vmem %s1425_s0, %s973_s23  ;;  %v1287_v47 = vld [vmem:[%s1427_s2] ss:$0 sm:$0xff]  ;;  %s1294_s7 = scalar_lea.vmem %s1428_s3, %s975_s29 }
   0xf   : > { %1037 = vmatprep.subr.bf16.mxu0 %v1109_v1  ;;  %1076 = vmatprep.subr.bf16.mxu1 %v1109_v1  ;;  %269 = vst.msk [vmem:[#allocation2 + $0x20] sm:$0xff] %vm264_vm0, %v1152_v3  ;;  %270 = vst.msk [vmem:[#allocation2 + $0x28] sm:$0xff] %vm264_vm0, %v1152_v3  ;;  %v1112_v5 = vld [vmem:[%s1243_s28] sm:$0xff]   ;;  %v1114_v7 = vld [vmem:[%s1243_s28 + $0x8] sm:$0xff]  }
  0x10   : > { %271 = vst.msk [vmem:[#allocation2 + $0x30] sm:$0xff] %vm264_vm0, %v1152_v3  ;;  %272 = vst.msk [vmem:[#allocation2 + $0x38] sm:$0xff] %vm264_vm0, %v1152_v3  ;;  %v1113_v6 = vld [vmem:[%s1243_s28 + $0x40] sm:$0xff]   ;;  %1043 = vmatprep.mubr.msk.bf16.mxu0 %vm473_vm1, %v1112_v5  ;;  %v1115_v8 = vld [vmem:[%s1243_s28 + $0x48] sm:$0xff]  }
  0x11   : > { %273 = vst.msk [vmem:[#allocation2 + $0x40] sm:$0xff] %vm264_vm0, %v1152_v3  ;;  %274 = vst.msk [vmem:[#allocation2 + $0x48] sm:$0xff] %vm264_vm0, %v1152_v3  ;;  %1059 = vmatprep.mubr.msk.bf16.mxu1 %vm473_vm1, %v1113_v6  ;;  %v1116_v9 = vld [vmem:[%s1243_s28 + $0x10] sm:$0xff]   ;;  %v1118_v11 = vld [vmem:[%s1243_s28 + $0x18] sm:$0xff]  }
  0x12   : > { %275 = vst.msk [vmem:[#allocation2 + $0x50] sm:$0xff] %vm264_vm0, %v1152_v3  ;;  %276 = vst.msk [vmem:[#allocation2 + $0x58] sm:$0xff] %vm264_vm0, %v1152_v3  ;;  %1038 = vmatpush3.bf16.msra.mxu0 %v1109_v1  ;;  %1080 = vmatpush3.bf16.msra.mxu1 %v1109_v1  ;;  %v1117_v10 = vld [vmem:[%s1243_s28 + $0x50] sm:$0xff]   ;;  %v1119_v12 = vld [vmem:[%s1243_s28 + $0x58] sm:$0xff]  }
  0x13   : > { %277 = vst.msk [vmem:[#allocation2 + $0x60] sm:$0xff] %vm264_vm0, %v1152_v3  ;;  %278 = vst.msk [vmem:[#allocation2 + $0x68] sm:$0xff] %vm264_vm0, %v1152_v3  ;;  %1039 = vmatprep.subr.bf16.mxu0 %v1110_v2  ;;  %1077 = vmatprep.subr.bf16.mxu1 %v1110_v2  ;;  %v1120_v13 = vld [vmem:[%s1243_s28 + $0x20] sm:$0xff]   ;;  %v1122_v15 = vld [vmem:[%s1243_s28 + $0x28] sm:$0xff]  }
  0x14   : > { %279 = vst.msk [vmem:[#allocation2 + $0x70] sm:$0xff] %vm264_vm0, %v1152_v3  ;;  %280 = vst.msk [vmem:[#allocation2 + $0x78] sm:$0xff] %vm264_vm0, %v1152_v3  ;;  %v1121_v14 = vld [vmem:[%s1243_s28 + $0x60] sm:$0xff]   ;;  %v1123_v16 = vld [vmem:[%s1243_s28 + $0x68] sm:$0xff]  }
  0x15   : > { %281 = vst.msk [vmem:[#allocation2 + $0x80] sm:$0xff] %vm264_vm0, %v1152_v3  ;;  %282 = vst.msk [vmem:[#allocation2 + $0x88] sm:$0xff] %vm264_vm0, %v1152_v3  ;;  %v1124_v17 = vld [vmem:[%s1243_s28 + $0x30] sm:$0xff]   ;;  %v1126_v19 = vld [vmem:[%s1243_s28 + $0x38] sm:$0xff]  }
  0x16   : > { %283 = vst.msk [vmem:[#allocation2 + $0x90] sm:$0xff] %vm264_vm0, %v1152_v3  ;;  %284 = vst.msk [vmem:[#allocation2 + $0x98] sm:$0xff] %vm264_vm0, %v1152_v3  ;;  %1040 = vmatpush3.bf16.msra.mxu0 %v1110_v2  ;;  %1081 = vmatpush3.bf16.msra.mxu1 %v1110_v2  ;;  %v1125_v18 = vld [vmem:[%s1243_s28 + $0x70] sm:$0xff]   ;;  %v1127_v20 = vld [vmem:[%s1243_s28 + $0x78] sm:$0xff]  }
  0x17   : > { %285 = vst.msk [vmem:[#allocation2 + $0xa0] sm:$0xff] %vm264_vm0, %v1152_v3  ;;  %286 = vst.msk [vmem:[#allocation2 + $0xa8] sm:$0xff] %vm264_vm0, %v1152_v3  ;;  %1041 = vmatprep.subr.bf16.mxu0 %v1111_v4  ;;  %1078 = vmatprep.subr.bf16.mxu1 %v1111_v4  ;;  %v331_v21 = vld [vmem:[#allocation2 + $0x10] sm:$0xff]  ;;  %v329_v25 = vld [vmem:[#allocation2] sm:$0xff] }
  0x18   : > { %287 = vst.msk [vmem:[#allocation2 + $0xb0] sm:$0xff] %vm264_vm0, %v1152_v3  ;;  %288 = vst.msk [vmem:[#allocation2 + $0xb8] sm:$0xff] %vm264_vm0, %v1152_v3  ;;  %v332_v31 = vld [vmem:[#allocation2 + $0x18] sm:$0xff]  ;;  %v330_v37 = vld [vmem:[#allocation2 + $0x8] sm:$0xff] }
  0x19   : > { %289 = vst.msk [vmem:[#allocation2 + $0xc0] sm:$0xff] %vm264_vm0, %v1152_v3  ;;  %290 = vst.msk [vmem:[#allocation2 + $0xc8] sm:$0xff] %vm264_vm0, %v1152_v3  ;;  %v335_v43 = vld [vmem:[#allocation2 + $0x30] sm:$0xff]  ;;  %v333_v50 = vld [vmem:[#allocation2 + $0x20] sm:$0xff] }
  0x1a   : > { %291 = vst.msk [vmem:[#allocation2 + $0xd0] sm:$0xff] %vm264_vm0, %v1152_v3  ;;  %292 = vst.msk [vmem:[#allocation2 + $0xd8] sm:$0xff] %vm264_vm0, %v1152_v3  ;;  %1042 = vmatpush3.bf16.msra.mxu0 %v1111_v4  ;;  %1082 = vmatpush3.bf16.msra.mxu1 %v1111_v4  ;;  %v336_v54 = vld [vmem:[#allocation2 + $0x38] sm:$0xff]  ;;  %v334_v0 = vld [vmem:[#allocation2 + $0x28] sm:$0xff] }
  0x1b   : > { %293 = vst.msk [vmem:[#allocation2 + $0xe0] sm:$0xff] %vm264_vm0, %v1152_v3  ;;  %294 = vst.msk [vmem:[#allocation2 + $0xe8] sm:$0xff] %vm264_vm0, %v1152_v3 }
  0x1c   : > { %295 = vst.msk [vmem:[#allocation2 + $0xf0] sm:$0xff] %vm264_vm0, %v1152_v3  ;;  %296 = vst.msk [vmem:[#allocation2 + $0xf8] sm:$0xff] %vm264_vm0, %v1152_v3  ;;  %v345_v26 = vld [vmem:[#allocation2 + $0x80] sm:$0xff]  ;;  %v346_v38 = vld [vmem:[#allocation2 + $0x88] sm:$0xff] }
  0x1d   : > { %1044 = vmatmul.mubr.msk.bf16.vlgmr.msra.gmra.mxu0 %vm473_vm1, %v1114_v7  ;;  %1060 = vmatmul.mubr.msk.bf16.vlgmr.msra.gmra.mxu1 %vm473_vm1, %v1115_v8  ;;  %v347_v22 = vld [vmem:[#allocation2 + $0x90] sm:$0xff]  ;;  %v348_v32 = vld [vmem:[#allocation2 + $0x98] sm:$0xff] }
  0x1e   : > { %1047 = vmatprep.mubr.msk.bf16.mxu0 %vm473_vm1, %v1116_v9  ;;  %1063 = vmatprep.mubr.msk.bf16.mxu1 %vm473_vm1, %v1117_v10  ;;  %v349_v51 = vld [vmem:[#allocation2 + $0xa0] sm:$0xff]  ;;  %v350_v5 = vld [vmem:[#allocation2 + $0xa8] sm:$0xff]  ;;  %v339_v10 = vld [vmem:[#allocation2 + $0x50] sm:$0xff] }
  0x1f   : > { %v351_v44 = vld [vmem:[#allocation2 + $0xb0] sm:$0xff]  ;;  %v352_v59 = vld [vmem:[#allocation2 + $0xb8] sm:$0xff] }
  0x25   : > { %1048 = vmatmul.mubr.msk.bf16.gmra.mxu0 %vm473_vm1, %v1118_v11  ;;  %1064 = vmatmul.mubr.msk.bf16.gmra.mxu1 %vm473_vm1, %v1119_v12 }
  0x26   : > { %1051 = vmatprep.mubr.msk.bf16.mxu0 %vm473_vm1, %v1120_v13  ;;  %1067 = vmatprep.mubr.msk.bf16.mxu1 %vm473_vm1, %v1121_v14 }
  0x2d   : > { %1052 = vmatmul.mubr.msk.bf16.gmra.mxu0 %vm473_vm1, %v1122_v15  ;;  %1068 = vmatmul.mubr.msk.bf16.gmra.mxu1 %vm473_vm1, %v1123_v16  ;;  %v355_v15 = vld [vmem:[#allocation2 + $0xd0] sm:$0xff] }
  0x2e   : > { %1055 = vmatprep.mubr.msk.bf16.mxu0 %vm473_vm1, %v1124_v17  ;;  %1071 = vmatprep.mubr.msk.bf16.mxu1 %vm473_vm1, %v1125_v18 }
  0x35   : > { %1056 = vmatmul.mubr.msk.bf16.gmra.mxu0 %vm473_vm1, %v1126_v19  ;;  %1072 = vmatmul.mubr.msk.bf16.gmra.mxu1 %vm473_vm1, %v1127_v20  ;;  %v337_v20 = vld [vmem:[#allocation2 + $0x40] sm:$0xff] }
  0xdd   : > { %v1045_v23 = vpop.f32.mrf.mxu0  ;;  %v1061_v24 = vpop.f32.mrf.mxu1 }
  0xde   : > { %v685_v27 = vadd.f32 %v1045_v23, %v331_v21  ;;  %v701_v28 = vadd.f32 %v1061_v24, %v347_v22 }
  0xdf   : > { %v556_v29 = vpop.f32.mrf.mxu0  ;;  %v620_v30 = vpop.f32.mrf.mxu1 }
  0xe0   : > { %718 = vst.msk [vmem:[#allocation2 + $0x10] sm:$0xff] %vm264_vm0, %v685_v27  ;;  %734 = vst.msk [vmem:[#allocation2 + $0x90] sm:$0xff] %vm264_vm0, %v701_v28  ;;  %v683_v33 = vadd.f32 %v556_v29, %v329_v25  ;;  %v699_v34 = vadd.f32 %v620_v30, %v345_v26  ;;  %v353_v25 = vld [vmem:[#allocation2 + $0xc0] sm:$0xff]  ;;  %v340_v30 = vld [vmem:[#allocation2 + $0x58] sm:$0xff] }
  0xe1   : > { %v1046_v35 = vpop.f32.mrf.mxu0  ;;  %v1062_v36 = vpop.f32.mrf.mxu1 }
  0xe2   : > { %716 = vst.msk [vmem:[#allocation2] sm:$0xff] %vm264_vm0, %v683_v33  ;;  %732 = vst.msk [vmem:[#allocation2 + $0x80] sm:$0xff] %vm264_vm0, %v699_v34  ;;  %v686_v39 = vadd.f32 %v1046_v35, %v332_v31  ;;  %v702_v40 = vadd.f32 %v1062_v36, %v348_v32  ;;  %v356_v35 = vld [vmem:[#allocation2 + $0xd8] sm:$0xff] }
  0xe3   : > { %v559_v41 = vpop.f32.mrf.mxu0  ;;  %v623_v42 = vpop.f32.mrf.mxu1 }
  0xe4   : > { %719 = vst.msk [vmem:[#allocation2 + $0x18] sm:$0xff] %vm264_vm0, %v686_v39  ;;  %735 = vst.msk [vmem:[#allocation2 + $0x98] sm:$0xff] %vm264_vm0, %v702_v40  ;;  %v684_v45 = vadd.f32 %v559_v41, %v330_v37  ;;  %v700_v46 = vadd.f32 %v623_v42, %v346_v38  ;;  %v338_v40 = vld [vmem:[#allocation2 + $0x48] sm:$0xff] }
  0xe5   : > { %v1049_v48 = vpop.f32.mrf.mxu0  ;;  %v1065_v49 = vpop.f32.mrf.mxu1 }
  0xe6   : > { %717 = vst.msk [vmem:[#allocation2 + $0x8] sm:$0xff] %vm264_vm0, %v684_v45  ;;  %733 = vst.msk [vmem:[#allocation2 + $0x88] sm:$0xff] %vm264_vm0, %v700_v46  ;;  %v689_v52 = vadd.f32 %v1049_v48, %v335_v43  ;;  %v705_v53 = vadd.f32 %v1065_v49, %v351_v44  ;;  %v354_v45 = vld [vmem:[#allocation2 + $0xc8] sm:$0xff] }
  0xe7   : > { %v753_v55 = vld [vmem:[#allocation2 + $0x10] sm:$0xff]  ;;  %v572_v57 = vpop.f32.mrf.mxu0  ;;  %v636_v58 = vpop.f32.mrf.mxu1 }
  0xe8   : > { %v769_v56 = vld [vmem:[#allocation2 + $0x90] sm:$0xff]  ;;  %v792_v60 = vadd.f32 %v1287_v47, %v753_v55  ;;  %722 = vst.msk [vmem:[#allocation2 + $0x30] sm:$0xff] %vm264_vm0, %v689_v52  ;;  %738 = vst.msk [vmem:[#allocation2 + $0xb0] sm:$0xff] %vm264_vm0, %v705_v53  ;;  %v687_v62 = vadd.f32 %v572_v57, %v333_v50  ;;  %v703_v63 = vadd.f32 %v636_v58, %v349_v51 }
  0xe9   : > { %v808_v61 = vadd.f32 %v1287_v47, %v769_v56  ;;  %v751_v1 = vld [vmem:[#allocation2] sm:$0xff]  ;;  %v1050_v3 = vpop.f32.mrf.mxu0  ;;  %v1066_v4 = vpop.f32.mrf.mxu1  ;;  %v343_v51 = vld [vmem:[#allocation2 + $0x70] sm:$0xff] }
  0xea   : > { %v767_v2 = vld [vmem:[#allocation2 + $0x80] sm:$0xff]  ;;  %824 = vst.msk [vmem:[%s1294_s7 + $0x10] sm:$0xff] %vm264_vm0, %v792_v60  ;;  %v790_v6 = vadd.f32 %v1287_v47, %v751_v1  ;;  %720 = vst.msk [vmem:[#allocation2 + $0x20] sm:$0xff] %vm264_vm0, %v687_v62  ;;  %v690_v8 = vadd.f32 %v1050_v3, %v336_v54  ;;  %v706_v9 = vadd.f32 %v1066_v4, %v352_v59  ;;  %v359_v56 = vld [vmem:[#allocation2 + $0xf0] sm:$0xff] }
  0xeb   : > { %840 = vst.msk [vmem:[%s1294_s7 + $0x90] sm:$0xff] %vm264_vm0, %v808_v61  ;;  %v806_v7 = vadd.f32 %v1287_v47, %v767_v2  ;;  %736 = vst.msk [vmem:[#allocation2 + $0xa0] sm:$0xff] %vm264_vm0, %v703_v63  ;;  %v754_v11 = vld [vmem:[#allocation2 + $0x18] sm:$0xff]  ;;  %v575_v13 = vpop.f32.mrf.mxu0  ;;  %v639_v14 = vpop.f32.mrf.mxu1  ;;  %v341_v61 = vld [vmem:[#allocation2 + $0x60] sm:$0xff] }
  0xec   : > { %v770_v12 = vld [vmem:[#allocation2 + $0x98] sm:$0xff]  ;;  %822 = vst.msk [vmem:[%s1294_s7] sm:$0xff] %vm264_vm0, %v790_v6  ;;  %v793_v16 = vadd.f32 %v1287_v47, %v754_v11  ;;  %723 = vst.msk [vmem:[#allocation2 + $0x38] sm:$0xff] %vm264_vm0, %v690_v8  ;;  %v688_v18 = vadd.f32 %v575_v13, %v334_v0  ;;  %v704_v19 = vadd.f32 %v639_v14, %v350_v5  ;;  %v357_v2 = vld [vmem:[#allocation2 + $0xe0] sm:$0xff] }
  0xed   : > { %838 = vst.msk [vmem:[%s1294_s7 + $0x80] sm:$0xff] %vm264_vm0, %v806_v7  ;;  %v809_v17 = vadd.f32 %v1287_v47, %v770_v12  ;;  %739 = vst.msk [vmem:[#allocation2 + $0xb8] sm:$0xff] %vm264_vm0, %v706_v9  ;;  %v752_v21 = vld [vmem:[#allocation2 + $0x8] sm:$0xff]  ;;  %v1053_v23 = vpop.f32.mrf.mxu0  ;;  %v1069_v24 = vpop.f32.mrf.mxu1  ;;  %v344_v7 = vld [vmem:[#allocation2 + $0x78] sm:$0xff] }
  0xee   : > { %v768_v22 = vld [vmem:[#allocation2 + $0x88] sm:$0xff]  ;;  %825 = vst.msk [vmem:[%s1294_s7 + $0x18] sm:$0xff] %vm264_vm0, %v793_v16  ;;  %v791_v26 = vadd.f32 %v1287_v47, %v752_v21  ;;  %721 = vst.msk [vmem:[#allocation2 + $0x28] sm:$0xff] %vm264_vm0, %v688_v18  ;;  %v693_v28 = vadd.f32 %v1053_v23, %v339_v10  ;;  %v709_v29 = vadd.f32 %v1069_v24, %v355_v15  ;;  %v360_v12 = vld [vmem:[#allocation2 + $0xf8] sm:$0xff] }
  0xef   : > { %841 = vst.msk [vmem:[%s1294_s7 + $0x98] sm:$0xff] %vm264_vm0, %v809_v17  ;;  %v807_v27 = vadd.f32 %v1287_v47, %v768_v22  ;;  %737 = vst.msk [vmem:[#allocation2 + $0xa8] sm:$0xff] %vm264_vm0, %v704_v19  ;;  %v757_v31 = vld [vmem:[#allocation2 + $0x30] sm:$0xff]  ;;  %v588_v33 = vpop.f32.mrf.mxu0  ;;  %v652_v34 = vpop.f32.mrf.mxu1  ;;  %v342_v17 = vld [vmem:[#allocation2 + $0x68] sm:$0xff] }
  0xf0   : > { %v773_v32 = vld [vmem:[#allocation2 + $0xb0] sm:$0xff]  ;;  %823 = vst.msk [vmem:[%s1294_s7 + $0x8] sm:$0xff] %vm264_vm0, %v791_v26  ;;  %v796_v36 = vadd.f32 %v1287_v47, %v757_v31  ;;  %726 = vst.msk [vmem:[#allocation2 + $0x50] sm:$0xff] %vm264_vm0, %v693_v28  ;;  %v691_v38 = vadd.f32 %v588_v33, %v337_v20  ;;  %v707_v39 = vadd.f32 %v652_v34, %v353_v25  ;;  %v358_v22 = vld [vmem:[#allocation2 + $0xe8] sm:$0xff] }
  0xf1   : > { %839 = vst.msk [vmem:[%s1294_s7 + $0x88] sm:$0xff] %vm264_vm0, %v807_v27  ;;  %v812_v37 = vadd.f32 %v1287_v47, %v773_v32  ;;  %742 = vst.msk [vmem:[#allocation2 + $0xd0] sm:$0xff] %vm264_vm0, %v709_v29  ;;  %v755_v41 = vld [vmem:[#allocation2 + $0x20] sm:$0xff]  ;;  %v1054_v43 = vpop.f32.mrf.mxu0  ;;  %v1070_v44 = vpop.f32.mrf.mxu1 }
  0xf2   : > { %v771_v42 = vld [vmem:[#allocation2 + $0xa0] sm:$0xff]  ;;  %828 = vst.msk [vmem:[%s1294_s7 + $0x30] sm:$0xff] %vm264_vm0, %v796_v36  ;;  %v794_v46 = vadd.f32 %v1287_v47, %v755_v41  ;;  %724 = vst.msk [vmem:[#allocation2 + $0x40] sm:$0xff] %vm264_vm0, %v691_v38  ;;  %v694_v49 = vadd.f32 %v1054_v43, %v340_v30  ;;  %v710_v50 = vadd.f32 %v1070_v44, %v356_v35 }
  0xf3   : > { %844 = vst.msk [vmem:[%s1294_s7 + $0xb0] sm:$0xff] %vm264_vm0, %v812_v37  ;;  %v810_v48 = vadd.f32 %v1287_v47, %v771_v42  ;;  %740 = vst.msk [vmem:[#allocation2 + $0xc0] sm:$0xff] %vm264_vm0, %v707_v39  ;;  %v758_v52 = vld [vmem:[#allocation2 + $0x38] sm:$0xff]  ;;  %v591_v54 = vpop.f32.mrf.mxu0  ;;  %v655_v55 = vpop.f32.mrf.mxu1 }
  0xf4   : > { %v774_v53 = vld [vmem:[#allocation2 + $0xb8] sm:$0xff]  ;;  %826 = vst.msk [vmem:[%s1294_s7 + $0x20] sm:$0xff] %vm264_vm0, %v794_v46  ;;  %v797_v57 = vadd.f32 %v1287_v47, %v758_v52  ;;  %727 = vst.msk [vmem:[#allocation2 + $0x58] sm:$0xff] %vm264_vm0, %v694_v49  ;;  %v692_v59 = vadd.f32 %v591_v54, %v338_v40  ;;  %v708_v60 = vadd.f32 %v655_v55, %v354_v45 }
  0xf5   : > { %842 = vst.msk [vmem:[%s1294_s7 + $0xa0] sm:$0xff] %vm264_vm0, %v810_v48  ;;  %v813_v58 = vadd.f32 %v1287_v47, %v774_v53  ;;  %743 = vst.msk [vmem:[#allocation2 + $0xd8] sm:$0xff] %vm264_vm0, %v710_v50  ;;  %v756_v62 = vld [vmem:[#allocation2 + $0x28] sm:$0xff]  ;;  %v1057_v0 = vpop.f32.mrf.mxu0  ;;  %v1073_v1 = vpop.f32.mrf.mxu1 }
  0xf6   : > { %v772_v63 = vld [vmem:[#allocation2 + $0xa8] sm:$0xff]  ;;  %829 = vst.msk [vmem:[%s1294_s7 + $0x38] sm:$0xff] %vm264_vm0, %v797_v57  ;;  %v795_v3 = vadd.f32 %v1287_v47, %v756_v62  ;;  %725 = vst.msk [vmem:[#allocation2 + $0x48] sm:$0xff] %vm264_vm0, %v692_v59  ;;  %v697_v5 = vadd.f32 %v1057_v0, %v343_v51  ;;  %v713_v6 = vadd.f32 %v1073_v1, %v359_v56 }
  0xf7   : > { %845 = vst.msk [vmem:[%s1294_s7 + $0xb8] sm:$0xff] %vm264_vm0, %v813_v58  ;;  %v811_v4 = vadd.f32 %v1287_v47, %v772_v63  ;;  %741 = vst.msk [vmem:[#allocation2 + $0xc8] sm:$0xff] %vm264_vm0, %v708_v60  ;;  %v761_v8 = vld [vmem:[#allocation2 + $0x50] sm:$0xff]  ;;  %v604_v10 = vpop.f32.mrf.mxu0  ;;  %v668_v11 = vpop.f32.mrf.mxu1 }
  0xf8   : > { %v777_v9 = vld [vmem:[#allocation2 + $0xd0] sm:$0xff]  ;;  %827 = vst.msk [vmem:[%s1294_s7 + $0x28] sm:$0xff] %vm264_vm0, %v795_v3  ;;  %v800_v13 = vadd.f32 %v1287_v47, %v761_v8  ;;  %730 = vst.msk [vmem:[#allocation2 + $0x70] sm:$0xff] %vm264_vm0, %v697_v5  ;;  %v695_v15 = vadd.f32 %v604_v10, %v341_v61  ;;  %v711_v16 = vadd.f32 %v668_v11, %v357_v2 }
  0xf9   : > { %843 = vst.msk [vmem:[%s1294_s7 + $0xa8] sm:$0xff] %vm264_vm0, %v811_v4  ;;  %v816_v14 = vadd.f32 %v1287_v47, %v777_v9  ;;  %746 = vst.msk [vmem:[#allocation2 + $0xf0] sm:$0xff] %vm264_vm0, %v713_v6  ;;  %v759_v18 = vld [vmem:[#allocation2 + $0x40] sm:$0xff]  ;;  %v1058_v20 = vpop.f32.mrf.mxu0  ;;  %v1074_v21 = vpop.f32.mrf.mxu1 }
  0xfa   : > { %v775_v19 = vld [vmem:[#allocation2 + $0xc0] sm:$0xff]  ;;  %832 = vst.msk [vmem:[%s1294_s7 + $0x50] sm:$0xff] %vm264_vm0, %v800_v13  ;;  %v798_v23 = vadd.f32 %v1287_v47, %v759_v18  ;;  %728 = vst.msk [vmem:[#allocation2 + $0x60] sm:$0xff] %vm264_vm0, %v695_v15  ;;  %v698_v25 = vadd.f32 %v1058_v20, %v344_v7  ;;  %v714_v26 = vadd.f32 %v1074_v21, %v360_v12 }
  0xfb   : > { %848 = vst.msk [vmem:[%s1294_s7 + $0xd0] sm:$0xff] %vm264_vm0, %v816_v14  ;;  %v814_v24 = vadd.f32 %v1287_v47, %v775_v19  ;;  %744 = vst.msk [vmem:[#allocation2 + $0xe0] sm:$0xff] %vm264_vm0, %v711_v16  ;;  %v762_v27 = vld [vmem:[#allocation2 + $0x58] sm:$0xff]  ;;  %v607_v29 = vpop.f32.mrf.mxu0  ;;  %v671_v30 = vpop.f32.mrf.mxu1 }
  0xfc   : > { %v778_v28 = vld [vmem:[#allocation2 + $0xd8] sm:$0xff]  ;;  %830 = vst.msk [vmem:[%s1294_s7 + $0x40] sm:$0xff] %vm264_vm0, %v798_v23  ;;  %v801_v31 = vadd.f32 %v1287_v47, %v762_v27  ;;  %731 = vst.msk [vmem:[#allocation2 + $0x78] sm:$0xff] %vm264_vm0, %v698_v25  ;;  %v696_v33 = vadd.f32 %v607_v29, %v342_v17  ;;  %v712_v34 = vadd.f32 %v671_v30, %v358_v22 }
  0xfd   : > { %846 = vst.msk [vmem:[%s1294_s7 + $0xc0] sm:$0xff] %vm264_vm0, %v814_v24  ;;  %v817_v32 = vadd.f32 %v1287_v47, %v778_v28  ;;  %747 = vst.msk [vmem:[#allocation2 + $0xf8] sm:$0xff] %vm264_vm0, %v714_v26  ;;  %v760_v35 = vld [vmem:[#allocation2 + $0x48] sm:$0xff] }
  0xfe   : > { %v776_v36 = vld [vmem:[#allocation2 + $0xc8] sm:$0xff]  ;;  %833 = vst.msk [vmem:[%s1294_s7 + $0x58] sm:$0xff] %vm264_vm0, %v801_v31  ;;  %v799_v37 = vadd.f32 %v1287_v47, %v760_v35  ;;  %729 = vst.msk [vmem:[#allocation2 + $0x68] sm:$0xff] %vm264_vm0, %v696_v33 }
  0xff   : > { %849 = vst.msk [vmem:[%s1294_s7 + $0xd8] sm:$0xff] %vm264_vm0, %v817_v32  ;;  %v815_v38 = vadd.f32 %v1287_v47, %v776_v36  ;;  %745 = vst.msk [vmem:[#allocation2 + $0xe8] sm:$0xff] %vm264_vm0, %v712_v34  ;;  %v765_v39 = vld [vmem:[#allocation2 + $0x70] sm:$0xff] }
 0x100   : > { %v781_v40 = vld [vmem:[#allocation2 + $0xf0] sm:$0xff]  ;;  %831 = vst.msk [vmem:[%s1294_s7 + $0x48] sm:$0xff] %vm264_vm0, %v799_v37  ;;  %v804_v41 = vadd.f32 %v1287_v47, %v765_v39 }
 0x101   : > { %847 = vst.msk [vmem:[%s1294_s7 + $0xc8] sm:$0xff] %vm264_vm0, %v815_v38  ;;  %v820_v42 = vadd.f32 %v1287_v47, %v781_v40  ;;  %v763_v43 = vld [vmem:[#allocation2 + $0x60] sm:$0xff] }
 0x102   : > { %v779_v44 = vld [vmem:[#allocation2 + $0xe0] sm:$0xff]  ;;  %836 = vst.msk [vmem:[%s1294_s7 + $0x70] sm:$0xff] %vm264_vm0, %v804_v41  ;;  %v802_v45 = vadd.f32 %v1287_v47, %v763_v43 }
 0x103   : > { %852 = vst.msk [vmem:[%s1294_s7 + $0xf0] sm:$0xff] %vm264_vm0, %v820_v42  ;;  %v818_v46 = vadd.f32 %v1287_v47, %v779_v44  ;;  %v766_v48 = vld [vmem:[#allocation2 + $0x78] sm:$0xff] }
 0x104   : > { %v782_v49 = vld [vmem:[#allocation2 + $0xf8] sm:$0xff]  ;;  %834 = vst.msk [vmem:[%s1294_s7 + $0x60] sm:$0xff] %vm264_vm0, %v802_v45  ;;  %v805_v50 = vadd.f32 %v1287_v47, %v766_v48 }
 0x105   : > { %850 = vst.msk [vmem:[%s1294_s7 + $0xe0] sm:$0xff] %vm264_vm0, %v818_v46  ;;  %v821_v51 = vadd.f32 %v1287_v47, %v782_v49  ;;  %v764_v52 = vld [vmem:[#allocation2 + $0x68] sm:$0xff] }
 0x106   : > { %v780_v53 = vld [vmem:[#allocation2 + $0xe8] sm:$0xff]  ;;  %837 = vst.msk [vmem:[%s1294_s7 + $0x78] sm:$0xff] %vm264_vm0, %v805_v50  ;;  %v803_v54 = vadd.f32 %v1287_v47, %v764_v52 }
 0x107   : > { %853 = vst.msk [vmem:[%s1294_s7 + $0xf8] sm:$0xff] %vm264_vm0, %v821_v51  ;;  %v819_v55 = vadd.f32 %v1287_v47, %v780_v53 }
 0x108   : > { %835 = vst.msk [vmem:[%s1294_s7 + $0x68] sm:$0xff] %vm264_vm0, %v803_v54 }
 0x109   : > { %851 = vst.msk [vmem:[%s1294_s7 + $0xe8] sm:$0xff] %vm264_vm0, %v819_v55 }
 0x10a PF: > { %s13_s14 = sadd.s32 1, %s1150_s14   ;;  %s1429_s12 = smov %s1146_s13 }
 0x10b   : > { %p10_p5 = scmp.ge.s32.totalorder %s13_s14, 4   ;;  %s1430_s13 = smov %s1432_s15 }
 0x10d   :  { %12 = sbr.rel (!%p10_p5) target bundleno = 2 (0x2), region = 76 }

// kernel: generator_forward.27
= control target key start
LH: loop header
LB: loop body
LE: loop exit
PB: predicated region body
PF: predicated region fallthrough
CT: control target
= control target key end

     0   :  { %vm14_vm0 = vcmask 122880   ;;  %vm133_vm1 = vcmask 130048   ;;  %v239_v0 = vmov 0.0   ;;  %s357_s0 = inlined_call_operand.vmem [shape: f32[128,16], index: 0, kind: input, shape index: {}]   ;;  %s358_s1 = inlined_call_operand.vmem [shape: f32[1,16], index: 1, kind: output, shape index: {0}]   ;;  %s359_s2 = inlined_call_operand.vmem [shape: f32[1,16], index: 2, kind: output, shape index: {1}]  }
   0x1   :  { %15 = vst.msk [vmem:[%s358_s1] sm:$0x1] %vm14_vm0, %v239_v0  ;;  %v17_v1 = vld [vmem:[%s357_s0] sm:$0xff]  ;;  %v18_v2 = vld [vmem:[%s357_s0 + $0x8] sm:$0xff]  ;;  %v19_v3 = vld [vmem:[%s357_s0 + $0x10] sm:$0xff] }
   0x2   :  { %16 = vst.msk [vmem:[%s359_s2] sm:$0x1] %vm14_vm0, %v239_v0  ;;  %v134_v4 = vsel %vm133_vm1, %v17_v1, 0.0  ;;  %v135_v5 = vsel %vm133_vm1, %v18_v2, 0.0  ;;  %v137_v6 = vsel %vm133_vm1, %v19_v3, 0.0  ;;  %v20_v7 = vld [vmem:[%s357_s0 + $0x18] sm:$0xff]  ;;  %v175_v15 = vmul.f32 %v17_v1, %v17_v1 }
   0x3   :  { %v136_v8 = vadd.f32 %v135_v5, %v134_v4  ;;  %v139_v9 = vsel %vm133_vm1, %v20_v7, 0.0  ;;  %v21_v10 = vld [vmem:[%s357_s0 + $0x20] sm:$0xff]  ;;  %v22_v13 = vld [vmem:[%s357_s0 + $0x28] sm:$0xff]  ;;  %v176_v16 = vmul.f32 %v18_v2, %v18_v2  ;;  %v177_v17 = vmul.f32 %v19_v3, %v19_v3  ;;  %v23_v19 = vld [vmem:[%s357_s0 + $0x30] sm:$0xff] }
   0x4   :  { %v141_v12 = vsel %vm133_vm1, %v21_v10, 0.0  ;;  %v143_v18 = vsel %vm133_vm1, %v22_v13, 0.0  ;;  %v178_v21 = vmul.f32 %v20_v7, %v20_v7  ;;  %v145_v22 = vsel %vm133_vm1, %v23_v19, 0.0  ;;  %v24_v24 = vld [vmem:[%s357_s0 + $0x38] sm:$0xff]  ;;  %v25_v31 = vld [vmem:[%s357_s0 + $0x40] sm:$0xff]  ;;  %v26_v37 = vld [vmem:[%s357_s0 + $0x48] sm:$0xff] }
   0x5   :  { %v138_v11 = vadd.f32 %v137_v6, %v136_v8  ;;  %v179_v23 = vmul.f32 %v21_v10, %v21_v10  ;;  %v191_v26 = vsel %vm133_vm1, %v175_v15, 0.0  ;;  %v192_v27 = vsel %vm133_vm1, %v176_v16, 0.0  ;;  %v27_v43 = vld [vmem:[%s357_s0 + $0x50] sm:$0xff]  ;;  %v28_v49 = vld [vmem:[%s357_s0 + $0x58] sm:$0xff]  ;;  %v29_v55 = vld [vmem:[%s357_s0 + $0x60] sm:$0xff] }
   0x6   :  { %v194_v28 = vsel %vm133_vm1, %v177_v17, 0.0  ;;  %v147_v29 = vsel %vm133_vm1, %v24_v24, 0.0  ;;  %v193_v30 = vadd.f32 %v192_v27, %v191_v26  ;;  %v180_v33 = vmul.f32 %v22_v13, %v22_v13  ;;  %v30_v61 = vld [vmem:[%s357_s0 + $0x68] sm:$0xff]  ;;  %v31_v3 = vld [vmem:[%s357_s0 + $0x70] sm:$0xff] }
   0x7   :  { %v140_v14 = vadd.f32 %v139_v9, %v138_v11  ;;  %v196_v34 = vsel %vm133_vm1, %v178_v21, 0.0  ;;  %v149_v35 = vsel %vm133_vm1, %v25_v31, 0.0  ;;  %v181_v39 = vmul.f32 %v23_v19, %v23_v19  ;;  %v32_v9 = vld [vmem:[%s357_s0 + $0x78] sm:$0xff] }
   0x8   :  { %v195_v36 = vadd.f32 %v194_v28, %v193_v30  ;;  %v198_v40 = vsel %vm133_vm1, %v179_v23, 0.0  ;;  %v151_v41 = vsel %vm133_vm1, %v26_v37, 0.0  ;;  %v182_v45 = vmul.f32 %v24_v24, %v24_v24 }
   0x9   :  { %v142_v20 = vadd.f32 %v141_v12, %v140_v14  ;;  %v200_v46 = vsel %vm133_vm1, %v180_v33, 0.0  ;;  %v153_v47 = vsel %vm133_vm1, %v27_v43, 0.0  ;;  %v183_v51 = vmul.f32 %v25_v31, %v25_v31 }
   0xa   :  { %v197_v42 = vadd.f32 %v196_v34, %v195_v36  ;;  %v202_v52 = vsel %vm133_vm1, %v181_v39, 0.0  ;;  %v155_v53 = vsel %vm133_vm1, %v28_v49, 0.0  ;;  %v184_v57 = vmul.f32 %v26_v37, %v26_v37  ;;  %v132_v36 = vld [vmem:[%s358_s1] sm:$0x1] }
   0xb   :  { %v144_v25 = vadd.f32 %v143_v18, %v142_v20  ;;  %v204_v58 = vsel %vm133_vm1, %v182_v45, 0.0  ;;  %v157_v59 = vsel %vm133_vm1, %v29_v55, 0.0  ;;  %v185_v63 = vmul.f32 %v27_v43, %v27_v43 }
   0xc   :  { %v199_v48 = vadd.f32 %v198_v40, %v197_v42  ;;  %v206_v0 = vsel %vm133_vm1, %v183_v51, 0.0  ;;  %v159_v1 = vsel %vm133_vm1, %v30_v61, 0.0  ;;  %v186_v5 = vmul.f32 %v28_v49, %v28_v49 }
   0xd   :  { %v146_v32 = vadd.f32 %v145_v22, %v144_v25  ;;  %v208_v6 = vsel %vm133_vm1, %v184_v57, 0.0  ;;  %v161_v7 = vsel %vm133_vm1, %v31_v3, 0.0  ;;  %v187_v11 = vmul.f32 %v29_v55, %v29_v55 }
   0xe   :  { %v201_v54 = vadd.f32 %v200_v46, %v199_v48  ;;  %v210_v12 = vsel %vm133_vm1, %v185_v63, 0.0  ;;  %v163_v13 = vsel %vm133_vm1, %v32_v9, 0.0  ;;  %v188_v16 = vmul.f32 %v30_v61, %v30_v61 }
   0xf   :  { %v148_v38 = vadd.f32 %v147_v29, %v146_v32  ;;  %v212_v17 = vsel %vm133_vm1, %v186_v5, 0.0  ;;  %v189_v20 = vmul.f32 %v31_v3, %v31_v3  ;;  %v214_v21 = vsel %vm133_vm1, %v187_v11, 0.0 }
  0x10   :  { %v203_v60 = vadd.f32 %v202_v52, %v201_v54  ;;  %v190_v24 = vmul.f32 %v32_v9, %v32_v9  ;;  %v216_v25 = vsel %vm133_vm1, %v188_v16, 0.0 }
  0x11   :  { %v150_v44 = vadd.f32 %v149_v35, %v148_v38  ;;  %v218_v28 = vsel %vm133_vm1, %v189_v20, 0.0 }
  0x12   :  { %v205_v2 = vadd.f32 %v204_v58, %v203_v60  ;;  %v220_v31 = vsel %vm133_vm1, %v190_v24, 0.0 }
  0x13   :  { %v152_v50 = vadd.f32 %v151_v41, %v150_v44  ;;  %v174_v44 = vld [vmem:[%s359_s2] sm:$0x1] }
  0x14   :  { %v207_v8 = vadd.f32 %v206_v0, %v205_v2 }
  0x15   :  { %v154_v56 = vadd.f32 %v153_v47, %v152_v50 }
  0x16   :  { %v209_v14 = vadd.f32 %v208_v6, %v207_v8 }
  0x17   :  { %v156_v62 = vadd.f32 %v155_v53, %v154_v56 }
  0x18   :  { %v211_v18 = vadd.f32 %v210_v12, %v209_v14 }
  0x19   :  { %v158_v4 = vadd.f32 %v157_v59, %v156_v62 }
  0x1a   :  { %v213_v22 = vadd.f32 %v212_v17, %v211_v18 }
  0x1b   :  { %v160_v10 = vadd.f32 %v159_v1, %v158_v4 }
  0x1c   :  { %v215_v26 = vadd.f32 %v214_v21, %v213_v22 }
  0x1d   :  { %v162_v15 = vadd.f32 %v161_v7, %v160_v10 }
  0x1e   :  { %v217_v29 = vadd.f32 %v216_v25, %v215_v26 }
  0x1f   :  { %v164_v19 = vadd.f32 %v163_v13, %v162_v15 }
  0x20   :  { %v219_v32 = vadd.f32 %v218_v28, %v217_v29 }
  0x21   :  { %v165_v23 = vrot.slane %v164_v19, 4 }
  0x22   :  { %v221_v34 = vadd.f32 %v220_v31, %v219_v32 }
  0x23   :  { %v166_v27 = vadd.f32 %v165_v23, %v164_v19 }
  0x24   :  { %v222_v37 = vrot.slane %v221_v34, 4 }
  0x25   :  { %v167_v30 = vrot.slane %v166_v27, 2 }
  0x26   :  { %v223_v39 = vadd.f32 %v222_v37, %v221_v34 }
  0x27   :  { %v168_v33 = vadd.f32 %v167_v30, %v166_v27 }
  0x28   :  { %v224_v41 = vrot.slane %v223_v39, 2 }
  0x29   :  { %v169_v35 = vrot.slane %v168_v33, 1 }
  0x2a   :  { %v225_v42 = vadd.f32 %v224_v41, %v223_v39 }
  0x2b   :  { %v170_v38 = vadd.f32 %v169_v35, %v168_v33 }
  0x2c   :  { %v226_v43 = vrot.slane %v225_v42, 1 }
  0x2d   :  { %v171_v40 = vadd.f32 %v170_v38, %v132_v36 }
  0x2e   :  { %v227_v45 = vadd.f32 %v226_v43, %v225_v42 }
  0x2f   :  { %173 = vst.msk [vmem:[%s358_s1] sm:$0x1] %vm14_vm0, %v171_v40 }
  0x30   :  { %v228_v46 = vadd.f32 %v227_v45, %v174_v44 }
  0x32   :  { %229 = vst.msk [vmem:[%s359_s2] sm:$0x1] %vm14_vm0, %v228_v46 }

// kernel: generator_forward.26
= control target key start
LH: loop header
LB: loop body
LE: loop exit
PB: predicated region body
PF: predicated region fallthrough
CT: control target
= control target key end

     0   :  { %vm20_vm0 = vcmask 130048   ;;  %v511_v1 = vmov 0.0   ;;  %s725_s1 = inlined_call_operand.vmem [shape: bf16[128,16], index: 1, kind: input, shape index: {}]   ;;  %s726_s0 = inlined_call_operand.vmem [shape: bf16[128,128], index: 0, kind: input, shape index: {}]   ;;  %s727_s2 = inlined_call_operand.vmem [shape: f32[1,16], index: 2, kind: input, shape index: {}]   ;;  %s728_s3 = inlined_call_operand.vmem [shape: f32[128,16], index: 3, kind: output, shape index: {}]  }
   0x1   :  { %v503_v0 = vld [vmem:[%s725_s1 + $0x38] sm:$0xff]   ;;  %23 = vst.msk [vmem:[#allocation2 + $0x10] sm:$0xff] %vm20_vm0, %v511_v1  ;;  %21 = vst.msk [vmem:[#allocation2] sm:$0xff] %vm20_vm0, %v511_v1  ;;  %v504_v2 = vld [vmem:[%s725_s1 + $0x30] sm:$0xff]  }
   0x2   :  { %22 = vst.msk [vmem:[#allocation2 + $0x8] sm:$0xff] %vm20_vm0, %v511_v1  ;;  %24 = vst.msk [vmem:[#allocation2 + $0x18] sm:$0xff] %vm20_vm0, %v511_v1  ;;  %454 = vmatprep.subr.bf16.mxu0 %v503_v0  ;;  %486 = vmatprep.subr.bf16.mxu1 %v503_v0  ;;  %v505_v3 = vld [vmem:[%s725_s1 + $0x28] sm:$0xff]   ;;  %v506_v4 = vld [vmem:[%s725_s1 + $0x20] sm:$0xff]  }
   0x3   :  { %25 = vst.msk [vmem:[#allocation2 + $0x20] sm:$0xff] %vm20_vm0, %v511_v1  ;;  %26 = vst.msk [vmem:[#allocation2 + $0x28] sm:$0xff] %vm20_vm0, %v511_v1  ;;  %455 = vmatpush3.bf16.msra.mxu0 %v503_v0  ;;  %494 = vmatpush3.bf16.msra.mxu1 %v503_v0  ;;  %v37_v5 = vld [vmem:[%s726_s0] sm:$0xf]  ;;  %v38_v6 = vld [vmem:[%s726_s0 + $0x4] sm:$0xf] }
   0x4   :  { %27 = vst.msk [vmem:[#allocation2 + $0x30] sm:$0xff] %vm20_vm0, %v511_v1  ;;  %28 = vst.msk [vmem:[#allocation2 + $0x38] sm:$0xff] %vm20_vm0, %v511_v1  ;;  %456 = vmatprep.subr.bf16.mxu0 %v504_v2  ;;  %487 = vmatprep.subr.bf16.mxu1 %v504_v2  ;;  %v45_v7 = vld [vmem:[%s726_s0 + $0x20] sm:$0xf]  ;;  %vm53_vm1 = vcmp.ge.bf16.partialorder %v37_v5, 0  ;;  %vm54_vm2 = vcmp.ge.bf16.partialorder %v38_v6, 0 }
   0x5   :  { %29 = vst.msk [vmem:[#allocation2 + $0x40] sm:$0xff] %vm20_vm0, %v511_v1  ;;  %30 = vst.msk [vmem:[#allocation2 + $0x48] sm:$0xff] %vm20_vm0, %v511_v1  ;;  %v69_v8 = vmul.bf16 1045249613, %v37_v5  ;;  %v70_v9 = vmul.bf16 1045249613, %v38_v6 }
   0x6   :  { %31 = vst.msk [vmem:[#allocation2 + $0x50] sm:$0xff] %vm20_vm0, %v511_v1  ;;  %32 = vst.msk [vmem:[#allocation2 + $0x58] sm:$0xff] %vm20_vm0, %v511_v1  ;;  %v46_v10 = vld [vmem:[%s726_s0 + $0x24] sm:$0xf]  ;;  %vm61_vm3 = vcmp.ge.bf16.partialorder %v45_v7, 0  ;;  %v507_v15 = vld [vmem:[%s725_s1 + $0x18] sm:$0xff]  }
   0x7   :  { %33 = vst.msk [vmem:[#allocation2 + $0x60] sm:$0xff] %vm20_vm0, %v511_v1  ;;  %34 = vst.msk [vmem:[#allocation2 + $0x68] sm:$0xff] %vm20_vm0, %v511_v1  ;;  %457 = vmatpush3.bf16.msra.mxu0 %v504_v2  ;;  %495 = vmatpush3.bf16.msra.mxu1 %v504_v2  ;;  %v77_v11 = vmul.bf16 1045249613, %v45_v7  ;;  %v85_v12 = vsel %vm53_vm1, %v37_v5, %v69_v8  ;;  %v86_v13 = vsel %vm54_vm2, %v38_v6, %v70_v9  ;;  %v508_v20 = vld [vmem:[%s725_s1 + $0x10] sm:$0xff]   ;;  %v509_v23 = vld [vmem:[%s725_s1 + $0x8] sm:$0xff]  }
   0x8   :  { %35 = vst.msk [vmem:[#allocation2 + $0x70] sm:$0xff] %vm20_vm0, %v511_v1  ;;  %36 = vst.msk [vmem:[#allocation2 + $0x78] sm:$0xff] %vm20_vm0, %v511_v1  ;;  %458 = vmatprep.subr.bf16.mxu0 %v505_v3  ;;  %488 = vmatprep.subr.bf16.mxu1 %v505_v3  ;;  %vm62_vm4 = vcmp.ge.bf16.partialorder %v46_v10, 0  ;;  %v78_v14 = vmul.bf16 1045249613, %v46_v10  ;;  %v421_v16 = vcombine.low %v85_v12, %v86_v13  ;;  %v510_v31 = vld [vmem:[%s725_s1] sm:$0xff]  }
   0x9   :  { %v93_v17 = vsel %vm61_vm3, %v45_v7, %v77_v11  ;;  %v39_v21 = vld [vmem:[%s726_s0 + $0x8] sm:$0xf]  ;;  %v40_v22 = vld [vmem:[%s726_s0 + $0xc] sm:$0xf]  ;;  %v41_v27 = vld [vmem:[%s726_s0 + $0x10] sm:$0xf] }
   0xa   :  { %v94_v18 = vsel %vm62_vm4, %v46_v10, %v78_v14  ;;  %470 = vmatprep.mubr.bf16.mxu0 %v421_v16  ;;  %v47_v24 = vld [vmem:[%s726_s0 + $0x28] sm:$0xf]  ;;  %v48_v25 = vld [vmem:[%s726_s0 + $0x2c] sm:$0xf]  ;;  %v71_v26 = vmul.bf16 1045249613, %v39_v21 }
   0xb   :  { %459 = vmatpush3.bf16.msra.mxu0 %v505_v3  ;;  %496 = vmatpush3.bf16.msra.mxu1 %v505_v3  ;;  %v425_v19 = vcombine.low %v93_v17, %v94_v18  ;;  %v42_v28 = vld [vmem:[%s726_s0 + $0x14] sm:$0xf]  ;;  %vm55_vm5 = vcmp.ge.bf16.partialorder %v39_v21, 0  ;;  %vm56_vm6 = vcmp.ge.bf16.partialorder %v40_v22, 0  ;;  %v49_v29 = vld [vmem:[%s726_s0 + $0x30] sm:$0xf] }
   0xc   :  { %460 = vmatprep.subr.bf16.mxu0 %v506_v4  ;;  %489 = vmatprep.subr.bf16.mxu1 %v506_v4  ;;  %v50_v30 = vld [vmem:[%s726_s0 + $0x34] sm:$0xf]  ;;  %v72_v32 = vmul.bf16 1045249613, %v40_v22  ;;  %vm63_vm7 = vcmp.ge.bf16.partialorder %v47_v24, 0  ;;  %vm64_vm8 = vcmp.ge.bf16.partialorder %v48_v25, 0  ;;  %v87_v39 = vsel %vm55_vm5, %v39_v21, %v71_v26 }
   0xd   :  { %478 = vmatprep.mubr.bf16.mxu1 %v425_v19  ;;  %v79_v33 = vmul.bf16 1045249613, %v47_v24  ;;  %v80_v34 = vmul.bf16 1045249613, %v48_v25  ;;  %v73_v35 = vmul.bf16 1045249613, %v41_v27 }
   0xe   :  { %v74_v36 = vmul.bf16 1045249613, %v42_v28  ;;  %vm57_vm9 = vcmp.ge.bf16.partialorder %v41_v27, 0  ;;  %vm58_vm10 = vcmp.ge.bf16.partialorder %v42_v28, 0  ;;  %v81_v37 = vmul.bf16 1045249613, %v49_v29 }
   0xf   :  { %461 = vmatpush3.bf16.msra.mxu0 %v506_v4  ;;  %497 = vmatpush3.bf16.msra.mxu1 %v506_v4  ;;  %v82_v38 = vmul.bf16 1045249613, %v50_v30  ;;  %vm65_vm11 = vcmp.ge.bf16.partialorder %v49_v29, 0  ;;  %vm66_vm12 = vcmp.ge.bf16.partialorder %v50_v30, 0  ;;  %v88_v40 = vsel %vm56_vm6, %v40_v22, %v72_v32  ;;  %v43_v45 = vld [vmem:[%s726_s0 + $0x18] sm:$0xf] }
  0x10   :  { %462 = vmatprep.subr.bf16.mxu0 %v507_v15  ;;  %490 = vmatprep.subr.bf16.mxu1 %v507_v15  ;;  %v95_v41 = vsel %vm63_vm7, %v47_v24, %v79_v33  ;;  %v96_v42 = vsel %vm64_vm8, %v48_v25, %v80_v34  ;;  %v89_v43 = vsel %vm57_vm9, %v41_v27, %v73_v35  ;;  %v44_v48 = vld [vmem:[%s726_s0 + $0x1c] sm:$0xf]  ;;  %v51_v49 = vld [vmem:[%s726_s0 + $0x38] sm:$0xf]  ;;  %vm59_vm13 = vcmp.ge.bf16.partialorder %v43_v45, 0  ;;  %v103_v1 = vld [vmem:[#allocation2 + $0x10] sm:$0xff] }
  0x11   :  { %v90_v44 = vsel %vm58_vm10, %v42_v28, %v74_v36  ;;  %v97_v46 = vsel %vm65_vm11, %v49_v29, %v81_v37  ;;  %v98_v47 = vsel %vm66_vm12, %v50_v30, %v82_v38  ;;  %v52_v50 = vld [vmem:[%s726_s0 + $0x3c] sm:$0xf]  ;;  %v422_v51 = vcombine.low %v87_v39, %v88_v40  ;;  %v111_v2 = vld [vmem:[#allocation2 + $0x50] sm:$0xff]  ;;  %v101_v5 = vld [vmem:[#allocation2] sm:$0xff] }
  0x12   :  { %v426_v52 = vcombine.low %v95_v41, %v96_v42  ;;  %v423_v53 = vcombine.low %v89_v43, %v90_v44  ;;  %v75_v54 = vmul.bf16 1045249613, %v43_v45  ;;  %v427_v55 = vcombine.low %v97_v46, %v98_v47  ;;  %v109_v6 = vld [vmem:[#allocation2 + $0x40] sm:$0xff]  ;;  %v104_v11 = vld [vmem:[#allocation2 + $0x18] sm:$0xff]  ;;  %v102_v17 = vld [vmem:[#allocation2 + $0x8] sm:$0xff] }
  0x13   :  { %463 = vmatpush3.bf16.msra.mxu0 %v507_v15  ;;  %498 = vmatpush3.bf16.msra.mxu1 %v507_v15  ;;  %v76_v56 = vmul.bf16 1045249613, %v44_v48  ;;  %v83_v57 = vmul.bf16 1045249613, %v51_v49  ;;  %v84_v58 = vmul.bf16 1045249613, %v52_v50 }
  0x14   :  { %464 = vmatprep.subr.bf16.mxu0 %v508_v20  ;;  %491 = vmatprep.subr.bf16.mxu1 %v508_v20  ;;  %vm60_vm14 = vcmp.ge.bf16.partialorder %v44_v48, 0  ;;  %vm67_vm15 = vcmp.ge.bf16.partialorder %v51_v49, 0  ;;  %vm68_vm1 = vcmp.ge.bf16.partialorder %v52_v50, 0  ;;  %v91_v59 = vsel %vm59_vm13, %v43_v45, %v75_v54  ;;  %v112_v12 = vld [vmem:[#allocation2 + $0x58] sm:$0xff]  ;;  %v110_v18 = vld [vmem:[#allocation2 + $0x48] sm:$0xff]  ;;  %v115_v24 = vld [vmem:[#allocation2 + $0x70] sm:$0xff] }
  0x15   :  { %v92_v60 = vsel %vm60_vm14, %v44_v48, %v76_v56  ;;  %v99_v61 = vsel %vm67_vm15, %v51_v49, %v83_v57  ;;  %v100_v62 = vsel %vm68_vm1, %v52_v50, %v84_v58  ;;  %v633_v27 = vld [vmem:[%s727_s2] ss:$0 sm:$0xff]  ;;  %v108_v34 = vld [vmem:[#allocation2 + $0x38] sm:$0xff]  ;;  %v106_v44 = vld [vmem:[#allocation2 + $0x28] sm:$0xff] }
  0x16   :  { %v424_v63 = vcombine.low %v91_v59, %v92_v60  ;;  %v428_v0 = vcombine.low %v99_v61, %v100_v62  ;;  %v105_v30 = vld [vmem:[#allocation2 + $0x20] sm:$0xff]  ;;  %v116_v39 = vld [vmem:[#allocation2 + $0x78] sm:$0xff]  ;;  %v114_v49 = vld [vmem:[#allocation2 + $0x68] sm:$0xff] }
  0x17   :  { %465 = vmatpush3.bf16.msra.mxu0 %v508_v20  ;;  %499 = vmatpush3.bf16.msra.mxu1 %v508_v20 }
  0x18   :  { %466 = vmatprep.subr.bf16.mxu0 %v509_v23  ;;  %492 = vmatprep.subr.bf16.mxu1 %v509_v23 }
  0x1b   :  { %467 = vmatpush3.bf16.msra.mxu0 %v509_v23  ;;  %500 = vmatpush3.bf16.msra.mxu1 %v509_v23  ;;  %v107_v23 = vld [vmem:[#allocation2 + $0x30] sm:$0xff] }
  0x1c   :  { %468 = vmatprep.subr.bf16.mxu0 %v510_v31  ;;  %493 = vmatprep.subr.bf16.mxu1 %v510_v31 }
  0x1f   :  { %469 = vmatpush3.bf16.msra.mxu0 %v510_v31  ;;  %501 = vmatpush3.bf16.msra.mxu1 %v510_v31  ;;  %v113_v31 = vld [vmem:[#allocation2 + $0x60] sm:$0xff] }
  0x22   :  { %471 = vmatmul.mubr.bf16.vlgmr.msra.gmra.mxu0 %v422_v51  ;;  %479 = vmatmul.mubr.bf16.vlgmr.msra.gmra.mxu1 %v426_v52 }
  0x23   :  { %474 = vmatprep.mubr.bf16.mxu0 %v423_v53  ;;  %482 = vmatprep.mubr.bf16.mxu1 %v427_v55 }
  0x2a   :  { %475 = vmatmul.mubr.bf16.gmra.mxu0 %v424_v63  ;;  %483 = vmatmul.mubr.bf16.gmra.mxu1 %v428_v0 }
  0xe2   :  { %v472_v3 = vpop.f32.mrf.mxu0  ;;  %v480_v4 = vpop.f32.mrf.mxu1 }
  0xe3   :  { %v328_v7 = vadd.f32 %v472_v3, %v103_v1  ;;  %v336_v8 = vadd.f32 %v480_v4, %v111_v2 }
  0xe4   :  { %v263_v9 = vpop.f32.mrf.mxu0  ;;  %v295_v10 = vpop.f32.mrf.mxu1 }
  0xe5   :  { %345 = vst.msk [vmem:[#allocation2 + $0x10] sm:$0xff] %vm20_vm0, %v328_v7  ;;  %353 = vst.msk [vmem:[#allocation2 + $0x50] sm:$0xff] %vm20_vm0, %v336_v8  ;;  %v326_v13 = vadd.f32 %v263_v9, %v101_v5  ;;  %v334_v14 = vadd.f32 %v295_v10, %v109_v6 }
  0xe6   :  { %v473_v15 = vpop.f32.mrf.mxu0  ;;  %v481_v16 = vpop.f32.mrf.mxu1 }
  0xe7   :  { %343 = vst.msk [vmem:[#allocation2] sm:$0xff] %vm20_vm0, %v326_v13  ;;  %351 = vst.msk [vmem:[#allocation2 + $0x40] sm:$0xff] %vm20_vm0, %v334_v14  ;;  %v329_v19 = vadd.f32 %v473_v15, %v104_v11  ;;  %v337_v20 = vadd.f32 %v481_v16, %v112_v12 }
  0xe8   :  { %v266_v21 = vpop.f32.mrf.mxu0  ;;  %v298_v22 = vpop.f32.mrf.mxu1 }
  0xe9   :  { %346 = vst.msk [vmem:[#allocation2 + $0x18] sm:$0xff] %vm20_vm0, %v329_v19  ;;  %354 = vst.msk [vmem:[#allocation2 + $0x58] sm:$0xff] %vm20_vm0, %v337_v20  ;;  %v327_v25 = vadd.f32 %v266_v21, %v102_v17  ;;  %v335_v26 = vadd.f32 %v298_v22, %v110_v18 }
  0xea   :  { %v476_v28 = vpop.f32.mrf.mxu0  ;;  %v484_v29 = vpop.f32.mrf.mxu1 }
  0xeb   :  { %344 = vst.msk [vmem:[#allocation2 + $0x8] sm:$0xff] %vm20_vm0, %v327_v25  ;;  %352 = vst.msk [vmem:[#allocation2 + $0x48] sm:$0xff] %vm20_vm0, %v335_v26  ;;  %v332_v32 = vadd.f32 %v476_v28, %v107_v23  ;;  %v340_v33 = vadd.f32 %v484_v29, %v115_v24 }
  0xec   :  { %v364_v35 = vld [vmem:[#allocation2 + $0x10] sm:$0xff]  ;;  %v279_v37 = vpop.f32.mrf.mxu0  ;;  %v311_v38 = vpop.f32.mrf.mxu1 }
  0xed   :  { %v372_v36 = vld [vmem:[#allocation2 + $0x50] sm:$0xff]  ;;  %v387_v40 = vadd.f32 %v633_v27, %v364_v35  ;;  %349 = vst.msk [vmem:[#allocation2 + $0x30] sm:$0xff] %vm20_vm0, %v332_v32  ;;  %357 = vst.msk [vmem:[#allocation2 + $0x70] sm:$0xff] %vm20_vm0, %v340_v33  ;;  %v330_v42 = vadd.f32 %v279_v37, %v105_v30  ;;  %v338_v43 = vadd.f32 %v311_v38, %v113_v31 }
  0xee   :  { %v395_v41 = vadd.f32 %v633_v27, %v372_v36  ;;  %v362_v45 = vld [vmem:[#allocation2] sm:$0xff]  ;;  %v477_v47 = vpop.f32.mrf.mxu0  ;;  %v485_v48 = vpop.f32.mrf.mxu1 }
  0xef   :  { %v370_v46 = vld [vmem:[#allocation2 + $0x40] sm:$0xff]  ;;  %403 = vst.msk [vmem:[%s728_s3 + $0x10] sm:$0xff] %vm20_vm0, %v387_v40  ;;  %v385_v50 = vadd.f32 %v633_v27, %v362_v45  ;;  %347 = vst.msk [vmem:[#allocation2 + $0x20] sm:$0xff] %vm20_vm0, %v330_v42  ;;  %v333_v52 = vadd.f32 %v477_v47, %v108_v34  ;;  %v341_v53 = vadd.f32 %v485_v48, %v116_v39 }
  0xf0   :  { %411 = vst.msk [vmem:[%s728_s3 + $0x50] sm:$0xff] %vm20_vm0, %v395_v41  ;;  %v393_v51 = vadd.f32 %v633_v27, %v370_v46  ;;  %355 = vst.msk [vmem:[#allocation2 + $0x60] sm:$0xff] %vm20_vm0, %v338_v43  ;;  %v365_v54 = vld [vmem:[#allocation2 + $0x18] sm:$0xff]  ;;  %v282_v56 = vpop.f32.mrf.mxu0  ;;  %v314_v57 = vpop.f32.mrf.mxu1 }
  0xf1   :  { %v373_v55 = vld [vmem:[#allocation2 + $0x58] sm:$0xff]  ;;  %401 = vst.msk [vmem:[%s728_s3] sm:$0xff] %vm20_vm0, %v385_v50  ;;  %v388_v58 = vadd.f32 %v633_v27, %v365_v54  ;;  %350 = vst.msk [vmem:[#allocation2 + $0x38] sm:$0xff] %vm20_vm0, %v333_v52  ;;  %v331_v60 = vadd.f32 %v282_v56, %v106_v44  ;;  %v339_v61 = vadd.f32 %v314_v57, %v114_v49 }
  0xf2   :  { %409 = vst.msk [vmem:[%s728_s3 + $0x40] sm:$0xff] %vm20_vm0, %v393_v51  ;;  %v396_v59 = vadd.f32 %v633_v27, %v373_v55  ;;  %358 = vst.msk [vmem:[#allocation2 + $0x78] sm:$0xff] %vm20_vm0, %v341_v53  ;;  %v363_v62 = vld [vmem:[#allocation2 + $0x8] sm:$0xff] }
  0xf3   :  { %v371_v63 = vld [vmem:[#allocation2 + $0x48] sm:$0xff]  ;;  %404 = vst.msk [vmem:[%s728_s3 + $0x18] sm:$0xff] %vm20_vm0, %v388_v58  ;;  %v386_v0 = vadd.f32 %v633_v27, %v363_v62  ;;  %348 = vst.msk [vmem:[#allocation2 + $0x28] sm:$0xff] %vm20_vm0, %v331_v60 }
  0xf4   :  { %412 = vst.msk [vmem:[%s728_s3 + $0x58] sm:$0xff] %vm20_vm0, %v396_v59  ;;  %v394_v1 = vadd.f32 %v633_v27, %v371_v63  ;;  %356 = vst.msk [vmem:[#allocation2 + $0x68] sm:$0xff] %vm20_vm0, %v339_v61  ;;  %v368_v2 = vld [vmem:[#allocation2 + $0x30] sm:$0xff] }
  0xf5   :  { %v376_v3 = vld [vmem:[#allocation2 + $0x70] sm:$0xff]  ;;  %402 = vst.msk [vmem:[%s728_s3 + $0x8] sm:$0xff] %vm20_vm0, %v386_v0  ;;  %v391_v4 = vadd.f32 %v633_v27, %v368_v2 }
  0xf6   :  { %410 = vst.msk [vmem:[%s728_s3 + $0x48] sm:$0xff] %vm20_vm0, %v394_v1  ;;  %v399_v5 = vadd.f32 %v633_v27, %v376_v3  ;;  %v366_v6 = vld [vmem:[#allocation2 + $0x20] sm:$0xff] }
  0xf7   :  { %v374_v7 = vld [vmem:[#allocation2 + $0x60] sm:$0xff]  ;;  %407 = vst.msk [vmem:[%s728_s3 + $0x30] sm:$0xff] %vm20_vm0, %v391_v4  ;;  %v389_v8 = vadd.f32 %v633_v27, %v366_v6 }
  0xf8   :  { %415 = vst.msk [vmem:[%s728_s3 + $0x70] sm:$0xff] %vm20_vm0, %v399_v5  ;;  %v397_v9 = vadd.f32 %v633_v27, %v374_v7  ;;  %v369_v10 = vld [vmem:[#allocation2 + $0x38] sm:$0xff] }
  0xf9   :  { %v377_v11 = vld [vmem:[#allocation2 + $0x78] sm:$0xff]  ;;  %405 = vst.msk [vmem:[%s728_s3 + $0x20] sm:$0xff] %vm20_vm0, %v389_v8  ;;  %v392_v12 = vadd.f32 %v633_v27, %v369_v10 }
  0xfa   :  { %413 = vst.msk [vmem:[%s728_s3 + $0x60] sm:$0xff] %vm20_vm0, %v397_v9  ;;  %v400_v13 = vadd.f32 %v633_v27, %v377_v11  ;;  %v367_v14 = vld [vmem:[#allocation2 + $0x28] sm:$0xff] }
  0xfb   :  { %v375_v15 = vld [vmem:[#allocation2 + $0x68] sm:$0xff]  ;;  %408 = vst.msk [vmem:[%s728_s3 + $0x38] sm:$0xff] %vm20_vm0, %v392_v12  ;;  %v390_v16 = vadd.f32 %v633_v27, %v367_v14 }
  0xfc   :  { %416 = vst.msk [vmem:[%s728_s3 + $0x78] sm:$0xff] %vm20_vm0, %v400_v13  ;;  %v398_v17 = vadd.f32 %v633_v27, %v375_v15 }
  0xfd   :  { %406 = vst.msk [vmem:[%s728_s3 + $0x28] sm:$0xff] %vm20_vm0, %v390_v16 }
  0xfe   :  { %414 = vst.msk [vmem:[%s728_s3 + $0x68] sm:$0xff] %vm20_vm0, %v398_v17 }

// kernel: generator_forward.28
= control target key start
LH: loop header
LB: loop body
LE: loop exit
PB: predicated region body
PF: predicated region fallthrough
CT: control target
= control target key end

     0   :  { %vm76_vm0 = vcmask 130048   ;;  %s237_s0 = inlined_call_operand.vmem [shape: f32[128,16], index: 0, kind: input, shape index: {}]   ;;  %s238_s1 = inlined_call_operand.vmem [shape: f32[1,16], index: 1, kind: input, shape index: {}]   ;;  %s239_s2 = inlined_call_operand.vmem [shape: f32[1,16], index: 2, kind: input, shape index: {}]   ;;  %s240_s3 = inlined_call_operand.vmem [shape: f32[128,16], index: 3, kind: output, shape index: {}]  }
   0x1   :  { %v14_v0 = vld [vmem:[%s237_s0] sm:$0xff]  ;;  %v15_v4 = vld [vmem:[%s237_s0 + $0x8] sm:$0xff]  ;;  %v16_v5 = vld [vmem:[%s237_s0 + $0x10] sm:$0xff] }
   0x2   :  { %v97_v1 = vld [vmem:[%s238_s1] ss:$0 sm:$0xff]  ;;  %v17_v6 = vld [vmem:[%s237_s0 + $0x18] sm:$0xff]  ;;  %v19_v11 = vld [vmem:[%s237_s0 + $0x28] sm:$0xff] }
   0x3   :  { %v98_v2 = vld [vmem:[%s239_s2] ss:$0 sm:$0xff]  ;;  %v37_v3 = vmul.f32 %v97_v1, %v14_v0  ;;  %v38_v7 = vmul.f32 %v97_v1, %v15_v4  ;;  %v39_v8 = vmul.f32 %v97_v1, %v16_v5  ;;  %v40_v9 = vmul.f32 %v97_v1, %v17_v6  ;;  %v20_v12 = vld [vmem:[%s237_s0 + $0x30] sm:$0xff]  ;;  %v21_v17 = vld [vmem:[%s237_s0 + $0x38] sm:$0xff] }
   0x4   :  { %v18_v10 = vld [vmem:[%s237_s0 + $0x20] sm:$0xff]  ;;  %v42_v15 = vmul.f32 %v97_v1, %v19_v11  ;;  %v43_v16 = vmul.f32 %v97_v1, %v20_v12  ;;  %v23_v19 = vld [vmem:[%s237_s0 + $0x48] sm:$0xff]  ;;  %v44_v23 = vmul.f32 %v97_v1, %v21_v17  ;;  %v24_v24 = vld [vmem:[%s237_s0 + $0x50] sm:$0xff] }
   0x5   :  { %v60_v13 = vadd.f32 %v98_v2, %v37_v3  ;;  %v41_v14 = vmul.f32 %v97_v1, %v18_v10  ;;  %v22_v18 = vld [vmem:[%s237_s0 + $0x40] sm:$0xff]  ;;  %v61_v20 = vadd.f32 %v98_v2, %v38_v7  ;;  %v62_v21 = vadd.f32 %v98_v2, %v39_v8  ;;  %v25_v25 = vld [vmem:[%s237_s0 + $0x58] sm:$0xff]  ;;  %v27_v31 = vld [vmem:[%s237_s0 + $0x68] sm:$0xff] }
   0x6   :  { %v63_v22 = vadd.f32 %v98_v2, %v40_v9  ;;  %v26_v26 = vld [vmem:[%s237_s0 + $0x60] sm:$0xff]  ;;  %v65_v28 = vadd.f32 %v98_v2, %v42_v15  ;;  %v66_v29 = vadd.f32 %v98_v2, %v43_v16  ;;  %v45_v30 = vmul.f32 %v97_v1, %v22_v18  ;;  %v28_v32 = vld [vmem:[%s237_s0 + $0x70] sm:$0xff]  ;;  %v29_v33 = vld [vmem:[%s237_s0 + $0x78] sm:$0xff] }
   0x7   :  { %77 = vst.msk [vmem:[%s240_s3] sm:$0xff] %vm76_vm0, %v60_v13  ;;  %v64_v27 = vadd.f32 %v98_v2, %v41_v14  ;;  %78 = vst.msk [vmem:[%s240_s3 + $0x8] sm:$0xff] %vm76_vm0, %v61_v20  ;;  %v67_v34 = vadd.f32 %v98_v2, %v44_v23  ;;  %v46_v35 = vmul.f32 %v97_v1, %v23_v19 }
   0x8   :  { %79 = vst.msk [vmem:[%s240_s3 + $0x10] sm:$0xff] %vm76_vm0, %v62_v21  ;;  %80 = vst.msk [vmem:[%s240_s3 + $0x18] sm:$0xff] %vm76_vm0, %v63_v22  ;;  %v47_v36 = vmul.f32 %v97_v1, %v24_v24  ;;  %v48_v37 = vmul.f32 %v97_v1, %v25_v25  ;;  %v68_v38 = vadd.f32 %v98_v2, %v45_v30 }
   0x9   :  { %81 = vst.msk [vmem:[%s240_s3 + $0x20] sm:$0xff] %vm76_vm0, %v64_v27  ;;  %82 = vst.msk [vmem:[%s240_s3 + $0x28] sm:$0xff] %vm76_vm0, %v65_v28  ;;  %v49_v39 = vmul.f32 %v97_v1, %v26_v26  ;;  %v50_v40 = vmul.f32 %v97_v1, %v27_v31  ;;  %v51_v41 = vmul.f32 %v97_v1, %v28_v32 }
   0xa   :  { %83 = vst.msk [vmem:[%s240_s3 + $0x30] sm:$0xff] %vm76_vm0, %v66_v29  ;;  %84 = vst.msk [vmem:[%s240_s3 + $0x38] sm:$0xff] %vm76_vm0, %v67_v34  ;;  %v69_v42 = vadd.f32 %v98_v2, %v46_v35  ;;  %v70_v43 = vadd.f32 %v98_v2, %v47_v36  ;;  %v71_v44 = vadd.f32 %v98_v2, %v48_v37 }
   0xb   :  { %v52_v45 = vmul.f32 %v97_v1, %v29_v33  ;;  %85 = vst.msk [vmem:[%s240_s3 + $0x40] sm:$0xff] %vm76_vm0, %v68_v38  ;;  %v72_v46 = vadd.f32 %v98_v2, %v49_v39  ;;  %v73_v47 = vadd.f32 %v98_v2, %v50_v40  ;;  %v74_v48 = vadd.f32 %v98_v2, %v51_v41 }
   0xc   :  { %86 = vst.msk [vmem:[%s240_s3 + $0x48] sm:$0xff] %vm76_vm0, %v69_v42  ;;  %87 = vst.msk [vmem:[%s240_s3 + $0x50] sm:$0xff] %vm76_vm0, %v70_v43 }
   0xd   :  { %88 = vst.msk [vmem:[%s240_s3 + $0x58] sm:$0xff] %vm76_vm0, %v71_v44  ;;  %v75_v49 = vadd.f32 %v98_v2, %v52_v45  ;;  %89 = vst.msk [vmem:[%s240_s3 + $0x60] sm:$0xff] %vm76_vm0, %v72_v46 }
   0xe   :  { %90 = vst.msk [vmem:[%s240_s3 + $0x68] sm:$0xff] %vm76_vm0, %v73_v47  ;;  %91 = vst.msk [vmem:[%s240_s3 + $0x70] sm:$0xff] %vm76_vm0, %v74_v48 }
   0xf   :  { %92 = vst.msk [vmem:[%s240_s3 + $0x78] sm:$0xff] %vm76_vm0, %v75_v49 }

// kernel: generator_forward.31
= control target key start
LH: loop header
LB: loop body
LE: loop exit
PB: predicated region body
PF: predicated region fallthrough
CT: control target
= control target key end

     0   :  { %vm40_vm0 = vcmask 261120   ;;  %s101_s0 = inlined_call_operand.vmem [shape: f32[32,32], index: 0, kind: input, shape index: {}]   ;;  %s102_s1 = inlined_call_operand.vmem [shape: f32[1,32], index: 1, kind: input, shape index: {}]   ;;  %s103_s2 = inlined_call_operand.vmem [shape: f32[1,32], index: 2, kind: input, shape index: {}]   ;;  %s104_s3 = inlined_call_operand.vmem [shape: f32[32,32], index: 3, kind: output, shape index: {}]  }
   0x1   :  { %v14_v0 = vld [vmem:[%s101_s0] sm:$0xff]  ;;  %v15_v4 = vld [vmem:[%s101_s0 + $0x8] sm:$0xff]  ;;  %v16_v5 = vld [vmem:[%s101_s0 + $0x10] sm:$0xff] }
   0x2   :  { %v49_v1 = vld [vmem:[%s102_s1] ss:$0 sm:$0xff]  ;;  %v17_v6 = vld [vmem:[%s101_s0 + $0x18] sm:$0xff] }
   0x3   :  { %v50_v2 = vld [vmem:[%s103_s2] ss:$0 sm:$0xff]  ;;  %v25_v3 = vmul.f32 %v49_v1, %v14_v0  ;;  %v26_v7 = vmul.f32 %v49_v1, %v15_v4  ;;  %v27_v8 = vmul.f32 %v49_v1, %v16_v5  ;;  %v28_v9 = vmul.f32 %v49_v1, %v17_v6 }
   0x5   :  { %v36_v10 = vadd.f32 %v50_v2, %v25_v3  ;;  %v37_v11 = vadd.f32 %v50_v2, %v26_v7  ;;  %v38_v12 = vadd.f32 %v50_v2, %v27_v8  ;;  %v39_v13 = vadd.f32 %v50_v2, %v28_v9 }
   0x7   :  { %41 = vst.msk [vmem:[%s104_s3] sm:$0xff] %vm40_vm0, %v36_v10  ;;  %42 = vst.msk [vmem:[%s104_s3 + $0x8] sm:$0xff] %vm40_vm0, %v37_v11 }
   0x8   :  { %43 = vst.msk [vmem:[%s104_s3 + $0x10] sm:$0xff] %vm40_vm0, %v38_v12  ;;  %44 = vst.msk [vmem:[%s104_s3 + $0x18] sm:$0xff] %vm40_vm0, %v39_v13 }

// kernel: generator_forward.30
= control target key start
LH: loop header
LB: loop body
LE: loop exit
PB: predicated region body
PF: predicated region fallthrough
CT: control target
= control target key end

     0   :  { %vm14_vm0 = vcmask 253952   ;;  %vm49_vm1 = vcmask 261120   ;;  %v95_v0 = vmov 0.0   ;;  %s153_s0 = inlined_call_operand.vmem [shape: f32[32,32], index: 0, kind: input, shape index: {}]   ;;  %s154_s1 = inlined_call_operand.vmem [shape: f32[1,32], index: 1, kind: output, shape index: {0}]   ;;  %s155_s2 = inlined_call_operand.vmem [shape: f32[1,32], index: 2, kind: output, shape index: {1}]  }
   0x1   :  { %15 = vst.msk [vmem:[%s154_s1] sm:$0x1] %vm14_vm0, %v95_v0  ;;  %v17_v1 = vld [vmem:[%s153_s0] sm:$0xff]  ;;  %v18_v2 = vld [vmem:[%s153_s0 + $0x8] sm:$0xff]  ;;  %v19_v3 = vld [vmem:[%s153_s0 + $0x10] sm:$0xff] }
   0x2   :  { %16 = vst.msk [vmem:[%s155_s2] sm:$0x1] %vm14_vm0, %v95_v0  ;;  %v20_v4 = vld [vmem:[%s153_s0 + $0x18] sm:$0xff]  ;;  %v50_v5 = vsel %vm49_vm1, %v17_v1, 0.0  ;;  %v51_v6 = vsel %vm49_vm1, %v18_v2, 0.0  ;;  %v53_v7 = vsel %vm49_vm1, %v19_v3, 0.0  ;;  %v67_v8 = vmul.f32 %v17_v1, %v17_v1 }
   0x3   :  { %v52_v9 = vadd.f32 %v51_v6, %v50_v5  ;;  %v68_v10 = vmul.f32 %v18_v2, %v18_v2  ;;  %v69_v11 = vmul.f32 %v19_v3, %v19_v3  ;;  %v55_v12 = vsel %vm49_vm1, %v20_v4, 0.0 }
   0x4   :  { %v70_v13 = vmul.f32 %v20_v4, %v20_v4  ;;  %v71_v14 = vsel %vm49_vm1, %v67_v8, 0.0 }
   0x5   :  { %v54_v15 = vadd.f32 %v53_v7, %v52_v9  ;;  %v72_v16 = vsel %vm49_vm1, %v68_v10, 0.0  ;;  %v74_v17 = vsel %vm49_vm1, %v69_v11, 0.0 }
   0x6   :  { %v73_v18 = vadd.f32 %v72_v16, %v71_v14  ;;  %v76_v20 = vsel %vm49_vm1, %v70_v13, 0.0 }
   0x7   :  { %v56_v19 = vadd.f32 %v55_v12, %v54_v15 }
   0x8   :  { %v75_v21 = vadd.f32 %v74_v17, %v73_v18  ;;  %v48_v31 = vld [vmem:[%s154_s1] sm:$0x1] }
   0x9   :  { %v57_v22 = vrot.slane %v56_v19, 4  ;;  %v66_v36 = vld [vmem:[%s155_s2] sm:$0x1] }
   0xa   :  { %v77_v23 = vadd.f32 %v76_v20, %v75_v21 }
   0xb   :  { %v58_v24 = vadd.f32 %v57_v22, %v56_v19 }
   0xc   :  { %v78_v25 = vrot.slane %v77_v23, 4 }
   0xd   :  { %v59_v26 = vrot.slane %v58_v24, 2 }
   0xe   :  { %v79_v27 = vadd.f32 %v78_v25, %v77_v23 }
   0xf   :  { %v60_v28 = vadd.f32 %v59_v26, %v58_v24 }
  0x10   :  { %v80_v29 = vrot.slane %v79_v27, 2 }
  0x11   :  { %v61_v30 = vrot.slane %v60_v28, 1 }
  0x12   :  { %v81_v32 = vadd.f32 %v80_v29, %v79_v27 }
  0x13   :  { %v62_v33 = vadd.f32 %v61_v30, %v60_v28 }
  0x14   :  { %v82_v34 = vrot.slane %v81_v32, 1 }
  0x15   :  { %v63_v35 = vadd.f32 %v62_v33, %v48_v31 }
  0x16   :  { %v83_v37 = vadd.f32 %v82_v34, %v81_v32 }
  0x17   :  { %65 = vst.msk [vmem:[%s154_s1] sm:$0x1] %vm14_vm0, %v63_v35 }
  0x18   :  { %v84_v38 = vadd.f32 %v83_v37, %v66_v36 }
  0x1a   :  { %85 = vst.msk [vmem:[%s155_s2] sm:$0x1] %vm14_vm0, %v84_v38 }

// kernel: generator_forward.29
= control target key start
LH: loop header
LB: loop body
LE: loop exit
PB: predicated region body
PF: predicated region fallthrough
CT: control target
= control target key end

     0   :  { %vm20_vm4 = vcmask 261120   ;;  %v359_v32 = vmov 0.0   ;;  %s467_s1 = inlined_call_operand.vmem [shape: bf16[256,32], index: 1, kind: input, shape index: {}]   ;;  %s468_s0 = inlined_call_operand.vmem [shape: bf16[32,256], index: 0, kind: input, shape index: {}]   ;;  %s469_s2 = inlined_call_operand.vmem [shape: f32[1,32], index: 2, kind: input, shape index: {}]   ;;  %s470_s3 = inlined_call_operand.vmem [shape: f32[32,32], index: 3, kind: output, shape index: {}]  }
   0x1   :  { %v343_v0 = vld [vmem:[%s467_s1 + $0x78] sm:$0xff]   ;;  %v345_v2 = vld [vmem:[%s467_s1 + $0x70] sm:$0xff]   ;;  %v347_v4 = vld [vmem:[%s467_s1 + $0x68] sm:$0xff]   ;;  %21 = vst.msk [vmem:[#allocation2] sm:$0xff] %vm20_vm4, %v359_v32 }
   0x2   :  { %v344_v1 = vld [vmem:[%s467_s1 + $0x38] sm:$0xff]   ;;  %298 = vmatprep.subr.bf16.mxu0 %v343_v0  ;;  %326 = vmatprep.subr.bf16.mxu1 %v343_v0  ;;  %v346_v3 = vld [vmem:[%s467_s1 + $0x30] sm:$0xff]   ;;  %v348_v5 = vld [vmem:[%s467_s1 + $0x28] sm:$0xff]   ;;  %22 = vst.msk [vmem:[#allocation2 + $0x8] sm:$0xff] %vm20_vm4, %v359_v32 }
   0x3   :  { %299 = vmatpush3.bf16.msra.mxu0 %v344_v1  ;;  %334 = vmatpush3.bf16.msra.mxu1 %v344_v1  ;;  %v349_v6 = vld [vmem:[%s467_s1 + $0x60] sm:$0xff]   ;;  %v351_v8 = vld [vmem:[%s467_s1 + $0x58] sm:$0xff]   ;;  %v353_v10 = vld [vmem:[%s467_s1 + $0x50] sm:$0xff]   ;;  %23 = vst.msk [vmem:[#allocation2 + $0x10] sm:$0xff] %vm20_vm4, %v359_v32 }
   0x4   :  { %300 = vmatprep.subr.bf16.mxu0 %v345_v2  ;;  %327 = vmatprep.subr.bf16.mxu1 %v345_v2  ;;  %v350_v7 = vld [vmem:[%s467_s1 + $0x20] sm:$0xff]   ;;  %v352_v9 = vld [vmem:[%s467_s1 + $0x18] sm:$0xff]   ;;  %v26_v12 = vld [vmem:[%s468_s0 + $0x8] sm:$0xff]  ;;  %24 = vst.msk [vmem:[#allocation2 + $0x18] sm:$0xff] %vm20_vm4, %v359_v32 }
   0x5   :  { %v25_v11 = vld [vmem:[%s468_s0] sm:$0xff]  ;;  %v27_v13 = vld [vmem:[%s468_s0 + $0x10] sm:$0xff]  ;;  %vm30_vm1 = vcmp.ge.bf16.partialorder %v26_v12, 0  ;;  %v34_v15 = vmul.bf16 1045249613, %v26_v12  ;;  %v28_v16 = vld [vmem:[%s468_s0 + $0x18] sm:$0xff] }
   0x6   :  { %vm29_vm0 = vcmp.ge.bf16.partialorder %v25_v11, 0  ;;  %v33_v14 = vmul.bf16 1045249613, %v25_v11  ;;  %vm31_vm2 = vcmp.ge.bf16.partialorder %v27_v13, 0  ;;  %v35_v17 = vmul.bf16 1045249613, %v27_v13 }
   0x7   :  { %301 = vmatpush3.bf16.msra.mxu0 %v346_v3  ;;  %335 = vmatpush3.bf16.msra.mxu1 %v346_v3  ;;  %v354_v18 = vld [vmem:[%s467_s1 + $0x10] sm:$0xff]   ;;  %v38_v20 = vsel %vm30_vm1, %v26_v12, %v34_v15  ;;  %vm32_vm3 = vcmp.ge.bf16.partialorder %v28_v16, 0  ;;  %v36_v21 = vmul.bf16 1045249613, %v28_v16  ;;  %v355_v22 = vld [vmem:[%s467_s1 + $0x48] sm:$0xff]   ;;  %v357_v28 = vld [vmem:[%s467_s1 + $0x40] sm:$0xff]  }
   0x8   :  { %302 = vmatprep.subr.bf16.mxu0 %v347_v4  ;;  %328 = vmatprep.subr.bf16.mxu1 %v347_v4  ;;  %v37_v19 = vsel %vm29_vm0, %v25_v11, %v33_v14  ;;  %v39_v24 = vsel %vm31_vm2, %v27_v13, %v35_v17  ;;  %v356_v27 = vld [vmem:[%s467_s1 + $0x8] sm:$0xff]   ;;  %v358_v29 = vld [vmem:[%s467_s1] sm:$0xff]  }
   0x9   :  { %v278_v23 = vcombine.high %v37_v19, %v38_v20  ;;  %v40_v25 = vsel %vm32_vm3, %v28_v16, %v36_v21  ;;  %v277_v30 = vcombine.low %v37_v19, %v38_v20  ;;  %v41_v35 = vld [vmem:[#allocation2] sm:$0xff]  ;;  %v42_v45 = vld [vmem:[#allocation2 + $0x8] sm:$0xff] }
   0xa   :  { %v280_v26 = vcombine.high %v39_v24, %v40_v25  ;;  %v279_v31 = vcombine.low %v39_v24, %v40_v25  ;;  %v43_v37 = vld [vmem:[#allocation2 + $0x10] sm:$0xff]  ;;  %v297_v53 = vld [vmem:[%s469_s2] ss:$0 sm:$0xff] }
   0xb   :  { %303 = vmatpush3.bf16.msra.mxu0 %v348_v5  ;;  %336 = vmatpush3.bf16.msra.mxu1 %v348_v5  ;;  %v44_v47 = vld [vmem:[#allocation2 + $0x18] sm:$0xff] }
   0xc   :  { %304 = vmatprep.subr.bf16.mxu0 %v349_v6  ;;  %329 = vmatprep.subr.bf16.mxu1 %v349_v6 }
   0xd   :  { %225 = vmatprep.mubr.bf16.mxu0 %v278_v23  ;;  %233 = vmatprep.mubr.bf16.mxu1 %v280_v26 }
   0xf   :  { %305 = vmatpush3.bf16.msra.mxu0 %v350_v7  ;;  %337 = vmatpush3.bf16.msra.mxu1 %v350_v7 }
  0x10   :  { %306 = vmatprep.subr.bf16.mxu0 %v351_v8  ;;  %330 = vmatprep.subr.bf16.mxu1 %v351_v8 }
  0x13   :  { %307 = vmatpush3.bf16.msra.mxu0 %v352_v9  ;;  %338 = vmatpush3.bf16.msra.mxu1 %v352_v9 }
  0x14   :  { %308 = vmatprep.subr.bf16.mxu0 %v353_v10  ;;  %331 = vmatprep.subr.bf16.mxu1 %v353_v10 }
  0x17   :  { %309 = vmatpush3.bf16.msra.mxu0 %v354_v18  ;;  %339 = vmatpush3.bf16.msra.mxu1 %v354_v18 }
  0x18   :  { %310 = vmatprep.subr.bf16.mxu0 %v355_v22  ;;  %332 = vmatprep.subr.bf16.mxu1 %v355_v22 }
  0x1b   :  { %311 = vmatpush3.bf16.msra.mxu0 %v356_v27  ;;  %340 = vmatpush3.bf16.msra.mxu1 %v356_v27 }
  0x1c   :  { %312 = vmatprep.subr.bf16.mxu0 %v357_v28  ;;  %333 = vmatprep.subr.bf16.mxu1 %v357_v28 }
  0x1f   :  { %313 = vmatpush3.bf16.msra.mxu0 %v358_v29  ;;  %341 = vmatpush3.bf16.msra.mxu1 %v358_v29 }
  0x22   :  { %226 = vmatmul.mubr.bf16.vlgmr.msra.gmra.mxu0 %v277_v30  ;;  %234 = vmatmul.mubr.bf16.vlgmr.msra.gmra.mxu1 %v279_v31 }
  0xe2   :  { %v314_v33 = vpop.f32.mrf.mxu0  ;;  %v320_v34 = vpop.f32.mrf.mxu1 }
  0xe4   :  { %v315_v36 = vpop.f32.mrf.mxu0  ;;  %v321_v38 = vpop.f32.mrf.mxu1 }
  0xe5   :  { %v316_v39 = vadd.f32 %v315_v36, %v314_v33  ;;  %v322_v40 = vadd.f32 %v321_v38, %v320_v34 }
  0xe6   :  { %v317_v41 = vpop.f32.mrf.mxu0  ;;  %v323_v42 = vpop.f32.mrf.mxu1 }
  0xe7   :  { %v242_v43 = vadd.f32 %v316_v39, %v41_v35  ;;  %v244_v44 = vadd.f32 %v322_v40, %v43_v37 }
  0xe8   :  { %v318_v46 = vpop.f32.mrf.mxu0  ;;  %v324_v48 = vpop.f32.mrf.mxu1 }
  0xe9   :  { %247 = vst.msk [vmem:[#allocation2] sm:$0xff] %vm20_vm4, %v242_v43  ;;  %249 = vst.msk [vmem:[#allocation2 + $0x10] sm:$0xff] %vm20_vm4, %v244_v44  ;;  %v319_v49 = vadd.f32 %v318_v46, %v317_v41  ;;  %v325_v50 = vadd.f32 %v324_v48, %v323_v42 }
  0xeb   :  { %v243_v51 = vadd.f32 %v319_v49, %v42_v45  ;;  %v245_v52 = vadd.f32 %v325_v50, %v44_v47 }
  0xed   :  { %248 = vst.msk [vmem:[#allocation2 + $0x8] sm:$0xff] %vm20_vm4, %v243_v51  ;;  %250 = vst.msk [vmem:[#allocation2 + $0x18] sm:$0xff] %vm20_vm4, %v245_v52 }
  0xf0   :  { %v254_v54 = vld [vmem:[#allocation2] sm:$0xff]  ;;  %v256_v55 = vld [vmem:[#allocation2 + $0x10] sm:$0xff] }
  0xf1   :  { %v265_v56 = vadd.f32 %v297_v53, %v254_v54  ;;  %v267_v57 = vadd.f32 %v297_v53, %v256_v55 }
  0xf3   :  { %269 = vst.msk [vmem:[%s470_s3] sm:$0xff] %vm20_vm4, %v265_v56  ;;  %271 = vst.msk [vmem:[%s470_s3 + $0x10] sm:$0xff] %vm20_vm4, %v267_v57 }
  0xf4   :  { %v255_v58 = vld [vmem:[#allocation2 + $0x8] sm:$0xff]  ;;  %v257_v59 = vld [vmem:[#allocation2 + $0x18] sm:$0xff] }
  0xf5   :  { %v266_v60 = vadd.f32 %v297_v53, %v255_v58  ;;  %v268_v61 = vadd.f32 %v297_v53, %v257_v59 }
  0xf7   :  { %270 = vst.msk [vmem:[%s470_s3 + $0x8] sm:$0xff] %vm20_vm4, %v266_v60  ;;  %272 = vst.msk [vmem:[%s470_s3 + $0x18] sm:$0xff] %vm20_vm4, %v268_v61 }

// kernel: generator_forward.34
= control target key start
LH: loop header
LB: loop body
LE: loop exit
PB: predicated region body
PF: predicated region fallthrough
CT: control target
= control target key end

     0   :  { %vm31_vm0 = vcmask 523264   ;;  %s71_s0 = inlined_call_operand.vmem [shape: f32[8,64], index: 0, kind: input, shape index: {}]   ;;  %s72_s1 = inlined_call_operand.vmem [shape: f32[1,64], index: 1, kind: input, shape index: {}]   ;;  %s73_s2 = inlined_call_operand.vmem [shape: f32[1,64], index: 2, kind: input, shape index: {}]   ;;  %s74_s3 = inlined_call_operand.vmem [shape: f32[8,64], index: 3, kind: output, shape index: {}]  }
   0x1   :  { %v14_v0 = vld [vmem:[%s71_s0] sm:$0xff] }
   0x2   :  { %v37_v1 = vld [vmem:[%s72_s1] ss:$0 sm:$0xff] }
   0x3   :  { %v38_v2 = vld [vmem:[%s73_s2] ss:$0 sm:$0xff]  ;;  %v22_v3 = vmul.f32 %v37_v1, %v14_v0 }
   0x5   :  { %v30_v4 = vadd.f32 %v38_v2, %v22_v3 }
   0x7   :  { %32 = vst.msk [vmem:[%s74_s3] sm:$0xff] %vm31_vm0, %v30_v4 }

// kernel: tile.3
= control target key start
LH: loop header
LB: loop body
LE: loop exit
PB: predicated region body
PF: predicated region fallthrough
CT: control target
= control target key end

     0   :  { %s26_s0 = inlined_call_operand.<no memory space> [shape: f32[], index: 0, kind: input, shape index: {}]   ;;  %s27_s1 = inlined_call_operand.vmem [shape: f32[1,256], index: 1, kind: output, shape index: {}]  }
   0x1   :  { %v2_v0 = vstv %s26_s0 }
   0x2   :  { %3 = vst [vmem:[%s27_s1] sm:$0x1] %v2_v0  ;;  %6 = vst [vmem:[%s27_s1 + $0x1] sm:$0x1] %v2_v0 }

// kernel: generator_forward.33
= control target key start
LH: loop header
LB: loop body
LE: loop exit
PB: predicated region body
PF: predicated region fallthrough
CT: control target
= control target key end

     0   :  { %vm14_vm0 = vcmask 516096   ;;  %vm28_vm1 = vcmask 523264   ;;  %v59_v0 = vmov 0.0   ;;  %s100_s0 = inlined_call_operand.vmem [shape: f32[8,64], index: 0, kind: input, shape index: {}]   ;;  %s101_s1 = inlined_call_operand.vmem [shape: f32[1,64], index: 1, kind: output, shape index: {0}]   ;;  %s102_s2 = inlined_call_operand.vmem [shape: f32[1,64], index: 2, kind: output, shape index: {1}]  }
   0x1   :  { %15 = vst.msk [vmem:[%s101_s1] sm:$0x1] %vm14_vm0, %v59_v0  ;;  %v17_v1 = vld [vmem:[%s100_s0] sm:$0xff]  ;;  %16 = vst.msk [vmem:[%s102_s2] sm:$0x1] %vm14_vm0, %v59_v0 }
   0x2   :  { %v29_v2 = vsel %vm28_vm1, %v17_v1, 0.0  ;;  %v40_v3 = vmul.f32 %v17_v1, %v17_v1 }
   0x3   :  { %v30_v4 = vrot.slane %v29_v2, 4 }
   0x4   :  { %v41_v5 = vsel %vm28_vm1, %v40_v3, 0.0 }
   0x5   :  { %v31_v6 = vadd.f32 %v30_v4, %v29_v2  ;;  %v42_v7 = vrot.slane %v41_v5, 4 }
   0x7   :  { %v32_v8 = vrot.slane %v31_v6, 2  ;;  %v43_v9 = vadd.f32 %v42_v7, %v41_v5 }
   0x8   :  { %v27_v14 = vld [vmem:[%s101_s1] sm:$0x1] }
   0x9   :  { %v33_v10 = vadd.f32 %v32_v8, %v31_v6  ;;  %v44_v11 = vrot.slane %v43_v9, 2  ;;  %v39_v17 = vld [vmem:[%s102_s2] sm:$0x1] }
   0xb   :  { %v34_v12 = vrot.slane %v33_v10, 1  ;;  %v45_v13 = vadd.f32 %v44_v11, %v43_v9 }
   0xd   :  { %v35_v15 = vadd.f32 %v34_v12, %v33_v10  ;;  %v46_v16 = vrot.slane %v45_v13, 1 }
   0xf   :  { %v36_v18 = vadd.f32 %v35_v15, %v27_v14  ;;  %v47_v19 = vadd.f32 %v46_v16, %v45_v13 }
  0x11   :  { %38 = vst.msk [vmem:[%s101_s1] sm:$0x1] %vm14_vm0, %v36_v18  ;;  %v48_v20 = vadd.f32 %v47_v19, %v39_v17 }
  0x13   :  { %49 = vst.msk [vmem:[%s102_s2] sm:$0x1] %vm14_vm0, %v48_v20 }

// kernel: tile.2
= control target key start
LH: loop header
LB: loop body
LE: loop exit
PB: predicated region body
PF: predicated region fallthrough
CT: control target
= control target key end

     0   :  { %s20_s0 = inlined_call_operand.<no memory space> [shape: f32[], index: 0, kind: input, shape index: {}]   ;;  %s21_s1 = inlined_call_operand.vmem [shape: f32[1,128], index: 1, kind: output, shape index: {}]  }
   0x1   :  { %v2_v0 = vstv %s20_s0 }
   0x2   :  { %3 = vst [vmem:[%s21_s1] sm:$0x1] %v2_v0 }

// kernel: generator_forward.35
= control target key start
LH: loop header
LB: loop body
LE: loop exit
PB: predicated region body
PF: predicated region fallthrough
CT: control target
= control target key end

     0   :  { %s1237_s12 = smov 0   ;;  %s1239_s13 = smov 0   ;;  %s1353_s0 = inlined_call_operand.vmem [shape: bf16[2,1024], index: 0, kind: input, shape index: {}]   ;;  %s1354_s1 = inlined_call_operand.vmem [shape: bf16[1024,64], index: 1, kind: input, shape index: {}]   ;;  %s1355_s2 = inlined_call_operand.vmem [shape: f32[1,64], index: 2, kind: input, shape index: {}]   ;;  %s1356_s3 = inlined_call_operand.vmem [shape: f32[2,64], index: 3, kind: output, shape index: {}]  }
   0x1   :  { %s1241_s14 = smov 0   ;;  %s1243_s15 = smov 0  }
   0x2   :  { %s1245_s16 = smov 0  }
   0x3 LB: > { %s901_s17 = sadd.s32 4294967295, %s1205_s16   ;;  %s25_s18 = sadd.s32 1, %s1201_s15  ;;  %s1205_s16 = sphi %s1245_s16, %s13_s16   ;;  %s1201_s15 = sphi %s1243_s15, %s1360_s15   ;;  %s1197_s14 = sphi %s1241_s14, %s1359_s14   ;;  %s1193_s13 = sphi %s1239_s13, %s1358_s13   ;;  %s1189_s12 = sphi %s1237_s12, %s1357_s12  }
   0x4   : > { %p26_p0 = scmp.ge.s32.totalorder %s25_s18, 2  ;;  %p48_p1 = scmp.ne.s32.totalorder %s1193_s13, %s1189_s12 }
   0x5   : > { %p49_p2 = scmp.eq.s32.totalorder %s1205_s16, 0  ;;  %s41_s20 = sadd.s32 1, %s1193_s13 }
   0x6   : > { %s1362_s18 = smov (%p26_p0, %s25_s18), 0  ;;  %p904_p5 = scmp.ge.s32.totalorder %s1205_s16, 2 }
   0x7   : > { %p50_p3 = por %p49_p2, %p48_p1  ;;  %s37_s19 = ssub.s32 %s1201_s15, %s1362_s18 }
   0x8   : > { %p39_p4 = scmp.eq.s32.totalorder %s37_s19, 0  ;;  %162 = sbr.rel (%p904_p5) target bundleno = 26 (0x1a), region = 20 }
   0xa   : > { %s1273_s21 = scalar_select %p39_p4, %s1193_s13, %s41_s20  }
   0xd   : > { %165 = sbr.rel (!%p50_p3) target bundleno = 26 (0x1a), region = 24  ;;  %s167_s22 = sand.u32 (%p50_p3), 1, %s1193_s13  }
   0xe   : > { %s906_s23 = sshll.u32 (%p50_p3), %s1201_s15, 2  ;;  %s905_s24 = sshll.u32 (%p50_p3), %s167_s22, 4 }
   0xf   : > { %s178_s27 = scalar_lea.vmem (%p50_p3), %s1353_s0, %s906_s23   ;;  %s169_s28 = scalar_lea.vmem (%p50_p3), [#allocation3], %s905_s24  }
  0x10   : > { %s1207_s29 = smov (%p50_p3), 0  }
  0x12 LB: >> { %v197_v0 = vld [vmem:[%s178_s27] sm:$0xf]  ;;  %s191_s29 = sadd.s32 1, %s1209_s29   ;;  %s1209_s29 = sphi %s1207_s29, %s191_s29  }
  0x13   : >> { %198 = vst [vmem:[%s169_s28] sm:$0xf] %v197_v0  ;;  %p190_p6 = scmp.ge.s32.totalorder %s191_s29, 1 }
  0x15   : > { %193 = sbr.rel (!%p190_p6) target bundleno = 18 (0x12), region = 146 }
  0x1a PF: > { %p909_p7 = scmp.ge.s32.totalorder %s1205_s16, 1  ;;  %p242_p8 = scmp.lt.s32.totalorder %s1205_s16, 3 }
  0x1c   : > { %p243_p9 = pnand %p909_p7, %p242_p8 }
  0x1d   : > { %s249_s30 = sand.u32 (!%p243_p9), 1, %s1189_s12   ;;  %s911_s4 = sshll.u32 (!%p243_p9), %s1197_s14, 6 }
  0x1e   : > { %246 = sbr.rel (%p243_p9) target bundleno = 306 (0x132), region = 62  ;;  %s910_s5 = sshll.u32 (!%p243_p9), %s249_s30, 4 }
  0x1f   : > { %p284_p10 = scmp.lt.s32.totalorder (!%p243_p9), %s911_s4, 127  ;;  %s1290_s10 = scalar_lea.vmem (!%p243_p9), [#allocation3], %s910_s5 }
  0x20   : > { %p913_p11 = scmp.ne.s32.totalorder (!%p243_p9), %s1197_s14, 0 }
  0x23   : > { %s1364_s4 = smov (!%p284_p10, %s911_s4), 127  ;;  %303 = sbr.rel (%p913_p11) target bundleno = 42 (0x2a), region = 70 }
  0x24   : > { %s912_s6 = sshll.u32 %s1364_s4, 2 }
  0x25   : > { %s1288_s9 = scalar_lea.vmem %s1354_s1, %s912_s6 }
  0x28   : > { %vm304_vm0 = vcmask 523264   ;;  %v1215_v1 = vmov 0.0  }
  0x29   : > { %305 = vst.msk [vmem:[#allocation2] sm:$0xff] %vm304_vm0, %v1215_v1 }
  0x2a PF: > { %v1103_v2 = vld [vmem:[%s1288_s9 + $0x78] sm:$0xff]   ;;  %v1107_v6 = vld [vmem:[%s1288_s9 + $0x70] sm:$0xff]   ;;  %v1111_v10 = vld [vmem:[%s1288_s9 + $0x68] sm:$0xff]   ;;  %v396_v37 = vlaneseq  ;;  %v1216_v45 = vmov 1966171168   ;;  %vm702_vm5 = vcmask 523264  }
  0x2b   : > { %v1104_v3 = vld [vmem:[%s1288_s9 + $0xf8] sm:$0xff]   ;;  %953 = vmatprep.subr.bf16.mxu0 %v1103_v2  ;;  %v1108_v7 = vld [vmem:[%s1288_s9 + $0xf0] sm:$0xff]   ;;  %v1112_v11 = vld [vmem:[%s1288_s9 + $0xe8] sm:$0xff]   ;;  %v394_v46 = vunpack.c.l.s4 %v1216_v45  ;;  %p946_p12 = scmp.ne.s32.totalorder %s1197_s14, 1 }
  0x2c   : > { %v1105_v4 = vld [vmem:[%s1288_s9 + $0x38] sm:$0xff]   ;;  %975 = vmatprep.subr.bf16.mxu1 %v1104_v3  ;;  %v1109_v8 = vld [vmem:[%s1288_s9 + $0x30] sm:$0xff]   ;;  %v1113_v12 = vld [vmem:[%s1288_s9 + $0x28] sm:$0xff]   ;;  %v397_v47 = vshrl.u32 %v396_v37, 7 }
  0x2d   : > { %v1106_v5 = vld [vmem:[%s1288_s9 + $0xb8] sm:$0xff]   ;;  %954 = vmatpush3.bf16.msra.mxu0 %v1105_v4  ;;  %v1110_v9 = vld [vmem:[%s1288_s9 + $0xb0] sm:$0xff]   ;;  %v1114_v13 = vld [vmem:[%s1288_s9 + $0xa8] sm:$0xff]   ;;  %v395_v52 = vunpack.c.0.s8 %v394_v46 }
  0x2e   : > { %976 = vmatpush3.bf16.msra.mxu1 %v1106_v5  ;;  %955 = vmatprep.subr.bf16.mxu0 %v1107_v6  ;;  %v1115_v14 = vld [vmem:[%s1288_s9 + $0x60] sm:$0xff]   ;;  %v1119_v18 = vld [vmem:[%s1288_s9 + $0x58] sm:$0xff]   ;;  %v1123_v22 = vld [vmem:[%s1288_s9 + $0x50] sm:$0xff]  }
  0x2f   : > { %977 = vmatprep.subr.bf16.mxu1 %v1108_v7  ;;  %v1116_v15 = vld [vmem:[%s1288_s9 + $0xe0] sm:$0xff]   ;;  %v1120_v19 = vld [vmem:[%s1288_s9 + $0xd8] sm:$0xff]   ;;  %v1124_v23 = vld [vmem:[%s1288_s9 + $0xd0] sm:$0xff]   ;;  %v398_v53 = vsub.s32 %v395_v52, %v397_v47 }
  0x30   : > { %v1117_v16 = vld [vmem:[%s1288_s9 + $0x20] sm:$0xff]   ;;  %v1121_v20 = vld [vmem:[%s1288_s9 + $0x18] sm:$0xff]   ;;  %v1125_v24 = vld [vmem:[%s1288_s9 + $0x10] sm:$0xff]  }
  0x31   : > { %956 = vmatpush3.bf16.msra.mxu0 %v1109_v8  ;;  %v1118_v17 = vld [vmem:[%s1288_s9 + $0xa0] sm:$0xff]   ;;  %v1122_v21 = vld [vmem:[%s1288_s9 + $0x98] sm:$0xff]   ;;  %v1126_v25 = vld [vmem:[%s1288_s9 + $0x90] sm:$0xff]  }
  0x32   : > { %978 = vmatpush3.bf16.msra.mxu1 %v1110_v9  ;;  %957 = vmatprep.subr.bf16.mxu0 %v1111_v10  ;;  %v1127_v26 = vld [vmem:[%s1288_s9 + $0x48] sm:$0xff]   ;;  %v1131_v30 = vld [vmem:[%s1288_s9 + $0x40] sm:$0xff]  }
  0x33   : > { %979 = vmatprep.subr.bf16.mxu1 %v1112_v11  ;;  %v1128_v27 = vld [vmem:[%s1288_s9 + $0xc8] sm:$0xff]   ;;  %v1132_v31 = vld [vmem:[%s1288_s9 + $0xc0] sm:$0xff]  }
  0x34   : > { %v1129_v28 = vld [vmem:[%s1288_s9 + $0x8] sm:$0xff]   ;;  %v1133_v32 = vld [vmem:[%s1288_s9] sm:$0xff]  }
  0x35   : > { %958 = vmatpush3.bf16.msra.mxu0 %v1113_v12  ;;  %v1130_v29 = vld [vmem:[%s1288_s9 + $0x88] sm:$0xff]   ;;  %v1134_v33 = vld [vmem:[%s1288_s9 + $0x80] sm:$0xff]  }
  0x36   : > { %980 = vmatpush3.bf16.msra.mxu1 %v1114_v13  ;;  %959 = vmatprep.subr.bf16.mxu0 %v1115_v14  ;;  %v306_v34 = vld [vmem:[%s1290_s10] sm:$0xf]  ;;  %v307_v35 = vld [vmem:[%s1290_s10 + $0x4] sm:$0xf]  ;;  %v308_v36 = vld [vmem:[%s1290_s10 + $0x8] sm:$0xf] }
  0x37   : > { %981 = vmatprep.subr.bf16.mxu1 %v1116_v15  ;;  %v309_v38 = vld [vmem:[%s1290_s10 + $0xc] sm:$0xf]  ;;  %vm310_vm1 = vcmp.ge.bf16.partialorder %v306_v34, 0  ;;  %vm311_vm2 = vcmp.ge.bf16.partialorder %v307_v35, 0  ;;  %vm312_vm3 = vcmp.ge.bf16.partialorder %v308_v36, 0 }
  0x38   : > { %vm313_vm4 = vcmp.ge.bf16.partialorder %v309_v38, 0  ;;  %v314_v39 = vmul.bf16 1045249613, %v306_v34  ;;  %v315_v40 = vmul.bf16 1045249613, %v307_v35  ;;  %v322_v5 = vld [vmem:[#allocation2] sm:$0xff] }
  0x39   : > { %960 = vmatpush3.bf16.msra.mxu0 %v1117_v16  ;;  %v316_v41 = vmul.bf16 1045249613, %v308_v36  ;;  %v317_v42 = vmul.bf16 1045249613, %v309_v38 }
  0x3a   : > { %982 = vmatpush3.bf16.msra.mxu1 %v1118_v17  ;;  %961 = vmatprep.subr.bf16.mxu0 %v1119_v18  ;;  %v318_v43 = vsel %vm310_vm1, %v306_v34, %v314_v39  ;;  %v319_v44 = vsel %vm311_vm2, %v307_v35, %v315_v40 }
  0x3b   : > { %983 = vmatprep.subr.bf16.mxu1 %v1120_v19  ;;  %v320_v48 = vsel %vm312_vm3, %v308_v36, %v316_v41  ;;  %v321_v49 = vsel %vm313_vm4, %v309_v38, %v317_v42  ;;  %v391_v50 = vcombine.low %v318_v43, %v319_v44 }
  0x3c   : > { %v392_v51 = vcombine.low %v320_v48, %v321_v49 }
  0x3d   : > { %962 = vmatpush3.bf16.msra.mxu0 %v1121_v20  ;;  %v399_v54 = vrot.slane %v391_v50, %v398_v53 }
  0x3e   : > { %984 = vmatpush3.bf16.msra.mxu1 %v1122_v21  ;;  %963 = vmatprep.subr.bf16.mxu0 %v1123_v22  ;;  %v406_v55 = vrot.slane %v392_v51, %v398_v53 }
  0x3f   : > { %985 = vmatprep.subr.bf16.mxu1 %v1124_v23 }
  0x40   : > { %v408_v56 = vcombine.high %v399_v54, %v406_v55  ;;  %v407_v57 = vcombine.low %v399_v54, %v406_v55 }
  0x41   : > { %964 = vmatpush3.bf16.msra.mxu0 %v1125_v24 }
  0x42   : > { %986 = vmatpush3.bf16.msra.mxu1 %v1126_v25  ;;  %965 = vmatprep.subr.bf16.mxu0 %v1127_v26  ;;  %v422_v58 = vrot.slane %v408_v56, %v398_v53  ;;  %v415_v59 = vrot.slane %v407_v57, %v398_v53 }
  0x43   : > { %987 = vmatprep.subr.bf16.mxu1 %v1128_v27 }
  0x44   : > { %653 = vmatprep.mubr.bf16.mxu0 %v422_v58  ;;  %v424_v60 = vcombine.high %v422_v58, %v422_v58  ;;  %v423_v61 = vcombine.high %v415_v59, %v415_v59 }
  0x45   : > { %966 = vmatpush3.bf16.msra.mxu0 %v1129_v28 }
  0x46   : > { %988 = vmatpush3.bf16.msra.mxu1 %v1130_v29  ;;  %967 = vmatprep.subr.bf16.mxu0 %v1131_v30 }
  0x47   : > { %989 = vmatprep.subr.bf16.mxu1 %v1132_v31  ;;  %693 = vmatprep.mubr.bf16.mxu1 %v424_v60 }
  0x49   : > { %968 = vmatpush3.bf16.msra.mxu0 %v1133_v32 }
  0x4a   : > { %990 = vmatpush3.bf16.msra.mxu1 %v1134_v33 }
  0x4c   : > { %654 = vmatmul.mubr.bf16.vlgmr.msra.gmra.mxu0 %v415_v59 }
  0x4d   : > { %694 = vmatmul.mubr.bf16.vlgmr.msra.gmra.mxu1 %v423_v61 }
 0x10c   : > { %v969_v62 = vpop.f32.mrf.mxu0 }
 0x10d   : > { %v991_v63 = vpop.f32.mrf.mxu1 }
 0x10e   : > { %v970_v0 = vpop.f32.mrf.mxu0 }
 0x10f   : > { %v971_v1 = vadd.f32 %v970_v0, %v969_v62  ;;  %v992_v2 = vpop.f32.mrf.mxu1 }
 0x110   : > { %v972_v3 = vpop.f32.mrf.mxu0  ;;  %v993_v4 = vadd.f32 %v992_v2, %v991_v63 }
 0x111   : > { %v994_v6 = vpop.f32.mrf.mxu1 }
 0x112   : > { %v973_v7 = vpop.f32.mrf.mxu0  ;;  %v696_v8 = vadd.f32 %v993_v4, %v971_v1  ;;  %707 = sbr.rel (%p946_p12) target bundleno = 291 (0x123), region = 74 }
 0x113   : > { %v995_v9 = vpop.f32.mrf.mxu1 }
 0x114   : > { %v701_v10 = vadd.f32 %v696_v8, %v322_v5 }
 0x116   : > { %703 = vst.msk [vmem:[#allocation2] sm:$0xff] %vm702_vm5, %v701_v10 }
 0x117   : > { %v947_v12 = vld [vmem:[%s1355_s2] ss:$0 sm:$0xff] }
 0x11d   : > { %v708_v11 = vld [vmem:[#allocation2] sm:$0xff] }
 0x11e   : > { %v716_v13 = vadd.f32 %v947_v12, %v708_v11 }
 0x120   : > { %v717_v14 = vmax.f32 %v716_v13, 0.0 }
 0x122   : > { %718 = vst.msk [vmem:[#allocation4] sm:$0xff] %vm702_vm5, %v717_v14 }
 0x123 PF: > { %p948_p13 = scmp.ne.s32.totalorder %s901_s17, 1 }
 0x124   : > { %s1211_s19 = smov (!%p948_p13), 0  }
 0x125   : > { %721 = sbr.rel (%p948_p13) target bundleno = 306 (0x132), region = 78 }
 0x12a LB: >> { %v747_v15 = vld [vmem:[#allocation4] sm:$0x3]  ;;  %s741_s19 = sadd.s32 1, %s1213_s19   ;;  %s1213_s19 = sphi %s1211_s19, %s741_s19  }
 0x12b   : >> { %748 = vst [vmem:[%s1356_s3] sm:$0x3] %v747_v15  ;;  %p740_p0 = scmp.ge.s32.totalorder %s741_s19, 1 }
 0x12d   : > { %743 = sbr.rel (!%p740_p0) target bundleno = 298 (0x12a), region = 157 }
 0x132 PF: > { %s13_s16 = sadd.s32 1, %s1205_s16   ;;  %s1357_s12 = smov %s1193_s13 }
 0x133   : > { %p10_p1 = scmp.ge.s32.totalorder %s13_s16, 4   ;;  %s1358_s13 = smov %s1273_s21 }
 0x134   : > { %s1359_s14 = smov %s1201_s15  ;;  %s1360_s15 = smov %s1362_s18 }
 0x135   :  { %12 = sbr.rel (!%p10_p1) target bundleno = 3 (0x3), region = 168 }

// kernel: generator_forward.32
= control target key start
LH: loop header
LB: loop body
LE: loop exit
PB: predicated region body
PF: predicated region fallthrough
CT: control target
= control target key end

     0   :  { %vm20_vm2 = vcmask 523264   ;;  %v515_v42 = vmov 0.0   ;;  %s647_s1 = inlined_call_operand.vmem [shape: bf16[512,64], index: 1, kind: input, shape index: {}]   ;;  %s648_s0 = inlined_call_operand.vmem [shape: bf16[8,512], index: 0, kind: input, shape index: {}]   ;;  %s649_s2 = inlined_call_operand.vmem [shape: f32[1,64], index: 2, kind: input, shape index: {}]   ;;  %s650_s3 = inlined_call_operand.vmem [shape: f32[8,64], index: 3, kind: output, shape index: {}]  }
   0x1   :  { %v483_v0 = vld [vmem:[%s647_s1 + $0x78] sm:$0xff]   ;;  %v487_v4 = vld [vmem:[%s647_s1 + $0x70] sm:$0xff]   ;;  %v491_v8 = vld [vmem:[%s647_s1 + $0x68] sm:$0xff]   ;;  %21 = vst.msk [vmem:[#allocation2] sm:$0xff] %vm20_vm2, %v515_v42 }
   0x2   :  { %v484_v1 = vld [vmem:[%s647_s1 + $0xf8] sm:$0xff]   ;;  %438 = vmatprep.subr.bf16.mxu0 %v483_v0  ;;  %v488_v5 = vld [vmem:[%s647_s1 + $0xf0] sm:$0xff]   ;;  %v492_v9 = vld [vmem:[%s647_s1 + $0xe8] sm:$0xff]  }
   0x3   :  { %v485_v2 = vld [vmem:[%s647_s1 + $0x38] sm:$0xff]   ;;  %460 = vmatprep.subr.bf16.mxu1 %v484_v1  ;;  %v489_v6 = vld [vmem:[%s647_s1 + $0x30] sm:$0xff]   ;;  %v493_v10 = vld [vmem:[%s647_s1 + $0x28] sm:$0xff]  }
   0x4   :  { %v486_v3 = vld [vmem:[%s647_s1 + $0xb8] sm:$0xff]   ;;  %439 = vmatpush3.bf16.msra.mxu0 %v485_v2  ;;  %v490_v7 = vld [vmem:[%s647_s1 + $0xb0] sm:$0xff]   ;;  %v494_v11 = vld [vmem:[%s647_s1 + $0xa8] sm:$0xff]  }
   0x5   :  { %461 = vmatpush3.bf16.msra.mxu1 %v486_v3  ;;  %440 = vmatprep.subr.bf16.mxu0 %v487_v4  ;;  %v495_v12 = vld [vmem:[%s647_s1 + $0x60] sm:$0xff]   ;;  %v499_v16 = vld [vmem:[%s647_s1 + $0x58] sm:$0xff]   ;;  %v503_v20 = vld [vmem:[%s647_s1 + $0x50] sm:$0xff]  }
   0x6   :  { %462 = vmatprep.subr.bf16.mxu1 %v488_v5  ;;  %v496_v13 = vld [vmem:[%s647_s1 + $0xe0] sm:$0xff]   ;;  %v500_v17 = vld [vmem:[%s647_s1 + $0xd8] sm:$0xff]   ;;  %v504_v21 = vld [vmem:[%s647_s1 + $0xd0] sm:$0xff]  }
   0x7   :  { %v497_v14 = vld [vmem:[%s647_s1 + $0x20] sm:$0xff]   ;;  %v501_v18 = vld [vmem:[%s647_s1 + $0x18] sm:$0xff]   ;;  %v505_v22 = vld [vmem:[%s647_s1 + $0x10] sm:$0xff]  }
   0x8   :  { %441 = vmatpush3.bf16.msra.mxu0 %v489_v6  ;;  %v498_v15 = vld [vmem:[%s647_s1 + $0xa0] sm:$0xff]   ;;  %v502_v19 = vld [vmem:[%s647_s1 + $0x98] sm:$0xff]   ;;  %v506_v23 = vld [vmem:[%s647_s1 + $0x90] sm:$0xff]  }
   0x9   :  { %463 = vmatpush3.bf16.msra.mxu1 %v490_v7  ;;  %442 = vmatprep.subr.bf16.mxu0 %v491_v8  ;;  %v507_v24 = vld [vmem:[%s647_s1 + $0x48] sm:$0xff]   ;;  %v511_v28 = vld [vmem:[%s647_s1 + $0x40] sm:$0xff]  }
   0xa   :  { %464 = vmatprep.subr.bf16.mxu1 %v492_v9  ;;  %v508_v25 = vld [vmem:[%s647_s1 + $0xc8] sm:$0xff]   ;;  %v512_v29 = vld [vmem:[%s647_s1 + $0xc0] sm:$0xff]  }
   0xb   :  { %v509_v26 = vld [vmem:[%s647_s1 + $0x8] sm:$0xff]   ;;  %v513_v30 = vld [vmem:[%s647_s1] sm:$0xff]  }
   0xc   :  { %443 = vmatpush3.bf16.msra.mxu0 %v493_v10  ;;  %v510_v27 = vld [vmem:[%s647_s1 + $0x88] sm:$0xff]   ;;  %v514_v31 = vld [vmem:[%s647_s1 + $0x80] sm:$0xff]  }
   0xd   :  { %465 = vmatpush3.bf16.msra.mxu1 %v494_v11  ;;  %444 = vmatprep.subr.bf16.mxu0 %v495_v12  ;;  %v22_v32 = vld [vmem:[%s648_s0] sm:$0xff]  ;;  %v23_v33 = vld [vmem:[%s648_s0 + $0x8] sm:$0xff] }
   0xe   :  { %466 = vmatprep.subr.bf16.mxu1 %v496_v13  ;;  %vm24_vm0 = vcmp.ge.bf16.partialorder %v22_v32, 0  ;;  %v26_v34 = vmul.bf16 1045249613, %v22_v32  ;;  %vm25_vm1 = vcmp.ge.bf16.partialorder %v23_v33, 0  ;;  %v27_v35 = vmul.bf16 1045249613, %v23_v33 }
   0xf   :  { %v30_v49 = vld [vmem:[#allocation2] sm:$0xff] }
  0x10   :  { %445 = vmatpush3.bf16.msra.mxu0 %v497_v14  ;;  %v28_v36 = vsel %vm24_vm0, %v22_v32, %v26_v34  ;;  %v29_v37 = vsel %vm25_vm1, %v23_v33, %v27_v35  ;;  %v437_v56 = vld [vmem:[%s649_s2] ss:$0 sm:$0xff] }
  0x11   :  { %467 = vmatpush3.bf16.msra.mxu1 %v498_v15  ;;  %446 = vmatprep.subr.bf16.mxu0 %v499_v16  ;;  %v401_v38 = vcombine.low %v28_v36, %v28_v36  ;;  %v402_v39 = vcombine.high %v28_v36, %v28_v36  ;;  %v403_v40 = vcombine.low %v29_v37, %v29_v37 }
  0x12   :  { %468 = vmatprep.subr.bf16.mxu1 %v500_v17  ;;  %v404_v41 = vcombine.high %v29_v37, %v29_v37 }
  0x13   :  { %333 = vmatprep.mubr.bf16.mxu0 %v402_v39 }
  0x14   :  { %447 = vmatpush3.bf16.msra.mxu0 %v501_v18  ;;  %373 = vmatprep.mubr.bf16.mxu1 %v404_v41 }
  0x15   :  { %469 = vmatpush3.bf16.msra.mxu1 %v502_v19  ;;  %448 = vmatprep.subr.bf16.mxu0 %v503_v20 }
  0x16   :  { %470 = vmatprep.subr.bf16.mxu1 %v504_v21 }
  0x18   :  { %449 = vmatpush3.bf16.msra.mxu0 %v505_v22 }
  0x19   :  { %471 = vmatpush3.bf16.msra.mxu1 %v506_v23  ;;  %450 = vmatprep.subr.bf16.mxu0 %v507_v24 }
  0x1a   :  { %472 = vmatprep.subr.bf16.mxu1 %v508_v25 }
  0x1c   :  { %451 = vmatpush3.bf16.msra.mxu0 %v509_v26 }
  0x1d   :  { %473 = vmatpush3.bf16.msra.mxu1 %v510_v27  ;;  %452 = vmatprep.subr.bf16.mxu0 %v511_v28 }
  0x1e   :  { %474 = vmatprep.subr.bf16.mxu1 %v512_v29 }
  0x20   :  { %453 = vmatpush3.bf16.msra.mxu0 %v513_v30 }
  0x21   :  { %475 = vmatpush3.bf16.msra.mxu1 %v514_v31 }
  0x23   :  { %334 = vmatmul.mubr.bf16.vlgmr.msra.gmra.mxu0 %v401_v38 }
  0x24   :  { %374 = vmatmul.mubr.bf16.vlgmr.msra.gmra.mxu1 %v403_v40 }
  0xe3   :  { %v454_v43 = vpop.f32.mrf.mxu0 }
  0xe4   :  { %v476_v44 = vpop.f32.mrf.mxu1 }
  0xe5   :  { %v455_v45 = vpop.f32.mrf.mxu0 }
  0xe6   :  { %v477_v46 = vpop.f32.mrf.mxu1  ;;  %v456_v47 = vadd.f32 %v455_v45, %v454_v43 }
  0xe7   :  { %v478_v48 = vadd.f32 %v477_v46, %v476_v44  ;;  %v457_v50 = vpop.f32.mrf.mxu0 }
  0xe8   :  { %v479_v51 = vpop.f32.mrf.mxu1 }
  0xe9   :  { %v376_v52 = vadd.f32 %v478_v48, %v456_v47  ;;  %v458_v53 = vpop.f32.mrf.mxu0 }
  0xea   :  { %v480_v54 = vpop.f32.mrf.mxu1 }
  0xeb   :  { %v381_v55 = vadd.f32 %v376_v52, %v30_v49 }
  0xed   :  { %383 = vst.msk [vmem:[#allocation2] sm:$0xff] %vm20_vm2, %v381_v55 }
  0xf4   :  { %v387_v57 = vld [vmem:[#allocation2] sm:$0xff] }
  0xf5   :  { %v395_v58 = vadd.f32 %v437_v56, %v387_v57 }
  0xf7   :  { %396 = vst.msk [vmem:[%s650_s3] sm:$0xff] %vm20_vm2, %v395_v58 }

// kernel: generator_forward.36
= control target key start
LH: loop header
LB: loop body
LE: loop exit
PB: predicated region body
PF: predicated region fallthrough
CT: control target
= control target key end

     0   :  { %v936_v38 = vmov 1966171168   ;;  %v110_v40 = vlaneseq  ;;  %vm525_vm0 = vcmask 523264   ;;  %s1206_s0 = inlined_call_operand.vmem [shape: bf16[2,576], index: 0, kind: input, shape index: {}]   ;;  %s1207_s1 = inlined_call_operand.vmem [shape: bf16[576,256], index: 1, kind: input, shape index: {}]   ;;  %s1208_s2 = inlined_call_operand.vmem [shape: f32[1,256], index: 2, kind: input, shape index: {}]   ;;  %s1209_s3 = inlined_call_operand.vmem [shape: f32[2,256], index: 3, kind: output, shape index: {}]  }
   0x1   :  { %v822_v0 = vld [vmem:[%s1207_s1 + $0x74] ss:$8 sps:$4 sm:$0xff]   ;;  %v826_v2 = vld [vmem:[%s1207_s1 + $0x70] ss:$8 sps:$4 sm:$0xff]   ;;  %v828_v4 = vld [vmem:[%s1207_s1 + $0x64] ss:$8 sps:$4 sm:$0xff]   ;;  %v108_v39 = vunpack.c.l.s4 %v936_v38 }
   0x2   :  { %v824_v1 = vld [vmem:[%s1207_s1 + $0x174] ss:$8 sps:$4 sm:$0xff]   ;;  %529 = vmatprep.subr.bf16.mxu0 %v822_v0  ;;  %v827_v3 = vld [vmem:[%s1207_s1 + $0x170] ss:$8 sps:$4 sm:$0xff]   ;;  %v830_v5 = vld [vmem:[%s1207_s1 + $0x164] ss:$8 sps:$4 sm:$0xff]  }
   0x3   :  { %570 = vmatprep.subr.bf16.mxu1 %v824_v1  ;;  %530 = vmatpush1.bf16.msra.mxu0 %v826_v2  ;;  %v832_v6 = vld [vmem:[%s1207_s1 + $0x60] ss:$8 sps:$4 sm:$0xff]   ;;  %v834_v8 = vld [vmem:[%s1207_s1 + $0x54] ss:$8 sps:$4 sm:$0xff]   ;;  %v838_v10 = vld [vmem:[%s1207_s1 + $0x50] ss:$8 sps:$4 sm:$0xff]   ;;  %v109_v45 = vunpack.c.0.s8 %v108_v39 }
   0x4   :  { %571 = vmatpush1.bf16.msra.mxu1 %v827_v3  ;;  %531 = vmatprep.subr.bf16.mxu0 %v828_v4  ;;  %v833_v7 = vld [vmem:[%s1207_s1 + $0x160] ss:$8 sps:$4 sm:$0xff]   ;;  %v836_v9 = vld [vmem:[%s1207_s1 + $0x154] ss:$8 sps:$4 sm:$0xff]   ;;  %v839_v11 = vld [vmem:[%s1207_s1 + $0x150] ss:$8 sps:$4 sm:$0xff]  }
   0x5   :  { %572 = vmatprep.subr.bf16.mxu1 %v830_v5  ;;  %v840_v12 = vld [vmem:[%s1207_s1 + $0x44] ss:$8 sps:$4 sm:$0xff]   ;;  %v844_v14 = vld [vmem:[%s1207_s1 + $0x40] ss:$8 sps:$4 sm:$0xff]   ;;  %v846_v16 = vld [vmem:[%s1207_s1 + $0x34] ss:$8 sps:$4 sm:$0xff]  }
   0x6   :  { %v842_v13 = vld [vmem:[%s1207_s1 + $0x144] ss:$8 sps:$4 sm:$0xff]   ;;  %v845_v15 = vld [vmem:[%s1207_s1 + $0x140] ss:$8 sps:$4 sm:$0xff]   ;;  %v848_v17 = vld [vmem:[%s1207_s1 + $0x134] ss:$8 sps:$4 sm:$0xff]  }
   0x7   :  { %532 = vmatpush1.bf16.msra.mxu0 %v832_v6  ;;  %v850_v18 = vld [vmem:[%s1207_s1 + $0x30] ss:$8 sps:$4 sm:$0xff]   ;;  %v852_v20 = vld [vmem:[%s1207_s1 + $0x24] ss:$8 sps:$4 sm:$0xff]   ;;  %v856_v22 = vld [vmem:[%s1207_s1 + $0x20] ss:$8 sps:$4 sm:$0xff]  }
   0x8   :  { %573 = vmatpush1.bf16.msra.mxu1 %v833_v7  ;;  %533 = vmatprep.subr.bf16.mxu0 %v834_v8  ;;  %v851_v19 = vld [vmem:[%s1207_s1 + $0x130] ss:$8 sps:$4 sm:$0xff]   ;;  %v854_v21 = vld [vmem:[%s1207_s1 + $0x124] ss:$8 sps:$4 sm:$0xff]   ;;  %v857_v23 = vld [vmem:[%s1207_s1 + $0x120] ss:$8 sps:$4 sm:$0xff]  }
   0x9   :  { %574 = vmatprep.subr.bf16.mxu1 %v836_v9  ;;  %v858_v24 = vld [vmem:[%s1207_s1 + $0x14] ss:$8 sps:$4 sm:$0xff]   ;;  %v862_v26 = vld [vmem:[%s1207_s1 + $0x10] ss:$8 sps:$4 sm:$0xff]   ;;  %v864_v28 = vld [vmem:[%s1207_s1 + $0x4] ss:$8 sps:$4 sm:$0xff]  }
   0xa   :  { %v860_v25 = vld [vmem:[%s1207_s1 + $0x114] ss:$8 sps:$4 sm:$0xff]   ;;  %v863_v27 = vld [vmem:[%s1207_s1 + $0x110] ss:$8 sps:$4 sm:$0xff]   ;;  %v866_v29 = vld [vmem:[%s1207_s1 + $0x104] ss:$8 sps:$4 sm:$0xff]  }
   0xb   :  { %534 = vmatpush1.bf16.msra.mxu0 %v838_v10  ;;  %v868_v30 = vld [vmem:[%s1207_s1] ss:$8 sps:$4 sm:$0xff]   ;;  %v870_v32 = vld [vmem:[%s1207_s1 + $0xf4] ss:$8 sps:$4 sm:$0xff]   ;;  %v874_v34 = vld [vmem:[%s1207_s1 + $0xf0] ss:$8 sps:$4 sm:$0xff]  }
   0xc   :  { %575 = vmatpush1.bf16.msra.mxu1 %v839_v11  ;;  %535 = vmatprep.subr.bf16.mxu0 %v840_v12  ;;  %v869_v31 = vld [vmem:[%s1207_s1 + $0x100] ss:$8 sps:$4 sm:$0xff]   ;;  %v872_v33 = vld [vmem:[%s1207_s1 + $0x1f4] ss:$8 sps:$4 sm:$0xff]   ;;  %v875_v35 = vld [vmem:[%s1207_s1 + $0x1f0] ss:$8 sps:$4 sm:$0xff]  }
   0xd   :  { %576 = vmatprep.subr.bf16.mxu1 %v842_v13  ;;  %v876_v36 = vld [vmem:[%s1207_s1 + $0xe4] ss:$8 sps:$4 sm:$0xff]   ;;  %v880_v41 = vld [vmem:[%s1207_s1 + $0xe0] ss:$8 sps:$4 sm:$0xff]   ;;  %v882_v43 = vld [vmem:[%s1207_s1 + $0xd4] ss:$8 sps:$4 sm:$0xff]  }
   0xe   :  { %v878_v37 = vld [vmem:[%s1207_s1 + $0x1e4] ss:$8 sps:$4 sm:$0xff]   ;;  %v881_v42 = vld [vmem:[%s1207_s1 + $0x1e0] ss:$8 sps:$4 sm:$0xff]   ;;  %v884_v44 = vld [vmem:[%s1207_s1 + $0x1d4] ss:$8 sps:$4 sm:$0xff]  }
   0xf   :  { %536 = vmatpush1.bf16.msra.mxu0 %v844_v14  ;;  %v1084_v46 = vshrl.u32 %v110_v40, 7  ;;  %v886_v47 = vld [vmem:[%s1207_s1 + $0xd0] ss:$8 sps:$4 sm:$0xff]   ;;  %v888_v49 = vld [vmem:[%s1207_s1 + $0xc4] ss:$8 sps:$4 sm:$0xff]  }
  0x10   :  { %577 = vmatpush1.bf16.msra.mxu1 %v845_v15  ;;  %537 = vmatprep.subr.bf16.mxu0 %v846_v16  ;;  %v887_v48 = vld [vmem:[%s1207_s1 + $0x1d0] ss:$8 sps:$4 sm:$0xff]   ;;  %v890_v50 = vld [vmem:[%s1207_s1 + $0x1c4] ss:$8 sps:$4 sm:$0xff]   ;;  %v892_v51 = vld [vmem:[%s1207_s1 + $0xc0] ss:$8 sps:$4 sm:$0xff]  }
  0x11   :  { %578 = vmatprep.subr.bf16.mxu1 %v848_v17  ;;  %v893_v52 = vld [vmem:[%s1207_s1 + $0x1c0] ss:$8 sps:$4 sm:$0xff]   ;;  %v1105_v53 = vsub.s32 %v109_v45, %v1084_v46  ;;  %v894_v54 = vld [vmem:[%s1207_s1 + $0xb4] ss:$8 sps:$4 sm:$0xff]   ;;  %v898_v59 = vld [vmem:[%s1207_s1 + $0xb0] ss:$8 sps:$4 sm:$0xff]  }
  0x12   :  { %v918_v55 = vld [vmem:[%s1206_s0] ss:$5 sps:$4 sm:$0xff]   ;;  %v896_v56 = vld [vmem:[%s1207_s1 + $0x1b4] ss:$8 sps:$4 sm:$0xff]   ;;  %v921_v57 = vld [vmem:[%s1206_s0 + $0xa] ss:$5 sps:$4 sm:$0xff]  }
  0x13   :  { %538 = vmatpush1.bf16.msra.mxu0 %v850_v18  ;;  %v113_v58 = vrot.slane %v918_v55, %v1105_v53  ;;  %v899_v60 = vld [vmem:[%s1207_s1 + $0x1b0] ss:$8 sps:$4 sm:$0xff]   ;;  %v127_v61 = vrot.slane %v921_v57, %v1105_v53  ;;  %v900_v62 = vld [vmem:[%s1207_s1 + $0xa4] ss:$8 sps:$4 sm:$0xff]   ;;  %v904_v2 = vld [vmem:[%s1207_s1 + $0xa0] ss:$8 sps:$4 sm:$0xff]  }
  0x14   :  { %579 = vmatpush1.bf16.msra.mxu1 %v851_v19  ;;  %539 = vmatprep.subr.bf16.mxu0 %v852_v20  ;;  %v902_v63 = vld [vmem:[%s1207_s1 + $0x1a4] ss:$8 sps:$4 sm:$0xff]   ;;  %v905_v3 = vld [vmem:[%s1207_s1 + $0x1a0] ss:$8 sps:$4 sm:$0xff]   ;;  %v906_v4 = vld [vmem:[%s1207_s1 + $0x94] ss:$8 sps:$4 sm:$0xff]  }
  0x15   :  { %580 = vmatprep.subr.bf16.mxu1 %v854_v21  ;;  %v136_v0 = vcombine.high %v113_v58, %v127_v61  ;;  %v908_v5 = vld [vmem:[%s1207_s1 + $0x194] ss:$8 sps:$4 sm:$0xff]   ;;  %v135_v7 = vcombine.low %v113_v58, %v127_v61  ;;  %v910_v8 = vld [vmem:[%s1207_s1 + $0x90] ss:$8 sps:$4 sm:$0xff]   ;;  %v912_v10 = vld [vmem:[%s1207_s1 + $0x84] ss:$8 sps:$4 sm:$0xff]  }
  0x16   :  { %v911_v9 = vld [vmem:[%s1207_s1 + $0x190] ss:$8 sps:$4 sm:$0xff]   ;;  %v914_v11 = vld [vmem:[%s1207_s1 + $0x184] ss:$8 sps:$4 sm:$0xff]   ;;  %v916_v13 = vld [vmem:[%s1207_s1 + $0x80] ss:$8 sps:$4 sm:$0xff]  }
  0x17   :  { %540 = vmatpush1.bf16.msra.mxu0 %v856_v22  ;;  %v158_v1 = vrot.slane %v136_v0, %v1105_v53  ;;  %v144_v12 = vrot.slane %v135_v7, %v1105_v53  ;;  %v917_v14 = vld [vmem:[%s1207_s1 + $0x180] ss:$8 sps:$4 sm:$0xff]   ;;  %v926_v15 = vld [vmem:[%s1207_s1 + $0x234] ss:$8 sps:$4 sm:$0xff]   ;;  %v924_v17 = vld [vmem:[%s1207_s1 + $0x230] ss:$8 sps:$4 sm:$0xff]  }
  0x18   :  { %581 = vmatpush1.bf16.msra.mxu1 %v857_v23  ;;  %541 = vmatprep.subr.bf16.mxu0 %v858_v24  ;;  %v929_v18 = vld [vmem:[%s1207_s1 + $0x224] ss:$8 sps:$4 sm:$0xff]   ;;  %v927_v21 = vld [vmem:[%s1207_s1 + $0x220] ss:$8 sps:$4 sm:$0xff]   ;;  %v937_v22 = vmov 0   ;;  %v665_v39 = vsub.s32 0, %v1084_v46 }
  0x19   :  { %582 = vmatprep.subr.bf16.mxu1 %v860_v25  ;;  %v160_v6 = vcombine.high %v158_v1, %v158_v1  ;;  %561 = vmatprep.mubr.bf16.mxu0 %v158_v1  ;;  %v159_v16 = vcombine.high %v144_v12, %v144_v12  ;;  %v920_v19 = vld [vmem:[%s1206_s0 + $0x4] ss:$5 sps:$4 sm:$0x11]   ;;  %v923_v20 = vld [vmem:[%s1206_s0 + $0xe] ss:$5 sps:$4 sm:$0x11]  }
  0x1a   :  { %v932_v23 = vld [vmem:[%s1207_s1 + $0x214] ss:$8 sps:$4 sm:$0xff]   ;;  %v120_v24 = vrot.slane %v920_v19, %v1105_v53  ;;  %v134_v25 = vrot.slane %v923_v20, %v1105_v53  ;;  %v661_v40 = vld [vmem:[%s1208_s2] sm:$0x3] }
  0x1b   :  { %542 = vmatpush1.bf16.msra.mxu0 %v862_v26  ;;  %602 = vmatprep.mubr.bf16.mxu1 %v160_v6  ;;  %v930_v26 = vld [vmem:[%s1207_s1 + $0x210] ss:$8 sps:$4 sm:$0xff]  }
  0x1c   :  { %583 = vmatpush1.bf16.msra.mxu1 %v863_v27  ;;  %543 = vmatprep.subr.bf16.mxu0 %v864_v28  ;;  %v935_v27 = vld [vmem:[%s1207_s1 + $0x204] ss:$8 sps:$4 sm:$0xff]   ;;  %v137_v28 = vcombine.low %v120_v24, %v134_v25 }
  0x1d   :  { %584 = vmatprep.subr.bf16.mxu1 %v866_v29  ;;  %v933_v29 = vld [vmem:[%s1207_s1 + $0x200] ss:$8 sps:$4 sm:$0xff]  }
  0x1f   :  { %544 = vmatpush1.bf16.msra.mxu0 %v868_v30  ;;  %v151_v30 = vrot.slane %v137_v28, %v1105_v53 }
  0x20   :  { %585 = vmatpush1.bf16.msra.mxu1 %v869_v31  ;;  %545 = vmatprep.subr.bf16.mxu0 %v870_v32 }
  0x21   :  { %586 = vmatprep.subr.bf16.mxu1 %v872_v33 }
  0x23   :  { %546 = vmatpush2.bf16.msra.mxu0 %v874_v34 }
  0x24   :  { %587 = vmatpush2.bf16.msra.mxu1 %v875_v35  ;;  %547 = vmatprep.subr.bf16.mxu0 %v876_v36 }
  0x25   :  { %588 = vmatprep.subr.bf16.mxu1 %v878_v37 }
  0x27   :  { %548 = vmatpush2.bf16.msra.mxu0 %v880_v41  ;;  %v669_v41 = vsub.s32 1, %v1084_v46 }
  0x28   :  { %589 = vmatpush2.bf16.msra.mxu1 %v881_v42  ;;  %549 = vmatprep.subr.bf16.mxu0 %v882_v43 }
  0x29   :  { %590 = vmatprep.subr.bf16.mxu1 %v884_v44  ;;  %v666_v44 = vrot.slane %v661_v40, %v665_v39 }
  0x2b   :  { %550 = vmatpush2.bf16.msra.mxu0 %v886_v47 }
  0x2c   :  { %591 = vmatpush2.bf16.msra.mxu1 %v887_v48  ;;  %551 = vmatprep.subr.bf16.mxu0 %v888_v49  ;;  %v670_v48 = vrot.slane %v661_v40, %v669_v41 }
  0x2d   :  { %592 = vmatprep.subr.bf16.mxu1 %v890_v50 }
  0x2f   :  { %552 = vmatpush2.bf16.msra.mxu0 %v892_v51 }
  0x30   :  { %593 = vmatpush2.bf16.msra.mxu1 %v893_v52  ;;  %553 = vmatprep.subr.bf16.mxu0 %v894_v54 }
  0x31   :  { %594 = vmatprep.subr.bf16.mxu1 %v896_v56 }
  0x33   :  { %554 = vmatpush2.bf16.msra.mxu0 %v898_v59 }
  0x34   :  { %595 = vmatpush2.bf16.msra.mxu1 %v899_v60  ;;  %555 = vmatprep.subr.bf16.mxu0 %v900_v62 }
  0x35   :  { %596 = vmatprep.subr.bf16.mxu1 %v902_v63 }
  0x37   :  { %556 = vmatpush2.bf16.msra.mxu0 %v904_v2 }
  0x38   :  { %597 = vmatpush2.bf16.msra.mxu1 %v905_v3  ;;  %557 = vmatprep.subr.bf16.mxu0 %v906_v4 }
  0x39   :  { %598 = vmatprep.subr.bf16.mxu1 %v908_v5 }
  0x3b   :  { %558 = vmatpush2.bf16.msra.mxu0 %v910_v8 }
  0x3c   :  { %599 = vmatpush2.bf16.msra.mxu1 %v911_v9  ;;  %559 = vmatprep.subr.bf16.mxu0 %v912_v10 }
  0x3d   :  { %600 = vmatprep.subr.bf16.mxu1 %v914_v11 }
  0x3f   :  { %560 = vmatpush2.bf16.msra.mxu0 %v916_v13 }
  0x40   :  { %601 = vmatpush2.bf16.msra.mxu1 %v917_v14  ;;  %619 = vmatprep.subr.bf16.mxu0 %v926_v15 }
  0x42   :  { %562 = vmatmul.mubr.bf16.vlgmr.msra.gmra.mxu0 %v144_v12 }
  0x43   :  { %603 = vmatmul.mubr.bf16.vlgmr.msra.gmra.mxu1 %v159_v16  ;;  %620 = vmatpush1.bf16.msra.mxu0 %v924_v17 }
  0x44   :  { %643 = vmatprep.mubr.bf16.mxu0 %v937_v22  ;;  %621 = vmatprep.subr.bf16.mxu0 %v929_v18 }
  0x47   :  { %622 = vmatpush1.bf16.msra.mxu0 %v927_v21 }
  0x48   :  { %623 = vmatprep.subr.bf16.mxu0 %v932_v23 }
  0x4b   :  { %624 = vmatpush1.bf16.msra.mxu0 %v930_v26 }
  0x4c   :  { %625 = vmatprep.subr.bf16.mxu0 %v935_v27 }
  0x4f   :  { %626 = vmatpush1.bf16.msra.mxu0 %v933_v29 }
  0x52   :  { %816 = vmatmul.mubr.msk.bf16.vlgmr.msra.gmra.mxu0 %vm525_vm0, %v151_v30 }
 0x102   :  { %v563_v31 = vpop.f32.mrf.mxu0 }
 0x103   :  { %v604_v32 = vpop.f32.mrf.mxu1 }
 0x104   :  { %v565_v33 = vpop.f32.mrf.mxu0  ;;  %v605_v42 = vadd.f32 %v604_v32, %v563_v31 }
 0x105   :  { %v606_v34 = vpop.f32.mrf.mxu1 }
 0x106   :  { %v567_v35 = vpop.f32.mrf.mxu0  ;;  %v607_v45 = vadd.f32 %v606_v34, %v565_v33 }
 0x107   :  { %v608_v36 = vpop.f32.mrf.mxu1 }
 0x108   :  { %v568_v37 = vpop.f32.mrf.mxu0 }
 0x109   :  { %v609_v38 = vpop.f32.mrf.mxu1 }
 0x112   :  { %v645_v43 = vpop.f32.mrf.mxu0 }
 0x113   :  { %v646_v47 = vadd.f32 %v645_v43, %v605_v42 }
 0x114   :  { %v647_v49 = vpop.f32.mrf.mxu0 }
 0x115   :  { %v648_v50 = vadd.f32 %v647_v49, %v607_v45  ;;  %v673_v52 = vadd.f32 %v666_v44, %v646_v47 }
 0x116   :  { %v649_v51 = vpop.f32.mrf.mxu0 }
 0x117   :  { %v674_v53 = vadd.f32 %v670_v48, %v648_v50 }
 0x118   :  { %v650_v54 = vpop.f32.mrf.mxu0 }
 0x119   :  { %v677_v55 = vcombine.low %v673_v52, %v674_v53 }
 0x11b   :  { %817 = vst.sshfl [vmem:[#allocation3] sm:$0x33 pattern:$0x76325410] %v677_v55 }
 0x122   :  { %v721_v56 = vld [vmem:[#allocation3] sm:$0xf] }
 0x123   :  { %722 = vst [vmem:[%s1209_s3] sm:$0xf] %v721_v56 }

// kernel: generator_forward.39
= control target key start
LH: loop header
LB: loop body
LE: loop exit
PB: predicated region body
PF: predicated region fallthrough
CT: control target
= control target key end

     0   :  { %v1132_v34 = vmov 0   ;;  %vm1134_vm0 = vmmov 0   ;;  %s1397_s1 = inlined_call_operand.vmem [shape: bf16[1152,128], index: 1, kind: input, shape index: {}]   ;;  %s1398_s0 = inlined_call_operand.vmem [shape: bf16[8,1152], index: 0, kind: input, shape index: {}]   ;;  %s1399_s2 = inlined_call_operand.vmem [shape: f32[1,128], index: 2, kind: input, shape index: {}]   ;;  %s1400_s3 = inlined_call_operand.vmem [shape: f32[8,128], index: 3, kind: output, shape index: {}]  }
   0x1   :  { %v1060_v0 = vld [vmem:[%s1397_s1 + $0x78] sm:$0xff]   ;;  %v1064_v4 = vld [vmem:[%s1397_s1 + $0x70] sm:$0xff]   ;;  %v1068_v8 = vld [vmem:[%s1397_s1 + $0x68] sm:$0xff]  }
   0x2   :  { %v1061_v1 = vld [vmem:[%s1397_s1 + $0xf8] sm:$0xff]   ;;  %940 = vmatprep.subr.bf16.mxu0 %v1060_v0  ;;  %v1065_v5 = vld [vmem:[%s1397_s1 + $0xf0] sm:$0xff]   ;;  %v1069_v9 = vld [vmem:[%s1397_s1 + $0xe8] sm:$0xff]  }
   0x3   :  { %v1062_v2 = vld [vmem:[%s1397_s1 + $0x38] sm:$0xff]   ;;  %962 = vmatprep.subr.bf16.mxu1 %v1061_v1  ;;  %v1066_v6 = vld [vmem:[%s1397_s1 + $0x30] sm:$0xff]   ;;  %v1070_v10 = vld [vmem:[%s1397_s1 + $0x28] sm:$0xff]  }
   0x4   :  { %v1063_v3 = vld [vmem:[%s1397_s1 + $0xb8] sm:$0xff]   ;;  %941 = vmatpush3.bf16.msra.mxu0 %v1062_v2  ;;  %v1067_v7 = vld [vmem:[%s1397_s1 + $0xb0] sm:$0xff]   ;;  %v1071_v11 = vld [vmem:[%s1397_s1 + $0xa8] sm:$0xff]  }
   0x5   :  { %963 = vmatpush3.bf16.msra.mxu1 %v1063_v3  ;;  %942 = vmatprep.subr.bf16.mxu0 %v1064_v4  ;;  %v1072_v12 = vld [vmem:[%s1397_s1 + $0x60] sm:$0xff]   ;;  %v1076_v16 = vld [vmem:[%s1397_s1 + $0x58] sm:$0xff]   ;;  %v1080_v20 = vld [vmem:[%s1397_s1 + $0x50] sm:$0xff]  }
   0x6   :  { %964 = vmatprep.subr.bf16.mxu1 %v1065_v5  ;;  %v1073_v13 = vld [vmem:[%s1397_s1 + $0xe0] sm:$0xff]   ;;  %v1077_v17 = vld [vmem:[%s1397_s1 + $0xd8] sm:$0xff]   ;;  %v1081_v21 = vld [vmem:[%s1397_s1 + $0xd0] sm:$0xff]  }
   0x7   :  { %v1074_v14 = vld [vmem:[%s1397_s1 + $0x20] sm:$0xff]   ;;  %v1078_v18 = vld [vmem:[%s1397_s1 + $0x18] sm:$0xff]   ;;  %v1082_v22 = vld [vmem:[%s1397_s1 + $0x10] sm:$0xff]  }
   0x8   :  { %943 = vmatpush3.bf16.msra.mxu0 %v1066_v6  ;;  %v1075_v15 = vld [vmem:[%s1397_s1 + $0xa0] sm:$0xff]   ;;  %v1079_v19 = vld [vmem:[%s1397_s1 + $0x98] sm:$0xff]   ;;  %v1083_v23 = vld [vmem:[%s1397_s1 + $0x90] sm:$0xff]  }
   0x9   :  { %965 = vmatpush3.bf16.msra.mxu1 %v1067_v7  ;;  %944 = vmatprep.subr.bf16.mxu0 %v1068_v8  ;;  %v1084_v24 = vld [vmem:[%s1397_s1 + $0x48] sm:$0xff]   ;;  %v1088_v28 = vld [vmem:[%s1397_s1 + $0x40] sm:$0xff]   ;;  %v1092_v37 = vld [vmem:[%s1397_s1 + $0x178] sm:$0xff]  }
   0xa   :  { %966 = vmatprep.subr.bf16.mxu1 %v1069_v9  ;;  %v1085_v25 = vld [vmem:[%s1397_s1 + $0xc8] sm:$0xff]   ;;  %v1089_v29 = vld [vmem:[%s1397_s1 + $0xc0] sm:$0xff]   ;;  %v1093_v38 = vld [vmem:[%s1397_s1 + $0x138] sm:$0xff]  }
   0xb   :  { %v1086_v26 = vld [vmem:[%s1397_s1 + $0x8] sm:$0xff]   ;;  %v1090_v30 = vld [vmem:[%s1397_s1] sm:$0xff]   ;;  %v1094_v43 = vld [vmem:[%s1397_s1 + $0x1f8] sm:$0xff]  }
   0xc   :  { %945 = vmatpush3.bf16.msra.mxu0 %v1070_v10  ;;  %v1087_v27 = vld [vmem:[%s1397_s1 + $0x88] sm:$0xff]   ;;  %v1091_v31 = vld [vmem:[%s1397_s1 + $0x80] sm:$0xff]   ;;  %v1095_v44 = vld [vmem:[%s1397_s1 + $0x1b8] sm:$0xff]  }
   0xd   :  { %967 = vmatpush3.bf16.msra.mxu1 %v1071_v11  ;;  %946 = vmatprep.subr.bf16.mxu0 %v1072_v12  ;;  %v20_v32 = vld [vmem:[%s1398_s0] sm:$0xff]  ;;  %v21_v33 = vld [vmem:[%s1398_s0 + $0x8] sm:$0xff]  ;;  %v1096_v45 = vld [vmem:[%s1397_s1 + $0x170] sm:$0xff]  }
   0xe   :  { %968 = vmatprep.subr.bf16.mxu1 %v1073_v13  ;;  %v25_v35 = vmax.bf16 %v1132_v34, %v20_v32  ;;  %v26_v36 = vmax.bf16 %v1132_v34, %v21_v33  ;;  %v1097_v46 = vld [vmem:[%s1397_s1 + $0x130] sm:$0xff]   ;;  %v1100_v49 = vld [vmem:[%s1397_s1 + $0x168] sm:$0xff]   ;;  %v1104_v53 = vld [vmem:[%s1397_s1 + $0x160] sm:$0xff]  }
   0xf   :  { %v1098_v47 = vld [vmem:[%s1397_s1 + $0x1f0] sm:$0xff]   ;;  %v1101_v50 = vld [vmem:[%s1397_s1 + $0x128] sm:$0xff]   ;;  %v1105_v54 = vld [vmem:[%s1397_s1 + $0x120] sm:$0xff]  }
  0x10   :  { %947 = vmatpush3.bf16.msra.mxu0 %v1074_v14  ;;  %v859_v39 = vcombine.high %v25_v35, %v25_v35  ;;  %v861_v40 = vcombine.high %v26_v36, %v26_v36  ;;  %v858_v41 = vcombine.low %v25_v35, %v25_v35  ;;  %v860_v42 = vcombine.low %v26_v36, %v26_v36  ;;  %v1099_v48 = vld [vmem:[%s1397_s1 + $0x1b0] sm:$0xff]   ;;  %v1102_v51 = vld [vmem:[%s1397_s1 + $0x1e8] sm:$0xff]   ;;  %v1106_v55 = vld [vmem:[%s1397_s1 + $0x1e0] sm:$0xff]  }
  0x11   :  { %969 = vmatpush3.bf16.msra.mxu1 %v1075_v15  ;;  %948 = vmatprep.subr.bf16.mxu0 %v1076_v16  ;;  %v1103_v52 = vld [vmem:[%s1397_s1 + $0x1a8] sm:$0xff]   ;;  %v1107_v56 = vld [vmem:[%s1397_s1 + $0x1a0] sm:$0xff]   ;;  %v1108_v57 = vld [vmem:[%s1397_s1 + $0x158] sm:$0xff]  }
  0x12   :  { %970 = vmatprep.subr.bf16.mxu1 %v1077_v17  ;;  %671 = vmatprep.mubr.bf16.mxu0 %v859_v39  ;;  %v1109_v58 = vld [vmem:[%s1397_s1 + $0x118] sm:$0xff]   ;;  %v1112_v61 = vld [vmem:[%s1397_s1 + $0x150] sm:$0xff]   ;;  %v1116_v1 = vld [vmem:[%s1397_s1 + $0x148] sm:$0xff]  }
  0x13   :  { %711 = vmatprep.mubr.bf16.mxu1 %v861_v40  ;;  %v1110_v59 = vld [vmem:[%s1397_s1 + $0x1d8] sm:$0xff]   ;;  %v1113_v62 = vld [vmem:[%s1397_s1 + $0x110] sm:$0xff]   ;;  %v1117_v2 = vld [vmem:[%s1397_s1 + $0x108] sm:$0xff]  }
  0x14   :  { %949 = vmatpush3.bf16.msra.mxu0 %v1078_v18  ;;  %v1111_v60 = vld [vmem:[%s1397_s1 + $0x198] sm:$0xff]   ;;  %v1114_v63 = vld [vmem:[%s1397_s1 + $0x1d0] sm:$0xff]   ;;  %v1118_v3 = vld [vmem:[%s1397_s1 + $0x1c8] sm:$0xff]   ;;  %v1133_v18 = vmov 0.0  }
  0x15   :  { %971 = vmatpush3.bf16.msra.mxu1 %v1079_v19  ;;  %950 = vmatprep.subr.bf16.mxu0 %v1080_v20  ;;  %v1115_v0 = vld [vmem:[%s1397_s1 + $0x190] sm:$0xff]   ;;  %v1119_v4 = vld [vmem:[%s1397_s1 + $0x188] sm:$0xff]   ;;  %v1120_v5 = vld [vmem:[%s1397_s1 + $0x140] sm:$0xff]  }
  0x16   :  { %972 = vmatprep.subr.bf16.mxu1 %v1081_v21  ;;  %v1121_v6 = vld [vmem:[%s1397_s1 + $0x100] sm:$0xff]   ;;  %v22_v8 = vld [vmem:[%s1398_s0 + $0x10] sm:$0xff]  ;;  %v23_v11 = vld [vmem:[%s1398_s0 + $0x18] sm:$0xff] }
  0x17   :  { %v1122_v7 = vld [vmem:[%s1397_s1 + $0x1c0] sm:$0xff]   ;;  %v27_v9 = vmax.bf16 %v1132_v34, %v22_v8  ;;  %v28_v14 = vmax.bf16 %v1132_v34, %v23_v11  ;;  %v1124_v15 = vld [vmem:[%s1397_s1 + $0x238] sm:$0xff]   ;;  %v1125_v19 = vld [vmem:[%s1397_s1 + $0x230] sm:$0xff]  }
  0x18   :  { %951 = vmatpush3.bf16.msra.mxu0 %v1082_v22  ;;  %v1123_v10 = vld [vmem:[%s1397_s1 + $0x180] sm:$0xff]   ;;  %v1126_v22 = vld [vmem:[%s1397_s1 + $0x228] sm:$0xff]  }
  0x19   :  { %973 = vmatpush3.bf16.msra.mxu1 %v1083_v23  ;;  %952 = vmatprep.subr.bf16.mxu0 %v1084_v24  ;;  %v863_v12 = vcombine.high %v27_v9, %v27_v9  ;;  %v862_v13 = vcombine.low %v27_v9, %v27_v9  ;;  %v865_v16 = vcombine.high %v28_v14, %v28_v14  ;;  %v24_v20 = vld [vmem:[%s1398_s0 + $0x20] sm:$0xf]  ;;  %v1128_v24 = vld [vmem:[%s1397_s1 + $0x218] sm:$0xff]  }
  0x1a   :  { %974 = vmatprep.subr.bf16.mxu1 %v1085_v25  ;;  %v864_v17 = vcombine.low %v28_v14, %v28_v14  ;;  %v29_v21 = vmax.bf16 %v1132_v34, %v24_v20  ;;  %v1127_v23 = vld [vmem:[%s1397_s1 + $0x220] sm:$0xff]   ;;  %v1129_v25 = vld [vmem:[%s1397_s1 + $0x210] sm:$0xff]  }
  0x1c   :  { %953 = vmatpush3.bf16.msra.mxu0 %v1086_v26  ;;  %v1130_v26 = vld [vmem:[%s1397_s1 + $0x208] sm:$0xff]  }
  0x1d   :  { %975 = vmatpush3.bf16.msra.mxu1 %v1087_v27  ;;  %954 = vmatprep.subr.bf16.mxu0 %v1088_v28  ;;  %v1131_v27 = vld [vmem:[%s1397_s1 + $0x200] sm:$0xff]   ;;  %v866_v28 = vcombine.low %v29_v21, %v29_v21 }
  0x1e   :  { %976 = vmatprep.subr.bf16.mxu1 %v1089_v29 }
  0x20   :  { %955 = vmatpush3.bf16.msra.mxu0 %v1090_v30 }
  0x21   :  { %977 = vmatpush3.bf16.msra.mxu1 %v1091_v31  ;;  %984 = vmatprep.subr.bf16.mxu0 %v1092_v37 }
  0x22   :  { %1006 = vmatprep.subr.bf16.mxu1 %v1094_v43 }
  0x23   :  { %672 = vmatmul.mubr.bf16.vlgmr.msra.gmra.mxu0 %v858_v41 }
  0x24   :  { %712 = vmatmul.mubr.bf16.vlgmr.msra.gmra.mxu1 %v860_v42  ;;  %985 = vmatpush3.bf16.msra.mxu0 %v1093_v38 }
  0x25   :  { %1007 = vmatpush3.bf16.msra.mxu1 %v1095_v44  ;;  %986 = vmatprep.subr.bf16.mxu0 %v1096_v45 }
  0x26   :  { %1008 = vmatprep.subr.bf16.mxu1 %v1098_v47  ;;  %751 = vmatprep.mubr.bf16.mxu0 %v863_v12 }
  0x27   :  { %791 = vmatprep.mubr.bf16.mxu1 %v865_v16 }
  0x28   :  { %987 = vmatpush3.bf16.msra.mxu0 %v1097_v46 }
  0x29   :  { %1009 = vmatpush3.bf16.msra.mxu1 %v1099_v48  ;;  %988 = vmatprep.subr.bf16.mxu0 %v1100_v49 }
  0x2a   :  { %1010 = vmatprep.subr.bf16.mxu1 %v1102_v51 }
  0x2c   :  { %989 = vmatpush3.bf16.msra.mxu0 %v1101_v50 }
  0x2d   :  { %1011 = vmatpush3.bf16.msra.mxu1 %v1103_v52  ;;  %990 = vmatprep.subr.bf16.mxu0 %v1104_v53  ;;  %v939_v53 = vld [vmem:[%s1399_s2] ss:$0 sm:$0xff] }
  0x2e   :  { %1012 = vmatprep.subr.bf16.mxu1 %v1106_v55 }
  0x30   :  { %991 = vmatpush3.bf16.msra.mxu0 %v1105_v54 }
  0x31   :  { %1013 = vmatpush3.bf16.msra.mxu1 %v1107_v56  ;;  %992 = vmatprep.subr.bf16.mxu0 %v1108_v57 }
  0x32   :  { %1014 = vmatprep.subr.bf16.mxu1 %v1110_v59 }
  0x34   :  { %993 = vmatpush3.bf16.msra.mxu0 %v1109_v58 }
  0x35   :  { %1015 = vmatpush3.bf16.msra.mxu1 %v1111_v60  ;;  %994 = vmatprep.subr.bf16.mxu0 %v1112_v61 }
  0x36   :  { %1016 = vmatprep.subr.bf16.mxu1 %v1114_v63 }
  0x38   :  { %995 = vmatpush3.bf16.msra.mxu0 %v1113_v62 }
  0x39   :  { %1017 = vmatpush3.bf16.msra.mxu1 %v1115_v0  ;;  %996 = vmatprep.subr.bf16.mxu0 %v1116_v1 }
  0x3a   :  { %1018 = vmatprep.subr.bf16.mxu1 %v1118_v3 }
  0x3c   :  { %997 = vmatpush3.bf16.msra.mxu0 %v1117_v2 }
  0x3d   :  { %1019 = vmatpush3.bf16.msra.mxu1 %v1119_v4  ;;  %998 = vmatprep.subr.bf16.mxu0 %v1120_v5 }
  0x3e   :  { %1020 = vmatprep.subr.bf16.mxu1 %v1122_v7 }
  0x40   :  { %999 = vmatpush3.bf16.msra.mxu0 %v1121_v6 }
  0x41   :  { %1021 = vmatpush3.bf16.msra.mxu1 %v1123_v10  ;;  %1037 = vmatprep.subr.bf16.mxu0 %v1133_v18 }
  0x43   :  { %752 = vmatmul.mubr.bf16.vlgmr.msra.gmra.mxu0 %v862_v13 }
  0x44   :  { %1038 = vmatpush3.bf16.msra.mxu0 %v1124_v15  ;;  %792 = vmatmul.mubr.bf16.vlgmr.msra.gmra.mxu1 %v864_v17 }
  0x45   :  { %1039 = vmatprep.subr.bf16.mxu0 %v1133_v18  ;;  %1053 = vmatprep.mubr.msk.bf16.mxu0 %vm1134_vm0, %v1133_v18 }
  0x48   :  { %1040 = vmatpush3.bf16.msra.mxu0 %v1125_v19 }
  0x49   :  { %1041 = vmatprep.subr.bf16.mxu0 %v1133_v18 }
  0x4c   :  { %1042 = vmatpush3.bf16.msra.mxu0 %v1126_v22 }
  0x4d   :  { %1043 = vmatprep.subr.bf16.mxu0 %v1133_v18 }
  0x50   :  { %1044 = vmatpush3.bf16.msra.mxu0 %v1127_v23 }
  0x51   :  { %1045 = vmatprep.subr.bf16.mxu0 %v1133_v18 }
  0x54   :  { %1046 = vmatpush3.bf16.msra.mxu0 %v1128_v24 }
  0x55   :  { %1047 = vmatprep.subr.bf16.mxu0 %v1133_v18 }
  0x58   :  { %1048 = vmatpush3.bf16.msra.mxu0 %v1129_v25 }
  0x59   :  { %1049 = vmatprep.subr.bf16.mxu0 %v1133_v18 }
  0x5c   :  { %1050 = vmatpush3.bf16.msra.mxu0 %v1130_v26 }
  0x5d   :  { %1051 = vmatprep.subr.bf16.mxu0 %v1133_v18 }
  0x60   :  { %1052 = vmatpush3.bf16.msra.mxu0 %v1131_v27 }
  0x63   :  { %1054 = vmatmul.mubr.bf16.vlgmr.msra.gmra.mxu0 %v866_v28 }
  0xe3   :  { %v956_v29 = vpop.f32.mrf.mxu0 }
  0xe4   :  { %v978_v30 = vpop.f32.mrf.mxu1 }
  0xe5   :  { %v957_v31 = vpop.f32.mrf.mxu0 }
  0xe6   :  { %v979_v32 = vpop.f32.mrf.mxu1  ;;  %v958_v45 = vadd.f32 %v957_v31, %v956_v29 }
  0xe7   :  { %v959_v33 = vpop.f32.mrf.mxu0  ;;  %v980_v46 = vadd.f32 %v979_v32, %v978_v30 }
  0xe8   :  { %v981_v34 = vpop.f32.mrf.mxu1 }
  0xe9   :  { %v960_v35 = vpop.f32.mrf.mxu0  ;;  %v714_v48 = vadd.f32 %v980_v46, %v958_v45 }
  0xea   :  { %v982_v36 = vpop.f32.mrf.mxu1 }
 0x103   :  { %v1000_v37 = vpop.f32.mrf.mxu0 }
 0x104   :  { %v1022_v38 = vpop.f32.mrf.mxu1 }
 0x105   :  { %v1001_v39 = vpop.f32.mrf.mxu0 }
 0x106   :  { %v1023_v40 = vpop.f32.mrf.mxu1  ;;  %v1002_v47 = vadd.f32 %v1001_v39, %v1000_v37 }
 0x107   :  { %v1003_v41 = vpop.f32.mrf.mxu0  ;;  %v1024_v50 = vadd.f32 %v1023_v40, %v1022_v38 }
 0x108   :  { %v1025_v42 = vpop.f32.mrf.mxu1  ;;  %v754_v49 = vadd.f32 %v1002_v47, %v714_v48 }
 0x109   :  { %v1004_v43 = vpop.f32.mrf.mxu0 }
 0x10a   :  { %v1026_v44 = vpop.f32.mrf.mxu1  ;;  %v794_v51 = vadd.f32 %v1024_v50, %v754_v49 }
 0x123   :  { %v833_v52 = vpop.f32.mrf.mxu0 }
 0x124   :  { %v834_v54 = vadd.f32 %v833_v52, %v794_v51 }
 0x125   :  { %v1055_v55 = vpop.f32.mrf.mxu0 }
 0x126   :  { %v852_v56 = vadd.f32 %v939_v53, %v834_v54 }
 0x127   :  { %v836_v57 = vpop.f32.mrf.mxu0 }
 0x128   :  { %853 = vst [vmem:[%s1400_s3] sm:$0xff] %v852_v56 }
 0x129   :  { %v1056_v58 = vpop.f32.mrf.mxu0 }

// kernel: generator_forward.42
= control target key start
LH: loop header
LB: loop body
LE: loop exit
PB: predicated region body
PF: predicated region fallthrough
CT: control target
= control target key end

     0   :  { %v739_v35 = vmov 0   ;;  %vm19_vm0 = vcmask 523264   ;;  %s934_s1 = inlined_call_operand.vmem [shape: bf16[576,64], index: 1, kind: input, shape index: {}]   ;;  %s935_s0 = inlined_call_operand.vmem [shape: bf16[32,576], index: 0, kind: input, shape index: {}]   ;;  %s936_s2 = inlined_call_operand.vmem [shape: f32[1,64], index: 2, kind: input, shape index: {}]   ;;  %s937_s3 = inlined_call_operand.vmem [shape: f32[32,64], index: 3, kind: output, shape index: {}]  }
   0x1   :  { %v703_v0 = vld [vmem:[%s934_s1 + $0x78] sm:$0xff]   ;;  %v707_v4 = vld [vmem:[%s934_s1 + $0x70] sm:$0xff]   ;;  %v711_v8 = vld [vmem:[%s934_s1 + $0x68] sm:$0xff]  }
   0x2   :  { %v704_v1 = vld [vmem:[%s934_s1 + $0xf8] sm:$0xff]   ;;  %627 = vmatprep.subr.bf16.mxu0 %v703_v0  ;;  %v708_v5 = vld [vmem:[%s934_s1 + $0xf0] sm:$0xff]   ;;  %v712_v9 = vld [vmem:[%s934_s1 + $0xe8] sm:$0xff]  }
   0x3   :  { %v705_v2 = vld [vmem:[%s934_s1 + $0x38] sm:$0xff]   ;;  %655 = vmatprep.subr.bf16.mxu1 %v704_v1  ;;  %v709_v6 = vld [vmem:[%s934_s1 + $0x30] sm:$0xff]   ;;  %v713_v10 = vld [vmem:[%s934_s1 + $0x28] sm:$0xff]  }
   0x4   :  { %v706_v3 = vld [vmem:[%s934_s1 + $0xb8] sm:$0xff]   ;;  %628 = vmatpush3.bf16.msra.mxu0 %v705_v2  ;;  %v710_v7 = vld [vmem:[%s934_s1 + $0xb0] sm:$0xff]   ;;  %v714_v11 = vld [vmem:[%s934_s1 + $0xa8] sm:$0xff]  }
   0x5   :  { %656 = vmatpush3.bf16.msra.mxu1 %v706_v3  ;;  %629 = vmatprep.subr.bf16.mxu0 %v707_v4  ;;  %v715_v12 = vld [vmem:[%s934_s1 + $0x60] sm:$0xff]   ;;  %v719_v16 = vld [vmem:[%s934_s1 + $0x58] sm:$0xff]   ;;  %v723_v20 = vld [vmem:[%s934_s1 + $0x50] sm:$0xff]  }
   0x6   :  { %657 = vmatprep.subr.bf16.mxu1 %v708_v5  ;;  %v716_v13 = vld [vmem:[%s934_s1 + $0xe0] sm:$0xff]   ;;  %v720_v17 = vld [vmem:[%s934_s1 + $0xd8] sm:$0xff]   ;;  %v724_v21 = vld [vmem:[%s934_s1 + $0xd0] sm:$0xff]  }
   0x7   :  { %v717_v14 = vld [vmem:[%s934_s1 + $0x20] sm:$0xff]   ;;  %v721_v18 = vld [vmem:[%s934_s1 + $0x18] sm:$0xff]   ;;  %v725_v22 = vld [vmem:[%s934_s1 + $0x10] sm:$0xff]  }
   0x8   :  { %630 = vmatpush3.bf16.msra.mxu0 %v709_v6  ;;  %v718_v15 = vld [vmem:[%s934_s1 + $0xa0] sm:$0xff]   ;;  %v722_v19 = vld [vmem:[%s934_s1 + $0x98] sm:$0xff]   ;;  %v726_v23 = vld [vmem:[%s934_s1 + $0x90] sm:$0xff]  }
   0x9   :  { %658 = vmatpush3.bf16.msra.mxu1 %v710_v7  ;;  %631 = vmatprep.subr.bf16.mxu0 %v711_v8  ;;  %v727_v24 = vld [vmem:[%s934_s1 + $0x48] sm:$0xff]   ;;  %v731_v28 = vld [vmem:[%s934_s1 + $0x40] sm:$0xff]   ;;  %v27_v33 = vld [vmem:[%s935_s0 + $0x14] sm:$0xff]  ;;  %v740_v7 = vmov 0.0  }
   0xa   :  { %659 = vmatprep.subr.bf16.mxu1 %v712_v9  ;;  %v728_v25 = vld [vmem:[%s934_s1 + $0xc8] sm:$0xff]   ;;  %v732_v29 = vld [vmem:[%s934_s1 + $0xc0] sm:$0xff]   ;;  %v39_v37 = vmax.bf16 %v739_v35, %v27_v33  ;;  %v735_v41 = vld [vmem:[%s934_s1 + $0x118] sm:$0xff]   ;;  %22 = vst.msk [vmem:[#allocation2 + $0x10] sm:$0xff] %vm19_vm0, %v740_v7 }
   0xb   :  { %v729_v26 = vld [vmem:[%s934_s1 + $0x8] sm:$0xff]   ;;  %v733_v30 = vld [vmem:[%s934_s1] sm:$0xff]   ;;  %v736_v44 = vld [vmem:[%s934_s1 + $0x110] sm:$0xff]   ;;  %20 = vst.msk [vmem:[#allocation2] sm:$0xff] %vm19_vm0, %v740_v7 }
   0xc   :  { %632 = vmatpush3.bf16.msra.mxu0 %v713_v10  ;;  %v730_v27 = vld [vmem:[%s934_s1 + $0x88] sm:$0xff]   ;;  %v734_v31 = vld [vmem:[%s934_s1 + $0x80] sm:$0xff]   ;;  %v31_v51 = vld [vmem:[%s935_s0 + $0x30] sm:$0xff]  ;;  %21 = vst.msk [vmem:[#allocation2 + $0x8] sm:$0xff] %vm19_vm0, %v740_v7 }
   0xd   :  { %660 = vmatpush3.bf16.msra.mxu1 %v714_v11  ;;  %633 = vmatprep.subr.bf16.mxu0 %v715_v12  ;;  %v24_v32 = vld [vmem:[%s935_s0] sm:$0xff]  ;;  %v25_v34 = vld [vmem:[%s935_s0 + $0x8] sm:$0xff]  ;;  %v43_v53 = vmax.bf16 %v739_v35, %v31_v51  ;;  %v26_v56 = vld [vmem:[%s935_s0 + $0x10] sm:$0xf]  ;;  %23 = vst.msk [vmem:[#allocation2 + $0x18] sm:$0xff] %vm19_vm0, %v740_v7 }
   0xe   :  { %661 = vmatprep.subr.bf16.mxu1 %v716_v13  ;;  %v36_v36 = vmax.bf16 %v739_v35, %v24_v32  ;;  %v28_v38 = vld [vmem:[%s935_s0 + $0x1c] sm:$0xff]  ;;  %v37_v39 = vmax.bf16 %v739_v35, %v25_v34  ;;  %v30_v45 = vld [vmem:[%s935_s0 + $0x28] sm:$0xff]  ;;  %v29_v58 = vld [vmem:[%s935_s0 + $0x24] sm:$0xf]  ;;  %v38_v60 = vmax.bf16 %v739_v35, %v26_v56 }
   0xf   :  { %v40_v40 = vmax.bf16 %v739_v35, %v28_v38  ;;  %v33_v46 = vld [vmem:[%s935_s0 + $0x3c] sm:$0xff]  ;;  %v42_v49 = vmax.bf16 %v739_v35, %v30_v45  ;;  %v34_v52 = vld [vmem:[%s935_s0 + $0x44] sm:$0xff]  ;;  %v41_v61 = vmax.bf16 %v739_v35, %v29_v58  ;;  %v32_v0 = vld [vmem:[%s935_s0 + $0x38] sm:$0xf] }
  0x10   :  { %634 = vmatpush3.bf16.msra.mxu0 %v717_v14  ;;  %v579_v42 = vcombine.high %v36_v36, %v39_v37  ;;  %v578_v43 = vcombine.low %v36_v36, %v39_v37  ;;  %v45_v50 = vmax.bf16 %v739_v35, %v33_v46  ;;  %v46_v54 = vmax.bf16 %v739_v35, %v34_v52  ;;  %v737_v59 = vld [vmem:[%s934_s1 + $0x108] sm:$0xff]   ;;  %v738_v2 = vld [vmem:[%s934_s1 + $0x100] sm:$0xff]  }
  0x11   :  { %662 = vmatpush3.bf16.msra.mxu1 %v718_v15  ;;  %635 = vmatprep.subr.bf16.mxu0 %v719_v16  ;;  %v581_v47 = vcombine.high %v37_v39, %v40_v40  ;;  %v580_v48 = vcombine.low %v37_v39, %v40_v40  ;;  %v35_v1 = vld [vmem:[%s935_s0 + $0x4c] sm:$0xf]  ;;  %v582_v3 = vcombine.low %v38_v60, %v41_v61  ;;  %v626_v52 = vld [vmem:[%s936_s2] ss:$0 sm:$0xff] }
  0x12   :  { %663 = vmatprep.subr.bf16.mxu1 %v720_v17  ;;  %429 = vmatprep.mubr.bf16.mxu0 %v579_v42  ;;  %v584_v55 = vcombine.high %v42_v49, %v45_v50  ;;  %v586_v57 = vcombine.high %v43_v53, %v46_v54  ;;  %v583_v62 = vcombine.low %v42_v49, %v45_v50  ;;  %v48_v37 = vld [vmem:[#allocation2] sm:$0xff] }
  0x13   :  { %478 = vmatprep.mubr.bf16.mxu1 %v581_v47  ;;  %v585_v63 = vcombine.low %v43_v53, %v46_v54  ;;  %v44_v4 = vmax.bf16 %v739_v35, %v32_v0  ;;  %v47_v5 = vmax.bf16 %v739_v35, %v35_v1  ;;  %v49_v47 = vld [vmem:[#allocation2 + $0x8] sm:$0xff] }
  0x14   :  { %636 = vmatpush3.bf16.msra.mxu0 %v721_v18  ;;  %v51_v42 = vld [vmem:[#allocation2 + $0x18] sm:$0xff] }
  0x15   :  { %664 = vmatpush3.bf16.msra.mxu1 %v722_v19  ;;  %637 = vmatprep.subr.bf16.mxu0 %v723_v20  ;;  %v587_v6 = vcombine.low %v44_v4, %v47_v5 }
  0x16   :  { %665 = vmatprep.subr.bf16.mxu1 %v724_v21 }
  0x18   :  { %638 = vmatpush3.bf16.msra.mxu0 %v725_v22 }
  0x19   :  { %666 = vmatpush3.bf16.msra.mxu1 %v726_v23  ;;  %639 = vmatprep.subr.bf16.mxu0 %v727_v24 }
  0x1a   :  { %667 = vmatprep.subr.bf16.mxu1 %v728_v25 }
  0x1c   :  { %640 = vmatpush3.bf16.msra.mxu0 %v729_v26 }
  0x1d   :  { %668 = vmatpush3.bf16.msra.mxu1 %v730_v27  ;;  %641 = vmatprep.subr.bf16.mxu0 %v731_v28 }
  0x1e   :  { %669 = vmatprep.subr.bf16.mxu1 %v732_v29 }
  0x20   :  { %642 = vmatpush3.bf16.msra.mxu0 %v733_v30 }
  0x21   :  { %670 = vmatpush3.bf16.msra.mxu1 %v734_v31  ;;  %689 = vmatprep.subr.bf16.mxu0 %v735_v41  ;;  %v50_v31 = vld [vmem:[#allocation2 + $0x10] sm:$0xff] }
  0x23   :  { %430 = vmatmul.mubr.bf16.vlgmr.msra.gmra.mxu0 %v578_v43 }
  0x24   :  { %479 = vmatmul.mubr.bf16.vlgmr.msra.gmra.mxu1 %v580_v48  ;;  %690 = vmatpush3.bf16.msra.mxu0 %v735_v41 }
  0x25   :  { %691 = vmatprep.subr.bf16.mxu0 %v736_v44  ;;  %437 = vmatprep.mubr.bf16.mxu0 %v584_v55 }
  0x26   :  { %486 = vmatprep.mubr.bf16.mxu1 %v586_v57 }
  0x28   :  { %692 = vmatpush3.bf16.msra.mxu0 %v736_v44 }
  0x29   :  { %693 = vmatprep.subr.bf16.mxu0 %v737_v59 }
  0x2b   :  { %438 = vmatmul.mubr.bf16.gmra.mxu0 %v583_v62 }
  0x2c   :  { %487 = vmatmul.mubr.bf16.gmra.mxu1 %v585_v63  ;;  %694 = vmatpush3.bf16.msra.mxu0 %v737_v59 }
  0x2d   :  { %695 = vmatprep.subr.bf16.mxu0 %v738_v2  ;;  %697 = vmatprep.mubr.msk.bf16.mxu0 %vm19_vm0, %v582_v3 }
  0x30   :  { %696 = vmatpush3.bf16.msra.mxu0 %v738_v2 }
  0x33   :  { %698 = vmatmul.mubr.msk.bf16.vlgmr.msra.gmra.mxu0 %vm19_vm0, %v587_v6 }
  0xe3   :  { %v643_v8 = vpop.f32.mrf.mxu0 }
  0xe4   :  { %v671_v9 = vpop.f32.mrf.mxu1 }
  0xe5   :  { %v644_v10 = vpop.f32.mrf.mxu0 }
  0xe6   :  { %v672_v11 = vpop.f32.mrf.mxu1  ;;  %v645_v23 = vadd.f32 %v644_v10, %v643_v8 }
  0xe7   :  { %v646_v12 = vpop.f32.mrf.mxu0  ;;  %v673_v24 = vadd.f32 %v672_v11, %v671_v9 }
  0xe8   :  { %v674_v13 = vpop.f32.mrf.mxu1 }
  0xe9   :  { %v647_v14 = vpop.f32.mrf.mxu0  ;;  %v481_v36 = vadd.f32 %v673_v24, %v645_v23 }
  0xea   :  { %v675_v15 = vpop.f32.mrf.mxu1  ;;  %v648_v33 = vadd.f32 %v647_v14, %v646_v12 }
  0xeb   :  { %v649_v16 = vpop.f32.mrf.mxu0  ;;  %v676_v34 = vadd.f32 %v675_v15, %v674_v13 }
  0xec   :  { %v677_v17 = vpop.f32.mrf.mxu1 }
  0xed   :  { %v650_v18 = vpop.f32.mrf.mxu0  ;;  %v484_v46 = vadd.f32 %v676_v34, %v648_v33 }
  0xee   :  { %v651_v19 = vadd.f32 %v650_v18, %v649_v16  ;;  %v678_v20 = vpop.f32.mrf.mxu1 }
  0xef   :  { %v679_v21 = vadd.f32 %v678_v20, %v677_v17  ;;  %v652_v22 = vpop.f32.mrf.mxu0 }
  0xf0   :  { %v680_v25 = vpop.f32.mrf.mxu1 }
  0xf1   :  { %v653_v26 = vpop.f32.mrf.mxu0  ;;  %v489_v29 = vadd.f32 %v679_v21, %v651_v19 }
  0xf2   :  { %v654_v27 = vadd.f32 %v653_v26, %v652_v22  ;;  %v681_v28 = vpop.f32.mrf.mxu1 }
  0xf3   :  { %v682_v30 = vadd.f32 %v681_v28, %v680_v25  ;;  %v699_v32 = vpop.f32.mrf.mxu0 }
  0xf4   :  { %v538_v35 = vadd.f32 %v699_v32, %v489_v29 }
  0xf5   :  { %v529_v38 = vpop.f32.mrf.mxu0  ;;  %v492_v41 = vadd.f32 %v682_v30, %v654_v27 }
  0xf6   :  { %v546_v39 = vadd.f32 %v538_v35, %v50_v31  ;;  %v530_v40 = vadd.f32 %v529_v38, %v481_v36 }
  0xf7   :  { %v700_v43 = vpop.f32.mrf.mxu0 }
  0xf8   :  { %550 = vst.msk [vmem:[#allocation2 + $0x10] sm:$0xff] %vm19_vm0, %v546_v39  ;;  %v544_v44 = vadd.f32 %v530_v40, %v48_v37  ;;  %v541_v45 = vadd.f32 %v700_v43, %v492_v41 }
  0xf9   :  { %v532_v48 = vpop.f32.mrf.mxu0 }
  0xfa   :  { %548 = vst.msk [vmem:[#allocation2] sm:$0xff] %vm19_vm0, %v544_v44  ;;  %v547_v49 = vadd.f32 %v541_v45, %v51_v42  ;;  %v533_v50 = vadd.f32 %v532_v48, %v484_v46 }
  0xfc   :  { %551 = vst.msk [vmem:[#allocation2 + $0x18] sm:$0xff] %vm19_vm0, %v547_v49  ;;  %v545_v51 = vadd.f32 %v533_v50, %v49_v47 }
  0xfe   :  { %549 = vst.msk [vmem:[#allocation2 + $0x8] sm:$0xff] %vm19_vm0, %v545_v51 }
  0xff   :  { %v557_v53 = vld [vmem:[#allocation2 + $0x10] sm:$0xff] }
 0x100   :  { %v568_v54 = vadd.f32 %v626_v52, %v557_v53 }
 0x101   :  { %v555_v55 = vld [vmem:[#allocation2] sm:$0xff] }
 0x102   :  { %572 = vst.msk [vmem:[%s937_s3 + $0x10] sm:$0xff] %vm19_vm0, %v568_v54  ;;  %v566_v56 = vadd.f32 %v626_v52, %v555_v55 }
 0x103   :  { %v558_v57 = vld [vmem:[#allocation2 + $0x18] sm:$0xff] }
 0x104   :  { %570 = vst.msk [vmem:[%s937_s3] sm:$0xff] %vm19_vm0, %v566_v56  ;;  %v569_v58 = vadd.f32 %v626_v52, %v558_v57 }
 0x105   :  { %v556_v59 = vld [vmem:[#allocation2 + $0x8] sm:$0xff] }
 0x106   :  { %573 = vst.msk [vmem:[%s937_s3 + $0x18] sm:$0xff] %vm19_vm0, %v569_v58  ;;  %v567_v60 = vadd.f32 %v626_v52, %v556_v59 }
 0x108   :  { %571 = vst.msk [vmem:[%s937_s3 + $0x8] sm:$0xff] %vm19_vm0, %v567_v60 }

// kernel: generator_forward.45
= control target key start
LH: loop header
LB: loop body
LE: loop exit
PB: predicated region body
PF: predicated region fallthrough
CT: control target
= control target key end

     0   :  { %v874_v14 = vmov 0   ;;  %vm19_vm0 = vcmask 261120   ;;  %s1227_s1 = inlined_call_operand.vmem [shape: bf16[288,32], index: 1, kind: input, shape index: {}]   ;;  %s1228_s0 = inlined_call_operand.vmem [shape: bf16[128,288], index: 0, kind: input, shape index: {}]   ;;  %s1229_s2 = inlined_call_operand.vmem [shape: f32[1,32], index: 2, kind: input, shape index: {}]   ;;  %s1230_s3 = inlined_call_operand.vmem [shape: f32[128,32], index: 3, kind: output, shape index: {}]  }
   0x1   :  { %v856_v0 = vld [vmem:[%s1227_s1 + $0x78] sm:$0xff]   ;;  %v858_v2 = vld [vmem:[%s1227_s1 + $0x70] sm:$0xff]   ;;  %v860_v4 = vld [vmem:[%s1227_s1 + $0x68] sm:$0xff]  }
   0x2   :  { %v857_v1 = vld [vmem:[%s1227_s1 + $0x38] sm:$0xff]   ;;  %744 = vmatprep.subr.bf16.mxu0 %v856_v0  ;;  %838 = vmatprep.subr.bf16.mxu1 %v856_v0  ;;  %v859_v3 = vld [vmem:[%s1227_s1 + $0x30] sm:$0xff]   ;;  %v861_v5 = vld [vmem:[%s1227_s1 + $0x28] sm:$0xff]  }
   0x3   :  { %745 = vmatpush3.bf16.msra.mxu0 %v857_v1  ;;  %846 = vmatpush3.bf16.msra.mxu1 %v857_v1  ;;  %v862_v6 = vld [vmem:[%s1227_s1 + $0x60] sm:$0xff]   ;;  %v864_v8 = vld [vmem:[%s1227_s1 + $0x58] sm:$0xff]   ;;  %v866_v10 = vld [vmem:[%s1227_s1 + $0x50] sm:$0xff]  }
   0x4   :  { %746 = vmatprep.subr.bf16.mxu0 %v858_v2  ;;  %839 = vmatprep.subr.bf16.mxu1 %v858_v2  ;;  %v863_v7 = vld [vmem:[%s1227_s1 + $0x20] sm:$0xff]   ;;  %v865_v9 = vld [vmem:[%s1227_s1 + $0x18] sm:$0xff]   ;;  %v38_v12 = vld [vmem:[%s1228_s0 + $0xc] sm:$0xff] }
   0x5   :  { %v36_v11 = vld [vmem:[%s1228_s0] sm:$0xff]  ;;  %v60_v13 = vld [vmem:[%s1228_s0 + $0x90] sm:$0xff]  ;;  %v70_v16 = vmax.bf16 %v874_v14, %v38_v12  ;;  %v868_v22 = vld [vmem:[%s1227_s1 + $0x48] sm:$0xff]  }
   0x6   :  { %v68_v15 = vmax.bf16 %v874_v14, %v36_v11  ;;  %v62_v17 = vld [vmem:[%s1228_s0 + $0x9c] sm:$0xff]  ;;  %v92_v18 = vmax.bf16 %v874_v14, %v60_v13  ;;  %v867_v20 = vld [vmem:[%s1227_s1 + $0x10] sm:$0xff]   ;;  %v869_v24 = vld [vmem:[%s1227_s1 + $0x8] sm:$0xff]  }
   0x7   :  { %747 = vmatpush3.bf16.msra.mxu0 %v859_v3  ;;  %847 = vmatpush3.bf16.msra.mxu1 %v859_v3  ;;  %v94_v19 = vmax.bf16 %v874_v14, %v62_v17  ;;  %v870_v25 = vld [vmem:[%s1227_s1 + $0x40] sm:$0xff]   ;;  %v40_v26 = vld [vmem:[%s1228_s0 + $0x18] sm:$0xff]  ;;  %v64_v28 = vld [vmem:[%s1228_s0 + $0xa8] sm:$0xff] }
   0x8   :  { %748 = vmatprep.subr.bf16.mxu0 %v860_v4  ;;  %840 = vmatprep.subr.bf16.mxu1 %v860_v4  ;;  %v694_v21 = vcombine.high %v68_v15, %v70_v16  ;;  %v42_v27 = vld [vmem:[%s1228_s0 + $0x24] sm:$0xff]  ;;  %v66_v29 = vld [vmem:[%s1228_s0 + $0xb4] sm:$0xff]  ;;  %v72_v31 = vmax.bf16 %v874_v14, %v40_v26  ;;  %v96_v34 = vmax.bf16 %v874_v14, %v64_v28  ;;  %v46_v42 = vld [vmem:[%s1228_s0 + $0x3c] sm:$0xff] }
   0x9   :  { %v712_v23 = vcombine.high %v92_v18, %v94_v19  ;;  %v871_v30 = vld [vmem:[%s1227_s1] sm:$0xff]   ;;  %v74_v32 = vmax.bf16 %v874_v14, %v42_v27  ;;  %v872_v33 = vld [vmem:[%s1227_s1 + $0x88] sm:$0xff]   ;;  %v98_v35 = vmax.bf16 %v874_v14, %v66_v29  ;;  %v693_v36 = vcombine.low %v68_v15, %v70_v16  ;;  %v44_v40 = vld [vmem:[%s1228_s0 + $0x30] sm:$0xff] }
   0xa   :  { %437 = vmatprep.mubr.bf16.mxu0 %v694_v21  ;;  %v711_v37 = vcombine.low %v92_v18, %v94_v19  ;;  %v873_v39 = vld [vmem:[%s1227_s1 + $0x80] sm:$0xff]   ;;  %v37_v43 = vld [vmem:[%s1228_s0 + $0x8] sm:$0xf]  ;;  %v39_v44 = vld [vmem:[%s1228_s0 + $0x14] sm:$0xf]  ;;  %v76_v45 = vmax.bf16 %v874_v14, %v44_v40  ;;  %v78_v46 = vmax.bf16 %v874_v14, %v46_v42 }
   0xb   :  { %749 = vmatpush3.bf16.msra.mxu0 %v861_v5  ;;  %848 = vmatpush3.bf16.msra.mxu1 %v861_v5  ;;  %v697_v38 = vcombine.high %v72_v31, %v74_v32  ;;  %v715_v41 = vcombine.high %v96_v34, %v98_v35  ;;  %v69_v47 = vmax.bf16 %v874_v14, %v37_v43  ;;  %v41_v53 = vld [vmem:[%s1228_s0 + $0x20] sm:$0xf]  ;;  %v43_v54 = vld [vmem:[%s1228_s0 + $0x2c] sm:$0xf]  ;;  %v50_v56 = vld [vmem:[%s1228_s0 + $0x54] sm:$0xff] }
   0xc   :  { %750 = vmatprep.subr.bf16.mxu0 %v862_v6  ;;  %841 = vmatprep.subr.bf16.mxu1 %v862_v6  ;;  %v71_v48 = vmax.bf16 %v874_v14, %v39_v44  ;;  %v696_v49 = vcombine.low %v72_v31, %v74_v32  ;;  %v714_v50 = vcombine.low %v96_v34, %v98_v35  ;;  %v48_v55 = vld [vmem:[%s1228_s0 + $0x48] sm:$0xff]  ;;  %v45_v57 = vld [vmem:[%s1228_s0 + $0x38] sm:$0xf]  ;;  %v47_v58 = vld [vmem:[%s1228_s0 + $0x44] sm:$0xf]  ;;  %v875_v44 = vmov 0.0  }
   0xd   :  { %485 = vmatprep.mubr.bf16.mxu1 %v712_v23  ;;  %v700_v51 = vcombine.high %v76_v45, %v78_v46  ;;  %v73_v59 = vmax.bf16 %v874_v14, %v41_v53  ;;  %v75_v60 = vmax.bf16 %v874_v14, %v43_v54  ;;  %v80_v61 = vmax.bf16 %v874_v14, %v48_v55  ;;  %v49_v5 = vld [vmem:[%s1228_s0 + $0x50] sm:$0xf]  ;;  %v51_v6 = vld [vmem:[%s1228_s0 + $0x5c] sm:$0xf]  ;;  %v59_v23 = vld [vmem:[%s1228_s0 + $0x8c] sm:$0xf] }
   0xe   :  { %v695_v52 = vcombine.low %v69_v47, %v71_v48  ;;  %v82_v62 = vmax.bf16 %v874_v14, %v50_v56  ;;  %v77_v63 = vmax.bf16 %v874_v14, %v45_v57  ;;  %v79_v0 = vmax.bf16 %v874_v14, %v47_v58  ;;  %v61_v26 = vld [vmem:[%s1228_s0 + $0x98] sm:$0xf]  ;;  %v63_v27 = vld [vmem:[%s1228_s0 + $0xa4] sm:$0xf]  ;;  %22 = vst.msk [vmem:[#allocation2 + $0x10] sm:$0xff] %vm19_vm0, %v875_v44 }
   0xf   :  { %751 = vmatpush3.bf16.msra.mxu0 %v863_v7  ;;  %849 = vmatpush3.bf16.msra.mxu1 %v863_v7  ;;  %v699_v1 = vcombine.low %v76_v45, %v78_v46  ;;  %v698_v2 = vcombine.low %v73_v59, %v75_v60  ;;  %v52_v7 = vld [vmem:[%s1228_s0 + $0x60] sm:$0xff]  ;;  %v81_v11 = vmax.bf16 %v874_v14, %v49_v5 }
  0x10   :  { %752 = vmatprep.subr.bf16.mxu0 %v864_v8  ;;  %842 = vmatprep.subr.bf16.mxu1 %v864_v8  ;;  %v703_v3 = vcombine.high %v80_v61, %v82_v62  ;;  %v701_v4 = vcombine.low %v77_v63, %v79_v0  ;;  %v54_v8 = vld [vmem:[%s1228_s0 + $0x6c] sm:$0xff]  ;;  %v83_v12 = vmax.bf16 %v874_v14, %v51_v6 }
  0x11   :  { %v84_v13 = vmax.bf16 %v874_v14, %v52_v7  ;;  %v86_v15 = vmax.bf16 %v874_v14, %v54_v8  ;;  %v702_v18 = vcombine.low %v80_v61, %v82_v62  ;;  %v91_v29 = vmax.bf16 %v874_v14, %v59_v23  ;;  %20 = vst.msk [vmem:[#allocation2] sm:$0xff] %vm19_vm0, %v875_v44 }
  0x12   :  { %v704_v19 = vcombine.low %v81_v11, %v83_v12  ;;  %v93_v32 = vmax.bf16 %v874_v14, %v61_v26  ;;  %21 = vst.msk [vmem:[#allocation2 + $0x8] sm:$0xff] %vm19_vm0, %v875_v44  ;;  %23 = vst.msk [vmem:[#allocation2 + $0x18] sm:$0xff] %vm19_vm0, %v875_v44 }
  0x13   :  { %753 = vmatpush3.bf16.msra.mxu0 %v865_v9  ;;  %850 = vmatpush3.bf16.msra.mxu1 %v865_v9  ;;  %v53_v9 = vld [vmem:[%s1228_s0 + $0x68] sm:$0xf]  ;;  %v705_v34 = vcombine.low %v84_v13, %v86_v15  ;;  %24 = vst.msk [vmem:[#allocation2 + $0x20] sm:$0xff] %vm19_vm0, %v875_v44  ;;  %25 = vst.msk [vmem:[#allocation2 + $0x28] sm:$0xff] %vm19_vm0, %v875_v44 }
  0x14   :  { %754 = vmatprep.subr.bf16.mxu0 %v866_v10  ;;  %843 = vmatprep.subr.bf16.mxu1 %v866_v10  ;;  %v55_v10 = vld [vmem:[%s1228_s0 + $0x74] sm:$0xf]  ;;  %v85_v16 = vmax.bf16 %v874_v14, %v53_v9  ;;  %26 = vst.msk [vmem:[#allocation2 + $0x30] sm:$0xff] %vm19_vm0, %v875_v44  ;;  %27 = vst.msk [vmem:[#allocation2 + $0x38] sm:$0xff] %vm19_vm0, %v875_v44 }
  0x15   :  { %v87_v17 = vmax.bf16 %v874_v14, %v55_v10  ;;  %28 = vst.msk [vmem:[#allocation2 + $0x40] sm:$0xff] %vm19_vm0, %v875_v44  ;;  %29 = vst.msk [vmem:[#allocation2 + $0x48] sm:$0xff] %vm19_vm0, %v875_v44  ;;  %v102_v62 = vld [vmem:[#allocation2 + $0x10] sm:$0xff] }
  0x16   :  { %30 = vst.msk [vmem:[#allocation2 + $0x50] sm:$0xff] %vm19_vm0, %v875_v44  ;;  %31 = vst.msk [vmem:[#allocation2 + $0x58] sm:$0xff] %vm19_vm0, %v875_v44 }
  0x17   :  { %755 = vmatpush3.bf16.msra.mxu0 %v867_v20  ;;  %851 = vmatpush3.bf16.msra.mxu1 %v867_v20  ;;  %v706_v20 = vcombine.high %v84_v13, %v86_v15  ;;  %v707_v21 = vcombine.low %v85_v16, %v87_v17  ;;  %32 = vst.msk [vmem:[#allocation2 + $0x60] sm:$0xff] %vm19_vm0, %v875_v44  ;;  %33 = vst.msk [vmem:[#allocation2 + $0x68] sm:$0xff] %vm19_vm0, %v875_v44 }
  0x18   :  { %756 = vmatprep.subr.bf16.mxu0 %v868_v22  ;;  %844 = vmatprep.subr.bf16.mxu1 %v868_v22  ;;  %v57_v22 = vld [vmem:[%s1228_s0 + $0x80] sm:$0xf]  ;;  %34 = vst.msk [vmem:[#allocation2 + $0x70] sm:$0xff] %vm19_vm0, %v875_v44  ;;  %35 = vst.msk [vmem:[#allocation2 + $0x78] sm:$0xff] %vm19_vm0, %v875_v44 }
  0x19   :  { %v89_v28 = vmax.bf16 %v874_v14, %v57_v22  ;;  %v103_v9 = vld [vmem:[#allocation2 + $0x18] sm:$0xff]  ;;  %v101_v16 = vld [vmem:[#allocation2 + $0x8] sm:$0xff] }
  0x1a   :  { %v104_v26 = vld [vmem:[#allocation2 + $0x20] sm:$0xff] }
  0x1b   :  { %757 = vmatpush3.bf16.msra.mxu0 %v869_v24  ;;  %852 = vmatpush3.bf16.msra.mxu1 %v869_v24  ;;  %v56_v24 = vld [vmem:[%s1228_s0 + $0x78] sm:$0xff]  ;;  %v710_v35 = vcombine.low %v89_v28, %v91_v29 }
  0x1c   :  { %758 = vmatprep.subr.bf16.mxu0 %v870_v25  ;;  %845 = vmatprep.subr.bf16.mxu1 %v870_v25  ;;  %v58_v25 = vld [vmem:[%s1228_s0 + $0x84] sm:$0xff] }
  0x1d   :  { %v90_v31 = vmax.bf16 %v874_v14, %v58_v25 }
  0x1f   :  { %759 = vmatpush3.bf16.msra.mxu0 %v871_v30  ;;  %853 = vmatpush3.bf16.msra.mxu1 %v871_v30  ;;  %v88_v30 = vmax.bf16 %v874_v14, %v56_v24  ;;  %v1124_v24 = vld [vmem:[%s1229_s2] ss:$0 sm:$0xff] }
  0x20   :  { %818 = vmatprep.subr.bf16.mxu1 %v872_v33 }
  0x21   :  { %v708_v42 = vcombine.low %v88_v30, %v90_v31 }
  0x22   :  { %438 = vmatmul.mubr.bf16.vlgmr.msra.gmra.mxu0 %v693_v36  ;;  %486 = vmatmul.mubr.bf16.vlgmr.msra.gmra.mxu1 %v711_v37  ;;  %v709_v36 = vcombine.high %v88_v30, %v90_v31  ;;  %v106_v31 = vld [vmem:[#allocation2 + $0x30] sm:$0xff] }
  0x23   :  { %819 = vmatpush3.bf16.msra.mxu1 %v872_v33  ;;  %445 = vmatprep.mubr.bf16.mxu0 %v697_v38  ;;  %v95_v33 = vmax.bf16 %v874_v14, %v63_v27  ;;  %v65_v38 = vld [vmem:[%s1228_s0 + $0xb0] sm:$0xf] }
  0x24   :  { %493 = vmatprep.mubr.bf16.mxu1 %v715_v41  ;;  %820 = vmatprep.subr.bf16.mxu1 %v873_v39  ;;  %v97_v40 = vmax.bf16 %v874_v14, %v65_v38 }
  0x25   :  { %v713_v37 = vcombine.low %v93_v32, %v95_v33 }
  0x27   :  { %821 = vmatpush3.bf16.msra.mxu1 %v873_v39  ;;  %v67_v39 = vld [vmem:[%s1228_s0 + $0xbc] sm:$0xf] }
  0x28   :  { %v99_v41 = vmax.bf16 %v874_v14, %v67_v39 }
  0x2a   :  { %446 = vmatmul.mubr.bf16.gmra.mxu0 %v696_v49  ;;  %494 = vmatmul.mubr.bf16.gmra.mxu1 %v714_v50  ;;  %v716_v43 = vcombine.low %v97_v40, %v99_v41  ;;  %v105_v40 = vld [vmem:[#allocation2 + $0x28] sm:$0xff] }
  0x2b   :  { %453 = vmatprep.mubr.bf16.mxu0 %v700_v51  ;;  %822 = vmatprep.mubr.msk.bf16.mxu1 %vm19_vm0, %v695_v52 }
  0x32   :  { %454 = vmatmul.mubr.bf16.gmra.mxu0 %v699_v1  ;;  %823 = vmatmul.mubr.msk.bf16.vlgmr.msra.gmra.mxu1 %vm19_vm0, %v698_v2 }
  0x33   :  { %461 = vmatprep.mubr.bf16.mxu0 %v703_v3  ;;  %826 = vmatprep.mubr.msk.bf16.mxu1 %vm19_vm0, %v701_v4  ;;  %v100_v3 = vld [vmem:[#allocation2] sm:$0xff] }
  0x3a   :  { %462 = vmatmul.mubr.bf16.gmra.mxu0 %v702_v18  ;;  %827 = vmatmul.mubr.msk.bf16.gmra.mxu1 %vm19_vm0, %v704_v19 }
  0x3b   :  { %469 = vmatprep.mubr.bf16.mxu0 %v706_v20  ;;  %830 = vmatprep.mubr.msk.bf16.mxu1 %vm19_vm0, %v707_v21 }
  0x42   :  { %470 = vmatmul.mubr.bf16.gmra.mxu0 %v705_v34  ;;  %831 = vmatmul.mubr.msk.bf16.gmra.mxu1 %vm19_vm0, %v710_v35 }
  0x43   :  { %477 = vmatprep.mubr.bf16.mxu0 %v709_v36  ;;  %834 = vmatprep.mubr.msk.bf16.mxu1 %vm19_vm0, %v713_v37 }
  0x4a   :  { %478 = vmatmul.mubr.bf16.gmra.mxu0 %v708_v42  ;;  %835 = vmatmul.mubr.msk.bf16.gmra.mxu1 %vm19_vm0, %v716_v43 }
  0xe2   :  { %v760_v14 = vpop.f32.mrf.mxu0  ;;  %v1102_v45 = vpop.f32.mrf.mxu1 }
  0xe4   :  { %v761_v46 = vpop.f32.mrf.mxu0  ;;  %v1104_v47 = vpop.f32.mrf.mxu1 }
  0xe5   :  { %v762_v0 = vadd.f32 %v761_v46, %v760_v14 }
  0xe6   :  { %v763_v48 = vpop.f32.mrf.mxu0  ;;  %v1106_v49 = vpop.f32.mrf.mxu1 }
  0xe8   :  { %v764_v50 = vpop.f32.mrf.mxu0  ;;  %v1108_v51 = vpop.f32.mrf.mxu1 }
  0xe9   :  { %v765_v11 = vadd.f32 %v764_v50, %v763_v48  ;;  %v107_v48 = vld [vmem:[#allocation2 + $0x38] sm:$0xff] }
  0xea   :  { %v766_v52 = vpop.f32.mrf.mxu0  ;;  %v1110_v53 = vpop.f32.mrf.mxu1 }
  0xec   :  { %v767_v54 = vpop.f32.mrf.mxu0  ;;  %v1112_v55 = vpop.f32.mrf.mxu1 }
  0xed   :  { %v768_v60 = vadd.f32 %v767_v54, %v766_v52 }
  0xee   :  { %v769_v56 = vpop.f32.mrf.mxu0  ;;  %v1114_v57 = vpop.f32.mrf.mxu1 }
  0xf0   :  { %v770_v58 = vpop.f32.mrf.mxu0  ;;  %v1116_v59 = vpop.f32.mrf.mxu1 }
  0xf1   :  { %v771_v5 = vadd.f32 %v770_v58, %v769_v56 }
  0xf2   :  { %v772_v61 = vpop.f32.mrf.mxu0  ;;  %v824_v63 = vpop.f32.mrf.mxu1 }
  0xf3   :  { %v545_v1 = vadd.f32 %v824_v63, %v768_v60 }
  0xf4   :  { %v773_v2 = vpop.f32.mrf.mxu0  ;;  %v536_v4 = vpop.f32.mrf.mxu1 }
  0xf5   :  { %v601_v6 = vadd.f32 %v545_v1, %v102_v62  ;;  %v537_v7 = vadd.f32 %v762_v0, %v536_v4  ;;  %v774_v22 = vadd.f32 %v773_v2, %v772_v61  ;;  %v108_v2 = vld [vmem:[#allocation2 + $0x40] sm:$0xff] }
  0xf6   :  { %v775_v8 = vpop.f32.mrf.mxu0  ;;  %v825_v10 = vpop.f32.mrf.mxu1 }
  0xf7   :  { %617 = vst.msk [vmem:[#allocation2 + $0x10] sm:$0xff] %vm19_vm0, %v601_v6  ;;  %v599_v12 = vadd.f32 %v537_v7, %v100_v3  ;;  %v548_v13 = vadd.f32 %v825_v10, %v771_v5 }
  0xf8   :  { %v776_v15 = vpop.f32.mrf.mxu0  ;;  %v539_v17 = vpop.f32.mrf.mxu1 }
  0xf9   :  { %615 = vst.msk [vmem:[#allocation2] sm:$0xff] %vm19_vm0, %v599_v12  ;;  %v602_v18 = vadd.f32 %v548_v13, %v103_v9  ;;  %v540_v19 = vadd.f32 %v765_v11, %v539_v17  ;;  %v777_v35 = vadd.f32 %v776_v15, %v775_v8  ;;  %v804_v9 = vadd.f32 %v1112_v55, %v1110_v53  ;;  %v109_v15 = vld [vmem:[#allocation2 + $0x48] sm:$0xff]  ;;  %v114_v17 = vld [vmem:[#allocation2 + $0x70] sm:$0xff] }
  0xfa   :  { %v778_v20 = vpop.f32.mrf.mxu0  ;;  %v828_v21 = vpop.f32.mrf.mxu1  ;;  %v798_v55 = vadd.f32 %v1104_v47, %v1102_v45 }
  0xfb   :  { %618 = vst.msk [vmem:[#allocation2 + $0x18] sm:$0xff] %vm19_vm0, %v602_v18  ;;  %v600_v23 = vadd.f32 %v540_v19, %v101_v16 }
  0xfc   :  { %v779_v25 = vpop.f32.mrf.mxu0  ;;  %v552_v27 = vpop.f32.mrf.mxu1 }
  0xfd   :  { %616 = vst.msk [vmem:[#allocation2 + $0x8] sm:$0xff] %vm19_vm0, %v600_v23  ;;  %v780_v28 = vadd.f32 %v779_v25, %v778_v20  ;;  %v553_v29 = vadd.f32 %v774_v22, %v552_v27 }
  0xfe   :  { %v636_v30 = vld [vmem:[#allocation2 + $0x10] sm:$0xff]  ;;  %v781_v32 = vpop.f32.mrf.mxu0  ;;  %v829_v33 = vpop.f32.mrf.mxu1 }
  0xff   :  { %v659_v34 = vadd.f32 %v1124_v24, %v636_v30  ;;  %v561_v36 = vadd.f32 %v828_v21, %v780_v28  ;;  %v603_v37 = vadd.f32 %v553_v29, %v104_v26  ;;  %v807_v21 = vadd.f32 %v1116_v59, %v1114_v57  ;;  %v112_v30 = vld [vmem:[#allocation2 + $0x60] sm:$0xff] }
 0x100   :  { %v634_v38 = vld [vmem:[#allocation2] sm:$0xff]  ;;  %v782_v39 = vpop.f32.mrf.mxu0  ;;  %v555_v41 = vpop.f32.mrf.mxu1  ;;  %v801_v59 = vadd.f32 %v1108_v51, %v1106_v49 }
 0x101   :  { %675 = vst.msk [vmem:[%s1230_s3 + $0x10] sm:$0xff] %vm19_vm0, %v659_v34  ;;  %v657_v42 = vadd.f32 %v1124_v24, %v634_v38  ;;  %v605_v43 = vadd.f32 %v561_v36, %v106_v31  ;;  %619 = vst.msk [vmem:[#allocation2 + $0x20] sm:$0xff] %vm19_vm0, %v603_v37  ;;  %v783_v44 = vadd.f32 %v782_v39, %v781_v32  ;;  %v110_v32 = vld [vmem:[#allocation2 + $0x50] sm:$0xff]  ;;  %v113_v39 = vld [vmem:[#allocation2 + $0x68] sm:$0xff] }
 0x102   :  { %v556_v14 = vadd.f32 %v777_v35, %v555_v41  ;;  %v637_v46 = vld [vmem:[#allocation2 + $0x18] sm:$0xff]  ;;  %v784_v50 = vpop.f32.mrf.mxu0  ;;  %v832_v52 = vpop.f32.mrf.mxu1 }
 0x103   :  { %673 = vst.msk [vmem:[%s1230_s3] sm:$0xff] %vm19_vm0, %v657_v42  ;;  %v660_v54 = vadd.f32 %v1124_v24, %v637_v46  ;;  %621 = vst.msk [vmem:[#allocation2 + $0x30] sm:$0xff] %vm19_vm0, %v605_v43  ;;  %v564_v56 = vadd.f32 %v829_v33, %v783_v44  ;;  %v115_v33 = vld [vmem:[#allocation2 + $0x78] sm:$0xff] }
 0x104   :  { %v604_v58 = vadd.f32 %v556_v14, %v105_v40  ;;  %v635_v60 = vld [vmem:[#allocation2 + $0x8] sm:$0xff]  ;;  %v785_v61 = vpop.f32.mrf.mxu0  ;;  %v568_v62 = vpop.f32.mrf.mxu1  ;;  %v111_v44 = vld [vmem:[#allocation2 + $0x58] sm:$0xff] }
 0x105   :  { %676 = vst.msk [vmem:[%s1230_s3 + $0x18] sm:$0xff] %vm19_vm0, %v660_v54  ;;  %v658_v63 = vadd.f32 %v1124_v24, %v635_v60  ;;  %v606_v0 = vadd.f32 %v564_v56, %v107_v48  ;;  %v786_v1 = vadd.f32 %v785_v61, %v784_v50 }
 0x106   :  { %620 = vst.msk [vmem:[#allocation2 + $0x28] sm:$0xff] %vm19_vm0, %v604_v58  ;;  %v787_v3 = vpop.f32.mrf.mxu0  ;;  %v833_v4 = vpop.f32.mrf.mxu1 }
 0x107   :  { %674 = vst.msk [vmem:[%s1230_s3 + $0x8] sm:$0xff] %vm19_vm0, %v658_v63  ;;  %622 = vst.msk [vmem:[#allocation2 + $0x38] sm:$0xff] %vm19_vm0, %v606_v0  ;;  %v569_v5 = vadd.f32 %v786_v1, %v568_v62 }
 0x108   :  { %v638_v6 = vld [vmem:[#allocation2 + $0x20] sm:$0xff]  ;;  %v788_v7 = vpop.f32.mrf.mxu0  ;;  %v571_v8 = vpop.f32.mrf.mxu1 }
 0x109   :  { %v661_v10 = vadd.f32 %v1124_v24, %v638_v6  ;;  %v607_v11 = vadd.f32 %v569_v5, %v108_v2  ;;  %v789_v12 = vadd.f32 %v788_v7, %v787_v3 }
 0x10a   :  { %v640_v13 = vld [vmem:[#allocation2 + $0x30] sm:$0xff]  ;;  %v790_v16 = vpop.f32.mrf.mxu0  ;;  %v836_v18 = vpop.f32.mrf.mxu1 }
 0x10b   :  { %v663_v19 = vadd.f32 %v1124_v24, %v640_v13  ;;  %677 = vst.msk [vmem:[%s1230_s3 + $0x20] sm:$0xff] %vm19_vm0, %v661_v10  ;;  %623 = vst.msk [vmem:[#allocation2 + $0x40] sm:$0xff] %vm19_vm0, %v607_v11  ;;  %v572_v20 = vadd.f32 %v789_v12, %v571_v8  ;;  %v593_v53 = vadd.f32 %v836_v18, %v804_v9 }
 0x10c   :  { %v791_v23 = vpop.f32.mrf.mxu0  ;;  %v584_v25 = vpop.f32.mrf.mxu1 }
 0x10d   :  { %v639_v22 = vld [vmem:[#allocation2 + $0x28] sm:$0xff]  ;;  %679 = vst.msk [vmem:[%s1230_s3 + $0x30] sm:$0xff] %vm19_vm0, %v663_v19  ;;  %v608_v27 = vadd.f32 %v572_v20, %v109_v15  ;;  %v613_v28 = vadd.f32 %v593_v53, %v114_v17  ;;  %v792_v29 = vadd.f32 %v791_v23, %v790_v16  ;;  %v585_v45 = vadd.f32 %v798_v55, %v584_v25 }
 0x10e   :  { %v662_v26 = vadd.f32 %v1124_v24, %v639_v22  ;;  %v641_v31 = vld [vmem:[#allocation2 + $0x38] sm:$0xff]  ;;  %v793_v47 = vpop.f32.mrf.mxu0  ;;  %v837_v57 = vpop.f32.mrf.mxu1 }
 0x10f   :  { %v664_v34 = vadd.f32 %v1124_v24, %v641_v31  ;;  %624 = vst.msk [vmem:[#allocation2 + $0x48] sm:$0xff] %vm19_vm0, %v608_v27  ;;  %629 = vst.msk [vmem:[#allocation2 + $0x70] sm:$0xff] %vm19_vm0, %v613_v28  ;;  %v577_v35 = vadd.f32 %v832_v52, %v792_v29  ;;  %v596_v36 = vadd.f32 %v837_v57, %v807_v21 }
 0x110   :  { %678 = vst.msk [vmem:[%s1230_s3 + $0x28] sm:$0xff] %vm19_vm0, %v662_v26  ;;  %v611_v37 = vadd.f32 %v585_v45, %v112_v30  ;;  %v794_v38 = vpop.f32.mrf.mxu0  ;;  %v587_v40 = vpop.f32.mrf.mxu1 }
 0x111   :  { %680 = vst.msk [vmem:[%s1230_s3 + $0x38] sm:$0xff] %vm19_vm0, %v664_v34  ;;  %v609_v49 = vadd.f32 %v577_v35, %v110_v32  ;;  %v614_v51 = vadd.f32 %v596_v36, %v115_v33  ;;  %v795_v41 = vadd.f32 %v794_v38, %v793_v47  ;;  %v588_v42 = vadd.f32 %v801_v59, %v587_v40 }
 0x112   :  { %v642_v43 = vld [vmem:[#allocation2 + $0x40] sm:$0xff]  ;;  %627 = vst.msk [vmem:[#allocation2 + $0x60] sm:$0xff] %vm19_vm0, %v611_v37 }
 0x113   :  { %v665_v14 = vadd.f32 %v1124_v24, %v642_v43  ;;  %625 = vst.msk [vmem:[#allocation2 + $0x50] sm:$0xff] %vm19_vm0, %v609_v49  ;;  %630 = vst.msk [vmem:[#allocation2 + $0x78] sm:$0xff] %vm19_vm0, %v614_v51  ;;  %v580_v46 = vadd.f32 %v833_v4, %v795_v41  ;;  %v612_v48 = vadd.f32 %v588_v42, %v113_v39 }
 0x115   :  { %681 = vst.msk [vmem:[%s1230_s3 + $0x40] sm:$0xff] %vm19_vm0, %v665_v14  ;;  %v610_v50 = vadd.f32 %v580_v46, %v111_v44  ;;  %628 = vst.msk [vmem:[#allocation2 + $0x68] sm:$0xff] %vm19_vm0, %v612_v48 }
 0x116   :  { %v643_v52 = vld [vmem:[#allocation2 + $0x48] sm:$0xff]  ;;  %v648_v54 = vld [vmem:[#allocation2 + $0x70] sm:$0xff] }
 0x117   :  { %v666_v56 = vadd.f32 %v1124_v24, %v643_v52  ;;  %v671_v58 = vadd.f32 %v1124_v24, %v648_v54  ;;  %626 = vst.msk [vmem:[#allocation2 + $0x58] sm:$0xff] %vm19_vm0, %v610_v50 }
 0x119   :  { %682 = vst.msk [vmem:[%s1230_s3 + $0x48] sm:$0xff] %vm19_vm0, %v666_v56  ;;  %687 = vst.msk [vmem:[%s1230_s3 + $0x70] sm:$0xff] %vm19_vm0, %v671_v58  ;;  %v646_v60 = vld [vmem:[#allocation2 + $0x60] sm:$0xff] }
 0x11a   :  { %v644_v61 = vld [vmem:[#allocation2 + $0x50] sm:$0xff]  ;;  %v669_v62 = vadd.f32 %v1124_v24, %v646_v60  ;;  %v649_v63 = vld [vmem:[#allocation2 + $0x78] sm:$0xff] }
 0x11b   :  { %v667_v0 = vadd.f32 %v1124_v24, %v644_v61  ;;  %v672_v1 = vadd.f32 %v1124_v24, %v649_v63 }
 0x11c   :  { %685 = vst.msk [vmem:[%s1230_s3 + $0x60] sm:$0xff] %vm19_vm0, %v669_v62  ;;  %v647_v2 = vld [vmem:[#allocation2 + $0x68] sm:$0xff] }
 0x11d   :  { %683 = vst.msk [vmem:[%s1230_s3 + $0x50] sm:$0xff] %vm19_vm0, %v667_v0  ;;  %688 = vst.msk [vmem:[%s1230_s3 + $0x78] sm:$0xff] %vm19_vm0, %v672_v1  ;;  %v670_v3 = vadd.f32 %v1124_v24, %v647_v2 }
 0x11e   :  { %v645_v4 = vld [vmem:[#allocation2 + $0x58] sm:$0xff] }
 0x11f   :  { %v668_v5 = vadd.f32 %v1124_v24, %v645_v4  ;;  %686 = vst.msk [vmem:[%s1230_s3 + $0x68] sm:$0xff] %vm19_vm0, %v670_v3 }
 0x121   :  { %684 = vst.msk [vmem:[%s1230_s3 + $0x58] sm:$0xff] %vm19_vm0, %v668_v5 }

// kernel: generator_forward.47
= control target key start
LH: loop header
LB: loop body
LE: loop exit
PB: predicated region body
PF: predicated region fallthrough
CT: control target
= control target key end

     0   :  { %vm220_vm0 = vcmask 64512   ;;  %s897_s0 = inlined_call_operand.vmem [shape: f32[512,8], index: 0, kind: input, shape index: {}]   ;;  %s898_s1 = inlined_call_operand.vmem [shape: f32[1,8], index: 1, kind: input, shape index: {}]   ;;  %s899_s2 = inlined_call_operand.vmem [shape: f32[1,8], index: 2, kind: input, shape index: {}]   ;;  %s900_s3 = inlined_call_operand.vmem [shape: f32[512,8], index: 3, kind: output, shape index: {}]  }
   0x1   :  { %v14_v0 = vld [vmem:[%s897_s0] sm:$0xff]  ;;  %v15_v4 = vld [vmem:[%s897_s0 + $0x8] sm:$0xff]  ;;  %v16_v5 = vld [vmem:[%s897_s0 + $0x10] sm:$0xff] }
   0x2   :  { %v317_v1 = vld [vmem:[%s898_s1] ss:$0 sm:$0xff]  ;;  %v17_v6 = vld [vmem:[%s897_s0 + $0x18] sm:$0xff]  ;;  %v19_v11 = vld [vmem:[%s897_s0 + $0x28] sm:$0xff] }
   0x3   :  { %v322_v2 = vld [vmem:[%s899_s2] ss:$0 sm:$0xff]  ;;  %v85_v3 = vmul.f32 %v317_v1, %v14_v0  ;;  %v86_v7 = vmul.f32 %v317_v1, %v15_v4  ;;  %v87_v8 = vmul.f32 %v317_v1, %v16_v5  ;;  %v88_v9 = vmul.f32 %v317_v1, %v17_v6  ;;  %v20_v12 = vld [vmem:[%s897_s0 + $0x30] sm:$0xff]  ;;  %v21_v17 = vld [vmem:[%s897_s0 + $0x38] sm:$0xff] }
   0x4   :  { %v18_v10 = vld [vmem:[%s897_s0 + $0x20] sm:$0xff]  ;;  %v90_v15 = vmul.f32 %v317_v1, %v19_v11  ;;  %v91_v16 = vmul.f32 %v317_v1, %v20_v12  ;;  %v23_v19 = vld [vmem:[%s897_s0 + $0x48] sm:$0xff]  ;;  %v92_v23 = vmul.f32 %v317_v1, %v21_v17  ;;  %v24_v24 = vld [vmem:[%s897_s0 + $0x50] sm:$0xff] }
   0x5   :  { %v156_v13 = vadd.f32 %v322_v2, %v85_v3  ;;  %v89_v14 = vmul.f32 %v317_v1, %v18_v10  ;;  %v22_v18 = vld [vmem:[%s897_s0 + $0x40] sm:$0xff]  ;;  %v157_v20 = vadd.f32 %v322_v2, %v86_v7  ;;  %v158_v21 = vadd.f32 %v322_v2, %v87_v8  ;;  %v25_v25 = vld [vmem:[%s897_s0 + $0x58] sm:$0xff]  ;;  %v27_v31 = vld [vmem:[%s897_s0 + $0x68] sm:$0xff] }
   0x6   :  { %v159_v22 = vadd.f32 %v322_v2, %v88_v9  ;;  %v26_v26 = vld [vmem:[%s897_s0 + $0x60] sm:$0xff]  ;;  %v161_v28 = vadd.f32 %v322_v2, %v90_v15  ;;  %v162_v29 = vadd.f32 %v322_v2, %v91_v16  ;;  %v93_v30 = vmul.f32 %v317_v1, %v22_v18  ;;  %v28_v32 = vld [vmem:[%s897_s0 + $0x70] sm:$0xff]  ;;  %v29_v33 = vld [vmem:[%s897_s0 + $0x78] sm:$0xff] }
   0x7   :  { %221 = vst.msk [vmem:[%s900_s3] sm:$0xff] %vm220_vm0, %v156_v13  ;;  %v160_v27 = vadd.f32 %v322_v2, %v89_v14  ;;  %222 = vst.msk [vmem:[%s900_s3 + $0x8] sm:$0xff] %vm220_vm0, %v157_v20  ;;  %v163_v34 = vadd.f32 %v322_v2, %v92_v23  ;;  %v94_v35 = vmul.f32 %v317_v1, %v23_v19  ;;  %v30_v38 = vld [vmem:[%s897_s0 + $0x80] sm:$0xff]  ;;  %v31_v43 = vld [vmem:[%s897_s0 + $0x88] sm:$0xff] }
   0x8   :  { %223 = vst.msk [vmem:[%s900_s3 + $0x10] sm:$0xff] %vm220_vm0, %v158_v21  ;;  %224 = vst.msk [vmem:[%s900_s3 + $0x18] sm:$0xff] %vm220_vm0, %v159_v22  ;;  %v95_v36 = vmul.f32 %v317_v1, %v24_v24  ;;  %v96_v37 = vmul.f32 %v317_v1, %v25_v25  ;;  %v164_v39 = vadd.f32 %v322_v2, %v93_v30  ;;  %v32_v44 = vld [vmem:[%s897_s0 + $0x90] sm:$0xff]  ;;  %v33_v45 = vld [vmem:[%s897_s0 + $0x98] sm:$0xff] }
   0x9   :  { %225 = vst.msk [vmem:[%s900_s3 + $0x20] sm:$0xff] %vm220_vm0, %v160_v27  ;;  %226 = vst.msk [vmem:[%s900_s3 + $0x28] sm:$0xff] %vm220_vm0, %v161_v28  ;;  %v97_v40 = vmul.f32 %v317_v1, %v26_v26  ;;  %v98_v41 = vmul.f32 %v317_v1, %v27_v31  ;;  %v99_v42 = vmul.f32 %v317_v1, %v28_v32  ;;  %v34_v50 = vld [vmem:[%s897_s0 + $0xa0] sm:$0xff]  ;;  %v35_v51 = vld [vmem:[%s897_s0 + $0xa8] sm:$0xff] }
   0xa   :  { %227 = vst.msk [vmem:[%s900_s3 + $0x30] sm:$0xff] %vm220_vm0, %v162_v29  ;;  %228 = vst.msk [vmem:[%s900_s3 + $0x38] sm:$0xff] %vm220_vm0, %v163_v34  ;;  %v165_v46 = vadd.f32 %v322_v2, %v94_v35  ;;  %v166_v47 = vadd.f32 %v322_v2, %v95_v36  ;;  %v167_v48 = vadd.f32 %v322_v2, %v96_v37  ;;  %v36_v52 = vld [vmem:[%s897_s0 + $0xb0] sm:$0xff]  ;;  %v37_v57 = vld [vmem:[%s897_s0 + $0xb8] sm:$0xff] }
   0xb   :  { %v100_v49 = vmul.f32 %v317_v1, %v29_v33  ;;  %229 = vst.msk [vmem:[%s900_s3 + $0x40] sm:$0xff] %vm220_vm0, %v164_v39  ;;  %v168_v53 = vadd.f32 %v322_v2, %v97_v40  ;;  %v169_v54 = vadd.f32 %v322_v2, %v98_v41  ;;  %v170_v55 = vadd.f32 %v322_v2, %v99_v42  ;;  %v38_v62 = vld [vmem:[%s897_s0 + $0xc0] sm:$0xff]  ;;  %v39_v5 = vld [vmem:[%s897_s0 + $0xc8] sm:$0xff]  ;;  %v40_v6 = vld [vmem:[%s897_s0 + $0xd0] sm:$0xff] }
   0xc   :  { %v101_v56 = vmul.f32 %v317_v1, %v30_v38  ;;  %230 = vst.msk [vmem:[%s900_s3 + $0x48] sm:$0xff] %vm220_vm0, %v165_v46  ;;  %231 = vst.msk [vmem:[%s900_s3 + $0x50] sm:$0xff] %vm220_vm0, %v166_v47  ;;  %v102_v59 = vmul.f32 %v317_v1, %v31_v43  ;;  %v103_v60 = vmul.f32 %v317_v1, %v32_v44  ;;  %v41_v7 = vld [vmem:[%s897_s0 + $0xd8] sm:$0xff]  ;;  %v42_v12 = vld [vmem:[%s897_s0 + $0xe0] sm:$0xff] }
   0xd   :  { %232 = vst.msk [vmem:[%s900_s3 + $0x58] sm:$0xff] %vm220_vm0, %v167_v48  ;;  %v171_v58 = vadd.f32 %v322_v2, %v100_v49  ;;  %v104_v61 = vmul.f32 %v317_v1, %v33_v45  ;;  %233 = vst.msk [vmem:[%s900_s3 + $0x60] sm:$0xff] %vm220_vm0, %v168_v53  ;;  %v105_v0 = vmul.f32 %v317_v1, %v34_v50  ;;  %v43_v13 = vld [vmem:[%s897_s0 + $0xe8] sm:$0xff]  ;;  %v44_v14 = vld [vmem:[%s897_s0 + $0xf0] sm:$0xff] }
   0xe   :  { %234 = vst.msk [vmem:[%s900_s3 + $0x68] sm:$0xff] %vm220_vm0, %v169_v54  ;;  %235 = vst.msk [vmem:[%s900_s3 + $0x70] sm:$0xff] %vm220_vm0, %v170_v55  ;;  %v172_v63 = vadd.f32 %v322_v2, %v101_v56  ;;  %v106_v3 = vmul.f32 %v317_v1, %v35_v51  ;;  %v107_v4 = vmul.f32 %v317_v1, %v36_v52  ;;  %v45_v19 = vld [vmem:[%s897_s0 + $0xf8] sm:$0xff]  ;;  %v46_v24 = vld [vmem:[%s897_s0 + $0x100] sm:$0xff] }
   0xf   :  { %236 = vst.msk [vmem:[%s900_s3 + $0x78] sm:$0xff] %vm220_vm0, %v171_v58  ;;  %v173_v8 = vadd.f32 %v322_v2, %v102_v59  ;;  %v174_v9 = vadd.f32 %v322_v2, %v103_v60  ;;  %v175_v10 = vadd.f32 %v322_v2, %v104_v61  ;;  %v108_v11 = vmul.f32 %v317_v1, %v37_v57  ;;  %v47_v29 = vld [vmem:[%s897_s0 + $0x108] sm:$0xff]  ;;  %v48_v30 = vld [vmem:[%s897_s0 + $0x110] sm:$0xff]  ;;  %v49_v31 = vld [vmem:[%s897_s0 + $0x118] sm:$0xff] }
  0x10   :  { %237 = vst.msk [vmem:[%s900_s3 + $0x80] sm:$0xff] %vm220_vm0, %v172_v63  ;;  %v176_v15 = vadd.f32 %v322_v2, %v105_v0  ;;  %v177_v16 = vadd.f32 %v322_v2, %v106_v3  ;;  %v178_v17 = vadd.f32 %v322_v2, %v107_v4  ;;  %v109_v18 = vmul.f32 %v317_v1, %v38_v62  ;;  %v50_v36 = vld [vmem:[%s897_s0 + $0x120] sm:$0xff]  ;;  %v51_v37 = vld [vmem:[%s897_s0 + $0x128] sm:$0xff]  ;;  %v52_v38 = vld [vmem:[%s897_s0 + $0x130] sm:$0xff] }
  0x11   :  { %238 = vst.msk [vmem:[%s900_s3 + $0x88] sm:$0xff] %vm220_vm0, %v173_v8  ;;  %239 = vst.msk [vmem:[%s900_s3 + $0x90] sm:$0xff] %vm220_vm0, %v174_v9  ;;  %v179_v20 = vadd.f32 %v322_v2, %v108_v11  ;;  %v110_v21 = vmul.f32 %v317_v1, %v39_v5  ;;  %v111_v22 = vmul.f32 %v317_v1, %v40_v6  ;;  %v53_v43 = vld [vmem:[%s897_s0 + $0x138] sm:$0xff]  ;;  %v54_v48 = vld [vmem:[%s897_s0 + $0x140] sm:$0xff] }
  0x12   :  { %240 = vst.msk [vmem:[%s900_s3 + $0x98] sm:$0xff] %vm220_vm0, %v175_v10  ;;  %v112_v23 = vmul.f32 %v317_v1, %v41_v7  ;;  %241 = vst.msk [vmem:[%s900_s3 + $0xa0] sm:$0xff] %vm220_vm0, %v176_v15  ;;  %v180_v25 = vadd.f32 %v322_v2, %v109_v18  ;;  %v113_v26 = vmul.f32 %v317_v1, %v42_v12  ;;  %v55_v53 = vld [vmem:[%s897_s0 + $0x148] sm:$0xff]  ;;  %v56_v54 = vld [vmem:[%s897_s0 + $0x150] sm:$0xff] }
  0x13   :  { %242 = vst.msk [vmem:[%s900_s3 + $0xa8] sm:$0xff] %vm220_vm0, %v177_v16  ;;  %243 = vst.msk [vmem:[%s900_s3 + $0xb0] sm:$0xff] %vm220_vm0, %v178_v17  ;;  %v114_v27 = vmul.f32 %v317_v1, %v43_v13  ;;  %v115_v28 = vmul.f32 %v317_v1, %v44_v14  ;;  %v181_v32 = vadd.f32 %v322_v2, %v110_v21  ;;  %v57_v55 = vld [vmem:[%s897_s0 + $0x158] sm:$0xff]  ;;  %v58_v60 = vld [vmem:[%s897_s0 + $0x160] sm:$0xff] }
  0x14   :  { %244 = vst.msk [vmem:[%s900_s3 + $0xb8] sm:$0xff] %vm220_vm0, %v179_v20  ;;  %v182_v33 = vadd.f32 %v322_v2, %v111_v22  ;;  %v183_v34 = vadd.f32 %v322_v2, %v112_v23  ;;  %v116_v35 = vmul.f32 %v317_v1, %v45_v19  ;;  %245 = vst.msk [vmem:[%s900_s3 + $0xc0] sm:$0xff] %vm220_vm0, %v180_v25  ;;  %v59_v61 = vld [vmem:[%s897_s0 + $0x168] sm:$0xff]  ;;  %v60_v62 = vld [vmem:[%s897_s0 + $0x170] sm:$0xff] }
  0x15   :  { %v184_v39 = vadd.f32 %v322_v2, %v113_v26  ;;  %v185_v40 = vadd.f32 %v322_v2, %v114_v27  ;;  %v186_v41 = vadd.f32 %v322_v2, %v115_v28  ;;  %v117_v42 = vmul.f32 %v317_v1, %v46_v24  ;;  %246 = vst.msk [vmem:[%s900_s3 + $0xc8] sm:$0xff] %vm220_vm0, %v181_v32  ;;  %v61_v5 = vld [vmem:[%s897_s0 + $0x178] sm:$0xff]  ;;  %v62_v10 = vld [vmem:[%s897_s0 + $0x180] sm:$0xff]  ;;  %v63_v15 = vld [vmem:[%s897_s0 + $0x188] sm:$0xff] }
  0x16   :  { %247 = vst.msk [vmem:[%s900_s3 + $0xd0] sm:$0xff] %vm220_vm0, %v182_v33  ;;  %248 = vst.msk [vmem:[%s900_s3 + $0xd8] sm:$0xff] %vm220_vm0, %v183_v34  ;;  %v187_v44 = vadd.f32 %v322_v2, %v116_v35  ;;  %v118_v45 = vmul.f32 %v317_v1, %v47_v29  ;;  %v119_v46 = vmul.f32 %v317_v1, %v48_v30  ;;  %v64_v16 = vld [vmem:[%s897_s0 + $0x190] sm:$0xff]  ;;  %v65_v17 = vld [vmem:[%s897_s0 + $0x198] sm:$0xff] }
  0x17   :  { %v120_v47 = vmul.f32 %v317_v1, %v49_v31  ;;  %249 = vst.msk [vmem:[%s900_s3 + $0xe0] sm:$0xff] %vm220_vm0, %v184_v39  ;;  %250 = vst.msk [vmem:[%s900_s3 + $0xe8] sm:$0xff] %vm220_vm0, %v185_v40  ;;  %v188_v49 = vadd.f32 %v322_v2, %v117_v42  ;;  %v121_v50 = vmul.f32 %v317_v1, %v50_v36  ;;  %v66_v22 = vld [vmem:[%s897_s0 + $0x1a0] sm:$0xff]  ;;  %v67_v23 = vld [vmem:[%s897_s0 + $0x1a8] sm:$0xff] }
  0x18   :  { %251 = vst.msk [vmem:[%s900_s3 + $0xf0] sm:$0xff] %vm220_vm0, %v186_v41  ;;  %v122_v51 = vmul.f32 %v317_v1, %v51_v37  ;;  %v123_v52 = vmul.f32 %v317_v1, %v52_v38  ;;  %252 = vst.msk [vmem:[%s900_s3 + $0xf8] sm:$0xff] %vm220_vm0, %v187_v44  ;;  %v189_v56 = vadd.f32 %v322_v2, %v118_v45  ;;  %v68_v24 = vld [vmem:[%s897_s0 + $0x1b0] sm:$0xff]  ;;  %v69_v29 = vld [vmem:[%s897_s0 + $0x1b8] sm:$0xff] }
  0x19   :  { %v190_v57 = vadd.f32 %v322_v2, %v119_v46  ;;  %v191_v58 = vadd.f32 %v322_v2, %v120_v47  ;;  %v124_v59 = vmul.f32 %v317_v1, %v53_v43  ;;  %253 = vst.msk [vmem:[%s900_s3 + $0x100] sm:$0xff] %vm220_vm0, %v188_v49  ;;  %v192_v63 = vadd.f32 %v322_v2, %v121_v50  ;;  %v70_v34 = vld [vmem:[%s897_s0 + $0x1c0] sm:$0xff]  ;;  %v71_v39 = vld [vmem:[%s897_s0 + $0x1c8] sm:$0xff]  ;;  %v72_v40 = vld [vmem:[%s897_s0 + $0x1d0] sm:$0xff] }
  0x1a   :  { %v193_v0 = vadd.f32 %v322_v2, %v122_v51  ;;  %v194_v3 = vadd.f32 %v322_v2, %v123_v52  ;;  %v125_v4 = vmul.f32 %v317_v1, %v54_v48  ;;  %254 = vst.msk [vmem:[%s900_s3 + $0x108] sm:$0xff] %vm220_vm0, %v189_v56  ;;  %v126_v7 = vmul.f32 %v317_v1, %v55_v53  ;;  %v73_v41 = vld [vmem:[%s897_s0 + $0x1d8] sm:$0xff]  ;;  %v74_v46 = vld [vmem:[%s897_s0 + $0x1e0] sm:$0xff]  ;;  %v75_v47 = vld [vmem:[%s897_s0 + $0x1e8] sm:$0xff] }
  0x1b   :  { %255 = vst.msk [vmem:[%s900_s3 + $0x110] sm:$0xff] %vm220_vm0, %v190_v57  ;;  %256 = vst.msk [vmem:[%s900_s3 + $0x118] sm:$0xff] %vm220_vm0, %v191_v58  ;;  %v195_v6 = vadd.f32 %v322_v2, %v124_v59  ;;  %v127_v8 = vmul.f32 %v317_v1, %v56_v54  ;;  %v128_v9 = vmul.f32 %v317_v1, %v57_v55  ;;  %v76_v48 = vld [vmem:[%s897_s0 + $0x1f0] sm:$0xff]  ;;  %v77_v53 = vld [vmem:[%s897_s0 + $0x1f8] sm:$0xff] }
  0x1c   :  { %257 = vst.msk [vmem:[%s900_s3 + $0x120] sm:$0xff] %vm220_vm0, %v192_v63  ;;  %258 = vst.msk [vmem:[%s900_s3 + $0x128] sm:$0xff] %vm220_vm0, %v193_v0  ;;  %v196_v11 = vadd.f32 %v322_v2, %v125_v4  ;;  %v129_v12 = vmul.f32 %v317_v1, %v58_v60  ;;  %v130_v13 = vmul.f32 %v317_v1, %v59_v61 }
  0x1d   :  { %259 = vst.msk [vmem:[%s900_s3 + $0x130] sm:$0xff] %vm220_vm0, %v194_v3  ;;  %v131_v14 = vmul.f32 %v317_v1, %v60_v62  ;;  %260 = vst.msk [vmem:[%s900_s3 + $0x138] sm:$0xff] %vm220_vm0, %v195_v6  ;;  %v197_v18 = vadd.f32 %v322_v2, %v126_v7  ;;  %v198_v19 = vadd.f32 %v322_v2, %v127_v8 }
  0x1e   :  { %v199_v20 = vadd.f32 %v322_v2, %v128_v9  ;;  %v132_v21 = vmul.f32 %v317_v1, %v61_v5  ;;  %261 = vst.msk [vmem:[%s900_s3 + $0x140] sm:$0xff] %vm220_vm0, %v196_v11  ;;  %v200_v25 = vadd.f32 %v322_v2, %v129_v12  ;;  %v201_v26 = vadd.f32 %v322_v2, %v130_v13 }
  0x1f   :  { %v202_v27 = vadd.f32 %v322_v2, %v131_v14  ;;  %v133_v28 = vmul.f32 %v317_v1, %v62_v10  ;;  %262 = vst.msk [vmem:[%s900_s3 + $0x148] sm:$0xff] %vm220_vm0, %v197_v18  ;;  %263 = vst.msk [vmem:[%s900_s3 + $0x150] sm:$0xff] %vm220_vm0, %v198_v19  ;;  %v134_v31 = vmul.f32 %v317_v1, %v63_v15 }
  0x20   :  { %264 = vst.msk [vmem:[%s900_s3 + $0x158] sm:$0xff] %vm220_vm0, %v199_v20  ;;  %v203_v30 = vadd.f32 %v322_v2, %v132_v21  ;;  %v135_v32 = vmul.f32 %v317_v1, %v64_v16  ;;  %v136_v33 = vmul.f32 %v317_v1, %v65_v17  ;;  %265 = vst.msk [vmem:[%s900_s3 + $0x160] sm:$0xff] %vm220_vm0, %v200_v25 }
  0x21   :  { %266 = vst.msk [vmem:[%s900_s3 + $0x168] sm:$0xff] %vm220_vm0, %v201_v26  ;;  %267 = vst.msk [vmem:[%s900_s3 + $0x170] sm:$0xff] %vm220_vm0, %v202_v27  ;;  %v204_v35 = vadd.f32 %v322_v2, %v133_v28  ;;  %v137_v36 = vmul.f32 %v317_v1, %v66_v22  ;;  %v138_v37 = vmul.f32 %v317_v1, %v67_v23 }
  0x22   :  { %v139_v38 = vmul.f32 %v317_v1, %v68_v24  ;;  %268 = vst.msk [vmem:[%s900_s3 + $0x178] sm:$0xff] %vm220_vm0, %v203_v30  ;;  %v205_v42 = vadd.f32 %v322_v2, %v134_v31  ;;  %v206_v43 = vadd.f32 %v322_v2, %v135_v32  ;;  %v207_v44 = vadd.f32 %v322_v2, %v136_v33 }
  0x23   :  { %v140_v45 = vmul.f32 %v317_v1, %v69_v29  ;;  %269 = vst.msk [vmem:[%s900_s3 + $0x180] sm:$0xff] %vm220_vm0, %v204_v35  ;;  %v208_v49 = vadd.f32 %v322_v2, %v137_v36  ;;  %v209_v50 = vadd.f32 %v322_v2, %v138_v37  ;;  %v141_v52 = vmul.f32 %v317_v1, %v70_v34 }
  0x24   :  { %v210_v51 = vadd.f32 %v322_v2, %v139_v38  ;;  %270 = vst.msk [vmem:[%s900_s3 + $0x188] sm:$0xff] %vm220_vm0, %v205_v42  ;;  %271 = vst.msk [vmem:[%s900_s3 + $0x190] sm:$0xff] %vm220_vm0, %v206_v43  ;;  %v142_v55 = vmul.f32 %v317_v1, %v71_v39  ;;  %v143_v56 = vmul.f32 %v317_v1, %v72_v40 }
  0x25   :  { %272 = vst.msk [vmem:[%s900_s3 + $0x198] sm:$0xff] %vm220_vm0, %v207_v44  ;;  %v211_v54 = vadd.f32 %v322_v2, %v140_v45  ;;  %v144_v57 = vmul.f32 %v317_v1, %v73_v41  ;;  %273 = vst.msk [vmem:[%s900_s3 + $0x1a0] sm:$0xff] %vm220_vm0, %v208_v49  ;;  %v212_v58 = vadd.f32 %v322_v2, %v141_v52 }
  0x26   :  { %274 = vst.msk [vmem:[%s900_s3 + $0x1a8] sm:$0xff] %vm220_vm0, %v209_v50  ;;  %275 = vst.msk [vmem:[%s900_s3 + $0x1b0] sm:$0xff] %vm220_vm0, %v210_v51  ;;  %v145_v59 = vmul.f32 %v317_v1, %v74_v46  ;;  %v146_v60 = vmul.f32 %v317_v1, %v75_v47  ;;  %v147_v61 = vmul.f32 %v317_v1, %v76_v48 }
  0x27   :  { %276 = vst.msk [vmem:[%s900_s3 + $0x1b8] sm:$0xff] %vm220_vm0, %v211_v54  ;;  %v213_v62 = vadd.f32 %v322_v2, %v142_v55  ;;  %v214_v63 = vadd.f32 %v322_v2, %v143_v56  ;;  %v215_v0 = vadd.f32 %v322_v2, %v144_v57  ;;  %v148_v3 = vmul.f32 %v317_v1, %v77_v53 }
  0x28   :  { %277 = vst.msk [vmem:[%s900_s3 + $0x1c0] sm:$0xff] %vm220_vm0, %v212_v58  ;;  %v216_v4 = vadd.f32 %v322_v2, %v145_v59  ;;  %v217_v5 = vadd.f32 %v322_v2, %v146_v60  ;;  %v218_v6 = vadd.f32 %v322_v2, %v147_v61 }
  0x29   :  { %278 = vst.msk [vmem:[%s900_s3 + $0x1c8] sm:$0xff] %vm220_vm0, %v213_v62  ;;  %279 = vst.msk [vmem:[%s900_s3 + $0x1d0] sm:$0xff] %vm220_vm0, %v214_v63  ;;  %v219_v1 = vadd.f32 %v322_v2, %v148_v3 }
  0x2a   :  { %280 = vst.msk [vmem:[%s900_s3 + $0x1d8] sm:$0xff] %vm220_vm0, %v215_v0  ;;  %281 = vst.msk [vmem:[%s900_s3 + $0x1e0] sm:$0xff] %vm220_vm0, %v216_v4 }
  0x2b   :  { %282 = vst.msk [vmem:[%s900_s3 + $0x1e8] sm:$0xff] %vm220_vm0, %v217_v5  ;;  %283 = vst.msk [vmem:[%s900_s3 + $0x1f0] sm:$0xff] %vm220_vm0, %v218_v6 }
  0x2c   :  { %284 = vst.msk [vmem:[%s900_s3 + $0x1f8] sm:$0xff] %vm220_vm0, %v219_v1 }

// kernel: generator_forward.46
= control target key start
LH: loop header
LB: loop body
LE: loop exit
PB: predicated region body
PF: predicated region fallthrough
CT: control target
= control target key end

     0   :  { %vm14_vm0 = vcmask 57344   ;;  %vm469_vm1 = vcmask 64512   ;;  %v815_v0 = vmov 0.0   ;;  %s1705_s0 = inlined_call_operand.vmem [shape: f32[512,8], index: 0, kind: input, shape index: {}]   ;;  %s1706_s1 = inlined_call_operand.vmem [shape: f32[1,8], index: 1, kind: output, shape index: {0}]   ;;  %s1707_s2 = inlined_call_operand.vmem [shape: f32[1,8], index: 2, kind: output, shape index: {1}]  }
   0x1   :  { %15 = vst.msk [vmem:[%s1706_s1] sm:$0x1] %vm14_vm0, %v815_v0  ;;  %16 = vst.msk [vmem:[%s1707_s2] sm:$0x1] %vm14_vm0, %v815_v0  ;;  %v842_v1 = vld [vmem:[%s1705_s0] sm:$0xff]  ;;  %v847_v2 = vld [vmem:[%s1705_s0 + $0x8] sm:$0xff] }
   0x2   :  { %v852_v3 = vld [vmem:[%s1705_s0 + $0x10] sm:$0xff]  ;;  %v470_v4 = vsel %vm469_vm1, %v842_v1, 0.0  ;;  %v471_v5 = vsel %vm469_vm1, %v847_v2, 0.0  ;;  %v863_v7 = vld [vmem:[%s1705_s0 + $0x18] sm:$0xff]  ;;  %v870_v10 = vld [vmem:[%s1705_s0 + $0x20] sm:$0xff] }
   0x3   :  { %v473_v6 = vsel %vm469_vm1, %v852_v3, 0.0  ;;  %v472_v8 = vadd.f32 %v471_v5, %v470_v4  ;;  %v475_v9 = vsel %vm469_vm1, %v863_v7, 0.0  ;;  %v477_v12 = vsel %vm469_vm1, %v870_v10, 0.0  ;;  %v877_v13 = vld [vmem:[%s1705_s0 + $0x28] sm:$0xff]  ;;  %v884_v16 = vld [vmem:[%s1705_s0 + $0x30] sm:$0xff]  ;;  %v889_v18 = vld [vmem:[%s1705_s0 + $0x38] sm:$0xff] }
   0x4   :  { %v479_v15 = vsel %vm469_vm1, %v877_v13, 0.0  ;;  %v894_v19 = vld [vmem:[%s1705_s0 + $0x40] sm:$0xff]  ;;  %v481_v20 = vsel %vm469_vm1, %v884_v16, 0.0  ;;  %v901_v21 = vld [vmem:[%s1705_s0 + $0x48] sm:$0xff]  ;;  %v906_v22 = vld [vmem:[%s1705_s0 + $0x50] sm:$0xff]  ;;  %v483_v25 = vsel %vm469_vm1, %v889_v18, 0.0 }
   0x5   :  { %v474_v11 = vadd.f32 %v473_v6, %v472_v8  ;;  %v911_v23 = vld [vmem:[%s1705_s0 + $0x58] sm:$0xff]  ;;  %v485_v26 = vsel %vm469_vm1, %v894_v19, 0.0  ;;  %v920_v27 = vld [vmem:[%s1705_s0 + $0x108] sm:$0xff]  ;;  %v925_v28 = vld [vmem:[%s1705_s0 + $0x110] sm:$0xff]  ;;  %v487_v30 = vsel %vm469_vm1, %v901_v21, 0.0  ;;  %v489_v31 = vsel %vm469_vm1, %v906_v22, 0.0 }
   0x6   :  { %v930_v29 = vld [vmem:[%s1705_s0 + $0x118] sm:$0xff]  ;;  %v938_v32 = vsel %vm469_vm1, %v911_v23, 0.0  ;;  %v943_v33 = vld [vmem:[%s1705_s0 + $0x120] sm:$0xff]  ;;  %v948_v34 = vld [vmem:[%s1705_s0 + $0x128] sm:$0xff]  ;;  %v957_v37 = vsel %vm469_vm1, %v920_v27, 0.0  ;;  %v961_v38 = vsel %vm469_vm1, %v925_v28, 0.0 }
   0x7   :  { %v476_v14 = vadd.f32 %v475_v9, %v474_v11  ;;  %v953_v35 = vld [vmem:[%s1705_s0 + $0x130] sm:$0xff]  ;;  %1726 = vst [vmem:[#allocation2_spill] sm:$0xff] %v957_v37  ;;  %1727 = vst [vmem:[#allocation3_spill] sm:$0xff] %v961_v38  ;;  %v965_v39 = vsel %vm469_vm1, %v930_v29, 0.0  ;;  %v970_v40 = vld [vmem:[%s1705_s0 + $0x138] sm:$0xff]  ;;  %v984_v43 = vsel %vm469_vm1, %v943_v33, 0.0  ;;  %v609_v37 = vmul.f32 %v852_v3, %v852_v3 }
   0x8   :  { %1728 = vst [vmem:[#allocation4_spill] sm:$0xff] %v965_v39  ;;  %v975_v41 = vld [vmem:[%s1705_s0 + $0x140] sm:$0xff]  ;;  %v980_v42 = vld [vmem:[%s1705_s0 + $0x148] sm:$0xff]  ;;  %1729 = vst [vmem:[#allocation5_spill] sm:$0xff] %v984_v43  ;;  %v988_v44 = vsel %vm469_vm1, %v948_v34, 0.0  ;;  %v992_v45 = vsel %vm469_vm1, %v953_v35, 0.0 }
   0x9   :  { %v478_v17 = vadd.f32 %v477_v12, %v476_v14  ;;  %1730 = vst [vmem:[#allocation6_spill] sm:$0xff] %v988_v44  ;;  %1731 = vst [vmem:[#allocation7_spill] sm:$0xff] %v992_v45  ;;  %v997_v46 = vld [vmem:[%s1705_s0 + $0x150] sm:$0xff]  ;;  %v1002_v47 = vld [vmem:[%s1705_s0 + $0x158] sm:$0xff]  ;;  %v1011_v50 = vsel %vm469_vm1, %v970_v40, 0.0  ;;  %v1015_v51 = vsel %vm469_vm1, %v975_v41, 0.0 }
   0xa   :  { %v1007_v48 = vld [vmem:[%s1705_s0 + $0x160] sm:$0xff]  ;;  %1732 = vst [vmem:[#allocation8_spill] sm:$0xff] %v1011_v50  ;;  %1733 = vst [vmem:[#allocation9_spill] sm:$0xff] %v1015_v51  ;;  %v1019_v52 = vsel %vm469_vm1, %v980_v42, 0.0  ;;  %v1024_v53 = vld [vmem:[%s1705_s0 + $0x168] sm:$0xff]  ;;  %v1038_v56 = vsel %vm469_vm1, %v997_v46, 0.0 }
   0xb   :  { %v480_v24 = vadd.f32 %v479_v15, %v478_v17  ;;  %1734 = vst [vmem:[#allocation10_spill] sm:$0xff] %v1019_v52  ;;  %v1029_v54 = vld [vmem:[%s1705_s0 + $0x170] sm:$0xff]  ;;  %v1034_v55 = vld [vmem:[%s1705_s0 + $0x178] sm:$0xff]  ;;  %1735 = vst [vmem:[#allocation11_spill] sm:$0xff] %v1038_v56  ;;  %v1042_v57 = vsel %vm469_vm1, %v1002_v47, 0.0  ;;  %v1046_v58 = vsel %vm469_vm1, %v1007_v48, 0.0 }
   0xc   :  { %1736 = vst [vmem:[#allocation12_spill] sm:$0xff] %v1042_v57  ;;  %1737 = vst [vmem:[#allocation13_spill] sm:$0xff] %v1046_v58  ;;  %v1051_v59 = vld [vmem:[%s1705_s0 + $0x180] sm:$0xff]  ;;  %v1056_v60 = vld [vmem:[%s1705_s0 + $0x188] sm:$0xff]  ;;  %v1065_v63 = vsel %vm469_vm1, %v1024_v53, 0.0  ;;  %v1069_v0 = vsel %vm469_vm1, %v1029_v54, 0.0 }
   0xd   :  { %v482_v36 = vadd.f32 %v481_v20, %v480_v24  ;;  %v1061_v61 = vld [vmem:[%s1705_s0 + $0x190] sm:$0xff]  ;;  %1738 = vst [vmem:[#allocation14_spill] sm:$0xff] %v1065_v63  ;;  %1739 = vst [vmem:[#allocation15_spill] sm:$0xff] %v1069_v0  ;;  %v1073_v4 = vsel %vm469_vm1, %v1034_v55, 0.0  ;;  %v1078_v5 = vld [vmem:[%s1705_s0 + $0x198] sm:$0xff]  ;;  %v1092_v9 = vsel %vm469_vm1, %v1051_v59, 0.0 }
   0xe   :  { %1740 = vst [vmem:[#allocation16_spill] sm:$0xff] %v1073_v4  ;;  %v1083_v6 = vld [vmem:[%s1705_s0 + $0x1a0] sm:$0xff]  ;;  %v1088_v8 = vld [vmem:[%s1705_s0 + $0x1a8] sm:$0xff]  ;;  %1741 = vst [vmem:[#allocation17_spill] sm:$0xff] %v1092_v9  ;;  %v1096_v11 = vsel %vm469_vm1, %v1056_v60, 0.0  ;;  %v1100_v12 = vsel %vm469_vm1, %v1061_v61, 0.0 }
   0xf   :  { %v484_v49 = vadd.f32 %v483_v25, %v482_v36  ;;  %1742 = vst [vmem:[#allocation18_spill] sm:$0xff] %v1096_v11  ;;  %1743 = vst [vmem:[#allocation19_spill] sm:$0xff] %v1100_v12  ;;  %v1105_v14 = vld [vmem:[%s1705_s0 + $0x60] sm:$0xff]  ;;  %v1110_v15 = vld [vmem:[%s1705_s0 + $0x1b0] sm:$0xff]  ;;  %v1124_v25 = vsel %vm469_vm1, %v1078_v5, 0.0  ;;  %v1132_v36 = vsel %vm469_vm1, %v1088_v8, 0.0 }
  0x10   :  { %v1115_v17 = vld [vmem:[%s1705_s0 + $0x1b8] sm:$0xff]  ;;  %v1120_v20 = vld [vmem:[%s1705_s0 + $0x1c0] sm:$0xff]  ;;  %1744 = vst [vmem:[#allocation20_spill] sm:$0xff] %v1124_v25  ;;  %1746 = vst [vmem:[#allocation22_spill] sm:$0xff] %v1132_v36 }
  0x11   :  { %v486_v62 = vadd.f32 %v485_v26, %v484_v49  ;;  %v1128_v26 = vsel %vm469_vm1, %v1083_v6, 0.0  ;;  %v1137_v49 = vld [vmem:[%s1705_s0 + $0x1c8] sm:$0xff]  ;;  %v1155_v36 = vsel %vm469_vm1, %v1115_v17, 0.0  ;;  %v1159_v25 = vsel %vm469_vm1, %v1120_v20, 0.0  ;;  %v1164_v12 = vld [vmem:[%s1705_s0 + $0x1e0] sm:$0xff]  ;;  %v1191_v0 = vld [vmem:[%s1705_s0 + $0x1f8] sm:$0xff] }
  0x12   :  { %1745 = vst [vmem:[#allocation21_spill] sm:$0xff] %v1128_v26  ;;  %v1151_v26 = vsel %vm469_vm1, %v1110_v15, 0.0  ;;  %1748 = vst [vmem:[#allocation24_spill] sm:$0xff] %v1155_v36  ;;  %v1169_v11 = vld [vmem:[%s1705_s0 + $0x1e8] sm:$0xff]  ;;  %v1178_v9 = vsel %vm469_vm1, %v1137_v49, 0.0  ;;  %v1213_v58 = vsel %vm469_vm1, %v1191_v0, 0.0 }
  0x13   :  { %v488_v24 = vadd.f32 %v487_v30, %v486_v62  ;;  %v1142_v30 = vld [vmem:[%s1705_s0 + $0x1d0] sm:$0xff]  ;;  %v1147_v62 = vld [vmem:[%s1705_s0 + $0x1d8] sm:$0xff]  ;;  %1747 = vst [vmem:[#allocation23_spill] sm:$0xff] %v1151_v26  ;;  %1749 = vst [vmem:[#allocation25_spill] sm:$0xff] %v1159_v25 }
  0x14   :  { %v1174_v26 = vld [vmem:[%s1705_s0 + $0x1f0] sm:$0xff]  ;;  %1751 = vst [vmem:[#allocation27_spill] sm:$0xff] %v1178_v9  ;;  %v1182_v25 = vsel %vm469_vm1, %v1142_v30, 0.0  ;;  %v1186_v4 = vsel %vm469_vm1, %v1147_v62, 0.0  ;;  %1754 = vst [vmem:[#allocation30_spill] sm:$0xff] %v1191_v0  ;;  %v1201_v9 = vsel %vm469_vm1, %v1169_v11, 0.0 }
  0x15   :  { %1750 = vst [vmem:[#allocation26_spill] sm:$0xff] %v1174_v26  ;;  %v490_v36 = vadd.f32 %v489_v31, %v488_v24  ;;  %1752 = vst [vmem:[#allocation28_spill] sm:$0xff] %v1182_v25  ;;  %v493_v31 = vsel %vm469_vm1, %v1105_v14, 0.0  ;;  %v1197_v24 = vsel %vm469_vm1, %v1164_v12, 0.0  ;;  %v1205_v25 = vsel %vm469_vm1, %v1174_v26, 0.0  ;;  %v1242_v56 = vld [vmem:[%s1705_s0 + $0x90] sm:$0xff] }
  0x16   :  { %1753 = vst [vmem:[#allocation29_spill] sm:$0xff] %v1186_v4  ;;  %1755 = vst [vmem:[#allocation31_spill] sm:$0xff] %v1197_v24  ;;  %v30_v4 = vld [vmem:[%s1705_s0 + $0x68] sm:$0xff]  ;;  %v1247_v52 = vld [vmem:[%s1705_s0 + $0x98] sm:$0xff] }
  0x17   :  { %1756 = vst [vmem:[#allocation32_spill] sm:$0xff] %v1201_v9  ;;  %1757 = vst [vmem:[#allocation33_spill] sm:$0xff] %v1205_v25  ;;  %v492_v63 = vadd.f32 %v938_v32, %v490_v36  ;;  %v495_v24 = vsel %vm469_vm1, %v30_v4, 0.0  ;;  %v31_v9 = vld [vmem:[%s1705_s0 + $0x70] sm:$0xff]  ;;  %v1222_v25 = vld [vmem:[%s1705_s0 + $0x78] sm:$0xff]  ;;  %v507_v39 = vsel %vm469_vm1, %v1247_v52, 0.0 }
  0x18   :  { %1758 = vst [vmem:[#allocation34_spill] sm:$0xff] %v1213_v58  ;;  %1759 = vst [vmem:[#allocation35_spill] sm:$0xff] %v1222_v25  ;;  %v1227_v32 = vld [vmem:[%s1705_s0 + $0x80] sm:$0xff]  ;;  %v1232_v36 = vld [vmem:[%s1705_s0 + $0x88] sm:$0xff]  ;;  %v497_v58 = vsel %vm469_vm1, %v31_v9, 0.0 }
  0x19   :  { %v494_v57 = vadd.f32 %v493_v31, %v492_v63  ;;  %1760 = vst [vmem:[#allocation36_spill] sm:$0xff] %v1227_v32  ;;  %1761 = vst [vmem:[#allocation37_spill] sm:$0xff] %v1232_v36  ;;  %v607_v63 = vmul.f32 %v842_v1, %v842_v1  ;;  %v608_v31 = vmul.f32 %v847_v2, %v847_v2  ;;  %v1252_v51 = vld [vmem:[%s1705_s0 + $0xa0] sm:$0xff]  ;;  %v499_v1 = vsel %vm469_vm1, %v1222_v25, 0.0  ;;  %v1263_v44 = vld [vmem:[%s1705_s0 + $0xa8] sm:$0xff] }
  0x1a   :  { %1762 = vst [vmem:[#allocation38_spill] sm:$0xff] %v1242_v56  ;;  %1763 = vst [vmem:[#allocation39_spill] sm:$0xff] %v1247_v52  ;;  %v501_v2 = vsel %vm469_vm1, %v1227_v32, 0.0  ;;  %v503_v45 = vsel %vm469_vm1, %v1232_v36, 0.0  ;;  %v1268_v43 = vld [vmem:[%s1705_s0 + $0xb0] sm:$0xff]  ;;  %v509_v38 = vsel %vm469_vm1, %v1252_v51, 0.0  ;;  %v610_v25 = vmul.f32 %v863_v7, %v863_v7 }
  0x1b   :  { %1764 = vst [vmem:[#allocation40_spill] sm:$0xff] %v1252_v51  ;;  %v496_v50 = vadd.f32 %v495_v24, %v494_v57  ;;  %1765 = vst [vmem:[#allocation41_spill] sm:$0xff] %v1263_v44  ;;  %v1273_v57 = vld [vmem:[%s1705_s0 + $0xb8] sm:$0xff]  ;;  %v505_v24 = vsel %vm469_vm1, %v1242_v56, 0.0  ;;  %v1286_v36 = vld [vmem:[%s1705_s0 + $0xc0] sm:$0xff]  ;;  %v511_v51 = vsel %vm469_vm1, %v1263_v44, 0.0 }
  0x1c   :  { %1766 = vst [vmem:[#allocation42_spill] sm:$0xff] %v1268_v43  ;;  %1767 = vst [vmem:[#allocation43_spill] sm:$0xff] %v1273_v57  ;;  %v1291_v32 = vld [vmem:[%s1705_s0 + $0xc8] sm:$0xff]  ;;  %v1296_v52 = vld [vmem:[%s1705_s0 + $0xd0] sm:$0xff]  ;;  %v1302_v3 = vsel %vm469_vm1, %v1268_v43, 0.0 }
  0x1d   :  { %1768 = vst [vmem:[#allocation44_spill] sm:$0xff] %v1286_v36  ;;  %1769 = vst [vmem:[#allocation45_spill] sm:$0xff] %v1291_v32  ;;  %v498_v56 = vadd.f32 %v497_v58, %v496_v50  ;;  %v1309_v0 = vld [vmem:[%s1705_s0 + $0xd8] sm:$0xff]  ;;  %v1314_v26 = vld [vmem:[%s1705_s0 + $0xe0] sm:$0xff]  ;;  %v1318_v50 = vsel %vm469_vm1, %v1273_v57, 0.0  ;;  %v1322_v58 = vsel %vm469_vm1, %v1286_v36, 0.0 }
  0x1e   :  { %1770 = vst [vmem:[#allocation46_spill] sm:$0xff] %v1296_v52  ;;  %1771 = vst [vmem:[#allocation47_spill] sm:$0xff] %v1309_v0  ;;  %v1326_v7 = vsel %vm469_vm1, %v1291_v32, 0.0  ;;  %v1330_v43 = vsel %vm469_vm1, %v1296_v52, 0.0  ;;  %v1335_v44 = vld [vmem:[%s1705_s0 + $0xe8] sm:$0xff]  ;;  %v1340_v57 = vld [vmem:[%s1705_s0 + $0xf0] sm:$0xff]  ;;  %v611_v52 = vmul.f32 %v870_v10, %v870_v10  ;;  %v615_v10 = vmul.f32 %v894_v19, %v894_v19 }
  0x1f   :  { %1772 = vst [vmem:[#allocation48_spill] sm:$0xff] %v1314_v26  ;;  %1773 = vst [vmem:[#allocation49_spill] sm:$0xff] %v1322_v58  ;;  %v500_v36 = vadd.f32 %v499_v1, %v498_v56  ;;  %v1344_v58 = vsel %vm469_vm1, %v1309_v0, 0.0  ;;  %v1348_v32 = vsel %vm469_vm1, %v1314_v26, 0.0  ;;  %v612_v56 = vmul.f32 %v877_v13, %v877_v13 }
  0x20   :  { %1774 = vst [vmem:[#allocation50_spill] sm:$0xff] %v1326_v7  ;;  %1775 = vst [vmem:[#allocation51_spill] sm:$0xff] %v1330_v43  ;;  %v1354_v43 = vsel %vm469_vm1, %v1335_v44, 0.0  ;;  %v1358_v7 = vsel %vm469_vm1, %v1340_v57, 0.0  ;;  %v613_v1 = vmul.f32 %v884_v16, %v884_v16  ;;  %v614_v26 = vmul.f32 %v889_v18, %v889_v18 }
  0x21   :  { %1776 = vst [vmem:[#allocation52_spill] sm:$0xff] %v1335_v44  ;;  %1777 = vst [vmem:[#allocation53_spill] sm:$0xff] %v1340_v57  ;;  %v502_v0 = vadd.f32 %v501_v2, %v500_v36  ;;  %v616_v44 = vmul.f32 %v901_v21, %v901_v21  ;;  %v617_v57 = vmul.f32 %v906_v22, %v906_v22 }
  0x22   :  { %1778 = vst [vmem:[#allocation54_spill] sm:$0xff] %v1358_v7  ;;  %v618_v7 = vmul.f32 %v911_v23, %v911_v23  ;;  %v619_v13 = vmul.f32 %v1105_v14, %v1105_v14  ;;  %v1376_v16 = vmul.f32 %v30_v4, %v30_v4  ;;  %v1378_v2 = vmul.f32 %v31_v9, %v31_v9 }
  0x23   :  { %v504_v36 = vadd.f32 %v503_v45, %v502_v0  ;;  %v640_v18 = vmul.f32 %v920_v27, %v920_v27  ;;  %v641_v19 = vmul.f32 %v925_v28, %v925_v28  ;;  %v642_v21 = vmul.f32 %v930_v29, %v930_v29 }
  0x24   :  { %v643_v22 = vmul.f32 %v943_v33, %v943_v33  ;;  %v644_v23 = vmul.f32 %v948_v34, %v948_v34  ;;  %v645_v45 = vmul.f32 %v953_v35, %v953_v35  ;;  %v646_v4 = vmul.f32 %v970_v40, %v970_v40 }
  0x25   :  { %v506_v0 = vadd.f32 %v505_v24, %v504_v36  ;;  %v647_v27 = vmul.f32 %v975_v41, %v975_v41  ;;  %v648_v28 = vmul.f32 %v980_v42, %v980_v42  ;;  %v649_v29 = vmul.f32 %v997_v46, %v997_v46 }
  0x26   :  { %v650_v33 = vmul.f32 %v1002_v47, %v1002_v47  ;;  %v671_v34 = vsel %vm469_vm1, %v607_v63, 0.0  ;;  %v672_v35 = vsel %vm469_vm1, %v608_v31, 0.0  ;;  %v651_v40 = vmul.f32 %v1007_v48, %v1007_v48 }
  0x27   :  { %v508_v9 = vadd.f32 %v507_v39, %v506_v0  ;;  %v673_v14 = vadd.f32 %v672_v35, %v671_v34  ;;  %v674_v41 = vsel %vm469_vm1, %v609_v37, 0.0  ;;  %v652_v42 = vmul.f32 %v1024_v53, %v1024_v53  ;;  %v1779_v0 = vld [vmem:[#allocation26_spill] sm:$0xff] }
  0x28   :  { %v653_v46 = vmul.f32 %v1029_v54, %v1029_v54  ;;  %v654_v47 = vmul.f32 %v1034_v55, %v1034_v55  ;;  %v676_v63 = vsel %vm469_vm1, %v610_v25, 0.0  ;;  %v655_v39 = vmul.f32 %v1051_v59, %v1051_v59  ;;  %v1780_v34 = vld [vmem:[#allocation30_spill] sm:$0xff] }
  0x29   :  { %v510_v24 = vadd.f32 %v509_v38, %v508_v9  ;;  %v656_v48 = vmul.f32 %v1056_v60, %v1056_v60  ;;  %v675_v31 = vadd.f32 %v674_v41, %v673_v14  ;;  %v657_v37 = vmul.f32 %v1061_v61, %v1061_v61  ;;  %v1781_v41 = vld [vmem:[#allocation49_spill] sm:$0xff] }
  0x2a   :  { %v658_v53 = vmul.f32 %v1078_v5, %v1078_v5  ;;  %v659_v54 = vmul.f32 %v1083_v6, %v1083_v6  ;;  %v678_v55 = vsel %vm469_vm1, %v611_v52, 0.0  ;;  %v660_v38 = vmul.f32 %v1088_v8, %v1088_v8 }
  0x2b   :  { %v512_v25 = vadd.f32 %v511_v51, %v510_v24  ;;  %v661_v59 = vmul.f32 %v1110_v15, %v1110_v15  ;;  %v677_v60 = vadd.f32 %v676_v63, %v675_v31  ;;  %v662_v36 = vmul.f32 %v1115_v17, %v1115_v17 }
  0x2c   :  { %v663_v61 = vmul.f32 %v1120_v20, %v1120_v20  ;;  %v664_v5 = vmul.f32 %v1137_v49, %v1137_v49  ;;  %v680_v6 = vsel %vm469_vm1, %v612_v56, 0.0  ;;  %v665_v52 = vmul.f32 %v1142_v30, %v1142_v30 }
  0x2d   :  { %v514_v51 = vadd.f32 %v1302_v3, %v512_v25  ;;  %v666_v8 = vmul.f32 %v1147_v62, %v1147_v62  ;;  %v679_v15 = vadd.f32 %v678_v55, %v677_v60  ;;  %v667_v17 = vmul.f32 %v1164_v12, %v1164_v12  ;;  %v1783_v25 = vld [vmem:[#allocation51_spill] sm:$0xff] }
  0x2e   :  { %v668_v20 = vmul.f32 %v1169_v11, %v1169_v11  ;;  %v669_v49 = vmul.f32 %v1779_v0, %v1779_v0  ;;  %v682_v56 = vsel %vm469_vm1, %v613_v1, 0.0  ;;  %v670_v30 = vmul.f32 %v1780_v34, %v1780_v34  ;;  %v1785_v34 = vld [vmem:[#allocation54_spill] sm:$0xff] }
  0x2f   :  { %v516_v3 = vadd.f32 %v1318_v50, %v514_v51  ;;  %v681_v35 = vadd.f32 %v680_v6, %v679_v15  ;;  %v684_v62 = vsel %vm469_vm1, %v614_v26, 0.0  ;;  %v686_v9 = vsel %vm469_vm1, %v615_v10, 0.0 }
  0x30   :  { %v688_v12 = vsel %vm469_vm1, %v616_v44, 0.0  ;;  %v690_v14 = vsel %vm469_vm1, %v617_v57, 0.0  ;;  %v692_v11 = vsel %vm469_vm1, %v618_v7, 0.0  ;;  %v694_v1 = vsel %vm469_vm1, %v619_v13, 0.0  ;;  %v1782_v7 = vld [vmem:[#allocation50_spill] sm:$0xff] }
  0x31   :  { %v518_v63 = vadd.f32 %v1781_v41, %v516_v3  ;;  %v683_v24 = vadd.f32 %v682_v56, %v681_v35  ;;  %v1459_v50 = vsel %vm469_vm1, %v640_v18, 0.0  ;;  %v1462_v31 = vsel %vm469_vm1, %v641_v19, 0.0  ;;  %v1784_v56 = vld [vmem:[#allocation35_spill] sm:$0xff] }
  0x32   :  { %v1465_v26 = vsel %vm469_vm1, %v642_v21, 0.0  ;;  %v1468_v44 = vsel %vm469_vm1, %v643_v22, 0.0  ;;  %v1471_v57 = vsel %vm469_vm1, %v644_v23, 0.0  ;;  %v1475_v13 = vsel %vm469_vm1, %v645_v45, 0.0 }
  0x33   :  { %v520_v10 = vadd.f32 %v1782_v7, %v518_v63  ;;  %v685_v55 = vadd.f32 %v684_v62, %v683_v24  ;;  %v1478_v18 = vsel %vm469_vm1, %v646_v4, 0.0  ;;  %v1481_v19 = vsel %vm469_vm1, %v647_v27, 0.0  ;;  %v1786_v62 = vld [vmem:[#allocation36_spill] sm:$0xff] }
  0x34   :  { %v1484_v21 = vsel %vm469_vm1, %v648_v28, 0.0  ;;  %v1487_v22 = vsel %vm469_vm1, %v649_v29, 0.0  ;;  %v1490_v23 = vsel %vm469_vm1, %v650_v33, 0.0  ;;  %v1494_v45 = vsel %vm469_vm1, %v651_v40, 0.0 }
  0x35   :  { %v522_v60 = vadd.f32 %v1783_v25, %v520_v10  ;;  %v687_v6 = vadd.f32 %v686_v9, %v685_v55  ;;  %v1497_v4 = vsel %vm469_vm1, %v652_v42, 0.0  ;;  %v1500_v27 = vsel %vm469_vm1, %v653_v46, 0.0  ;;  %v1788_v10 = vld [vmem:[#allocation38_spill] sm:$0xff] }
  0x36   :  { %v1503_v28 = vsel %vm469_vm1, %v654_v47, 0.0  ;;  %v1506_v29 = vsel %vm469_vm1, %v655_v39, 0.0  ;;  %v1509_v33 = vsel %vm469_vm1, %v656_v48, 0.0  ;;  %v1513_v40 = vsel %vm469_vm1, %v657_v37, 0.0  ;;  %v1789_v25 = vld [vmem:[#allocation2_spill] sm:$0xff] }
  0x37   :  { %v524_v51 = vadd.f32 %v1344_v58, %v522_v60  ;;  %v689_v15 = vadd.f32 %v688_v12, %v687_v6  ;;  %v1516_v42 = vsel %vm469_vm1, %v658_v53, 0.0  ;;  %v1519_v46 = vsel %vm469_vm1, %v659_v54, 0.0 }
  0x38   :  { %v1522_v47 = vsel %vm469_vm1, %v660_v38, 0.0  ;;  %v1525_v39 = vsel %vm469_vm1, %v661_v59, 0.0  ;;  %v1528_v48 = vsel %vm469_vm1, %v662_v36, 0.0  ;;  %v1532_v37 = vsel %vm469_vm1, %v663_v61, 0.0 }
  0x39   :  { %v526_v58 = vadd.f32 %v1348_v32, %v524_v51  ;;  %v691_v0 = vadd.f32 %v690_v14, %v689_v15  ;;  %v1535_v53 = vsel %vm469_vm1, %v664_v5, 0.0  ;;  %v1538_v54 = vsel %vm469_vm1, %v665_v52, 0.0  ;;  %v1552_v32 = vld [vmem:[%s1705_s0 + $0xf8] sm:$0xff]  ;;  %v1790_v51 = vld [vmem:[#allocation39_spill] sm:$0xff] }
  0x3a   :  { %v1541_v38 = vsel %vm469_vm1, %v666_v8, 0.0  ;;  %v1544_v59 = vsel %vm469_vm1, %v667_v17, 0.0  ;;  %v1547_v36 = vsel %vm469_vm1, %v668_v20, 0.0  ;;  %v1556_v52 = vsel %vm469_vm1, %v669_v49, 0.0 }
  0x3b   :  { %v528_v61 = vadd.f32 %v1354_v43, %v526_v58  ;;  %v693_v5 = vadd.f32 %v692_v11, %v691_v0  ;;  %v1559_v8 = vsel %vm469_vm1, %v670_v30, 0.0  ;;  %v531_v17 = vsel %vm469_vm1, %v1552_v32, 0.0  ;;  %v1570_v43 = vld [vmem:[%s1705_s0 + $0x100] sm:$0xff]  ;;  %v1791_v58 = vld [vmem:[#allocation3_spill] sm:$0xff] }
  0x3c   :  { %v622_v20 = vmul.f32 %v1784_v56, %v1784_v56  ;;  %v696_v3 = vsel %vm469_vm1, %v1376_v16, 0.0  ;;  %v533_v30 = vsel %vm469_vm1, %v1570_v43, 0.0  ;;  %v623_v9 = vmul.f32 %v1786_v62, %v1786_v62  ;;  %v1787_v16 = vld [vmem:[#allocation37_spill] sm:$0xff] }
  0x3d   :  { %v530_v49 = vadd.f32 %v1785_v34, %v528_v61  ;;  %v695_v35 = vadd.f32 %v694_v1, %v693_v5  ;;  %v698_v12 = vsel %vm469_vm1, %v1378_v2, 0.0  ;;  %v624_v41 = vmul.f32 %v1787_v16, %v1787_v16  ;;  %v1792_v5 = vld [vmem:[#allocation40_spill] sm:$0xff]  ;;  %v1795_v62 = vld [vmem:[#allocation5_spill] sm:$0xff] }
  0x3e   :  { %v700_v63 = vsel %vm469_vm1, %v622_v20, 0.0  ;;  %v625_v1 = vmul.f32 %v1788_v10, %v1788_v10  ;;  %v702_v55 = vsel %vm469_vm1, %v623_v9, 0.0  ;;  %v626_v2 = vmul.f32 %v1790_v51, %v1790_v51  ;;  %v1793_v20 = vld [vmem:[#allocation4_spill] sm:$0xff] }
  0x3f   :  { %v532_v14 = vadd.f32 %v531_v17, %v530_v49  ;;  %v697_v11 = vadd.f32 %v696_v3, %v695_v35  ;;  %v704_v15 = vsel %vm469_vm1, %v624_v41, 0.0  ;;  %v627_v17 = vmul.f32 %v1792_v5, %v1792_v5  ;;  %v1794_v49 = vld [vmem:[#allocation41_spill] sm:$0xff]  ;;  %v1797_v41 = vld [vmem:[#allocation6_spill] sm:$0xff] }
  0x40   :  { %v706_v56 = vsel %vm469_vm1, %v625_v1, 0.0  ;;  %v628_v35 = vmul.f32 %v1794_v49, %v1794_v49 }
  0x41   :  { %v534_v24 = vadd.f32 %v533_v30, %v532_v14  ;;  %v699_v7 = vadd.f32 %v698_v12, %v697_v11  ;;  %v708_v30 = vsel %vm469_vm1, %v626_v2, 0.0  ;;  %v1796_v14 = vld [vmem:[#allocation42_spill] sm:$0xff]  ;;  %v710_v16 = vsel %vm469_vm1, %v627_v17, 0.0 }
  0x42   :  { %v629_v11 = vmul.f32 %v1796_v14, %v1796_v14  ;;  %v712_v1 = vsel %vm469_vm1, %v628_v35, 0.0 }
  0x43   :  { %v536_v60 = vadd.f32 %v1789_v25, %v534_v24  ;;  %v701_v6 = vadd.f32 %v700_v63, %v699_v7  ;;  %v1798_v7 = vld [vmem:[#allocation43_spill] sm:$0xff] }
  0x44   :  { %v630_v10 = vmul.f32 %v1798_v7, %v1798_v7  ;;  %v714_v2 = vsel %vm469_vm1, %v629_v11, 0.0 }
  0x45   :  { %v538_v0 = vadd.f32 %v1791_v58, %v536_v60  ;;  %v703_v61 = vadd.f32 %v702_v55, %v701_v6  ;;  %v1799_v55 = vld [vmem:[#allocation7_spill] sm:$0xff]  ;;  %v1800_v6 = vld [vmem:[#allocation44_spill] sm:$0xff] }
  0x46   :  { %v631_v51 = vmul.f32 %v1800_v6, %v1800_v6  ;;  %v716_v17 = vsel %vm469_vm1, %v630_v10, 0.0 }
  0x47   :  { %v540_v3 = vadd.f32 %v1793_v20, %v538_v0  ;;  %v705_v34 = vadd.f32 %v704_v15, %v703_v61  ;;  %v1801_v15 = vld [vmem:[#allocation8_spill] sm:$0xff]  ;;  %v1802_v61 = vld [vmem:[#allocation45_spill] sm:$0xff] }
  0x48   :  { %v632_v5 = vmul.f32 %v1802_v61, %v1802_v61  ;;  %v718_v35 = vsel %vm469_vm1, %v631_v51, 0.0 }
  0x49   :  { %v542_v9 = vadd.f32 %v1795_v62, %v540_v3  ;;  %v707_v12 = vadd.f32 %v706_v56, %v705_v34  ;;  %v1803_v56 = vld [vmem:[#allocation9_spill] sm:$0xff]  ;;  %v1804_v34 = vld [vmem:[#allocation46_spill] sm:$0xff] }
  0x4a   :  { %v633_v49 = vmul.f32 %v1804_v34, %v1804_v34  ;;  %v720_v11 = vsel %vm469_vm1, %v632_v5, 0.0 }
  0x4b   :  { %v544_v63 = vadd.f32 %v1797_v41, %v542_v9  ;;  %v709_v24 = vadd.f32 %v708_v30, %v707_v12  ;;  %v1805_v30 = vld [vmem:[#allocation10_spill] sm:$0xff]  ;;  %v1806_v12 = vld [vmem:[#allocation47_spill] sm:$0xff] }
  0x4c   :  { %v634_v14 = vmul.f32 %v1806_v12, %v1806_v12  ;;  %v722_v10 = vsel %vm469_vm1, %v633_v49, 0.0  ;;  %v1814_v49 = vld [vmem:[#allocation15_spill] sm:$0xff]  ;;  %v1815_v12 = vld [vmem:[#allocation16_spill] sm:$0xff] }
  0x4d   :  { %v546_v25 = vadd.f32 %v1799_v55, %v544_v63  ;;  %v711_v60 = vadd.f32 %v710_v16, %v709_v24  ;;  %v1807_v16 = vld [vmem:[#allocation11_spill] sm:$0xff]  ;;  %v1808_v24 = vld [vmem:[#allocation48_spill] sm:$0xff] }
  0x4e   :  { %v635_v7 = vmul.f32 %v1808_v24, %v1808_v24  ;;  %v724_v51 = vsel %vm469_vm1, %v634_v14, 0.0 }
  0x4f   :  { %v548_v58 = vadd.f32 %v1801_v15, %v546_v25  ;;  %v713_v0 = vadd.f32 %v712_v1, %v711_v60  ;;  %v1809_v1 = vld [vmem:[#allocation12_spill] sm:$0xff] }
  0x50   :  { %v1810_v60 = vld [vmem:[#allocation52_spill] sm:$0xff]  ;;  %v726_v5 = vsel %vm469_vm1, %v635_v7, 0.0  ;;  %v1817_v7 = vld [vmem:[#allocation18_spill] sm:$0xff] }
  0x51   :  { %v550_v20 = vadd.f32 %v1803_v56, %v548_v58  ;;  %v715_v3 = vadd.f32 %v714_v2, %v713_v0  ;;  %v636_v6 = vmul.f32 %v1810_v60, %v1810_v60  ;;  %v1811_v2 = vld [vmem:[#allocation13_spill] sm:$0xff] }
  0x52   :  { %v1812_v0 = vld [vmem:[#allocation53_spill] sm:$0xff] }
  0x53   :  { %v552_v62 = vadd.f32 %v1805_v30, %v550_v20  ;;  %v717_v9 = vadd.f32 %v716_v17, %v715_v3  ;;  %v637_v61 = vmul.f32 %v1812_v0, %v1812_v0  ;;  %v1813_v17 = vld [vmem:[#allocation14_spill] sm:$0xff]  ;;  %v638_v3 = vmul.f32 %v1552_v32, %v1552_v32 }
  0x54   :  { %v728_v34 = vsel %vm469_vm1, %v636_v6, 0.0  ;;  %v1819_v6 = vld [vmem:[#allocation20_spill] sm:$0xff]  ;;  %v1821_v0 = vld [vmem:[#allocation22_spill] sm:$0xff] }
  0x55   :  { %v554_v41 = vadd.f32 %v1807_v16, %v552_v62  ;;  %v719_v63 = vadd.f32 %v718_v35, %v717_v9  ;;  %v639_v62 = vmul.f32 %v1570_v43, %v1570_v43  ;;  %v730_v9 = vsel %vm469_vm1, %v637_v61, 0.0 }
  0x56   :  { %v732_v16 = vsel %vm469_vm1, %v638_v3, 0.0  ;;  %v1823_v3 = vld [vmem:[#allocation24_spill] sm:$0xff] }
  0x57   :  { %v556_v55 = vadd.f32 %v1809_v1, %v554_v41  ;;  %v721_v25 = vadd.f32 %v720_v11, %v719_v63  ;;  %v1816_v41 = vld [vmem:[#allocation17_spill] sm:$0xff]  ;;  %v734_v32 = vsel %vm469_vm1, %v639_v62, 0.0  ;;  %v1825_v62 = vld [vmem:[#allocation27_spill] sm:$0xff] }
  0x59   :  { %v558_v15 = vadd.f32 %v1811_v2, %v556_v55  ;;  %v723_v58 = vadd.f32 %v722_v10, %v721_v25  ;;  %v1818_v55 = vld [vmem:[#allocation19_spill] sm:$0xff]  ;;  %v1820_v2 = vld [vmem:[#allocation21_spill] sm:$0xff] }
  0x5b   :  { %v560_v56 = vadd.f32 %v1813_v17, %v558_v15  ;;  %v725_v20 = vadd.f32 %v724_v51, %v723_v58  ;;  %v1822_v17 = vld [vmem:[#allocation23_spill] sm:$0xff] }
  0x5d   :  { %v562_v35 = vadd.f32 %v1814_v49, %v560_v56  ;;  %v727_v30 = vadd.f32 %v726_v5, %v725_v20 }
  0x5f   :  { %v564_v14 = vadd.f32 %v1815_v12, %v562_v35  ;;  %v729_v11 = vadd.f32 %v728_v34, %v727_v30  ;;  %v1824_v35 = vld [vmem:[#allocation25_spill] sm:$0xff]  ;;  %v1826_v12 = vld [vmem:[#allocation28_spill] sm:$0xff] }
  0x61   :  { %v566_v63 = vadd.f32 %v1816_v41, %v564_v14  ;;  %v731_v24 = vadd.f32 %v730_v9, %v729_v11  ;;  %v1827_v11 = vld [vmem:[#allocation29_spill] sm:$0xff]  ;;  %v1828_v41 = vld [vmem:[#allocation31_spill] sm:$0xff] }
  0x63   :  { %v568_v10 = vadd.f32 %v1817_v7, %v566_v63  ;;  %v733_v1 = vadd.f32 %v732_v16, %v731_v24  ;;  %v1829_v24 = vld [vmem:[#allocation32_spill] sm:$0xff]  ;;  %v1830_v7 = vld [vmem:[#allocation33_spill] sm:$0xff] }
  0x65   :  { %v570_v25 = vadd.f32 %v1818_v55, %v568_v10  ;;  %v735_v60 = vadd.f32 %v734_v32, %v733_v1  ;;  %v1831_v1 = vld [vmem:[#allocation34_spill] sm:$0xff] }
  0x67   :  { %v572_v43 = vadd.f32 %v1819_v6, %v570_v25  ;;  %v737_v51 = vadd.f32 %v1459_v50, %v735_v60 }
  0x69   :  { %v574_v15 = vadd.f32 %v1820_v2, %v572_v43  ;;  %v739_v58 = vadd.f32 %v1462_v31, %v737_v51 }
  0x6b   :  { %v576_v61 = vadd.f32 %v1821_v0, %v574_v15  ;;  %v741_v5 = vadd.f32 %v1465_v26, %v739_v58 }
  0x6d   :  { %v578_v56 = vadd.f32 %v1822_v17, %v576_v61  ;;  %v743_v20 = vadd.f32 %v1468_v44, %v741_v5 }
  0x6f   :  { %v580_v34 = vadd.f32 %v1823_v3, %v578_v56  ;;  %v745_v49 = vadd.f32 %v1471_v57, %v743_v20 }
  0x71   :  { %v582_v30 = vadd.f32 %v1824_v35, %v580_v34  ;;  %v747_v50 = vadd.f32 %v1475_v13, %v745_v49 }
  0x73   :  { %v584_v9 = vadd.f32 %v1825_v62, %v582_v30  ;;  %v749_v31 = vadd.f32 %v1478_v18, %v747_v50 }
  0x75   :  { %v586_v14 = vadd.f32 %v1826_v12, %v584_v9  ;;  %v751_v26 = vadd.f32 %v1481_v19, %v749_v31 }
  0x77   :  { %v588_v16 = vadd.f32 %v1827_v11, %v586_v14  ;;  %v753_v44 = vadd.f32 %v1484_v21, %v751_v26 }
  0x79   :  { %v590_v63 = vadd.f32 %v1828_v41, %v588_v16  ;;  %v755_v57 = vadd.f32 %v1487_v22, %v753_v44 }
  0x7b   :  { %v592_v32 = vadd.f32 %v1829_v24, %v590_v63  ;;  %v757_v13 = vadd.f32 %v1490_v23, %v755_v57 }
  0x7d   :  { %v594_v10 = vadd.f32 %v1830_v7, %v592_v32  ;;  %v759_v18 = vadd.f32 %v1494_v45, %v757_v13  ;;  %v468_v45 = vld [vmem:[%s1706_s1] sm:$0x1] }
  0x7f   :  { %v596_v55 = vadd.f32 %v1831_v1, %v594_v10  ;;  %v761_v19 = vadd.f32 %v1497_v4, %v759_v18 }
  0x81   :  { %v597_v25 = vrot.slane %v596_v55, 4  ;;  %v763_v60 = vadd.f32 %v1500_v27, %v761_v19 }
  0x83   :  { %v598_v21 = vadd.f32 %v597_v25, %v596_v55  ;;  %v765_v6 = vadd.f32 %v1503_v28, %v763_v60 }
  0x85   :  { %v599_v43 = vrot.slane %v598_v21, 2  ;;  %v767_v22 = vadd.f32 %v1506_v29, %v765_v6 }
  0x87   :  { %v600_v51 = vadd.f32 %v599_v43, %v598_v21  ;;  %v769_v23 = vadd.f32 %v1509_v33, %v767_v22 }
  0x89   :  { %v601_v2 = vrot.slane %v600_v51, 1  ;;  %v771_v15 = vadd.f32 %v1513_v40, %v769_v23 }
  0x8b   :  { %v602_v4 = vadd.f32 %v601_v2, %v600_v51  ;;  %v773_v58 = vadd.f32 %v1516_v42, %v771_v15 }
  0x8d   :  { %v603_v27 = vadd.f32 %v602_v4, %v468_v45  ;;  %v775_v0 = vadd.f32 %v1519_v46, %v773_v58 }
  0x8f   :  { %605 = vst.msk [vmem:[%s1706_s1] sm:$0x1] %vm14_vm0, %v603_v27  ;;  %v777_v28 = vadd.f32 %v1522_v47, %v775_v0 }
  0x91   :  { %v779_v29 = vadd.f32 %v1525_v39, %v777_v28 }
  0x93   :  { %v781_v33 = vadd.f32 %v1528_v48, %v779_v29 }
  0x95   :  { %v783_v40 = vadd.f32 %v1532_v37, %v781_v33  ;;  %v606_v37 = vld [vmem:[%s1707_s2] sm:$0x1] }
  0x97   :  { %v785_v61 = vadd.f32 %v1535_v53, %v783_v40 }
  0x99   :  { %v787_v42 = vadd.f32 %v1538_v54, %v785_v61 }
  0x9b   :  { %v789_v5 = vadd.f32 %v1541_v38, %v787_v42 }
  0x9d   :  { %v791_v46 = vadd.f32 %v1544_v59, %v789_v5 }
  0x9f   :  { %v793_v17 = vadd.f32 %v1547_v36, %v791_v46 }
  0xa1   :  { %v795_v56 = vadd.f32 %v1556_v52, %v793_v17 }
  0xa3   :  { %v797_v47 = vadd.f32 %v1559_v8, %v795_v56 }
  0xa5   :  { %v798_v20 = vrot.slane %v797_v47, 4 }
  0xa7   :  { %v799_v39 = vadd.f32 %v798_v20, %v797_v47 }
  0xa9   :  { %v800_v3 = vrot.slane %v799_v39, 2 }
  0xab   :  { %v801_v48 = vadd.f32 %v800_v3, %v799_v39 }
  0xad   :  { %v802_v34 = vrot.slane %v801_v48, 1 }
  0xaf   :  { %v803_v53 = vadd.f32 %v802_v34, %v801_v48 }
  0xb1   :  { %v804_v54 = vadd.f32 %v803_v53, %v606_v37 }
  0xb3   :  { %805 = vst.msk [vmem:[%s1707_s2] sm:$0x1] %vm14_vm0, %v804_v54 }

// kernel: generator_forward.48
= control target key start
LH: loop header
LB: loop body
LE: loop exit
PB: predicated region body
PF: predicated region fallthrough
CT: control target
= control target key end

     0   :  { %s1700_s15 = smov 0   ;;  %s1702_s16 = smov 0   ;;  %s3069_s0 = inlined_call_operand.vmem [shape: f32[2,16,16,16], index: 0, kind: input, shape index: {}]   ;;  %s3070_s1 = inlined_call_operand.vmem [shape: f32[2,16,16,16], index: 1, kind: output, shape index: {0}]   ;;  %s3071_s2 = inlined_call_operand.vmem [shape: f32[2,16,16,16], index: 2, kind: output, shape index: {1}]   ;;  %s3072_s3 = inlined_call_operand.vmem [shape: f32[2,16,16,16], index: 3, kind: output, shape index: {2}]   ;;  %s3073_s4 = inlined_call_operand.vmem [shape: f32[2,16,16,16], index: 4, kind: output, shape index: {3}]  }
   0x1   :  { %s1704_s17 = smov 0  }
   0x2 LB: > { %s27_s18 = sadd.s32 1, %s1669_s16  ;;  %p1609_p0 = scmp.ge.s32.totalorder %s1673_s17, 1  ;;  %s1673_s17 = sphi %s1704_s17, %s15_s17   ;;  %s1669_s16 = sphi %s1702_s16, %s3369_s16   ;;  %s1665_s15 = sphi %s1700_s15, %s3368_s15  }
   0x3   : > { %p29_p1 = scmp.ge.s32.totalorder %s27_s18, 2  ;;  %p194_p2 = scmp.lt.s32.totalorder %s1673_s17, 3 }
   0x5   : > { %s3371_s18 = smov (%p29_p1, %s27_s18), 0  ;;  %p195_p3 = pnand %p1609_p0, %p194_p2 }
   0x7   : > { %198 = sbr.rel (%p195_p3) target bundleno = 209 (0xd1), region = 24 }
   0xc   : > { %p250_p4 = scmp.lt.s32.totalorder %s1665_s15, 1  ;;  %vm514_vm0 = vcmask 1040384   ;;  %vm868_vm1 = vcmask 130048   ;;  %vm611_vm2 = vcmask 1046528  }
   0xe   : > { %s3373_s15 = smov (!%p250_p4, %s1665_s15), 1 }
   0xf   : > { %s1718_s19 = sshll.u32 %s3373_s15, 8 }
  0x10   : > { %s1724_s22 = scalar_lea.vmem %s3069_s0, %s1718_s19  ;;  %s1795_s25 = scalar_lea.vmem %s3070_s1, %s1718_s19 }
  0x11   : > { %v290_v0 = vld [vmem:[%s1724_s22] sm:$0xff]  ;;  %v291_v1 = vld [vmem:[%s1724_s22 + $0x8] sm:$0xff]  ;;  %v292_v2 = vld [vmem:[%s1724_s22 + $0x10] sm:$0xff]  ;;  %s2294_s28 = scalar_lea.vmem %s3071_s2, %s1718_s19  ;;  %s2507_s5 = scalar_lea.vmem %s3072_s3, %s1718_s19 }
  0x12   : > { %v322_v3 = vmax.f32 %v290_v0, 0.0  ;;  %v323_v4 = vmax.f32 %v291_v1, 0.0  ;;  %v324_v5 = vmax.f32 %v292_v2, 0.0  ;;  %v293_v6 = vld [vmem:[%s1724_s22 + $0x18] sm:$0xff]  ;;  %v294_v7 = vld [vmem:[%s1724_s22 + $0x20] sm:$0xff]  ;;  %v295_v8 = vld [vmem:[%s1724_s22 + $0x28] sm:$0xff]  ;;  %s2877_s8 = scalar_lea.vmem %s3073_s4, %s1718_s19 }
  0x13   : > { %v325_v9 = vmax.f32 %v293_v6, 0.0  ;;  %v326_v10 = vmax.f32 %v294_v7, 0.0  ;;  %v327_v11 = vmax.f32 %v295_v8, 0.0  ;;  %v296_v16 = vld [vmem:[%s1724_s22 + $0x30] sm:$0xff]  ;;  %v297_v49 = vld [vmem:[%s1724_s22 + $0x38] sm:$0xff]  ;;  %v298_v54 = vld [vmem:[%s1724_s22 + $0x40] sm:$0xff] }
  0x14   : > { %v354_v12 = vmul.f32 0.25, %v322_v3  ;;  %v1732_v13 = vmul.f32 0.75, %v322_v3  ;;  %v355_v14 = vmul.f32 0.25, %v323_v4  ;;  %v1734_v15 = vmul.f32 0.75, %v323_v4  ;;  %v299_v55 = vld [vmem:[%s1724_s22 + $0x48] sm:$0xff]  ;;  %v300_v0 = vld [vmem:[%s1724_s22 + $0x50] sm:$0xff] }
  0x15   : > { %v1737_v17 = vmul.f32 0.75, %v324_v5  ;;  %v1739_v18 = vmul.f32 0.75, %v325_v9  ;;  %v1741_v19 = vmul.f32 0.25, %v324_v5  ;;  %v1743_v20 = vmul.f32 0.75, %v326_v10 }
  0x16   : > { %3177 = vst [vmem:[#allocation2_spill] sm:$0xff] %v1732_v13  ;;  %3178 = vst [vmem:[#allocation3_spill] sm:$0xff] %v1734_v15  ;;  %v1746_v21 = vadd.f32 %v1732_v13, %v354_v12  ;;  %v1749_v22 = vadd.f32 %v1734_v15, %v355_v14  ;;  %v1751_v23 = vmul.f32 0.25, %v325_v9  ;;  %v1753_v24 = vmul.f32 0.75, %v327_v11  ;;  %v301_v9 = vld [vmem:[%s1724_s22 + $0x58] sm:$0xff]  ;;  %v314_v15 = vld [vmem:[%s1724_s22 + $0xc0] sm:$0xff] }
  0x17   : > { %3179 = vst [vmem:[#allocation4_spill] sm:$0xff] %v1737_v17  ;;  %3180 = vst [vmem:[#allocation5_spill] sm:$0xff] %v1739_v18  ;;  %v1756_v25 = vadd.f32 %v1737_v17, %v354_v12  ;;  %v1759_v26 = vadd.f32 %v1739_v18, %v355_v14  ;;  %v1763_v27 = vadd.f32 %v1743_v20, %v1741_v19  ;;  %v328_v28 = vmax.f32 %v296_v16, 0.0 }
  0x18   : > { %3181 = vst [vmem:[#allocation6_spill] sm:$0xff] %v1741_v19  ;;  %3182 = vst [vmem:[#allocation7_spill] sm:$0xff] %v1743_v20  ;;  %v515_v29 = vrot.slane %v1746_v21, 7  ;;  %v1767_v30 = vmul.f32 0.75, %v1746_v21  ;;  %v516_v31 = vrot.slane %v1749_v22, 7  ;;  %v1771_v32 = vmul.f32 0.75, %v1749_v22 }
  0x19   : > { %3183 = vst [vmem:[#allocation8_spill] sm:$0xff] %v1751_v23  ;;  %3184 = vst [vmem:[#allocation9_spill] sm:$0xff] %v1753_v24  ;;  %v518_v33 = vrot.slane %v1756_v25, 7  ;;  %v1775_v34 = vmul.f32 0.75, %v1756_v25  ;;  %v519_v35 = vrot.slane %v1759_v26, 7  ;;  %v1779_v36 = vmul.f32 0.75, %v1759_v26 }
  0x1a   : > { %v595_v37 = vsel %vm514_vm0, %v1746_v21, %v515_v29  ;;  %v517_v38 = vsel %vm514_vm0, %v515_v29, %v516_v31  ;;  %v521_v39 = vrot.slane %v1763_v27, 7  ;;  %v1786_v40 = vmul.f32 0.75, %v1763_v27 }
  0x1b   : > { %v708_v41 = vmul.f32 0.25, %v595_v37  ;;  %v709_v42 = vmul.f32 0.25, %v517_v38  ;;  %v596_v43 = vsel %vm514_vm0, %v1756_v25, %v518_v33  ;;  %v520_v44 = vsel %vm514_vm0, %v518_v33, %v519_v35 }
  0x1c   : > { %v710_v45 = vmul.f32 0.25, %v596_v43  ;;  %v711_v46 = vmul.f32 0.25, %v520_v44  ;;  %v597_v47 = vsel %vm514_vm0, %v1763_v27, %v521_v39  ;;  %v1801_v48 = vadd.f32 %v1753_v24, %v1751_v23  ;;  %v316_v23 = vld [vmem:[%s1724_s22 + $0xd0] sm:$0xff] }
  0x1d   : > { %v772_v50 = vadd.f32 %v1767_v30, %v708_v41  ;;  %v773_v51 = vadd.f32 %v1771_v32, %v709_v42  ;;  %v712_v52 = vmul.f32 0.25, %v597_v47  ;;  %v1806_v53 = vmul.f32 0.25, %v326_v10 }
  0x1e   : > { %v774_v56 = vadd.f32 %v1775_v34, %v710_v45  ;;  %v775_v57 = vadd.f32 %v1779_v36, %v711_v46  ;;  %v522_v58 = vrot.slane %v1801_v48, 7  ;;  %v1814_v59 = vmul.f32 0.75, %v1801_v48 }
  0x1f   : > { %3185 = vst [vmem:[#allocation10_spill] sm:$0xff] %v1806_v53  ;;  %869 = vst.msk [vmem:[%s1795_s25] sm:$0xff] %vm868_vm1, %v772_v50  ;;  %v776_v60 = vadd.f32 %v1786_v40, %v712_v52  ;;  %v1821_v61 = vmul.f32 0.75, %v328_v28  ;;  %v329_v62 = vmax.f32 %v297_v49, 0.0  ;;  %v1823_v63 = vmul.f32 0.25, %v327_v11 }
  0x20   : > { %870 = vst.msk [vmem:[%s1795_s25 + $0x8] sm:$0xff] %vm868_vm1, %v773_v51  ;;  %871 = vst.msk [vmem:[%s1795_s25 + $0x10] sm:$0xff] %vm868_vm1, %v774_v56  ;;  %v523_v1 = vsel %vm514_vm0, %v521_v39, %v522_v58  ;;  %v330_v2 = vmax.f32 %v298_v54, 0.0  ;;  %v1831_v3 = vmul.f32 0.25, %v328_v28  ;;  %v331_v4 = vmax.f32 %v299_v55, 0.0  ;;  %v302_v54 = vld [vmem:[%s1724_s22 + $0x60] sm:$0xff] }
  0x21   : > { %3186 = vst [vmem:[#allocation11_spill] sm:$0xff] %v1821_v61  ;;  %3187 = vst [vmem:[#allocation12_spill] sm:$0xff] %v1823_v63  ;;  %v713_v5 = vmul.f32 0.25, %v523_v1  ;;  %v1837_v6 = vadd.f32 %v1821_v61, %v1806_v53  ;;  %v1839_v7 = vmul.f32 0.75, %v329_v62  ;;  %v1841_v8 = vmul.f32 0.25, %v329_v62 }
  0x22   : > { %872 = vst.msk [vmem:[%s1795_s25 + $0x18] sm:$0xff] %vm868_vm1, %v775_v57  ;;  %3188 = vst [vmem:[#allocation13_spill] sm:$0xff] %v1831_v3  ;;  %v1844_v10 = vmul.f32 0.75, %v330_v2  ;;  %v1846_v11 = vmul.f32 0.75, %v331_v4  ;;  %v332_v12 = vmax.f32 %v300_v0, 0.0  ;;  %v1848_v14 = vmul.f32 0.25, %v330_v2 }
  0x23   : > { %873 = vst.msk [vmem:[%s1795_s25 + $0x20] sm:$0xff] %vm868_vm1, %v776_v60  ;;  %3189 = vst [vmem:[#allocation14_spill] sm:$0xff] %v1839_v7  ;;  %v777_v16 = vadd.f32 %v1814_v59, %v713_v5  ;;  %v524_v28 = vrot.slane %v1837_v6, 7  ;;  %v1853_v29 = vmul.f32 0.75, %v1837_v6  ;;  %v1857_v31 = vadd.f32 %v1839_v7, %v1823_v63  ;;  %v303_v60 = vld [vmem:[%s1724_s22 + $0x68] sm:$0xff] }
  0x24   : > { %3190 = vst [vmem:[#allocation15_spill] sm:$0xff] %v1841_v8  ;;  %3191 = vst [vmem:[#allocation16_spill] sm:$0xff] %v1844_v10  ;;  %v1861_v33 = vadd.f32 %v1844_v10, %v1831_v3  ;;  %v1865_v35 = vadd.f32 %v1846_v11, %v1841_v8  ;;  %v1867_v37 = vmul.f32 0.75, %v332_v12  ;;  %v333_v38 = vmax.f32 %v301_v9, 0.0  ;;  %v311_v8 = vld [vmem:[%s1724_s22 + $0xa8] sm:$0xff] }
  0x25   : > { %3192 = vst [vmem:[#allocation17_spill] sm:$0xff] %v1846_v11  ;;  %3193 = vst [vmem:[#allocation18_spill] sm:$0xff] %v1848_v14  ;;  %v598_v39 = vsel %vm514_vm0, %v1837_v6, %v524_v28  ;;  %v525_v41 = vrot.slane %v1857_v31, 7  ;;  %v1875_v42 = vmul.f32 0.75, %v1857_v31  ;;  %v1877_v43 = vmul.f32 0.25, %v331_v4 }
  0x26   : > { %3194 = vst [vmem:[#allocation19_spill] sm:$0xff] %v1867_v37  ;;  %874 = vst.msk [vmem:[%s1795_s25 + $0x28] sm:$0xff] %vm868_vm1, %v777_v16  ;;  %v714_v44 = vmul.f32 0.25, %v598_v39  ;;  %v527_v45 = vrot.slane %v1861_v33, 7  ;;  %v1881_v46 = vmul.f32 0.75, %v1861_v33  ;;  %v528_v47 = vrot.slane %v1865_v35, 7 }
  0x27   : > { %3195 = vst [vmem:[#allocation20_spill] sm:$0xff] %v1877_v43  ;;  %v526_v49 = vsel %vm514_vm0, %v524_v28, %v525_v41  ;;  %v1886_v50 = vmul.f32 0.75, %v1865_v35  ;;  %v1890_v51 = vadd.f32 %v1867_v37, %v1848_v14  ;;  %v1892_v52 = vmul.f32 0.75, %v333_v38  ;;  %v304_v28 = vld [vmem:[%s1724_s22 + $0x70] sm:$0xff]  ;;  %v307_v37 = vld [vmem:[%s1724_s22 + $0x88] sm:$0xff] }
  0x28   : > { %v778_v55 = vadd.f32 %v1853_v29, %v714_v44  ;;  %v715_v56 = vmul.f32 0.25, %v526_v49  ;;  %v599_v57 = vsel %vm514_vm0, %v1861_v33, %v527_v45  ;;  %v529_v58 = vsel %vm514_vm0, %v527_v45, %v528_v47  ;;  %v305_v47 = vld [vmem:[%s1724_s22 + $0x78] sm:$0xff] }
  0x29   : > { %3196 = vst [vmem:[#allocation21_spill] sm:$0xff] %v1892_v52  ;;  %v716_v62 = vmul.f32 0.25, %v599_v57  ;;  %v717_v0 = vmul.f32 0.25, %v529_v58  ;;  %v530_v1 = vrot.slane %v1890_v51, 7  ;;  %v1902_v2 = vmul.f32 0.75, %v1890_v51 }
  0x2a   : > { %875 = vst.msk [vmem:[%s1795_s25 + $0x30] sm:$0xff] %vm868_vm1, %v778_v55  ;;  %v779_v4 = vadd.f32 %v1875_v42, %v715_v56  ;;  %v1909_v5 = vadd.f32 %v1892_v52, %v1877_v43  ;;  %v334_v9 = vmax.f32 %v302_v54, 0.0  ;;  %v1911_v16 = vmul.f32 0.25, %v332_v12 }
  0x2b   : > { %v780_v39 = vadd.f32 %v1881_v46, %v716_v62  ;;  %v781_v41 = vadd.f32 %v1886_v50, %v717_v0  ;;  %v600_v44 = vsel %vm514_vm0, %v1890_v51, %v530_v1  ;;  %v335_v45 = vmax.f32 %v303_v60, 0.0  ;;  %v306_v62 = vld [vmem:[%s1724_s22 + $0x80] sm:$0xff] }
  0x2c   : > { %3197 = vst [vmem:[#allocation22_spill] sm:$0xff] %v1911_v16  ;;  %876 = vst.msk [vmem:[%s1795_s25 + $0x38] sm:$0xff] %vm868_vm1, %v779_v4  ;;  %v718_v49 = vmul.f32 0.25, %v600_v44  ;;  %v531_v55 = vrot.slane %v1909_v5, 7  ;;  %v1923_v54 = vmul.f32 0.75, %v1909_v5  ;;  %v1925_v12 = vmul.f32 0.75, %v334_v9 }
  0x2d   : > { %877 = vst.msk [vmem:[%s1795_s25 + $0x40] sm:$0xff] %vm868_vm1, %v780_v39  ;;  %878 = vst.msk [vmem:[%s1795_s25 + $0x48] sm:$0xff] %vm868_vm1, %v781_v41  ;;  %v1931_v56 = vmul.f32 0.25, %v333_v38  ;;  %v1933_v57 = vmul.f32 0.75, %v335_v45  ;;  %v336_v58 = vmax.f32 %v304_v28, 0.0  ;;  %v1935_v60 = vmul.f32 0.25, %v334_v9 }
  0x2e   : > { %3198 = vst [vmem:[#allocation23_spill] sm:$0xff] %v1925_v12  ;;  %v782_v0 = vadd.f32 %v1902_v2, %v718_v49  ;;  %v532_v4 = vsel %vm514_vm0, %v530_v1, %v531_v55  ;;  %v1942_v44 = vadd.f32 %v1925_v12, %v1911_v16  ;;  %v337_v52 = vmax.f32 %v305_v47, 0.0 }
  0x2f   : > { %3199 = vst [vmem:[#allocation24_spill] sm:$0xff] %v1931_v56  ;;  %3200 = vst [vmem:[#allocation25_spill] sm:$0xff] %v1933_v57  ;;  %v719_v39 = vmul.f32 0.25, %v532_v4  ;;  %v1946_v38 = vadd.f32 %v1933_v57, %v1931_v56  ;;  %v1948_v41 = vmul.f32 0.75, %v336_v58  ;;  %v1950_v9 = vmul.f32 0.25, %v335_v45 }
  0x30   : > { %3201 = vst [vmem:[#allocation26_spill] sm:$0xff] %v1935_v60  ;;  %879 = vst.msk [vmem:[%s1795_s25 + $0x50] sm:$0xff] %vm868_vm1, %v782_v0  ;;  %v533_v1 = vrot.slane %v1942_v44, 7  ;;  %v1956_v28 = vmul.f32 0.75, %v1942_v44  ;;  %v1958_v49 = vmul.f32 0.75, %v337_v52  ;;  %v338_v47 = vmax.f32 %v306_v62, 0.0 }
  0x31   : > { %3202 = vst [vmem:[#allocation27_spill] sm:$0xff] %v1948_v41  ;;  %3203 = vst [vmem:[#allocation28_spill] sm:$0xff] %v1950_v9  ;;  %v783_v55 = vadd.f32 %v1923_v54, %v719_v39  ;;  %v534_v4 = vrot.slane %v1946_v38, 7  ;;  %v1963_v57 = vmul.f32 0.75, %v1946_v38  ;;  %v1967_v45 = vadd.f32 %v1948_v41, %v1935_v60 }
  0x32   : > { %3204 = vst [vmem:[#allocation29_spill] sm:$0xff] %v1958_v49  ;;  %v601_v0 = vsel %vm514_vm0, %v1942_v44, %v533_v1  ;;  %v1973_v12 = vadd.f32 %v1958_v49, %v1950_v9  ;;  %v1975_v62 = vmul.f32 0.25, %v336_v58  ;;  %v1977_v39 = vmul.f32 0.75, %v338_v47 }
  0x33   : > { %880 = vst.msk [vmem:[%s1795_s25 + $0x58] sm:$0xff] %vm868_vm1, %v783_v55  ;;  %v720_v11 = vmul.f32 0.25, %v601_v0  ;;  %v535_v56 = vsel %vm514_vm0, %v533_v1, %v534_v4  ;;  %v536_v41 = vrot.slane %v1967_v45, 7  ;;  %v1985_v60 = vmul.f32 0.75, %v1967_v45  ;;  %v308_v55 = vld [vmem:[%s1724_s22 + $0x90] sm:$0xff] }
  0x34   : > { %3205 = vst [vmem:[#allocation30_spill] sm:$0xff] %v1975_v62  ;;  %3206 = vst [vmem:[#allocation31_spill] sm:$0xff] %v1977_v39  ;;  %v721_v10 = vmul.f32 0.25, %v535_v56  ;;  %v537_v49 = vrot.slane %v1973_v12, 7  ;;  %v1989_v58 = vmul.f32 0.75, %v1973_v12  ;;  %v1993_v9 = vadd.f32 %v1977_v39, %v1975_v62  ;;  %v309_v56 = vld [vmem:[%s1724_s22 + $0x98] sm:$0xff] }
  0x35   : > { %v784_v1 = vadd.f32 %v1956_v28, %v720_v11  ;;  %v602_v4 = vsel %vm514_vm0, %v1967_v45, %v536_v41  ;;  %v339_v0 = vmax.f32 %v307_v37, 0.0  ;;  %v1999_v16 = vmul.f32 0.25, %v337_v52  ;;  %v310_v52 = vld [vmem:[%s1724_s22 + $0xa0] sm:$0xff] }
  0x36   : > { %v785_v7 = vadd.f32 %v1963_v57, %v721_v10  ;;  %v722_v43 = vmul.f32 0.25, %v602_v4  ;;  %v538_v61 = vsel %vm514_vm0, %v536_v41, %v537_v49  ;;  %v539_v39 = vrot.slane %v1993_v9, 7 }
  0x37   : > { %3207 = vst [vmem:[#allocation32_spill] sm:$0xff] %v1999_v16  ;;  %881 = vst.msk [vmem:[%s1795_s25 + $0x60] sm:$0xff] %vm868_vm1, %v784_v1  ;;  %v723_v62 = vmul.f32 0.25, %v538_v61  ;;  %v2008_v11 = vmul.f32 0.75, %v1993_v9  ;;  %v2010_v14 = vmul.f32 0.75, %v339_v0  ;;  %v340_v37 = vmax.f32 %v308_v55, 0.0 }
  0x38   : > { %882 = vst.msk [vmem:[%s1795_s25 + $0x68] sm:$0xff] %vm868_vm1, %v785_v7  ;;  %v786_v10 = vadd.f32 %v1985_v60, %v722_v43  ;;  %v603_v41 = vsel %vm514_vm0, %v1993_v9, %v539_v39  ;;  %v2018_v49 = vmul.f32 0.25, %v338_v47  ;;  %v341_v1 = vmax.f32 %v309_v56, 0.0  ;;  %v312_v56 = vld [vmem:[%s1724_s22 + $0xb0] sm:$0xff] }
  0x39   : > { %3208 = vst [vmem:[#allocation33_spill] sm:$0xff] %v2010_v14  ;;  %v787_v61 = vadd.f32 %v1989_v58, %v723_v62  ;;  %v724_v4 = vmul.f32 0.25, %v603_v41  ;;  %v2023_v24 = vadd.f32 %v2010_v14, %v1999_v16  ;;  %v2025_v55 = vmul.f32 0.75, %v340_v37 }
  0x3a   : > { %3209 = vst [vmem:[#allocation34_spill] sm:$0xff] %v2018_v49  ;;  %883 = vst.msk [vmem:[%s1795_s25 + $0x70] sm:$0xff] %vm868_vm1, %v786_v10  ;;  %v2030_v7 = vmul.f32 0.25, %v339_v0  ;;  %v2032_v43 = vmul.f32 0.75, %v341_v1  ;;  %v342_v47 = vmax.f32 %v310_v52, 0.0  ;;  %v2034_v20 = vmul.f32 0.25, %v340_v37 }
  0x3b   : > { %3210 = vst [vmem:[#allocation35_spill] sm:$0xff] %v2025_v55  ;;  %884 = vst.msk [vmem:[%s1795_s25 + $0x78] sm:$0xff] %vm868_vm1, %v787_v61  ;;  %v788_v62 = vadd.f32 %v2008_v11, %v724_v4  ;;  %v540_v41 = vrot.slane %v2023_v24, 7  ;;  %v2042_v14 = vmul.f32 0.75, %v2023_v24  ;;  %v2046_v10 = vadd.f32 %v2025_v55, %v2018_v49 }
  0x3c   : > { %3211 = vst [vmem:[#allocation36_spill] sm:$0xff] %v2030_v7  ;;  %3212 = vst [vmem:[#allocation37_spill] sm:$0xff] %v2032_v43  ;;  %v2050_v0 = vadd.f32 %v2032_v43, %v2030_v7  ;;  %v2052_v37 = vmul.f32 0.75, %v342_v47  ;;  %v343_v52 = vmax.f32 %v311_v8, 0.0  ;;  %v2054_v61 = vmul.f32 0.25, %v341_v1 }
  0x3d   : > { %3213 = vst [vmem:[#allocation38_spill] sm:$0xff] %v2034_v20  ;;  %885 = vst.msk [vmem:[%s1795_s25 + $0x80] sm:$0xff] %vm868_vm1, %v788_v62  ;;  %v541_v4 = vsel %vm514_vm0, %v539_v39, %v540_v41  ;;  %v542_v16 = vrot.slane %v2046_v10, 7  ;;  %v2061_v3 = vmul.f32 0.75, %v2046_v10  ;;  %v344_v55 = vmax.f32 %v312_v56, 0.0  ;;  %v313_v41 = vld [vmem:[%s1724_s22 + $0xb8] sm:$0xff] }
  0x3e   : > { %3214 = vst [vmem:[#allocation39_spill] sm:$0xff] %v2052_v37  ;;  %3215 = vst [vmem:[#allocation40_spill] sm:$0xff] %v2054_v61  ;;  %v725_v49 = vmul.f32 0.25, %v541_v4  ;;  %v543_v43 = vrot.slane %v2050_v0, 7  ;;  %v2065_v7 = vmul.f32 0.75, %v2050_v0  ;;  %v2069_v8 = vadd.f32 %v2052_v37, %v2034_v20 }
  0x3f   : > { %3216 = vst [vmem:[#allocation41_spill] sm:$0xff] %v2061_v3  ;;  %v604_v39 = vsel %vm514_vm0, %v2046_v10, %v542_v16  ;;  %v2073_v1 = vmul.f32 0.75, %v343_v52  ;;  %v2075_v62 = vmul.f32 0.25, %v342_v47  ;;  %v2077_v56 = vmul.f32 0.75, %v344_v55 }
  0x40   : > { %3217 = vst [vmem:[#allocation42_spill] sm:$0xff] %v2065_v7  ;;  %v789_v4 = vadd.f32 %v2042_v14, %v725_v49  ;;  %v726_v18 = vmul.f32 0.25, %v604_v39  ;;  %v544_v63 = vsel %vm514_vm0, %v542_v16, %v543_v43  ;;  %v545_v17 = vrot.slane %v2069_v8, 7  ;;  %v315_v39 = vld [vmem:[%s1724_s22 + $0xc8] sm:$0xff] }
  0x41   : > { %3218 = vst [vmem:[#allocation43_spill] sm:$0xff] %v2073_v1  ;;  %3219 = vst [vmem:[#allocation44_spill] sm:$0xff] %v2075_v62  ;;  %v727_v37 = vmul.f32 0.25, %v544_v63  ;;  %v2084_v20 = vmul.f32 0.75, %v2069_v8  ;;  %v2088_v47 = vadd.f32 %v2073_v1, %v2054_v61  ;;  %v2092_v53 = vadd.f32 %v2077_v56, %v2075_v62 }
  0x42   : > { %3220 = vst [vmem:[#allocation45_spill] sm:$0xff] %v2077_v56  ;;  %886 = vst.msk [vmem:[%s1795_s25 + $0x88] sm:$0xff] %vm868_vm1, %v789_v4  ;;  %v790_v16 = vadd.f32 %v2061_v3, %v726_v18  ;;  %v605_v63 = vsel %vm514_vm0, %v2069_v8, %v545_v17  ;;  %v345_v49 = vmax.f32 %v313_v41, 0.0  ;;  %v2100_v43 = vmul.f32 0.25, %v343_v52 }
  0x43   : > { %3221 = vst [vmem:[#allocation46_spill] sm:$0xff] %v2084_v20  ;;  %v791_v1 = vadd.f32 %v2065_v7, %v727_v37  ;;  %v728_v61 = vmul.f32 0.25, %v605_v63  ;;  %v546_v56 = vrot.slane %v2088_v47, 7  ;;  %v2106_v62 = vmul.f32 0.75, %v2088_v47 }
  0x44   : > { %3222 = vst [vmem:[#allocation47_spill] sm:$0xff] %v2100_v43  ;;  %887 = vst.msk [vmem:[%s1795_s25 + $0x90] sm:$0xff] %vm868_vm1, %v790_v16  ;;  %v548_v18 = vrot.slane %v2092_v53, 7  ;;  %v2112_v4 = vmul.f32 0.75, %v2092_v53  ;;  %v2114_v41 = vmul.f32 0.75, %v345_v49  ;;  %v346_v52 = vmax.f32 %v314_v15, 0.0 }
  0x45   : > { %3223 = vst [vmem:[#allocation48_spill] sm:$0xff] %v2106_v62  ;;  %888 = vst.msk [vmem:[%s1795_s25 + $0x98] sm:$0xff] %vm868_vm1, %v791_v1  ;;  %v792_v37 = vadd.f32 %v2084_v20, %v728_v61  ;;  %v547_v63 = vsel %vm514_vm0, %v545_v17, %v546_v56  ;;  %v2121_v13 = vmul.f32 0.25, %v344_v55  ;;  %v347_v19 = vmax.f32 %v315_v39, 0.0  ;;  %v317_v56 = vld [vmem:[%s1724_s22 + $0xd8] sm:$0xff] }
  0x46   : > { %3224 = vst [vmem:[#allocation49_spill] sm:$0xff] %v2112_v4  ;;  %3225 = vst [vmem:[#allocation50_spill] sm:$0xff] %v2114_v41  ;;  %v729_v16 = vmul.f32 0.25, %v547_v63  ;;  %v606_v7 = vsel %vm514_vm0, %v2092_v53, %v548_v18  ;;  %v2127_v3 = vadd.f32 %v2114_v41, %v2100_v43  ;;  %v2129_v15 = vmul.f32 0.75, %v346_v52 }
  0x47   : > { %3226 = vst [vmem:[#allocation51_spill] sm:$0xff] %v2121_v13  ;;  %889 = vst.msk [vmem:[%s1795_s25 + $0xa0] sm:$0xff] %vm868_vm1, %v792_v37  ;;  %v730_v61 = vmul.f32 0.25, %v606_v7  ;;  %v2133_v1 = vmul.f32 0.25, %v345_v49  ;;  %v2135_v17 = vmul.f32 0.75, %v347_v19  ;;  %v348_v55 = vmax.f32 %v316_v23, 0.0 }
  0x48   : > { %3227 = vst [vmem:[#allocation52_spill] sm:$0xff] %v2127_v3  ;;  %3228 = vst [vmem:[#allocation53_spill] sm:$0xff] %v2129_v15  ;;  %v793_v39 = vadd.f32 %v2106_v62, %v729_v16  ;;  %v549_v63 = vrot.slane %v2127_v3, 7  ;;  %v2141_v41 = vmul.f32 0.75, %v2127_v3  ;;  %v2145_v43 = vadd.f32 %v2129_v15, %v2121_v13  ;;  %v318_v16 = vld [vmem:[%s1724_s22 + $0xe0] sm:$0xff] }
  0x49   : > { %3229 = vst [vmem:[#allocation54_spill] sm:$0xff] %v2133_v1  ;;  %3230 = vst [vmem:[#allocation55_spill] sm:$0xff] %v2135_v17  ;;  %v794_v7 = vadd.f32 %v2112_v4, %v730_v61  ;;  %v2150_v49 = vadd.f32 %v2135_v17, %v2133_v1  ;;  %v2152_v23 = vmul.f32 0.25, %v346_v52  ;;  %v2154_v37 = vmul.f32 0.75, %v348_v55 }
  0x4a   : > { %3231 = vst [vmem:[#allocation56_spill] sm:$0xff] %v2141_v41  ;;  %3232 = vst [vmem:[#allocation57_spill] sm:$0xff] %v2145_v43  ;;  %v550_v62 = vsel %vm514_vm0, %v548_v18, %v549_v63  ;;  %v551_v20 = vrot.slane %v2145_v43, 7  ;;  %v2162_v15 = vmul.f32 0.75, %v2145_v43  ;;  %v349_v61 = vmax.f32 %v317_v56, 0.0 }
  0x4b   : > { %3233 = vst [vmem:[#allocation58_spill] sm:$0xff] %v2150_v49  ;;  %3234 = vst [vmem:[#allocation59_spill] sm:$0xff] %v2152_v23  ;;  %v731_v17 = vmul.f32 0.25, %v550_v62  ;;  %v552_v52 = vrot.slane %v2150_v49, 7  ;;  %v2168_v1 = vmul.f32 0.75, %v2150_v49  ;;  %v2176_v63 = vmul.f32 0.25, %v347_v19 }
  0x4c   : > { %3235 = vst [vmem:[#allocation60_spill] sm:$0xff] %v2154_v37  ;;  %890 = vst.msk [vmem:[%s1795_s25 + $0xa8] sm:$0xff] %vm868_vm1, %v793_v39  ;;  %v2172_v39 = vadd.f32 %v2154_v37, %v2152_v23  ;;  %v607_v18 = vsel %vm514_vm0, %v2145_v43, %v551_v20  ;;  %v2178_v56 = vmul.f32 0.75, %v349_v61  ;;  %v319_v62 = vld [vmem:[%s1724_s22 + $0xe8] sm:$0xff]  ;;  %v2191_v43 = vmul.f32 0.25, %v348_v55 }
  0x4d   : > { %3236 = vst [vmem:[#allocation61_spill] sm:$0xff] %v2162_v15  ;;  %891 = vst.msk [vmem:[%s1795_s25 + $0xb0] sm:$0xff] %vm868_vm1, %v794_v7  ;;  %v350_v7 = vmax.f32 %v318_v16, 0.0  ;;  %v795_v13 = vadd.f32 %v2141_v41, %v731_v17  ;;  %v732_v4 = vmul.f32 0.25, %v607_v18  ;;  %v553_v49 = vsel %vm514_vm0, %v551_v20, %v552_v52  ;;  %v2194_v16 = vld [vmem:[%s1724_s22 + $0xf0] sm:$0xff]  ;;  %v2204_v18 = vld [vmem:[%s1724_s22 + $0xf8] sm:$0xff] }
  0x4e   : > { %3237 = vst [vmem:[#allocation62_spill] sm:$0xff] %v2168_v1  ;;  %3238 = vst [vmem:[#allocation63_spill] sm:$0xff] %v2176_v63  ;;  %v554_v3 = vrot.slane %v2172_v39, 7  ;;  %v733_v37 = vmul.f32 0.25, %v553_v49  ;;  %v2185_v23 = vmul.f32 0.75, %v2172_v39  ;;  %v2189_v19 = vadd.f32 %v2178_v56, %v2176_v63 }
  0x4f   : > { %3239 = vst [vmem:[#allocation64_spill] sm:$0xff] %v2178_v56  ;;  %3241 = vst [vmem:[#allocation66_spill] sm:$0xff] %v2191_v43  ;;  %v796_v20 = vadd.f32 %v2162_v15, %v732_v4  ;;  %v2201_v49 = vmul.f32 0.75, %v350_v7  ;;  %v351_v52 = vmax.f32 %v319_v62, 0.0  ;;  %v2217_v4 = vmul.f32 0.25, %v349_v61 }
  0x50   : > { %3240 = vst [vmem:[#allocation65_spill] sm:$0xff] %v2189_v19  ;;  %3242 = vst [vmem:[#allocation67_spill] sm:$0xff] %v2194_v16  ;;  %v608_v17 = vsel %vm514_vm0, %v2172_v39, %v554_v3  ;;  %v797_v56 = vadd.f32 %v2168_v1, %v733_v37  ;;  %v555_v63 = vrot.slane %v2189_v19, 7  ;;  %v2209_v41 = vmul.f32 0.75, %v2189_v19 }
  0x51   : > { %892 = vst.msk [vmem:[%s1795_s25 + $0xb8] sm:$0xff] %vm868_vm1, %v795_v13  ;;  %3243 = vst [vmem:[#allocation68_spill] sm:$0xff] %v2201_v49  ;;  %v734_v55 = vmul.f32 0.25, %v608_v17  ;;  %v2215_v13 = vadd.f32 %v2201_v49, %v2191_v43  ;;  %v2219_v62 = vmul.f32 0.75, %v351_v52  ;;  %v2226_v1 = vmul.f32 0.25, %v350_v7 }
  0x52   : > { %3244 = vst [vmem:[#allocation69_spill] sm:$0xff] %v2204_v18  ;;  %3245 = vst [vmem:[#allocation70_spill] sm:$0xff] %v2209_v41  ;;  %v556_v17 = vsel %vm514_vm0, %v554_v3, %v555_v63  ;;  %v2243_v63 = vmul.f32 0.25, %v351_v52 }
  0x53   : > { %893 = vst.msk [vmem:[%s1795_s25 + $0xc0] sm:$0xff] %vm868_vm1, %v796_v20  ;;  %3246 = vst [vmem:[#allocation71_spill] sm:$0xff] %v2217_v4  ;;  %v798_v37 = vadd.f32 %v2185_v23, %v734_v55  ;;  %v3144_v20 = vmax.f32 %v2204_v18, 0.0  ;;  %v735_v19 = vmul.f32 0.25, %v556_v17  ;;  %v557_v49 = vrot.slane %v2215_v13, 7 }
  0x54   : > { %3247 = vst [vmem:[#allocation72_spill] sm:$0xff] %v2219_v62  ;;  %894 = vst.msk [vmem:[%s1795_s25 + $0xc8] sm:$0xff] %vm868_vm1, %v797_v56  ;;  %v2231_v61 = vmul.f32 0.75, %v2215_v13  ;;  %v2235_v15 = vadd.f32 %v2219_v62, %v2217_v4  ;;  %v3250_v56 = vmax.f32 %v2194_v16, 0.0  ;;  %v612_v55 = vrot.slane %v1746_v21, 1 }
  0x55   : > { %3248 = vst [vmem:[#allocation73_spill] sm:$0xff] %v2226_v1  ;;  %895 = vst.msk [vmem:[%s1795_s25 + $0xd0] sm:$0xff] %vm868_vm1, %v798_v37  ;;  %v2247_v7 = vmul.f32 0.75, %v3144_v20  ;;  %v799_v17 = vadd.f32 %v2209_v41, %v735_v19  ;;  %v609_v62 = vsel %vm514_vm0, %v2215_v13, %v557_v49  ;;  %v613_v21 = vrot.slane %v1749_v22, 1 }
  0x56   : > { %3249 = vst [vmem:[#allocation74_spill] sm:$0xff] %v2231_v61  ;;  %v2241_v3 = vmul.f32 0.75, %v3250_v56  ;;  %3252 = vst [vmem:[#allocation76_spill] sm:$0xff] %v2243_v63  ;;  %v558_v4 = vrot.slane %v2235_v15, 7  ;;  %v2255_v37 = vmul.f32 0.75, %v2235_v15  ;;  %v736_v56 = vmul.f32 0.25, %v609_v62 }
  0x57   : > { %3253 = vst [vmem:[#allocation77_spill] sm:$0xff] %v2247_v7  ;;  %v2263_v20 = vadd.f32 %v2247_v7, %v2243_v63  ;;  %896 = vst.msk [vmem:[%s1795_s25 + $0xd8] sm:$0xff] %vm868_vm1, %v799_v17  ;;  %v615_v18 = vrot.slane %v1756_v25, 1  ;;  %v616_v16 = vrot.slane %v1759_v26, 1  ;;  %v618_v62 = vrot.slane %v1763_v27, 1 }
  0x58   : > { %3251 = vst [vmem:[#allocation75_spill] sm:$0xff] %v2241_v3  ;;  %v2259_v52 = vadd.f32 %v2241_v3, %v2226_v1  ;;  %v559_v19 = vsel %vm514_vm0, %v557_v49, %v558_v4  ;;  %v800_v3 = vadd.f32 %v2231_v61, %v736_v56  ;;  %v614_v25 = vsel %vm611_vm2, %v612_v55, %v613_v21 }
  0x59   : > { %v737_v1 = vmul.f32 0.25, %v559_v19  ;;  %v561_v17 = vrot.slane %v2263_v20, 7  ;;  %v2279_v49 = vmul.f32 0.75, %v2263_v20  ;;  %v692_v27 = vsel %vm611_vm2, %v613_v21, %v1749_v22 }
  0x5a   : > { %v560_v43 = vrot.slane %v2259_v52, 7  ;;  %v2275_v7 = vmul.f32 0.75, %v2259_v52  ;;  %897 = vst.msk [vmem:[%s1795_s25 + $0xe0] sm:$0xff] %vm868_vm1, %v800_v3  ;;  %v804_v19 = vmul.f32 0.25, %v614_v25  ;;  %v805_v63 = vmul.f32 0.25, %v692_v27 }
  0x5b   : > { %v801_v4 = vadd.f32 %v2255_v37, %v737_v1  ;;  %v617_v22 = vsel %vm611_vm2, %v615_v18, %v616_v16  ;;  %v693_v1 = vsel %vm611_vm2, %v616_v16, %v1759_v26  ;;  %v619_v27 = vrot.slane %v1801_v48, 1 }
  0x5c   : > { %v610_v56 = vsel %vm514_vm0, %v2259_v52, %v560_v43  ;;  %v562_v41 = vsel %vm514_vm0, %v560_v43, %v561_v17  ;;  %v836_v55 = vadd.f32 %v804_v19, %v1767_v30  ;;  %v837_v43 = vadd.f32 %v805_v63, %v1771_v32 }
  0x5d   : > { %v738_v61 = vmul.f32 0.25, %v610_v56  ;;  %898 = vst.msk [vmem:[%s1795_s25 + $0xe8] sm:$0xff] %vm868_vm1, %v801_v4  ;;  %v739_v3 = vmul.f32 0.25, %v562_v41  ;;  %v806_v21 = vmul.f32 0.25, %v617_v22  ;;  %v807_v25 = vmul.f32 0.25, %v693_v1 }
  0x5e   : > { %v621_v18 = vrot.slane %v1837_v6, 1  ;;  %901 = vst.msk [vmem:[%s2294_s28] sm:$0xff] %vm868_vm1, %v836_v55  ;;  %902 = vst.msk [vmem:[%s2294_s28 + $0x8] sm:$0xff] %vm868_vm1, %v837_v43  ;;  %v622_v32 = vrot.slane %v1857_v31, 1  ;;  %v624_v41 = vrot.slane %v1861_v33, 1  ;;  %v694_v6 = vsel %vm611_vm2, %v619_v27, %v1801_v48 }
  0x5f   : > { %v802_v17 = vadd.f32 %v2275_v7, %v738_v61  ;;  %v803_v26 = vadd.f32 %v2279_v49, %v739_v3  ;;  %v838_v30 = vadd.f32 %v806_v21, %v1775_v34  ;;  %v839_v16 = vadd.f32 %v807_v25, %v1779_v36 }
  0x60   : > { %v620_v61 = vsel %vm611_vm2, %v618_v62, %v619_v27  ;;  %v625_v63 = vrot.slane %v1865_v35, 1  ;;  %v809_v4 = vmul.f32 0.25, %v694_v6  ;;  %v623_v33 = vsel %vm611_vm2, %v621_v18, %v622_v32 }
  0x61   : > { %899 = vst.msk [vmem:[%s1795_s25 + $0xf0] sm:$0xff] %vm868_vm1, %v802_v17  ;;  %900 = vst.msk [vmem:[%s1795_s25 + $0xf8] sm:$0xff] %vm868_vm1, %v803_v26  ;;  %v808_v34 = vmul.f32 0.25, %v620_v61  ;;  %v695_v36 = vsel %vm611_vm2, %v622_v32, %v1857_v31  ;;  %v810_v62 = vmul.f32 0.25, %v623_v33  ;;  %v627_v21 = vrot.slane %v1890_v51, 1 }
  0x62   : > { %903 = vst.msk [vmem:[%s2294_s28 + $0x10] sm:$0xff] %vm868_vm1, %v838_v30  ;;  %904 = vst.msk [vmem:[%s2294_s28 + $0x18] sm:$0xff] %vm868_vm1, %v839_v16  ;;  %v811_v56 = vmul.f32 0.25, %v695_v36  ;;  %v626_v48 = vsel %vm611_vm2, %v624_v41, %v625_v63  ;;  %v696_v19 = vsel %vm611_vm2, %v625_v63, %v1865_v35  ;;  %v841_v1 = vadd.f32 %v809_v4, %v1814_v59 }
  0x63   : > { %v840_v22 = vadd.f32 %v808_v34, %v1786_v40  ;;  %v812_v3 = vmul.f32 0.25, %v626_v48  ;;  %v813_v55 = vmul.f32 0.25, %v696_v19  ;;  %v842_v43 = vadd.f32 %v810_v62, %v1853_v29 }
  0x64   : > { %v843_v31 = vadd.f32 %v811_v56, %v1875_v42  ;;  %v628_v17 = vrot.slane %v1909_v5, 1  ;;  %906 = vst.msk [vmem:[%s2294_s28 + $0x28] sm:$0xff] %vm868_vm1, %v841_v1  ;;  %v630_v35 = vrot.slane %v1942_v44, 1  ;;  %v631_v29 = vrot.slane %v1946_v38, 1 }
  0x65   : > { %905 = vst.msk [vmem:[%s2294_s28 + $0x20] sm:$0xff] %vm868_vm1, %v840_v22  ;;  %v844_v40 = vadd.f32 %v812_v3, %v1881_v46  ;;  %v845_v59 = vadd.f32 %v813_v55, %v1886_v50  ;;  %907 = vst.msk [vmem:[%s2294_s28 + $0x30] sm:$0xff] %vm868_vm1, %v842_v43  ;;  %v633_v25 = vrot.slane %v1967_v45, 1  ;;  %v634_v27 = vrot.slane %v1973_v12, 1  ;;  %v3254_v3 = vld [vmem:[#allocation41_spill] sm:$0xff]  ;;  %v3255_v43 = vld [vmem:[#allocation42_spill] sm:$0xff] }
  0x66   : > { %908 = vst.msk [vmem:[%s2294_s28 + $0x38] sm:$0xff] %vm868_vm1, %v843_v31  ;;  %v629_v42 = vsel %vm611_vm2, %v627_v21, %v628_v17  ;;  %v697_v51 = vsel %vm611_vm2, %v628_v17, %v1909_v5  ;;  %v632_v44 = vsel %vm611_vm2, %v630_v35, %v631_v29  ;;  %v698_v18 = vsel %vm611_vm2, %v631_v29, %v1946_v38  ;;  %v3256_v21 = vld [vmem:[#allocation52_spill] sm:$0xff]  ;;  %v3260_v29 = vld [vmem:[#allocation58_spill] sm:$0xff] }
  0x67   : > { %909 = vst.msk [vmem:[%s2294_s28 + $0x40] sm:$0xff] %vm868_vm1, %v844_v40  ;;  %910 = vst.msk [vmem:[%s2294_s28 + $0x48] sm:$0xff] %vm868_vm1, %v845_v59  ;;  %v814_v46 = vmul.f32 0.25, %v629_v42  ;;  %v815_v50 = vmul.f32 0.25, %v697_v51  ;;  %v816_v26 = vmul.f32 0.25, %v632_v44  ;;  %v817_v30 = vmul.f32 0.25, %v698_v18 }
  0x68   : > { %v635_v5 = vsel %vm611_vm2, %v633_v25, %v634_v27  ;;  %v699_v45 = vsel %vm611_vm2, %v634_v27, %v1973_v12  ;;  %v636_v63 = vrot.slane %v1993_v9, 1  ;;  %v637_v34 = vrot.slane %v2023_v24, 1  ;;  %v3258_v40 = vld [vmem:[#allocation48_spill] sm:$0xff]  ;;  %v3259_v59 = vld [vmem:[#allocation57_spill] sm:$0xff] }
  0x69   : > { %v846_v32 = vadd.f32 %v814_v46, %v1902_v2  ;;  %v847_v41 = vadd.f32 %v815_v50, %v1923_v54  ;;  %v818_v16 = vmul.f32 0.25, %v635_v5  ;;  %v819_v61 = vmul.f32 0.25, %v699_v45  ;;  %v3261_v27 = vld [vmem:[#allocation65_spill] sm:$0xff] }
  0x6a   : > { %v848_v6 = vadd.f32 %v816_v26, %v1956_v28  ;;  %v849_v38 = vadd.f32 %v817_v30, %v1963_v57  ;;  %v639_v12 = vrot.slane %v2046_v10, 1  ;;  %v640_v28 = vrot.slane %v2050_v0, 1 }
  0x6b   : > { %911 = vst.msk [vmem:[%s2294_s28 + $0x50] sm:$0xff] %vm868_vm1, %v846_v32  ;;  %912 = vst.msk [vmem:[%s2294_s28 + $0x58] sm:$0xff] %vm868_vm1, %v847_v41  ;;  %v850_v2 = vadd.f32 %v818_v16, %v1985_v60  ;;  %v851_v54 = vadd.f32 %v819_v61, %v1989_v58  ;;  %v638_v57 = vsel %vm611_vm2, %v636_v63, %v637_v34  ;;  %v642_v4 = vrot.slane %v2069_v8, 1  ;;  %v3262_v32 = vld [vmem:[#allocation49_spill] sm:$0xff]  ;;  %v3263_v16 = vld [vmem:[#allocation56_spill] sm:$0xff] }
  0x6c   : > { %913 = vst.msk [vmem:[%s2294_s28 + $0x60] sm:$0xff] %vm868_vm1, %v848_v6  ;;  %914 = vst.msk [vmem:[%s2294_s28 + $0x68] sm:$0xff] %vm868_vm1, %v849_v38  ;;  %v700_v9 = vsel %vm611_vm2, %v637_v34, %v2023_v24  ;;  %v643_v33 = vrot.slane %v2088_v47, 1  ;;  %v820_v60 = vmul.f32 0.25, %v638_v57  ;;  %v641_v10 = vsel %vm611_vm2, %v639_v12, %v640_v28  ;;  %v3264_v63 = vld [vmem:[#allocation61_spill] sm:$0xff] }
  0x6d   : > { %915 = vst.msk [vmem:[%s2294_s28 + $0x70] sm:$0xff] %vm868_vm1, %v850_v2  ;;  %916 = vst.msk [vmem:[%s2294_s28 + $0x78] sm:$0xff] %vm868_vm1, %v851_v54  ;;  %v821_v58 = vmul.f32 0.25, %v700_v9  ;;  %v701_v36 = vsel %vm611_vm2, %v640_v28, %v2050_v0  ;;  %v822_v62 = vmul.f32 0.25, %v641_v10  ;;  %v645_v31 = vrot.slane %v2092_v53, 1  ;;  %v3265_v2 = vld [vmem:[#allocation62_spill] sm:$0xff] }
  0x6e   : > { %v823_v56 = vmul.f32 0.25, %v701_v36  ;;  %v644_v24 = vsel %vm611_vm2, %v642_v4, %v643_v33  ;;  %v702_v8 = vsel %vm611_vm2, %v643_v33, %v2088_v47  ;;  %v852_v48 = vadd.f32 %v820_v60, %v2008_v11  ;;  %v3257_v47 = vld [vmem:[#allocation46_spill] sm:$0xff] }
  0x6f   : > { %v853_v19 = vadd.f32 %v821_v58, %v2042_v14  ;;  %v824_v22 = vmul.f32 0.25, %v644_v24  ;;  %v825_v1 = vmul.f32 0.25, %v702_v8  ;;  %v854_v55 = vadd.f32 %v822_v62, %v3254_v3  ;;  %v3266_v9 = vld [vmem:[#allocation70_spill] sm:$0xff] }
  0x70   : > { %v855_v0 = vadd.f32 %v823_v56, %v3255_v43  ;;  %v646_v17 = vrot.slane %v3256_v21, 1  ;;  %917 = vst.msk [vmem:[%s2294_s28 + $0x80] sm:$0xff] %vm868_vm1, %v852_v48  ;;  %v648_v35 = vrot.slane %v3259_v59, 1  ;;  %v649_v42 = vrot.slane %v3260_v29, 1  ;;  %v3267_v10 = vld [vmem:[#allocation6_spill] sm:$0xff]  ;;  %v3270_v56 = vld [vmem:[#allocation3_spill] sm:$0xff] }
  0x71   : > { %918 = vst.msk [vmem:[%s2294_s28 + $0x88] sm:$0xff] %vm868_vm1, %v853_v19  ;;  %v856_v11 = vadd.f32 %v824_v22, %v3257_v47  ;;  %v857_v14 = vadd.f32 %v825_v1, %v3258_v40  ;;  %919 = vst.msk [vmem:[%s2294_s28 + $0x90] sm:$0xff] %vm868_vm1, %v854_v55  ;;  %v651_v25 = vrot.slane %v2172_v39, 1  ;;  %v652_v46 = vrot.slane %v3261_v27, 1  ;;  %v3268_v36 = vld [vmem:[#allocation2_spill] sm:$0xff]  ;;  %v3273_v40 = vld [vmem:[#allocation4_spill] sm:$0xff] }
  0x72   : > { %920 = vst.msk [vmem:[%s2294_s28 + $0x98] sm:$0xff] %vm868_vm1, %v855_v0  ;;  %v647_v53 = vsel %vm611_vm2, %v645_v31, %v646_v17  ;;  %v703_v51 = vsel %vm611_vm2, %v646_v17, %v3256_v21  ;;  %v650_v18 = vsel %vm611_vm2, %v648_v35, %v649_v42  ;;  %v704_v26 = vsel %vm611_vm2, %v649_v42, %v3260_v29  ;;  %v3271_v55 = vld [vmem:[#allocation74_spill] sm:$0xff]  ;;  %v3274_v35 = vld [vmem:[#allocation12_spill] sm:$0xff]  ;;  %v3275_v29 = vld [vmem:[#allocation5_spill] sm:$0xff] }
  0x73   : > { %921 = vst.msk [vmem:[%s2294_s28 + $0xa0] sm:$0xff] %vm868_vm1, %v856_v11  ;;  %922 = vst.msk [vmem:[%s2294_s28 + $0xa8] sm:$0xff] %vm868_vm1, %v857_v14  ;;  %v826_v50 = vmul.f32 0.25, %v647_v53  ;;  %v827_v44 = vmul.f32 0.25, %v703_v51  ;;  %v828_v30 = vmul.f32 0.25, %v650_v18  ;;  %v829_v5 = vmul.f32 0.25, %v704_v26 }
  0x74   : > { %v653_v45 = vsel %vm611_vm2, %v651_v25, %v652_v46  ;;  %v705_v39 = vsel %vm611_vm2, %v652_v46, %v3261_v27  ;;  %v654_v12 = vrot.slane %v2215_v13, 1  ;;  %v655_v28 = vrot.slane %v2235_v15, 1  ;;  %v3272_v11 = vld [vmem:[#allocation10_spill] sm:$0xff]  ;;  %v3278_v46 = vld [vmem:[#allocation15_spill] sm:$0xff] }
  0x75   : > { %v858_v41 = vadd.f32 %v826_v50, %v3262_v32  ;;  %v859_v61 = vadd.f32 %v827_v44, %v3263_v16  ;;  %v830_v6 = vmul.f32 0.25, %v653_v45  ;;  %v831_v38 = vmul.f32 0.25, %v705_v39  ;;  %v3279_v50 = vld [vmem:[#allocation9_spill] sm:$0xff] }
  0x76   : > { %v860_v34 = vadd.f32 %v828_v30, %v3264_v63  ;;  %v861_v54 = vadd.f32 %v829_v5, %v3265_v2  ;;  %v657_v33 = vrot.slane %v2259_v52, 1  ;;  %v658_v60 = vrot.slane %v2263_v20, 1 }
  0x77   : > { %923 = vst.msk [vmem:[%s2294_s28 + $0xb0] sm:$0xff] %vm868_vm1, %v858_v41  ;;  %924 = vst.msk [vmem:[%s2294_s28 + $0xb8] sm:$0xff] %vm868_vm1, %v859_v61  ;;  %v862_v57 = vadd.f32 %v830_v6, %v2185_v23  ;;  %v863_v4 = vadd.f32 %v831_v38, %v3266_v9  ;;  %v656_v13 = vsel %vm611_vm2, %v654_v12, %v655_v28  ;;  %v3269_v23 = vld [vmem:[#allocation8_spill] sm:$0xff]  ;;  %v3281_v12 = vld [vmem:[#allocation11_spill] sm:$0xff] }
  0x78   : > { %925 = vst.msk [vmem:[%s2294_s28 + $0xc0] sm:$0xff] %vm868_vm1, %v860_v34  ;;  %926 = vst.msk [vmem:[%s2294_s28 + $0xc8] sm:$0xff] %vm868_vm1, %v861_v54  ;;  %v706_v58 = vsel %vm611_vm2, %v655_v28, %v2235_v15  ;;  %v2455_v62 = vadd.f32 %v3268_v36, %v3267_v10  ;;  %v2459_v24 = vadd.f32 %v3270_v56, %v3269_v23  ;;  %v832_v52 = vmul.f32 0.25, %v656_v13  ;;  %v3280_v54 = vld [vmem:[#allocation18_spill] sm:$0xff] }
  0x79   : > { %927 = vst.msk [vmem:[%s2294_s28 + $0xd0] sm:$0xff] %vm868_vm1, %v862_v57  ;;  %928 = vst.msk [vmem:[%s2294_s28 + $0xd8] sm:$0xff] %vm868_vm1, %v863_v4  ;;  %v833_v8 = vmul.f32 0.25, %v706_v58  ;;  %v659_v48 = vsel %vm611_vm2, %v657_v33, %v658_v60  ;;  %v707_v15 = vsel %vm611_vm2, %v658_v60, %v2263_v20  ;;  %v2484_v14 = vadd.f32 %v3273_v40, %v3272_v11  ;;  %v3282_v4 = vld [vmem:[#allocation20_spill] sm:$0xff]  ;;  %v3283_v33 = vld [vmem:[#allocation14_spill] sm:$0xff] }
  0x7a   : > { %v834_v19 = vmul.f32 0.25, %v659_v48  ;;  %v835_v22 = vmul.f32 0.25, %v707_v15  ;;  %v965_v1 = vrot.slane %v2455_v62, 7  ;;  %v2470_v3 = vmul.f32 0.75, %v2455_v62  ;;  %v3284_v13 = vld [vmem:[#allocation22_spill] sm:$0xff]  ;;  %v3285_v58 = vld [vmem:[#allocation16_spill] sm:$0xff] }
  0x7b   : > { %v864_v43 = vadd.f32 %v832_v52, %v3271_v55  ;;  %v865_v0 = vadd.f32 %v833_v8, %v2255_v37  ;;  %v966_v31 = vrot.slane %v2459_v24, 7  ;;  %v2476_v21 = vmul.f32 0.75, %v2459_v24  ;;  %v3286_v55 = vld [vmem:[#allocation24_spill] sm:$0xff] }
  0x7c   : > { %v866_v20 = vadd.f32 %v834_v19, %v2275_v7  ;;  %v867_v17 = vadd.f32 %v835_v22, %v2279_v49  ;;  %v1045_v47 = vsel %vm514_vm0, %v2455_v62, %v965_v1  ;;  %v2493_v42 = vadd.f32 %v3275_v29, %v3274_v35  ;;  %v3276_v7 = vld [vmem:[#allocation13_spill] sm:$0xff]  ;;  %v3277_v49 = vld [vmem:[#allocation7_spill] sm:$0xff] }
  0x7d   : > { %929 = vst.msk [vmem:[%s2294_s28 + $0xe0] sm:$0xff] %vm868_vm1, %v864_v43  ;;  %930 = vst.msk [vmem:[%s2294_s28 + $0xe8] sm:$0xff] %vm868_vm1, %v865_v0  ;;  %v1157_v37 = vmul.f32 0.25, %v1045_v47  ;;  %v967_v59 = vsel %vm514_vm0, %v965_v1, %v966_v31  ;;  %v2497_v53 = vadd.f32 %v3277_v49, %v3276_v7  ;;  %v968_v25 = vrot.slane %v2484_v14, 7  ;;  %v3287_v43 = vld [vmem:[#allocation17_spill] sm:$0xff]  ;;  %v3288_v31 = vld [vmem:[#allocation26_spill] sm:$0xff] }
  0x7e   : > { %931 = vst.msk [vmem:[%s2294_s28 + $0xf0] sm:$0xff] %vm868_vm1, %v866_v20  ;;  %932 = vst.msk [vmem:[%s2294_s28 + $0xf8] sm:$0xff] %vm868_vm1, %v867_v17  ;;  %v1158_v51 = vmul.f32 0.25, %v967_v59  ;;  %v2511_v27 = vmul.f32 0.75, %v2484_v14  ;;  %v2515_v44 = vadd.f32 %v3279_v50, %v3278_v46  ;;  %v969_v26 = vrot.slane %v2493_v42, 7  ;;  %v3289_v20 = vld [vmem:[#allocation19_spill] sm:$0xff] }
  0x7f   : > { %v1221_v18 = vadd.f32 %v2470_v3, %v1157_v37  ;;  %v2520_v30 = vmul.f32 0.75, %v2493_v42  ;;  %v971_v5 = vrot.slane %v2497_v53, 7  ;;  %v1046_v39 = vsel %vm514_vm0, %v2484_v14, %v968_v25  ;;  %v3290_v37 = vld [vmem:[#allocation28_spill] sm:$0xff]  ;;  %v3291_v59 = vld [vmem:[#allocation21_spill] sm:$0xff] }
  0x80   : > { %v1222_v45 = vadd.f32 %v2476_v21, %v1158_v51  ;;  %v2527_v32 = vmul.f32 0.75, %v2497_v53  ;;  %v972_v41 = vrot.slane %v2515_v44, 7  ;;  %v1159_v16 = vmul.f32 0.25, %v1046_v39 }
  0x81   : > { %1317 = vst.msk [vmem:[%s2507_s5] sm:$0xff] %vm868_vm1, %v1221_v18  ;;  %v970_v61 = vsel %vm514_vm0, %v968_v25, %v969_v26  ;;  %v1047_v6 = vsel %vm514_vm0, %v2497_v53, %v971_v5  ;;  %v2536_v38 = vmul.f32 0.75, %v2515_v44  ;;  %v2543_v28 = vadd.f32 %v3281_v12, %v3280_v54  ;;  %v3294_v12 = vld [vmem:[#allocation32_spill] sm:$0xff] }
  0x82   : > { %1318 = vst.msk [vmem:[%s2507_s5 + $0x8] sm:$0xff] %vm868_vm1, %v1222_v45  ;;  %v1160_v63 = vmul.f32 0.25, %v970_v61  ;;  %v1161_v34 = vmul.f32 0.25, %v1047_v6  ;;  %v973_v2 = vsel %vm514_vm0, %v971_v5, %v972_v41  ;;  %v1223_v57 = vadd.f32 %v2511_v27, %v1159_v16  ;;  %v3292_v6 = vld [vmem:[#allocation30_spill] sm:$0xff] }
  0x83   : > { %v1162_v9 = vmul.f32 0.25, %v973_v2  ;;  %v2548_v60 = vadd.f32 %v3283_v33, %v3282_v4  ;;  %v2552_v10 = vadd.f32 %v3285_v58, %v3284_v13  ;;  %v974_v56 = vrot.slane %v2543_v28, 7  ;;  %v3296_v4 = vld [vmem:[#allocation34_spill] sm:$0xff]  ;;  %v3297_v33 = vld [vmem:[#allocation27_spill] sm:$0xff] }
  0x84   : > { %v1224_v36 = vadd.f32 %v2520_v30, %v1160_v63  ;;  %v1225_v23 = vadd.f32 %v2527_v32, %v1161_v34  ;;  %v2558_v52 = vmul.f32 0.75, %v2543_v28  ;;  %1319 = vst.msk [vmem:[%s2507_s5 + $0x10] sm:$0xff] %vm868_vm1, %v1223_v57  ;;  %v2579_v0 = vadd.f32 %v3287_v43, %v3286_v55  ;;  %v3293_v63 = vld [vmem:[#allocation23_spill] sm:$0xff]  ;;  %v3295_v57 = vld [vmem:[#allocation25_spill] sm:$0xff] }
  0x85   : > { %v1226_v8 = vadd.f32 %v2536_v38, %v1162_v9  ;;  %v975_v48 = vrot.slane %v2548_v60, 7  ;;  %v2565_v15 = vmul.f32 0.75, %v2548_v60  ;;  %v977_v19 = vrot.slane %v2552_v10, 7 }
  0x86   : > { %1320 = vst.msk [vmem:[%s2507_s5 + $0x18] sm:$0xff] %vm868_vm1, %v1224_v36  ;;  %1321 = vst.msk [vmem:[%s2507_s5 + $0x20] sm:$0xff] %vm868_vm1, %v1225_v23  ;;  %v1048_v22 = vsel %vm514_vm0, %v2543_v28, %v974_v56  ;;  %v2575_v1 = vmul.f32 0.75, %v2552_v10  ;;  %v2583_v17 = vadd.f32 %v3289_v20, %v3288_v31  ;;  %v2592_v35 = vadd.f32 %v3291_v59, %v3290_v37 }
  0x87   : > { %1322 = vst.msk [vmem:[%s2507_s5 + $0x28] sm:$0xff] %vm868_vm1, %v1226_v8  ;;  %v1163_v47 = vmul.f32 0.25, %v1048_v22  ;;  %v976_v11 = vsel %vm514_vm0, %v974_v56, %v975_v48  ;;  %v1049_v40 = vsel %vm514_vm0, %v2552_v10, %v977_v19  ;;  %v978_v49 = vrot.slane %v2579_v0, 7  ;;  %v3298_v56 = vld [vmem:[#allocation36_spill] sm:$0xff]  ;;  %v3299_v8 = vld [vmem:[#allocation29_spill] sm:$0xff] }
  0x88   : > { %v1164_v29 = vmul.f32 0.25, %v976_v11  ;;  %v1165_v7 = vmul.f32 0.25, %v1049_v40  ;;  %v2596_v51 = vmul.f32 0.75, %v2579_v0  ;;  %v980_v46 = vrot.slane %v2583_v17, 7 }
  0x89   : > { %v1227_v25 = vadd.f32 %v2558_v52, %v1163_v47  ;;  %v2601_v50 = vmul.f32 0.75, %v2583_v17  ;;  %v981_v18 = vrot.slane %v2592_v35, 7  ;;  %v979_v45 = vsel %vm514_vm0, %v977_v19, %v978_v49 }
  0x8a   : > { %v1228_v26 = vadd.f32 %v2565_v15, %v1164_v29  ;;  %v1229_v5 = vadd.f32 %v2575_v1, %v1165_v7  ;;  %v2608_v39 = vmul.f32 0.75, %v2592_v35  ;;  %v1166_v41 = vmul.f32 0.25, %v979_v45  ;;  %v3300_v29 = vld [vmem:[#allocation38_spill] sm:$0xff]  ;;  %v3301_v7 = vld [vmem:[#allocation31_spill] sm:$0xff] }
  0x8b   : > { %1323 = vst.msk [vmem:[%s2507_s5 + $0x30] sm:$0xff] %vm868_vm1, %v1227_v25  ;;  %v1050_v16 = vsel %vm514_vm0, %v2583_v17, %v980_v46  ;;  %v982_v61 = vsel %vm514_vm0, %v980_v46, %v981_v18  ;;  %v2617_v34 = vadd.f32 %v3293_v63, %v3292_v6  ;;  %v2625_v9 = vadd.f32 %v3295_v57, %v3294_v12 }
  0x8c   : > { %1324 = vst.msk [vmem:[%s2507_s5 + $0x38] sm:$0xff] %vm868_vm1, %v1228_v26  ;;  %1325 = vst.msk [vmem:[%s2507_s5 + $0x40] sm:$0xff] %vm868_vm1, %v1229_v5  ;;  %v1167_v2 = vmul.f32 0.25, %v1050_v16  ;;  %v1168_v54 = vmul.f32 0.25, %v982_v61  ;;  %v2629_v13 = vadd.f32 %v3297_v33, %v3296_v4  ;;  %v1230_v58 = vadd.f32 %v2596_v51, %v1166_v41  ;;  %v3302_v26 = vld [vmem:[#allocation40_spill] sm:$0xff]  ;;  %v3303_v5 = vld [vmem:[#allocation33_spill] sm:$0xff] }
  0x8d   : > { %v983_v36 = vrot.slane %v2617_v34, 7  ;;  %v2634_v23 = vmul.f32 0.75, %v2617_v34  ;;  %v2638_v48 = vadd.f32 %v3299_v8, %v3298_v56  ;;  %v984_v55 = vrot.slane %v2625_v9, 7 }
  0x8e   : > { %v1231_v19 = vadd.f32 %v2601_v50, %v1167_v2  ;;  %v1232_v22 = vadd.f32 %v2608_v39, %v1168_v54  ;;  %v2644_v43 = vmul.f32 0.75, %v2625_v9  ;;  %1326 = vst.msk [vmem:[%s2507_s5 + $0x48] sm:$0xff] %vm868_vm1, %v1230_v58  ;;  %v986_v20 = vrot.slane %v2629_v13, 7  ;;  %v3304_v58 = vld [vmem:[#allocation44_spill] sm:$0xff] }
  0x8f   : > { %v1051_v31 = vsel %vm514_vm0, %v2617_v34, %v983_v36  ;;  %v2652_v47 = vmul.f32 0.75, %v2629_v13  ;;  %v987_v11 = vrot.slane %v2638_v48, 7  ;;  %v985_v37 = vsel %vm514_vm0, %v983_v36, %v984_v55  ;;  %v3305_v36 = vld [vmem:[#allocation35_spill] sm:$0xff]  ;;  %v3307_v55 = vld [vmem:[#allocation37_spill] sm:$0xff] }
  0x90   : > { %1327 = vst.msk [vmem:[%s2507_s5 + $0x50] sm:$0xff] %vm868_vm1, %v1231_v19  ;;  %1328 = vst.msk [vmem:[%s2507_s5 + $0x58] sm:$0xff] %vm868_vm1, %v1232_v22  ;;  %v1169_v40 = vmul.f32 0.25, %v1051_v31  ;;  %v2661_v59 = vmul.f32 0.75, %v2638_v48  ;;  %v2665_v49 = vadd.f32 %v3301_v7, %v3300_v29  ;;  %v1170_v25 = vmul.f32 0.25, %v985_v37  ;;  %v3306_v22 = vld [vmem:[#allocation47_spill] sm:$0xff] }
  0x91   : > { %v1052_v46 = vsel %vm514_vm0, %v2629_v13, %v986_v20  ;;  %v988_v18 = vsel %vm514_vm0, %v986_v20, %v987_v11  ;;  %v2672_v45 = vadd.f32 %v3303_v5, %v3302_v26  ;;  %v2692_v56 = vadd.f32 %v3305_v36, %v3304_v58  ;;  %v3308_v20 = vld [vmem:[#allocation51_spill] sm:$0xff] }
  0x92   : > { %v1233_v41 = vadd.f32 %v2634_v23, %v1169_v40  ;;  %v1171_v16 = vmul.f32 0.25, %v1052_v46  ;;  %v1172_v61 = vmul.f32 0.25, %v988_v18  ;;  %v989_v6 = vrot.slane %v2665_v49, 7  ;;  %v3309_v11 = vld [vmem:[#allocation39_spill] sm:$0xff] }
  0x93   : > { %v1234_v63 = vadd.f32 %v2644_v43, %v1170_v25  ;;  %v2678_v2 = vmul.f32 0.75, %v2665_v49  ;;  %v990_v54 = vrot.slane %v2672_v45, 7  ;;  %v2682_v12 = vmul.f32 0.75, %v2672_v45  ;;  %v3311_v25 = vld [vmem:[#allocation54_spill] sm:$0xff]  ;;  %v3312_v46 = vld [vmem:[#allocation43_spill] sm:$0xff] }
  0x94   : > { %1329 = vst.msk [vmem:[%s2507_s5 + $0x60] sm:$0xff] %vm868_vm1, %v1233_v41  ;;  %v1235_v57 = vadd.f32 %v2652_v47, %v1171_v16  ;;  %v1236_v4 = vadd.f32 %v2661_v59, %v1172_v61  ;;  %v1053_v33 = vsel %vm514_vm0, %v2665_v49, %v989_v6  ;;  %v2699_v31 = vadd.f32 %v3307_v55, %v3306_v22  ;;  %v3316_v22 = vld [vmem:[#allocation59_spill] sm:$0xff]  ;;  %v3317_v55 = vld [vmem:[#allocation45_spill] sm:$0xff] }
  0x95   : > { %1330 = vst.msk [vmem:[%s2507_s5 + $0x68] sm:$0xff] %vm868_vm1, %v1234_v63  ;;  %v1173_v8 = vmul.f32 0.25, %v1053_v33  ;;  %v991_v19 = vsel %vm514_vm0, %v989_v6, %v990_v54  ;;  %v2703_v40 = vadd.f32 %v3309_v11, %v3308_v20  ;;  %v992_v29 = vrot.slane %v2692_v56, 7 }
  0x96   : > { %1331 = vst.msk [vmem:[%s2507_s5 + $0x70] sm:$0xff] %vm868_vm1, %v1235_v57  ;;  %1332 = vst.msk [vmem:[%s2507_s5 + $0x78] sm:$0xff] %vm868_vm1, %v1236_v4  ;;  %v1174_v37 = vmul.f32 0.25, %v991_v19  ;;  %v2711_v7 = vmul.f32 0.75, %v2692_v56  ;;  %v2715_v18 = vadd.f32 %v3312_v46, %v3311_v25  ;;  %v993_v5 = vrot.slane %v2699_v31, 7  ;;  %v3319_v25 = vld [vmem:[#allocation50_spill] sm:$0xff] }
  0x97   : > { %v1237_v26 = vadd.f32 %v2678_v2, %v1173_v8  ;;  %v2720_v41 = vmul.f32 0.75, %v2699_v31  ;;  %v995_v16 = vrot.slane %v2703_v40, 7  ;;  %v1054_v6 = vsel %vm514_vm0, %v2692_v56, %v992_v29 }
  0x98   : > { %3310 = vst [vmem:[#allocation41_spill] sm:$0xff] %v2711_v7  ;;  %v1238_v61 = vadd.f32 %v2682_v12, %v1174_v37  ;;  %v2727_v63 = vmul.f32 0.75, %v2703_v40  ;;  %v996_v54 = vrot.slane %v2715_v18, 7  ;;  %v1175_v57 = vmul.f32 0.25, %v1054_v6 }
  0x99   : > { %3313 = vst [vmem:[#allocation42_spill] sm:$0xff] %v2720_v41  ;;  %1333 = vst.msk [vmem:[%s2507_s5 + $0x80] sm:$0xff] %vm868_vm1, %v1237_v26  ;;  %v994_v4 = vsel %vm514_vm0, %v992_v29, %v993_v5  ;;  %v1055_v33 = vsel %vm514_vm0, %v2703_v40, %v995_v16  ;;  %v2736_v58 = vmul.f32 0.75, %v2715_v18  ;;  %v2743_v20 = vadd.f32 %v3317_v55, %v3316_v22  ;;  %v3318_v29 = vld [vmem:[#allocation63_spill] sm:$0xff]  ;;  %v3321_v26 = vld [vmem:[#allocation66_spill] sm:$0xff] }
  0x9a   : > { %3314 = vst [vmem:[#allocation52_spill] sm:$0xff] %v2727_v63  ;;  %1334 = vst.msk [vmem:[%s2507_s5 + $0x88] sm:$0xff] %vm868_vm1, %v1238_v61  ;;  %v1176_v36 = vmul.f32 0.25, %v994_v4  ;;  %v1177_v8 = vmul.f32 0.25, %v1055_v33  ;;  %v997_v19 = vsel %vm514_vm0, %v995_v16, %v996_v54  ;;  %v1239_v11 = vadd.f32 %v2711_v7, %v1175_v57  ;;  %v3322_v5 = vld [vmem:[#allocation53_spill] sm:$0xff]  ;;  %v3327_v55 = vld [vmem:[#allocation71_spill] sm:$0xff] }
  0x9b   : > { %3315 = vst [vmem:[#allocation46_spill] sm:$0xff] %v2736_v58  ;;  %v1178_v37 = vmul.f32 0.25, %v997_v19  ;;  %v2748_v46 = vadd.f32 %v3319_v25, %v3318_v29  ;;  %v2752_v61 = vadd.f32 %v3322_v5, %v3321_v26  ;;  %v998_v54 = vrot.slane %v2743_v20, 7  ;;  %v3330_v29 = vld [vmem:[#allocation73_spill] sm:$0xff]  ;;  %v3331_v25 = vld [vmem:[#allocation60_spill] sm:$0xff] }
  0x9c   : > { %v1240_v6 = vadd.f32 %v2720_v41, %v1176_v36  ;;  %v1241_v16 = vadd.f32 %v2727_v63, %v1177_v8  ;;  %v2758_v4 = vmul.f32 0.75, %v2743_v20  ;;  %1335 = vst.msk [vmem:[%s2507_s5 + $0x90] sm:$0xff] %vm868_vm1, %v1239_v11  ;;  %v3328_v11 = vld [vmem:[#allocation55_spill] sm:$0xff]  ;;  %v2783_v26 = vadd.f32 %v3331_v25, %v3330_v29  ;;  %v3333_v63 = vld [vmem:[#allocation64_spill] sm:$0xff] }
  0x9d   : > { %3320 = vst [vmem:[#allocation48_spill] sm:$0xff] %v2748_v46  ;;  %3323 = vst [vmem:[#allocation57_spill] sm:$0xff] %v2752_v61  ;;  %v1242_v57 = vadd.f32 %v2736_v58, %v1178_v37  ;;  %v999_v33 = vrot.slane %v2748_v46, 7  ;;  %v2765_v19 = vmul.f32 0.75, %v2748_v46  ;;  %v1001_v22 = vrot.slane %v2752_v61, 7  ;;  %v3332_v58 = vld [vmem:[#allocation76_spill] sm:$0xff] }
  0x9e   : > { %3324 = vst [vmem:[#allocation58_spill] sm:$0xff] %v2758_v4  ;;  %1336 = vst.msk [vmem:[%s2507_s5 + $0x98] sm:$0xff] %vm868_vm1, %v1240_v6  ;;  %v1056_v36 = vsel %vm514_vm0, %v2743_v20, %v998_v54  ;;  %v2775_v8 = vmul.f32 0.75, %v2752_v61  ;;  %v2779_v37 = vadd.f32 %v3328_v11, %v3327_v55  ;;  %v2792_v41 = vadd.f32 %v3333_v63, %v3332_v58 }
  0x9f   : > { %3325 = vst [vmem:[#allocation65_spill] sm:$0xff] %v2765_v19  ;;  %1337 = vst.msk [vmem:[%s2507_s5 + $0xa0] sm:$0xff] %vm868_vm1, %v1241_v16  ;;  %v1179_v5 = vmul.f32 0.25, %v1056_v36  ;;  %v1000_v6 = vsel %vm514_vm0, %v998_v54, %v999_v33  ;;  %v1057_v16 = vsel %vm514_vm0, %v2752_v61, %v1001_v22  ;;  %v1004_v54 = vrot.slane %v2783_v26, 7 }
  0xa0   : > { %3326 = vst [vmem:[#allocation49_spill] sm:$0xff] %v2775_v8  ;;  %3329 = vst [vmem:[#allocation56_spill] sm:$0xff] %v2779_v37  ;;  %v1180_v7 = vmul.f32 0.25, %v1000_v6  ;;  %v1181_v55 = vmul.f32 0.25, %v1057_v16  ;;  %v1002_v11 = vrot.slane %v2779_v37, 7  ;;  %v2796_v29 = vmul.f32 0.75, %v2779_v37 }
  0xa1   : > { %1338 = vst.msk [vmem:[%s2507_s5 + $0xa8] sm:$0xff] %vm868_vm1, %v1242_v57  ;;  %3334 = vst [vmem:[#allocation61_spill] sm:$0xff] %v2792_v41  ;;  %v1243_v57 = vadd.f32 %v2758_v4, %v1179_v5  ;;  %v2801_v33 = vmul.f32 0.75, %v2783_v26  ;;  %v1005_v36 = vrot.slane %v2792_v41, 7  ;;  %v2808_v6 = vmul.f32 0.75, %v2792_v41  ;;  %v3338_v37 = vld [vmem:[#allocation67_spill] sm:$0xff] }
  0xa2   : > { %3335 = vst [vmem:[#allocation62_spill] sm:$0xff] %v2796_v29  ;;  %v1244_v63 = vadd.f32 %v2765_v19, %v1180_v7  ;;  %v1245_v58 = vadd.f32 %v2775_v8, %v1181_v55  ;;  %v1003_v25 = vsel %vm514_vm0, %v1001_v22, %v1002_v11  ;;  %v1058_v5 = vsel %vm514_vm0, %v2783_v26, %v1004_v54  ;;  %v3340_v55 = vld [vmem:[#allocation69_spill] sm:$0xff] }
  0xa3   : > { %3336 = vst [vmem:[#allocation70_spill] sm:$0xff] %v2801_v33  ;;  %3337 = vst [vmem:[#allocation6_spill] sm:$0xff] %v2808_v6  ;;  %v1182_v16 = vmul.f32 0.25, %v1003_v25  ;;  %v1006_v4 = vsel %vm514_vm0, %v1004_v54, %v1005_v36  ;;  %v3339_v61 = vmax.f32 %v3338_v37, 0.0  ;;  %v1183_v7 = vmul.f32 0.25, %v1058_v5  ;;  %v3342_v54 = vld [vmem:[#allocation68_spill] sm:$0xff] }
  0xa4   : > { %1339 = vst.msk [vmem:[%s2507_s5 + $0xb0] sm:$0xff] %vm868_vm1, %v1243_v57  ;;  %1340 = vst.msk [vmem:[%s2507_s5 + $0xb8] sm:$0xff] %vm868_vm1, %v1244_v63  ;;  %v1184_v22 = vmul.f32 0.25, %v1006_v4  ;;  %v3341_v11 = vmax.f32 %v3340_v55, 0.0  ;;  %v1061_v25 = vrot.slane %v2455_v62, 1  ;;  %v3344_v37 = vld [vmem:[#allocation75_spill] sm:$0xff] }
  0xa5   : > { %v448_v46 = vmul.f32 0.25, %v3339_v61  ;;  %1341 = vst.msk [vmem:[%s2507_s5 + $0xc0] sm:$0xff] %vm868_vm1, %v1245_v58  ;;  %v1246_v8 = vadd.f32 %v2796_v29, %v1182_v16  ;;  %v1062_v63 = vrot.slane %v2459_v24, 1  ;;  %v1247_v58 = vadd.f32 %v2801_v33, %v1183_v7  ;;  %v3346_v5 = vld [vmem:[#allocation72_spill] sm:$0xff] }
  0xa6   : > { %v449_v57 = vmul.f32 0.25, %v3341_v11  ;;  %v1248_v4 = vadd.f32 %v2808_v6, %v1184_v22  ;;  %v3348_v11 = vld [vmem:[#allocation77_spill] sm:$0xff] }
  0xa7   : > { %v2826_v36 = vadd.f32 %v448_v46, %v3342_v54  ;;  %v2829_v61 = vadd.f32 %v448_v46, %v3344_v37  ;;  %1342 = vst.msk [vmem:[%s2507_s5 + $0xc8] sm:$0xff] %vm868_vm1, %v1246_v8  ;;  %1343 = vst.msk [vmem:[%s2507_s5 + $0xd0] sm:$0xff] %vm868_vm1, %v1247_v58  ;;  %v1063_v58 = vsel %vm611_vm2, %v1061_v25, %v1062_v63 }
  0xa8   : > { %v2835_v55 = vadd.f32 %v449_v57, %v3346_v5  ;;  %v2838_v19 = vadd.f32 %v449_v57, %v3348_v11  ;;  %1344 = vst.msk [vmem:[%s2507_s5 + $0xd8] sm:$0xff] %vm868_vm1, %v1248_v4  ;;  %v1141_v4 = vsel %vm611_vm2, %v1062_v63, %v2459_v24  ;;  %v1253_v41 = vmul.f32 0.25, %v1063_v58 }
  0xa9   : > { %3343 = vst [vmem:[#allocation2_spill] sm:$0xff] %v2826_v36  ;;  %3345 = vst [vmem:[#allocation8_spill] sm:$0xff] %v2829_v61  ;;  %v1007_v62 = vrot.slane %v2826_v36, 7  ;;  %v2844_v16 = vmul.f32 0.75, %v2826_v36  ;;  %v1010_v46 = vrot.slane %v2829_v61, 7  ;;  %v2848_v54 = vmul.f32 0.75, %v2829_v61 }
  0xaa   : > { %3347 = vst [vmem:[#allocation3_spill] sm:$0xff] %v2835_v55  ;;  %3349 = vst [vmem:[#allocation74_spill] sm:$0xff] %v2838_v19  ;;  %v1008_v7 = vrot.slane %v2835_v55, 7  ;;  %v2856_v22 = vmul.f32 0.75, %v2835_v55  ;;  %v1011_v8 = vrot.slane %v2838_v19, 7  ;;  %v2860_v57 = vmul.f32 0.75, %v2838_v19 }
  0xab   : > { %v1059_v37 = vsel %vm514_vm0, %v2826_v36, %v1007_v62  ;;  %v1060_v5 = vsel %vm514_vm0, %v2829_v61, %v1010_v46  ;;  %v1254_v36 = vmul.f32 0.25, %v1141_v4  ;;  %v1064_v24 = vrot.slane %v2484_v14, 1 }
  0xac   : > { %v1185_v11 = vmul.f32 0.25, %v1059_v37  ;;  %v1009_v6 = vsel %vm514_vm0, %v1007_v62, %v1008_v7  ;;  %v1187_v33 = vmul.f32 0.25, %v1060_v5  ;;  %v1012_v19 = vsel %vm514_vm0, %v1010_v46, %v1011_v8 }
  0xad   : > { %v1186_v29 = vmul.f32 0.25, %v1009_v6  ;;  %v1188_v55 = vmul.f32 0.25, %v1012_v19  ;;  %v1065_v6 = vrot.slane %v2493_v42, 1  ;;  %v1285_v62 = vadd.f32 %v1253_v41, %v2470_v3 }
  0xae   : > { %v1249_v61 = vadd.f32 %v2844_v16, %v1185_v11  ;;  %v1251_v25 = vadd.f32 %v2848_v54, %v1187_v33  ;;  %v1286_v46 = vadd.f32 %v1254_v36, %v2476_v21  ;;  %v1067_v14 = vrot.slane %v2497_v53, 1 }
  0xaf   : > { %v1250_v19 = vadd.f32 %v2856_v22, %v1186_v29  ;;  %v1252_v63 = vadd.f32 %v2860_v57, %v1188_v55  ;;  %v1066_v33 = vsel %vm611_vm2, %v1064_v24, %v1065_v6  ;;  %v1142_v7 = vsel %vm611_vm2, %v1065_v6, %v2493_v42  ;;  %1349 = vst.msk [vmem:[%s2877_s8] sm:$0xff] %vm868_vm1, %v1285_v62 }
  0xb0   : > { %1345 = vst.msk [vmem:[%s2507_s5 + $0xe0] sm:$0xff] %vm868_vm1, %v1249_v61  ;;  %1347 = vst.msk [vmem:[%s2507_s5 + $0xf0] sm:$0xff] %vm868_vm1, %v1251_v25  ;;  %v1068_v8 = vrot.slane %v2515_v44, 1  ;;  %v1255_v3 = vmul.f32 0.25, %v1066_v33  ;;  %v1256_v21 = vmul.f32 0.25, %v1142_v7  ;;  %v1070_v41 = vrot.slane %v2543_v28, 1 }
  0xb1   : > { %1346 = vst.msk [vmem:[%s2507_s5 + $0xe8] sm:$0xff] %vm868_vm1, %v1250_v19  ;;  %1348 = vst.msk [vmem:[%s2507_s5 + $0xf8] sm:$0xff] %vm868_vm1, %v1252_v63  ;;  %v1071_v42 = vrot.slane %v2548_v60, 1  ;;  %v1073_v36 = vrot.slane %v2552_v10, 1  ;;  %v1074_v61 = vrot.slane %v2579_v0, 1  ;;  %v1077_v19 = vrot.slane %v2592_v35, 1 }
  0xb2   : > { %1350 = vst.msk [vmem:[%s2877_s8 + $0x8] sm:$0xff] %vm868_vm1, %v1286_v46  ;;  %v1069_v53 = vsel %vm611_vm2, %v1067_v14, %v1068_v8  ;;  %v1143_v29 = vsel %vm611_vm2, %v1068_v8, %v2515_v44  ;;  %v1287_v55 = vadd.f32 %v1255_v3, %v2511_v27  ;;  %v1288_v37 = vadd.f32 %v1256_v21, %v2520_v30 }
  0xb3   : > { %v1257_v5 = vmul.f32 0.25, %v1069_v53  ;;  %v1258_v58 = vmul.f32 0.25, %v1143_v29  ;;  %v1072_v28 = vsel %vm611_vm2, %v1070_v41, %v1071_v42  ;;  %v1144_v4 = vsel %vm611_vm2, %v1071_v42, %v2548_v60 }
  0xb4   : > { %v1075_v11 = vsel %vm611_vm2, %v1073_v36, %v1074_v61  ;;  %v1145_v44 = vsel %vm611_vm2, %v1074_v61, %v2579_v0  ;;  %1351 = vst.msk [vmem:[%s2877_s8 + $0x10] sm:$0xff] %vm868_vm1, %v1287_v55  ;;  %1352 = vst.msk [vmem:[%s2877_s8 + $0x18] sm:$0xff] %vm868_vm1, %v1288_v37  ;;  %v1259_v10 = vmul.f32 0.25, %v1072_v28  ;;  %v1260_v25 = vmul.f32 0.25, %v1144_v4 }
  0xb5   : > { %v1289_v27 = vadd.f32 %v1257_v5, %v2527_v32  ;;  %v1290_v30 = vadd.f32 %v1258_v58, %v2536_v38  ;;  %v1261_v24 = vmul.f32 0.25, %v1075_v11  ;;  %v1262_v6 = vmul.f32 0.25, %v1145_v44  ;;  %v3350_v11 = vld [vmem:[#allocation48_spill] sm:$0xff] }
  0xb6   : > { %v1076_v60 = vrot.slane %v2583_v17, 1  ;;  %v1291_v32 = vadd.f32 %v1259_v10, %v2558_v52  ;;  %v1292_v38 = vadd.f32 %v1260_v25, %v2565_v15  ;;  %v1079_v0 = vrot.slane %v2617_v34, 1  ;;  %v3352_v10 = vld [vmem:[#allocation42_spill] sm:$0xff] }
  0xb7   : > { %1353 = vst.msk [vmem:[%s2877_s8 + $0x20] sm:$0xff] %vm868_vm1, %v1289_v27  ;;  %1354 = vst.msk [vmem:[%s2877_s8 + $0x28] sm:$0xff] %vm868_vm1, %v1290_v30  ;;  %v1080_v63 = vrot.slane %v2625_v9, 1  ;;  %v1293_v62 = vadd.f32 %v1261_v24, %v2575_v1  ;;  %v1294_v17 = vadd.f32 %v1262_v6, %v2596_v51  ;;  %v1146_v33 = vsel %vm611_vm2, %v1077_v19, %v2592_v35  ;;  %v3351_v27 = vld [vmem:[#allocation41_spill] sm:$0xff] }
  0xb8   : > { %v1078_v46 = vsel %vm611_vm2, %v1076_v60, %v1077_v19  ;;  %1355 = vst.msk [vmem:[%s2877_s8 + $0x30] sm:$0xff] %vm868_vm1, %v1291_v32  ;;  %1356 = vst.msk [vmem:[%s2877_s8 + $0x38] sm:$0xff] %vm868_vm1, %v1292_v38  ;;  %v1264_v7 = vmul.f32 0.25, %v1146_v33  ;;  %v1082_v35 = vrot.slane %v2629_v13, 1  ;;  %v1083_v14 = vrot.slane %v2638_v48, 1  ;;  %v3353_v24 = vld [vmem:[#allocation57_spill] sm:$0xff] }
  0xb9   : > { %v1263_v52 = vmul.f32 0.25, %v1078_v46  ;;  %v1081_v15 = vsel %vm611_vm2, %v1079_v0, %v1080_v63  ;;  %v1147_v34 = vsel %vm611_vm2, %v1080_v63, %v2625_v9  ;;  %1357 = vst.msk [vmem:[%s2877_s8 + $0x40] sm:$0xff] %vm868_vm1, %v1293_v62  ;;  %1358 = vst.msk [vmem:[%s2877_s8 + $0x48] sm:$0xff] %vm868_vm1, %v1294_v17  ;;  %v1085_v21 = vrot.slane %v2665_v49, 1  ;;  %v3355_v19 = vld [vmem:[#allocation52_spill] sm:$0xff]  ;;  %v3356_v38 = vld [vmem:[#allocation46_spill] sm:$0xff] }
  0xba   : > { %v1265_v1 = vmul.f32 0.25, %v1081_v15  ;;  %v1266_v51 = vmul.f32 0.25, %v1147_v34  ;;  %v1296_v3 = vadd.f32 %v1264_v7, %v2608_v39  ;;  %v1086_v9 = vrot.slane %v2672_v45, 1  ;;  %v3357_v34 = vld [vmem:[#allocation61_spill] sm:$0xff] }
  0xbb   : > { %v1295_v8 = vadd.f32 %v1263_v52, %v2601_v50  ;;  %v1084_v53 = vsel %vm611_vm2, %v1082_v35, %v1083_v14  ;;  %v1148_v13 = vsel %vm611_vm2, %v1083_v14, %v2638_v48  ;;  %v1088_v48 = vrot.slane %v2692_v56, 1  ;;  %v3359_v14 = vld [vmem:[#allocation65_spill] sm:$0xff] }
  0xbc   : > { %v1297_v41 = vadd.f32 %v1265_v1, %v2634_v23  ;;  %v1298_v42 = vadd.f32 %v1266_v51, %v2644_v43  ;;  %1360 = vst.msk [vmem:[%s2877_s8 + $0x58] sm:$0xff] %vm868_vm1, %v1296_v3  ;;  %v1267_v50 = vmul.f32 0.25, %v1084_v53  ;;  %v1268_v29 = vmul.f32 0.25, %v1148_v13  ;;  %v3358_v51 = vld [vmem:[#allocation58_spill] sm:$0xff] }
  0xbd   : > { %1359 = vst.msk [vmem:[%s2877_s8 + $0x50] sm:$0xff] %vm868_vm1, %v1295_v8  ;;  %v1087_v39 = vsel %vm611_vm2, %v1085_v21, %v1086_v9  ;;  %v1149_v49 = vsel %vm611_vm2, %v1086_v9, %v2672_v45  ;;  %v1089_v36 = vrot.slane %v2699_v31, 1  ;;  %v1091_v37 = vrot.slane %v2703_v40, 1  ;;  %v3360_v3 = vld [vmem:[#allocation2_spill] sm:$0xff]  ;;  %v3361_v9 = vld [vmem:[#allocation3_spill] sm:$0xff] }
  0xbe   : > { %1361 = vst.msk [vmem:[%s2877_s8 + $0x60] sm:$0xff] %vm868_vm1, %v1297_v41  ;;  %1362 = vst.msk [vmem:[%s2877_s8 + $0x68] sm:$0xff] %vm868_vm1, %v1298_v42  ;;  %v1269_v23 = vmul.f32 0.25, %v1087_v39  ;;  %v1270_v43 = vmul.f32 0.25, %v1149_v49  ;;  %v1299_v61 = vadd.f32 %v1267_v50, %v2652_v47  ;;  %v1300_v55 = vadd.f32 %v1268_v29, %v2661_v59  ;;  %v3362_v42 = vld [vmem:[#allocation49_spill] sm:$0xff]  ;;  %v3363_v13 = vld [vmem:[#allocation62_spill] sm:$0xff] }
  0xbf   : > { %v1092_v45 = vrot.slane %v2715_v18, 1  ;;  %v1090_v28 = vsel %vm611_vm2, %v1088_v48, %v1089_v36  ;;  %v1150_v56 = vsel %vm611_vm2, %v1089_v36, %v2699_v31  ;;  %v1094_v31 = vrot.slane %v2743_v20, 1 }
  0xc0   : > { %v1301_v5 = vadd.f32 %v1269_v23, %v2678_v2  ;;  %v1302_v58 = vadd.f32 %v1270_v43, %v2682_v12  ;;  %1363 = vst.msk [vmem:[%s2877_s8 + $0x70] sm:$0xff] %vm868_vm1, %v1299_v61  ;;  %1364 = vst.msk [vmem:[%s2877_s8 + $0x78] sm:$0xff] %vm868_vm1, %v1300_v55  ;;  %v1271_v47 = vmul.f32 0.25, %v1090_v28  ;;  %v1272_v4 = vmul.f32 0.25, %v1150_v56  ;;  %v3364_v61 = vld [vmem:[#allocation8_spill] sm:$0xff]  ;;  %v3367_v28 = vld [vmem:[#allocation6_spill] sm:$0xff] }
  0xc1   : > { %v1093_v59 = vsel %vm611_vm2, %v1091_v37, %v1092_v45  ;;  %v1151_v40 = vsel %vm611_vm2, %v1092_v45, %v2715_v18  ;;  %v1095_v44 = vrot.slane %v3350_v11, 1  ;;  %v1097_v6 = vrot.slane %v3353_v24, 1  ;;  %v3354_v18 = vld [vmem:[#allocation56_spill] sm:$0xff]  ;;  %v3365_v37 = vld [vmem:[#allocation74_spill] sm:$0xff] }
  0xc2   : > { %1365 = vst.msk [vmem:[%s2877_s8 + $0x80] sm:$0xff] %vm868_vm1, %v1301_v5  ;;  %1366 = vst.msk [vmem:[%s2877_s8 + $0x88] sm:$0xff] %vm868_vm1, %v1302_v58  ;;  %v1273_v2 = vmul.f32 0.25, %v1093_v59  ;;  %v1274_v12 = vmul.f32 0.25, %v1151_v40  ;;  %v1303_v30 = vadd.f32 %v1271_v47, %v3351_v27  ;;  %v1304_v25 = vadd.f32 %v1272_v4, %v3352_v10  ;;  %v3366_v5 = vld [vmem:[#allocation70_spill] sm:$0xff] }
  0xc3   : > { %v1098_v60 = vrot.slane %v3354_v18, 1  ;;  %v1096_v63 = vsel %vm611_vm2, %v1094_v31, %v1095_v44  ;;  %v1152_v20 = vsel %vm611_vm2, %v1095_v44, %v3350_v11  ;;  %v1100_v15 = vrot.slane %v2783_v26, 1 }
  0xc4   : > { %v1305_v32 = vadd.f32 %v1273_v2, %v3355_v19  ;;  %v1306_v0 = vadd.f32 %v1274_v12, %v3356_v38  ;;  %1367 = vst.msk [vmem:[%s2877_s8 + $0x90] sm:$0xff] %vm868_vm1, %v1303_v30  ;;  %1368 = vst.msk [vmem:[%s2877_s8 + $0x98] sm:$0xff] %vm868_vm1, %v1304_v25  ;;  %v1275_v62 = vmul.f32 0.25, %v1096_v63  ;;  %v1276_v17 = vmul.f32 0.25, %v1152_v20 }
  0xc5   : > { %v1099_v46 = vsel %vm611_vm2, %v1097_v6, %v1098_v60  ;;  %v1153_v33 = vsel %vm611_vm2, %v1098_v60, %v3354_v18  ;;  %v1101_v1 = vrot.slane %v3357_v34, 1  ;;  %v1103_v21 = vrot.slane %v3360_v3, 1 }
  0xc6   : > { %1369 = vst.msk [vmem:[%s2877_s8 + $0xa0] sm:$0xff] %vm868_vm1, %v1305_v32  ;;  %1370 = vst.msk [vmem:[%s2877_s8 + $0xa8] sm:$0xff] %vm868_vm1, %v1306_v0  ;;  %v1277_v52 = vmul.f32 0.25, %v1099_v46  ;;  %v1278_v7 = vmul.f32 0.25, %v1153_v33  ;;  %v1307_v35 = vadd.f32 %v1275_v62, %v3358_v51  ;;  %v1308_v8 = vadd.f32 %v1276_v17, %v3359_v14 }
  0xc7   : > { %v1104_v41 = vrot.slane %v3361_v9, 1  ;;  %v1102_v29 = vsel %vm611_vm2, %v1100_v15, %v1101_v1  ;;  %v1154_v26 = vsel %vm611_vm2, %v1101_v1, %v3357_v34  ;;  %v1106_v55 = vrot.slane %v3364_v61, 1 }
  0xc8   : > { %v1309_v53 = vadd.f32 %v1277_v52, %v3362_v42  ;;  %v1310_v50 = vadd.f32 %v1278_v7, %v3363_v13  ;;  %1371 = vst.msk [vmem:[%s2877_s8 + $0xb0] sm:$0xff] %vm868_vm1, %v1307_v35  ;;  %1372 = vst.msk [vmem:[%s2877_s8 + $0xb8] sm:$0xff] %vm868_vm1, %v1308_v8  ;;  %v1279_v39 = vmul.f32 0.25, %v1102_v29  ;;  %v1280_v49 = vmul.f32 0.25, %v1154_v26 }
  0xc9   : > { %v1105_v23 = vsel %vm611_vm2, %v1103_v21, %v1104_v41  ;;  %v1155_v43 = vsel %vm611_vm2, %v1104_v41, %v3361_v9  ;;  %v1107_v45 = vrot.slane %v3365_v37, 1 }
  0xca   : > { %1373 = vst.msk [vmem:[%s2877_s8 + $0xc0] sm:$0xff] %vm868_vm1, %v1309_v53  ;;  %1374 = vst.msk [vmem:[%s2877_s8 + $0xc8] sm:$0xff] %vm868_vm1, %v1310_v50  ;;  %v1281_v48 = vmul.f32 0.25, %v1105_v23  ;;  %v1282_v36 = vmul.f32 0.25, %v1155_v43  ;;  %v1311_v58 = vadd.f32 %v1279_v39, %v3366_v5  ;;  %v1312_v56 = vadd.f32 %v1280_v49, %v3367_v28 }
  0xcb   : > { %v1108_v59 = vsel %vm611_vm2, %v1106_v55, %v1107_v45  ;;  %v1156_v40 = vsel %vm611_vm2, %v1107_v45, %v3365_v37 }
  0xcc   : > { %v1313_v47 = vadd.f32 %v1281_v48, %v2844_v16  ;;  %v1314_v4 = vadd.f32 %v1282_v36, %v2856_v22  ;;  %1375 = vst.msk [vmem:[%s2877_s8 + $0xd0] sm:$0xff] %vm868_vm1, %v1311_v58  ;;  %1376 = vst.msk [vmem:[%s2877_s8 + $0xd8] sm:$0xff] %vm868_vm1, %v1312_v56  ;;  %v1283_v2 = vmul.f32 0.25, %v1108_v59  ;;  %v1284_v12 = vmul.f32 0.25, %v1156_v40 }
  0xce   : > { %1377 = vst.msk [vmem:[%s2877_s8 + $0xe0] sm:$0xff] %vm868_vm1, %v1313_v47  ;;  %1378 = vst.msk [vmem:[%s2877_s8 + $0xe8] sm:$0xff] %vm868_vm1, %v1314_v4  ;;  %v1315_v31 = vadd.f32 %v1283_v2, %v2848_v54  ;;  %v1316_v16 = vadd.f32 %v1284_v12, %v2860_v57 }
  0xd0   : > { %1379 = vst.msk [vmem:[%s2877_s8 + $0xf0] sm:$0xff] %vm868_vm1, %v1315_v31  ;;  %1380 = vst.msk [vmem:[%s2877_s8 + $0xf8] sm:$0xff] %vm868_vm1, %v1316_v16 }
  0xd1 PF: > { %s15_s17 = sadd.s32 1, %s1673_s17   ;;  %s3368_s15 = smov %s1669_s16 }
  0xd2   : > { %p12_p5 = scmp.ge.s32.totalorder %s15_s17, 4   ;;  %s3369_s16 = smov %s3371_s18 }
  0xd4   :  { %14 = sbr.rel (!%p12_p5) target bundleno = 2 (0x2), region = 90 }

// kernel: generator_forward.49
= control target key start
LH: loop header
LB: loop body
LE: loop exit
PB: predicated region body
PF: predicated region fallthrough
CT: control target
= control target key end

     0   :  { %s1995_s12 = smov 0   ;;  %s1997_s13 = smov 0   ;;  %s2443_s0 = inlined_call_operand.vmem [shape: bf16[2178,256], index: 0, kind: input, shape index: {}]   ;;  %s2444_s1 = inlined_call_operand.vmem [shape: bf16[256,3], index: 1, kind: input, shape index: {}]   ;;  %s2445_s2 = inlined_call_operand.vmem [shape: f32[1,3], index: 2, kind: input, shape index: {}]   ;;  %s2446_s3 = inlined_call_operand.vmem [shape: f32[2178,3], index: 3, kind: output, shape index: {}]  }
   0x1   :  { %s1999_s14 = smov 0   ;;  %s2001_s15 = smov 0  }
   0x2   :  { %s2003_s16 = smov 0  }
   0x3 LB: > { %s1428_s17 = sadd.s32 4294967295, %s1940_s16   ;;  %s32_s18 = sadd.s32 1, %s1936_s15  ;;  %s1940_s16 = sphi %s2003_s16, %s13_s16   ;;  %s1936_s15 = sphi %s2001_s15, %s2456_s15   ;;  %s1932_s14 = sphi %s1999_s14, %s2455_s14   ;;  %s1928_s13 = sphi %s1997_s13, %s2454_s13   ;;  %s1924_s12 = sphi %s1995_s12, %s2453_s12  }
   0x4   : > { %p34_p0 = scmp.ge.s32.totalorder %s32_s18, 9  ;;  %s123_s19 = sadd.s32 1, %s1928_s13 }
   0x5   : > { %p133_p1 = scmp.ne.s32.totalorder %s1928_s13, %s1924_s12  ;;  %p134_p2 = scmp.eq.s32.totalorder %s1428_s17, 8 }
   0x6   : > { %s2458_s18 = smov (%p34_p0, %s32_s18), 0  ;;  %p1434_p4 = scmp.ge.s32.totalorder %s1940_s16, 1 }
   0x7   : > { %p2027_p3 = por %p134_p2, %p133_p1  ;;  %s118_s21 = ssub.s32 %s1936_s15, %s2458_s18 }
   0x8   : > { %p201_p5 = scmp.lt.s32.totalorder %s1940_s16, 10  ;;  %p121_p6 = scmp.eq.s32.totalorder %s118_s21, 0 }
   0xa   : > { %p202_p7 = pnand %p1434_p4, %p201_p5 }
   0xb   : > { %s2036_s22 = scalar_select %p121_p6, %s1928_s13, %s123_s19  }
   0xc   : > { %205 = sbr.rel (%p202_p7) target bundleno = 383 (0x17f), region = 32  ;;  %s2042_s25 = sshll.u32 (!%p202_p7), %s1932_s14, 5 }
   0xd   : > { %p252_p8 = scmp.lt.s32.totalorder (!%p202_p7), %s2042_s25, 272  ;;  %s242_s27 = sand.u32 (!%p202_p7), 1, %s1924_s12  }
  0x11   : > { %v1742_v0 = vld [vmem:[%s2444_s1 + $0x78] sm:$0xff]   ;;  %v1744_v2 = vld [vmem:[%s2444_s1 + $0x70] sm:$0xff]   ;;  %v1746_v4 = vld [vmem:[%s2444_s1 + $0x68] sm:$0xff]   ;;  %s253_s9 = scalar_select %p252_p8, %s2042_s25, 272  ;;  %vm289_vm0 = vcmask 23552   ;;  %v1974_v48 = vmov 0.0  }
  0x12   : > { %v1743_v1 = vld [vmem:[%s2444_s1 + $0x38] sm:$0xff]   ;;  %1509 = vmatprep.subr.bf16.mxu0 %v1742_v0  ;;  %1621 = vmatprep.subr.bf16.mxu1 %v1742_v0  ;;  %v1745_v3 = vld [vmem:[%s2444_s1 + $0x30] sm:$0xff]   ;;  %v1747_v5 = vld [vmem:[%s2444_s1 + $0x28] sm:$0xff]   ;;  %290 = vst.msk [vmem:[#allocation2] sm:$0xff] %vm289_vm0, %v1974_v48  ;;  %s1046_s29 = ssub.s32 (%p2027_p3), 273, %s2042_s25  ;;  %s1506_s30 = sshll.u32 (%p2027_p3), %s1932_s14, 8 }
  0x13   : > { %1510 = vmatpush3.bf16.msra.mxu0 %v1743_v1  ;;  %1629 = vmatpush3.bf16.msra.mxu1 %v1743_v1  ;;  %v1748_v6 = vld [vmem:[%s2444_s1 + $0x60] sm:$0xff]   ;;  %s1505_s21 = sshll.u32 %s253_s9, 3  ;;  %v1750_v8 = vld [vmem:[%s2444_s1 + $0x58] sm:$0xff]   ;;  %v1752_v10 = vld [vmem:[%s2444_s1 + $0x50] sm:$0xff]   ;;  %291 = vst.msk [vmem:[#allocation2 + $0x8] sm:$0xff] %vm289_vm0, %v1974_v48  ;;  %p1047_p9 = scmp.lt.s32.totalorder (%p2027_p3), %s1046_s29, 32 }
  0x14   : > { %1511 = vmatprep.subr.bf16.mxu0 %v1744_v2  ;;  %1622 = vmatprep.subr.bf16.mxu1 %v1744_v2  ;;  %v1749_v7 = vld [vmem:[%s2444_s1 + $0x20] sm:$0xff]   ;;  %s2073_s28 = scalar_lea.vmem %s2443_s0, %s1505_s21  ;;  %v1751_v9 = vld [vmem:[%s2444_s1 + $0x18] sm:$0xff]   ;;  %v1753_v13 = vld [vmem:[%s2444_s1 + $0x10] sm:$0xff]   ;;  %292 = vst.msk [vmem:[#allocation2 + $0x10] sm:$0xff] %vm289_vm0, %v1974_v48  ;;  %s2306_s6 = scalar_lea.vmem (%p2027_p3), %s2446_s3, %s1506_s30  }
  0x15   : > { %v1760_v11 = vld [vmem:[%s2073_s28 + $0x4] ss:$8 sps:$4 sm:$0xff]   ;;  %v1758_v18 = vld [vmem:[%s2073_s28] ss:$8 sps:$4 sm:$0xff]   ;;  %v1764_v20 = vld [vmem:[%s2073_s28 + $0x14] ss:$8 sps:$4 sm:$0xff]  }
  0x16   : > { %v1763_v12 = vld [vmem:[%s2073_s28 + $0x84] ss:$8 sps:$4 sm:$0xff]   ;;  %706 = vmatprep.mubr.bf16.mxu0 %v1760_v11  ;;  %v1761_v19 = vld [vmem:[%s2073_s28 + $0x80] ss:$8 sps:$4 sm:$0xff]   ;;  %v1766_v21 = vld [vmem:[%s2073_s28 + $0x94] ss:$8 sps:$4 sm:$0xff]  }
  0x17   : > { %1512 = vmatpush3.bf16.msra.mxu0 %v1745_v3  ;;  %1630 = vmatpush3.bf16.msra.mxu1 %v1745_v3  ;;  %v1754_v14 = vld [vmem:[%s2444_s1 + $0x48] sm:$0xff]   ;;  %v1756_v16 = vld [vmem:[%s2444_s1 + $0x40] sm:$0xff]   ;;  %v1768_v22 = vld [vmem:[%s2073_s28 + $0x10] ss:$8 sps:$4 sm:$0xff]   ;;  %293 = vst.msk [vmem:[#allocation2 + $0x18] sm:$0xff] %vm289_vm0, %v1974_v48 }
  0x18   : > { %1513 = vmatprep.subr.bf16.mxu0 %v1746_v4  ;;  %1623 = vmatprep.subr.bf16.mxu1 %v1746_v4  ;;  %v1755_v15 = vld [vmem:[%s2444_s1 + $0x8] sm:$0xff]   ;;  %v1757_v17 = vld [vmem:[%s2444_s1] sm:$0xff]   ;;  %v1769_v23 = vld [vmem:[%s2073_s28 + $0x90] ss:$8 sps:$4 sm:$0xff]   ;;  %294 = vst.msk [vmem:[#allocation2 + $0x20] sm:$0xff] %vm289_vm0, %v1974_v48 }
  0x19   : > { %770 = vmatprep.mubr.bf16.mxu1 %v1763_v12  ;;  %v1770_v24 = vld [vmem:[%s2073_s28 + $0x24] ss:$8 sps:$4 sm:$0xff]   ;;  %v1774_v26 = vld [vmem:[%s2073_s28 + $0x20] ss:$8 sps:$4 sm:$0xff]   ;;  %v1776_v28 = vld [vmem:[%s2073_s28 + $0x34] ss:$8 sps:$4 sm:$0xff]  }
  0x1a   : > { %v1772_v25 = vld [vmem:[%s2073_s28 + $0xa4] ss:$8 sps:$4 sm:$0xff]   ;;  %v1775_v27 = vld [vmem:[%s2073_s28 + $0xa0] ss:$8 sps:$4 sm:$0xff]   ;;  %v1778_v29 = vld [vmem:[%s2073_s28 + $0xb4] ss:$8 sps:$4 sm:$0xff]  }
  0x1b   : > { %1514 = vmatpush3.bf16.msra.mxu0 %v1747_v5  ;;  %1631 = vmatpush3.bf16.msra.mxu1 %v1747_v5  ;;  %v1780_v30 = vld [vmem:[%s2073_s28 + $0x30] ss:$8 sps:$4 sm:$0xff]   ;;  %v1782_v32 = vld [vmem:[%s2073_s28 + $0x44] ss:$8 sps:$4 sm:$0xff]   ;;  %v1786_v34 = vld [vmem:[%s2073_s28 + $0x40] ss:$8 sps:$4 sm:$0xff]  }
  0x1c   : > { %1515 = vmatprep.subr.bf16.mxu0 %v1748_v6  ;;  %1624 = vmatprep.subr.bf16.mxu1 %v1748_v6  ;;  %v1781_v31 = vld [vmem:[%s2073_s28 + $0xb0] ss:$8 sps:$4 sm:$0xff]   ;;  %v1784_v33 = vld [vmem:[%s2073_s28 + $0xc4] ss:$8 sps:$4 sm:$0xff]   ;;  %v1787_v35 = vld [vmem:[%s2073_s28 + $0xc0] ss:$8 sps:$4 sm:$0xff]  }
  0x1d   : > { %v1788_v36 = vld [vmem:[%s2073_s28 + $0x54] ss:$8 sps:$4 sm:$0xff]   ;;  %v1792_v38 = vld [vmem:[%s2073_s28 + $0x50] ss:$8 sps:$4 sm:$0xff]   ;;  %v1794_v40 = vld [vmem:[%s2073_s28 + $0x64] ss:$8 sps:$4 sm:$0xff]  }
  0x1e   : > { %v1790_v37 = vld [vmem:[%s2073_s28 + $0xd4] ss:$8 sps:$4 sm:$0xff]   ;;  %v1793_v39 = vld [vmem:[%s2073_s28 + $0xd0] ss:$8 sps:$4 sm:$0xff]   ;;  %v1796_v41 = vld [vmem:[%s2073_s28 + $0xe4] ss:$8 sps:$4 sm:$0xff]  }
  0x1f   : > { %1516 = vmatpush3.bf16.msra.mxu0 %v1749_v7  ;;  %1632 = vmatpush3.bf16.msra.mxu1 %v1749_v7  ;;  %v1798_v42 = vld [vmem:[%s2073_s28 + $0x60] ss:$8 sps:$4 sm:$0xff]   ;;  %v1800_v44 = vld [vmem:[%s2073_s28 + $0x74] ss:$8 sps:$4 sm:$0xff]   ;;  %v1804_v46 = vld [vmem:[%s2073_s28 + $0x70] ss:$8 sps:$4 sm:$0xff]  }
  0x20   : > { %1517 = vmatprep.subr.bf16.mxu0 %v1750_v8  ;;  %1625 = vmatprep.subr.bf16.mxu1 %v1750_v8  ;;  %v1799_v43 = vld [vmem:[%s2073_s28 + $0xe0] ss:$8 sps:$4 sm:$0xff]   ;;  %v1802_v45 = vld [vmem:[%s2073_s28 + $0xf4] ss:$8 sps:$4 sm:$0xff]   ;;  %v1805_v47 = vld [vmem:[%s2073_s28 + $0xf0] ss:$8 sps:$4 sm:$0xff]  }
  0x21   : > { %295 = vst.msk [vmem:[#allocation2 + $0x28] sm:$0xff] %vm289_vm0, %v1974_v48  ;;  %296 = vst.msk [vmem:[#allocation2 + $0x30] sm:$0xff] %vm289_vm0, %v1974_v48  ;;  %v354_v51 = vld [vmem:[#allocation2] sm:$0xff]  ;;  %v355_v61 = vld [vmem:[#allocation2 + $0x8] sm:$0xff]  ;;  %s2182_s28 = sshll.u32 %s242_s27, 8 }
  0x22   : > { %297 = vst.msk [vmem:[#allocation2 + $0x38] sm:$0xff] %vm289_vm0, %v1974_v48  ;;  %298 = vst.msk [vmem:[#allocation2 + $0x40] sm:$0xff] %vm289_vm0, %v1974_v48  ;;  %v356_v7 = vld [vmem:[#allocation2 + $0x10] sm:$0xff]  ;;  %s2189_s12 = scalar_lea.vmem [#allocation3], %s2182_s28  }
  0x23   : > { %1518 = vmatpush3.bf16.msra.mxu0 %v1751_v9  ;;  %1633 = vmatpush3.bf16.msra.mxu1 %v1751_v9  ;;  %299 = vst.msk [vmem:[#allocation2 + $0x48] sm:$0xff] %vm289_vm0, %v1974_v48  ;;  %300 = vst.msk [vmem:[#allocation2 + $0x50] sm:$0xff] %vm289_vm0, %v1974_v48 }
  0x24   : > { %1519 = vmatprep.subr.bf16.mxu0 %v1752_v10  ;;  %1626 = vmatprep.subr.bf16.mxu1 %v1752_v10  ;;  %301 = vst.msk [vmem:[#allocation2 + $0x58] sm:$0xff] %vm289_vm0, %v1974_v48  ;;  %302 = vst.msk [vmem:[#allocation2 + $0x60] sm:$0xff] %vm289_vm0, %v1974_v48 }
  0x25   : > { %303 = vst.msk [vmem:[#allocation2 + $0x68] sm:$0xff] %vm289_vm0, %v1974_v48  ;;  %304 = vst.msk [vmem:[#allocation2 + $0x70] sm:$0xff] %vm289_vm0, %v1974_v48 }
  0x26   : > { %305 = vst.msk [vmem:[#allocation2 + $0x78] sm:$0xff] %vm289_vm0, %v1974_v48  ;;  %306 = vst.msk [vmem:[#allocation2 + $0x80] sm:$0xff] %vm289_vm0, %v1974_v48 }
  0x27   : > { %1520 = vmatpush3.bf16.msra.mxu0 %v1753_v13  ;;  %1634 = vmatpush3.bf16.msra.mxu1 %v1753_v13  ;;  %307 = vst.msk [vmem:[#allocation2 + $0x88] sm:$0xff] %vm289_vm0, %v1974_v48  ;;  %308 = vst.msk [vmem:[#allocation2 + $0x90] sm:$0xff] %vm289_vm0, %v1974_v48  ;;  %v2167_v13 = vld [vmem:[%s2445_s2] ss:$0 sm:$0xff] }
  0x28   : > { %1521 = vmatprep.subr.bf16.mxu0 %v1754_v14  ;;  %1627 = vmatprep.subr.bf16.mxu1 %v1754_v14  ;;  %309 = vst.msk [vmem:[#allocation2 + $0x98] sm:$0xff] %vm289_vm0, %v1974_v48  ;;  %310 = vst.msk [vmem:[#allocation2 + $0xa0] sm:$0xff] %vm289_vm0, %v1974_v48 }
  0x29   : > { %311 = vst.msk [vmem:[#allocation2 + $0xa8] sm:$0xff] %vm289_vm0, %v1974_v48  ;;  %312 = vst.msk [vmem:[#allocation2 + $0xb0] sm:$0xff] %vm289_vm0, %v1974_v48 }
  0x2a   : > { %313 = vst.msk [vmem:[#allocation2 + $0xb8] sm:$0xff] %vm289_vm0, %v1974_v48  ;;  %314 = vst.msk [vmem:[#allocation2 + $0xc0] sm:$0xff] %vm289_vm0, %v1974_v48 }
  0x2b   : > { %1522 = vmatpush3.bf16.msra.mxu0 %v1755_v15  ;;  %1635 = vmatpush3.bf16.msra.mxu1 %v1755_v15  ;;  %315 = vst.msk [vmem:[#allocation2 + $0xc8] sm:$0xff] %vm289_vm0, %v1974_v48  ;;  %316 = vst.msk [vmem:[#allocation2 + $0xd0] sm:$0xff] %vm289_vm0, %v1974_v48 }
  0x2c   : > { %1523 = vmatprep.subr.bf16.mxu0 %v1756_v16  ;;  %1628 = vmatprep.subr.bf16.mxu1 %v1756_v16  ;;  %317 = vst.msk [vmem:[#allocation2 + $0xd8] sm:$0xff] %vm289_vm0, %v1974_v48  ;;  %318 = vst.msk [vmem:[#allocation2 + $0xe0] sm:$0xff] %vm289_vm0, %v1974_v48 }
  0x2d   : > { %319 = vst.msk [vmem:[#allocation2 + $0xe8] sm:$0xff] %vm289_vm0, %v1974_v48  ;;  %320 = vst.msk [vmem:[#allocation2 + $0xf0] sm:$0xff] %vm289_vm0, %v1974_v48  ;;  %v370_v53 = vld [vmem:[#allocation2 + $0x80] sm:$0xff] }
  0x2e   : > { %321 = vst.msk [vmem:[#allocation2 + $0xf8] sm:$0xff] %vm289_vm0, %v1974_v48  ;;  %v371_v63 = vld [vmem:[#allocation2 + $0x88] sm:$0xff]  ;;  %v372_v9 = vld [vmem:[#allocation2 + $0x90] sm:$0xff] }
  0x2f   : > { %1524 = vmatpush3.bf16.msra.mxu0 %v1757_v17  ;;  %1636 = vmatpush3.bf16.msra.mxu1 %v1757_v17 }
  0x32   : > { %707 = vmatmul.mubr.bf16.vlgmr.msra.gmra.mxu0 %v1758_v18  ;;  %771 = vmatmul.mubr.bf16.vlgmr.msra.gmra.mxu1 %v1761_v19  ;;  %v357_v18 = vld [vmem:[#allocation2 + $0x18] sm:$0xff] }
  0x33   : > { %714 = vmatprep.mubr.bf16.mxu0 %v1764_v20  ;;  %778 = vmatprep.mubr.bf16.mxu1 %v1766_v21 }
  0x3a   : > { %715 = vmatmul.mubr.bf16.gmra.mxu0 %v1768_v22  ;;  %779 = vmatmul.mubr.bf16.gmra.mxu1 %v1769_v23  ;;  %v373_v22 = vld [vmem:[#allocation2 + $0x98] sm:$0xff] }
  0x3b   : > { %722 = vmatprep.mubr.bf16.mxu0 %v1770_v24  ;;  %786 = vmatprep.mubr.bf16.mxu1 %v1772_v25 }
  0x42   : > { %723 = vmatmul.mubr.bf16.gmra.mxu0 %v1774_v26  ;;  %787 = vmatmul.mubr.bf16.gmra.mxu1 %v1775_v27 }
  0x43   : > { %730 = vmatprep.mubr.bf16.mxu0 %v1776_v28  ;;  %794 = vmatprep.mubr.bf16.mxu1 %v1778_v29 }
  0x4a   : > { %731 = vmatmul.mubr.bf16.gmra.mxu0 %v1780_v30  ;;  %795 = vmatmul.mubr.bf16.gmra.mxu1 %v1781_v31 }
  0x4b   : > { %738 = vmatprep.mubr.bf16.mxu0 %v1782_v32  ;;  %802 = vmatprep.mubr.bf16.mxu1 %v1784_v33  ;;  %v358_v32 = vld [vmem:[#allocation2 + $0x20] sm:$0xff] }
  0x52   : > { %739 = vmatmul.mubr.bf16.gmra.mxu0 %v1786_v34  ;;  %803 = vmatmul.mubr.bf16.gmra.mxu1 %v1787_v35 }
  0x53   : > { %746 = vmatprep.mubr.bf16.mxu0 %v1788_v36  ;;  %810 = vmatprep.mubr.bf16.mxu1 %v1790_v37  ;;  %v374_v36 = vld [vmem:[#allocation2 + $0xa0] sm:$0xff] }
  0x5a   : > { %747 = vmatmul.mubr.bf16.gmra.mxu0 %v1792_v38  ;;  %811 = vmatmul.mubr.bf16.gmra.mxu1 %v1793_v39 }
  0x5b   : > { %754 = vmatprep.mubr.bf16.mxu0 %v1794_v40  ;;  %818 = vmatprep.mubr.bf16.mxu1 %v1796_v41 }
  0x62   : > { %755 = vmatmul.mubr.bf16.gmra.mxu0 %v1798_v42  ;;  %819 = vmatmul.mubr.bf16.gmra.mxu1 %v1799_v43 }
  0x63   : > { %762 = vmatprep.mubr.bf16.mxu0 %v1800_v44  ;;  %826 = vmatprep.mubr.bf16.mxu1 %v1802_v45 }
  0x6a   : > { %763 = vmatmul.mubr.bf16.gmra.mxu0 %v1804_v46  ;;  %827 = vmatmul.mubr.bf16.gmra.mxu1 %v1805_v47  ;;  %v359_v46 = vld [vmem:[#allocation2 + $0x28] sm:$0xff] }
  0xf2   : > { %v1525_v49 = vpop.f32.mrf.mxu0  ;;  %v1573_v50 = vpop.f32.mrf.mxu1 }
  0xf4   : > { %v1526_v52 = vpop.f32.mrf.mxu0  ;;  %v1574_v54 = vpop.f32.mrf.mxu1 }
  0xf5   : > { %v1527_v55 = vadd.f32 %v1526_v52, %v1525_v49  ;;  %v1575_v56 = vadd.f32 %v1574_v54, %v1573_v50  ;;  %v375_v50 = vld [vmem:[#allocation2 + $0xa8] sm:$0xff] }
  0xf6   : > { %v1528_v57 = vpop.f32.mrf.mxu0  ;;  %v1576_v58 = vpop.f32.mrf.mxu1 }
  0xf7   : > { %v835_v59 = vadd.f32 %v1527_v55, %v354_v51  ;;  %v851_v60 = vadd.f32 %v1575_v56, %v370_v53 }
  0xf8   : > { %v1529_v62 = vpop.f32.mrf.mxu0  ;;  %v1577_v0 = vpop.f32.mrf.mxu1 }
  0xf9   : > { %868 = vst.msk [vmem:[#allocation2] sm:$0xff] %vm289_vm0, %v835_v59  ;;  %884 = vst.msk [vmem:[#allocation2 + $0x80] sm:$0xff] %vm289_vm0, %v851_v60  ;;  %v1530_v1 = vadd.f32 %v1529_v62, %v1528_v57  ;;  %v1578_v2 = vadd.f32 %v1577_v0, %v1576_v58  ;;  %v360_v60 = vld [vmem:[#allocation2 + $0x30] sm:$0xff] }
  0xfa   : > { %v1531_v3 = vpop.f32.mrf.mxu0  ;;  %v1579_v4 = vpop.f32.mrf.mxu1  ;;  %v376_v0 = vld [vmem:[#allocation2 + $0xb0] sm:$0xff] }
  0xfb   : > { %v836_v5 = vadd.f32 %v1530_v1, %v355_v61  ;;  %v852_v6 = vadd.f32 %v1578_v2, %v371_v63 }
  0xfc   : > { %v1532_v8 = vpop.f32.mrf.mxu0  ;;  %v1580_v10 = vpop.f32.mrf.mxu1 }
  0xfd   : > { %869 = vst.msk [vmem:[#allocation2 + $0x8] sm:$0xff] %vm289_vm0, %v836_v5  ;;  %885 = vst.msk [vmem:[#allocation2 + $0x88] sm:$0xff] %vm289_vm0, %v852_v6  ;;  %v1533_v11 = vadd.f32 %v1532_v8, %v1531_v3  ;;  %v1581_v12 = vadd.f32 %v1580_v10, %v1579_v4  ;;  %v361_v10 = vld [vmem:[#allocation2 + $0x38] sm:$0xff] }
  0xfe   : > { %v1534_v14 = vpop.f32.mrf.mxu0  ;;  %v1582_v15 = vpop.f32.mrf.mxu1 }
  0xff   : > { %v837_v16 = vadd.f32 %v1533_v11, %v356_v7  ;;  %v853_v17 = vadd.f32 %v1581_v12, %v372_v9 }
 0x100   : > { %v903_v19 = vld [vmem:[#allocation2] sm:$0xff]  ;;  %v1535_v21 = vpop.f32.mrf.mxu0  ;;  %v1583_v23 = vpop.f32.mrf.mxu1 }
 0x101   : > { %v919_v20 = vld [vmem:[#allocation2 + $0x80] sm:$0xff]  ;;  %v942_v24 = vadd.f32 %v2167_v13, %v903_v19  ;;  %870 = vst.msk [vmem:[#allocation2 + $0x10] sm:$0xff] %vm289_vm0, %v837_v16  ;;  %886 = vst.msk [vmem:[#allocation2 + $0x90] sm:$0xff] %vm289_vm0, %v853_v17  ;;  %v1536_v26 = vadd.f32 %v1535_v21, %v1534_v14  ;;  %v1584_v27 = vadd.f32 %v1583_v23, %v1582_v15  ;;  %v377_v16 = vld [vmem:[#allocation2 + $0xb8] sm:$0xff] }
 0x102   : > { %v958_v25 = vadd.f32 %v2167_v13, %v919_v20  ;;  %v1537_v28 = vpop.f32.mrf.mxu0  ;;  %v1585_v29 = vpop.f32.mrf.mxu1 }
 0x103   : > { %1806 = vtanh.f32 %v942_v24  ;;  %v838_v30 = vadd.f32 %v1536_v26, %v357_v18  ;;  %v854_v31 = vadd.f32 %v1584_v27, %v373_v22  ;;  %v362_v27 = vld [vmem:[#allocation2 + $0x40] sm:$0xff] }
 0x104   : > { %1808 = vtanh.f32 %v958_v25  ;;  %v904_v33 = vld [vmem:[#allocation2 + $0x8] sm:$0xff]  ;;  %v1538_v35 = vpop.f32.mrf.mxu0  ;;  %v1586_v37 = vpop.f32.mrf.mxu1 }
 0x105   : > { %v920_v34 = vld [vmem:[#allocation2 + $0x88] sm:$0xff]  ;;  %v943_v38 = vadd.f32 %v2167_v13, %v904_v33  ;;  %871 = vst.msk [vmem:[#allocation2 + $0x18] sm:$0xff] %vm289_vm0, %v838_v30  ;;  %887 = vst.msk [vmem:[#allocation2 + $0x98] sm:$0xff] %vm289_vm0, %v854_v31  ;;  %v1539_v40 = vadd.f32 %v1538_v35, %v1537_v28  ;;  %v1587_v41 = vadd.f32 %v1586_v37, %v1585_v29 }
 0x106   : > { %v959_v39 = vadd.f32 %v2167_v13, %v920_v34  ;;  %v1540_v42 = vpop.f32.mrf.mxu0  ;;  %v1588_v43 = vpop.f32.mrf.mxu1 }
 0x107   : > { %1810 = vtanh.f32 %v943_v38  ;;  %v839_v44 = vadd.f32 %v1539_v40, %v358_v32  ;;  %v855_v45 = vadd.f32 %v1587_v41, %v374_v36  ;;  %v378_v32 = vld [vmem:[#allocation2 + $0xc0] sm:$0xff] }
 0x108   : > { %1812 = vtanh.f32 %v959_v39  ;;  %v905_v47 = vld [vmem:[#allocation2 + $0x10] sm:$0xff]  ;;  %v1541_v49 = vpop.f32.mrf.mxu0  ;;  %v1589_v51 = vpop.f32.mrf.mxu1 }
 0x109   : > { %v921_v48 = vld [vmem:[#allocation2 + $0x90] sm:$0xff]  ;;  %v944_v52 = vadd.f32 %v2167_v13, %v905_v47  ;;  %872 = vst.msk [vmem:[#allocation2 + $0x20] sm:$0xff] %vm289_vm0, %v839_v44  ;;  %888 = vst.msk [vmem:[#allocation2 + $0xa0] sm:$0xff] %vm289_vm0, %v855_v45  ;;  %v1542_v54 = vadd.f32 %v1541_v49, %v1540_v42  ;;  %v1590_v55 = vadd.f32 %v1589_v51, %v1588_v43  ;;  %v363_v43 = vld [vmem:[#allocation2 + $0x48] sm:$0xff] }
 0x10a   : > { %v960_v53 = vadd.f32 %v2167_v13, %v921_v48  ;;  %v1543_v56 = vpop.f32.mrf.mxu0  ;;  %v1591_v57 = vpop.f32.mrf.mxu1  ;;  %v379_v48 = vld [vmem:[#allocation2 + $0xc8] sm:$0xff] }
 0x10b   : > { %1814 = vtanh.f32 %v944_v52  ;;  %v840_v58 = vadd.f32 %v1542_v54, %v359_v46  ;;  %v856_v59 = vadd.f32 %v1590_v55, %v375_v50 }
 0x10c   : > { %1816 = vtanh.f32 %v960_v53  ;;  %v906_v61 = vld [vmem:[#allocation2 + $0x18] sm:$0xff]  ;;  %v1544_v63 = vpop.f32.mrf.mxu0  ;;  %v1592_v1 = vpop.f32.mrf.mxu1 }
 0x10d   : > { %v922_v62 = vld [vmem:[#allocation2 + $0x98] sm:$0xff]  ;;  %v945_v2 = vadd.f32 %v2167_v13, %v906_v61  ;;  %873 = vst.msk [vmem:[#allocation2 + $0x28] sm:$0xff] %vm289_vm0, %v840_v58  ;;  %889 = vst.msk [vmem:[#allocation2 + $0xa8] sm:$0xff] %vm289_vm0, %v856_v59  ;;  %v1545_v4 = vadd.f32 %v1544_v63, %v1543_v56  ;;  %v1593_v5 = vadd.f32 %v1592_v1, %v1591_v57  ;;  %v364_v59 = vld [vmem:[#allocation2 + $0x50] sm:$0xff] }
 0x10e   : > { %v961_v3 = vadd.f32 %v2167_v13, %v922_v62  ;;  %v1546_v6 = vpop.f32.mrf.mxu0  ;;  %v1594_v7 = vpop.f32.mrf.mxu1 }
 0x10f   : > { %1818 = vtanh.f32 %v945_v2  ;;  %v841_v8 = vadd.f32 %v1545_v4, %v360_v60  ;;  %v857_v9 = vadd.f32 %v1593_v5, %v376_v0  ;;  %v380_v0 = vld [vmem:[#allocation2 + $0xd0] sm:$0xff] }
 0x110   : > { %v1807_v11 = vpop.eup %1806  ;;  %1820 = vtanh.f32 %v961_v3  ;;  %v907_v12 = vld [vmem:[#allocation2 + $0x20] sm:$0xff]  ;;  %v1547_v15 = vpop.f32.mrf.mxu0 }
 0x111   : > { %v923_v14 = vld [vmem:[#allocation2 + $0xa0] sm:$0xff]  ;;  %v1595_v17 = vpop.f32.mrf.mxu1  ;;  %v1809_v18 = vpop.eup %1808  ;;  %1006 = vst.msk [vmem:[%s2189_s12] sm:$0xff] %vm289_vm0, %v1807_v11  ;;  %v946_v19 = vadd.f32 %v2167_v13, %v907_v12  ;;  %874 = vst.msk [vmem:[#allocation2 + $0x30] sm:$0xff] %vm289_vm0, %v841_v8  ;;  %v1548_v21 = vadd.f32 %v1547_v15, %v1546_v6  ;;  %v365_v11 = vld [vmem:[#allocation2 + $0x58] sm:$0xff] }
 0x112   : > { %v962_v20 = vadd.f32 %v2167_v13, %v923_v14  ;;  %890 = vst.msk [vmem:[#allocation2 + $0xb0] sm:$0xff] %vm289_vm0, %v857_v9  ;;  %v1596_v22 = vadd.f32 %v1595_v17, %v1594_v7  ;;  %1022 = vst.msk [vmem:[%s2189_s12 + $0x80] sm:$0xff] %vm289_vm0, %v1809_v18  ;;  %v1549_v23 = vpop.f32.mrf.mxu0  ;;  %v381_v17 = vld [vmem:[#allocation2 + $0xd8] sm:$0xff] }
 0x113   : > { %v1597_v24 = vpop.f32.mrf.mxu1  ;;  %1822 = vtanh.f32 %v946_v19  ;;  %v842_v25 = vadd.f32 %v1548_v21, %v361_v10 }
 0x114   : > { %v858_v26 = vadd.f32 %v1596_v22, %v377_v16  ;;  %v1811_v28 = vpop.eup %1810  ;;  %1824 = vtanh.f32 %v962_v20  ;;  %v908_v29 = vld [vmem:[#allocation2 + $0x28] sm:$0xff]  ;;  %v1550_v31 = vpop.f32.mrf.mxu0 }
 0x115   : > { %v924_v30 = vld [vmem:[#allocation2 + $0xa8] sm:$0xff]  ;;  %v1598_v33 = vpop.f32.mrf.mxu1  ;;  %v1813_v34 = vpop.eup %1812  ;;  %1007 = vst.msk [vmem:[%s2189_s12 + $0x8] sm:$0xff] %vm289_vm0, %v1811_v28  ;;  %v947_v35 = vadd.f32 %v2167_v13, %v908_v29  ;;  %875 = vst.msk [vmem:[#allocation2 + $0x38] sm:$0xff] %vm289_vm0, %v842_v25  ;;  %v1551_v37 = vadd.f32 %v1550_v31, %v1549_v23  ;;  %v366_v28 = vld [vmem:[#allocation2 + $0x60] sm:$0xff] }
 0x116   : > { %v963_v36 = vadd.f32 %v2167_v13, %v924_v30  ;;  %891 = vst.msk [vmem:[#allocation2 + $0xb8] sm:$0xff] %vm289_vm0, %v858_v26  ;;  %v1599_v38 = vadd.f32 %v1598_v33, %v1597_v24  ;;  %1023 = vst.msk [vmem:[%s2189_s12 + $0x88] sm:$0xff] %vm289_vm0, %v1813_v34  ;;  %v1552_v39 = vpop.f32.mrf.mxu0  ;;  %v382_v33 = vld [vmem:[#allocation2 + $0xe0] sm:$0xff] }
 0x117   : > { %v1600_v40 = vpop.f32.mrf.mxu1  ;;  %1826 = vtanh.f32 %v947_v35  ;;  %v843_v41 = vadd.f32 %v1551_v37, %v362_v27 }
 0x118   : > { %v859_v42 = vadd.f32 %v1599_v38, %v378_v32  ;;  %v1815_v44 = vpop.eup %1814  ;;  %1828 = vtanh.f32 %v963_v36  ;;  %v909_v45 = vld [vmem:[#allocation2 + $0x30] sm:$0xff]  ;;  %v1553_v47 = vpop.f32.mrf.mxu0 }
 0x119   : > { %v925_v46 = vld [vmem:[#allocation2 + $0xb0] sm:$0xff]  ;;  %v1601_v49 = vpop.f32.mrf.mxu1  ;;  %v1817_v50 = vpop.eup %1816  ;;  %1008 = vst.msk [vmem:[%s2189_s12 + $0x10] sm:$0xff] %vm289_vm0, %v1815_v44  ;;  %v948_v51 = vadd.f32 %v2167_v13, %v909_v45  ;;  %876 = vst.msk [vmem:[#allocation2 + $0x40] sm:$0xff] %vm289_vm0, %v843_v41  ;;  %v1554_v53 = vadd.f32 %v1553_v47, %v1552_v39  ;;  %v367_v44 = vld [vmem:[#allocation2 + $0x68] sm:$0xff] }
 0x11a   : > { %v964_v52 = vadd.f32 %v2167_v13, %v925_v46  ;;  %892 = vst.msk [vmem:[#allocation2 + $0xc0] sm:$0xff] %vm289_vm0, %v859_v42  ;;  %v1602_v54 = vadd.f32 %v1601_v49, %v1600_v40  ;;  %1024 = vst.msk [vmem:[%s2189_s12 + $0x90] sm:$0xff] %vm289_vm0, %v1817_v50  ;;  %v1555_v55 = vpop.f32.mrf.mxu0  ;;  %v383_v49 = vld [vmem:[#allocation2 + $0xe8] sm:$0xff] }
 0x11b   : > { %v1603_v56 = vpop.f32.mrf.mxu1  ;;  %1830 = vtanh.f32 %v948_v51  ;;  %v844_v57 = vadd.f32 %v1554_v53, %v363_v43 }
 0x11c   : > { %v860_v58 = vadd.f32 %v1602_v54, %v379_v48  ;;  %v1819_v60 = vpop.eup %1818  ;;  %1832 = vtanh.f32 %v964_v52  ;;  %v910_v61 = vld [vmem:[#allocation2 + $0x38] sm:$0xff]  ;;  %v1556_v63 = vpop.f32.mrf.mxu0 }
 0x11d   : > { %v926_v62 = vld [vmem:[#allocation2 + $0xb8] sm:$0xff]  ;;  %v1604_v1 = vpop.f32.mrf.mxu1  ;;  %v1821_v2 = vpop.eup %1820  ;;  %1009 = vst.msk [vmem:[%s2189_s12 + $0x18] sm:$0xff] %vm289_vm0, %v1819_v60  ;;  %v949_v3 = vadd.f32 %v2167_v13, %v910_v61  ;;  %877 = vst.msk [vmem:[#allocation2 + $0x48] sm:$0xff] %vm289_vm0, %v844_v57  ;;  %v1557_v5 = vadd.f32 %v1556_v63, %v1555_v55  ;;  %v368_v60 = vld [vmem:[#allocation2 + $0x70] sm:$0xff] }
 0x11e   : > { %v965_v4 = vadd.f32 %v2167_v13, %v926_v62  ;;  %893 = vst.msk [vmem:[#allocation2 + $0xc8] sm:$0xff] %vm289_vm0, %v860_v58  ;;  %v1605_v6 = vadd.f32 %v1604_v1, %v1603_v56  ;;  %1025 = vst.msk [vmem:[%s2189_s12 + $0x98] sm:$0xff] %vm289_vm0, %v1821_v2  ;;  %v1558_v7 = vpop.f32.mrf.mxu0  ;;  %v384_v1 = vld [vmem:[#allocation2 + $0xf0] sm:$0xff] }
 0x11f   : > { %v1606_v8 = vpop.f32.mrf.mxu1  ;;  %1834 = vtanh.f32 %v949_v3  ;;  %v845_v9 = vadd.f32 %v1557_v5, %v364_v59 }
 0x120   : > { %v861_v10 = vadd.f32 %v1605_v6, %v380_v0  ;;  %v1823_v12 = vpop.eup %1822  ;;  %1836 = vtanh.f32 %v965_v4  ;;  %v911_v14 = vld [vmem:[#allocation2 + $0x40] sm:$0xff]  ;;  %v1559_v16 = vpop.f32.mrf.mxu0 }
 0x121   : > { %v927_v15 = vld [vmem:[#allocation2 + $0xc0] sm:$0xff]  ;;  %v1607_v18 = vpop.f32.mrf.mxu1  ;;  %v1825_v19 = vpop.eup %1824  ;;  %1010 = vst.msk [vmem:[%s2189_s12 + $0x20] sm:$0xff] %vm289_vm0, %v1823_v12  ;;  %v950_v20 = vadd.f32 %v2167_v13, %v911_v14  ;;  %878 = vst.msk [vmem:[#allocation2 + $0x50] sm:$0xff] %vm289_vm0, %v845_v9  ;;  %v1560_v22 = vadd.f32 %v1559_v16, %v1558_v7  ;;  %v369_v12 = vld [vmem:[#allocation2 + $0x78] sm:$0xff] }
 0x122   : > { %v966_v21 = vadd.f32 %v2167_v13, %v927_v15  ;;  %894 = vst.msk [vmem:[#allocation2 + $0xd0] sm:$0xff] %vm289_vm0, %v861_v10  ;;  %v1608_v23 = vadd.f32 %v1607_v18, %v1606_v8  ;;  %1026 = vst.msk [vmem:[%s2189_s12 + $0xa0] sm:$0xff] %vm289_vm0, %v1825_v19  ;;  %v1561_v24 = vpop.f32.mrf.mxu0  ;;  %v385_v18 = vld [vmem:[#allocation2 + $0xf8] sm:$0xff] }
 0x123   : > { %v1609_v25 = vpop.f32.mrf.mxu1  ;;  %1838 = vtanh.f32 %v950_v20  ;;  %v846_v26 = vadd.f32 %v1560_v22, %v365_v11 }
 0x124   : > { %v862_v27 = vadd.f32 %v1608_v23, %v381_v17  ;;  %v1827_v29 = vpop.eup %1826  ;;  %1840 = vtanh.f32 %v966_v21  ;;  %v912_v30 = vld [vmem:[#allocation2 + $0x48] sm:$0xff]  ;;  %v1562_v32 = vpop.f32.mrf.mxu0 }
 0x125   : > { %v928_v31 = vld [vmem:[#allocation2 + $0xc8] sm:$0xff]  ;;  %v1610_v34 = vpop.f32.mrf.mxu1  ;;  %v1829_v35 = vpop.eup %1828  ;;  %1011 = vst.msk [vmem:[%s2189_s12 + $0x28] sm:$0xff] %vm289_vm0, %v1827_v29  ;;  %v951_v36 = vadd.f32 %v2167_v13, %v912_v30  ;;  %879 = vst.msk [vmem:[#allocation2 + $0x58] sm:$0xff] %vm289_vm0, %v846_v26  ;;  %v1563_v38 = vadd.f32 %v1562_v32, %v1561_v24 }
 0x126   : > { %v967_v37 = vadd.f32 %v2167_v13, %v928_v31  ;;  %895 = vst.msk [vmem:[#allocation2 + $0xd8] sm:$0xff] %vm289_vm0, %v862_v27  ;;  %v1611_v39 = vadd.f32 %v1610_v34, %v1609_v25  ;;  %1027 = vst.msk [vmem:[%s2189_s12 + $0xa8] sm:$0xff] %vm289_vm0, %v1829_v35  ;;  %v1564_v40 = vpop.f32.mrf.mxu0 }
 0x127   : > { %v1612_v41 = vpop.f32.mrf.mxu1  ;;  %1842 = vtanh.f32 %v951_v36  ;;  %v847_v42 = vadd.f32 %v1563_v38, %v366_v28 }
 0x128   : > { %v863_v43 = vadd.f32 %v1611_v39, %v382_v33  ;;  %v1831_v45 = vpop.eup %1830  ;;  %1844 = vtanh.f32 %v967_v37  ;;  %v913_v46 = vld [vmem:[#allocation2 + $0x50] sm:$0xff]  ;;  %v1565_v48 = vpop.f32.mrf.mxu0 }
 0x129   : > { %v929_v47 = vld [vmem:[#allocation2 + $0xd0] sm:$0xff]  ;;  %v1613_v50 = vpop.f32.mrf.mxu1  ;;  %v1833_v51 = vpop.eup %1832  ;;  %1012 = vst.msk [vmem:[%s2189_s12 + $0x30] sm:$0xff] %vm289_vm0, %v1831_v45  ;;  %v952_v52 = vadd.f32 %v2167_v13, %v913_v46  ;;  %880 = vst.msk [vmem:[#allocation2 + $0x60] sm:$0xff] %vm289_vm0, %v847_v42  ;;  %v1566_v54 = vadd.f32 %v1565_v48, %v1564_v40 }
 0x12a   : > { %v968_v53 = vadd.f32 %v2167_v13, %v929_v47  ;;  %896 = vst.msk [vmem:[#allocation2 + $0xe0] sm:$0xff] %vm289_vm0, %v863_v43  ;;  %v1614_v55 = vadd.f32 %v1613_v50, %v1612_v41  ;;  %1028 = vst.msk [vmem:[%s2189_s12 + $0xb0] sm:$0xff] %vm289_vm0, %v1833_v51  ;;  %v1567_v56 = vpop.f32.mrf.mxu0 }
 0x12b   : > { %v1615_v57 = vpop.f32.mrf.mxu1  ;;  %1846 = vtanh.f32 %v952_v52  ;;  %v848_v58 = vadd.f32 %v1566_v54, %v367_v44 }
 0x12c   : > { %v864_v59 = vadd.f32 %v1614_v55, %v383_v49  ;;  %v1835_v61 = vpop.eup %1834  ;;  %1848 = vtanh.f32 %v968_v53  ;;  %v914_v62 = vld [vmem:[#allocation2 + $0x58] sm:$0xff]  ;;  %v1568_v0 = vpop.f32.mrf.mxu0 }
 0x12d   : > { %v930_v63 = vld [vmem:[#allocation2 + $0xd8] sm:$0xff]  ;;  %v1616_v2 = vpop.f32.mrf.mxu1  ;;  %v1837_v3 = vpop.eup %1836  ;;  %1013 = vst.msk [vmem:[%s2189_s12 + $0x38] sm:$0xff] %vm289_vm0, %v1835_v61  ;;  %v953_v4 = vadd.f32 %v2167_v13, %v914_v62  ;;  %881 = vst.msk [vmem:[#allocation2 + $0x68] sm:$0xff] %vm289_vm0, %v848_v58  ;;  %v1569_v6 = vadd.f32 %v1568_v0, %v1567_v56 }
 0x12e   : > { %v969_v5 = vadd.f32 %v2167_v13, %v930_v63  ;;  %897 = vst.msk [vmem:[#allocation2 + $0xe8] sm:$0xff] %vm289_vm0, %v864_v59  ;;  %v1617_v7 = vadd.f32 %v1616_v2, %v1615_v57  ;;  %1029 = vst.msk [vmem:[%s2189_s12 + $0xb8] sm:$0xff] %vm289_vm0, %v1837_v3  ;;  %v1570_v8 = vpop.f32.mrf.mxu0 }
 0x12f   : > { %v1618_v9 = vpop.f32.mrf.mxu1  ;;  %1850 = vtanh.f32 %v953_v4  ;;  %v849_v10 = vadd.f32 %v1569_v6, %v368_v60 }
 0x130   : > { %v865_v11 = vadd.f32 %v1617_v7, %v384_v1  ;;  %v1839_v14 = vpop.eup %1838  ;;  %1852 = vtanh.f32 %v969_v5  ;;  %v915_v15 = vld [vmem:[#allocation2 + $0x60] sm:$0xff]  ;;  %v1571_v17 = vpop.f32.mrf.mxu0 }
 0x131   : > { %v931_v16 = vld [vmem:[#allocation2 + $0xe0] sm:$0xff]  ;;  %v1619_v19 = vpop.f32.mrf.mxu1  ;;  %v1841_v20 = vpop.eup %1840  ;;  %1014 = vst.msk [vmem:[%s2189_s12 + $0x40] sm:$0xff] %vm289_vm0, %v1839_v14  ;;  %v954_v21 = vadd.f32 %v2167_v13, %v915_v15  ;;  %882 = vst.msk [vmem:[#allocation2 + $0x70] sm:$0xff] %vm289_vm0, %v849_v10  ;;  %v1572_v23 = vadd.f32 %v1571_v17, %v1570_v8 }
 0x132   : > { %v970_v22 = vadd.f32 %v2167_v13, %v931_v16  ;;  %898 = vst.msk [vmem:[#allocation2 + $0xf0] sm:$0xff] %vm289_vm0, %v865_v11  ;;  %v1620_v24 = vadd.f32 %v1619_v19, %v1618_v9  ;;  %1030 = vst.msk [vmem:[%s2189_s12 + $0xc0] sm:$0xff] %vm289_vm0, %v1841_v20 }
 0x133   : > { %1854 = vtanh.f32 %v954_v21  ;;  %v850_v25 = vadd.f32 %v1572_v23, %v369_v12 }
 0x134   : > { %v866_v26 = vadd.f32 %v1620_v24, %v385_v18  ;;  %v1843_v27 = vpop.eup %1842  ;;  %1856 = vtanh.f32 %v970_v22  ;;  %v916_v28 = vld [vmem:[#allocation2 + $0x68] sm:$0xff] }
 0x135   : > { %v932_v29 = vld [vmem:[#allocation2 + $0xe8] sm:$0xff]  ;;  %v1845_v30 = vpop.eup %1844  ;;  %1015 = vst.msk [vmem:[%s2189_s12 + $0x48] sm:$0xff] %vm289_vm0, %v1843_v27  ;;  %v955_v31 = vadd.f32 %v2167_v13, %v916_v28  ;;  %883 = vst.msk [vmem:[#allocation2 + $0x78] sm:$0xff] %vm289_vm0, %v850_v25 }
 0x136   : > { %v971_v32 = vadd.f32 %v2167_v13, %v932_v29  ;;  %899 = vst.msk [vmem:[#allocation2 + $0xf8] sm:$0xff] %vm289_vm0, %v866_v26  ;;  %1031 = vst.msk [vmem:[%s2189_s12 + $0xc8] sm:$0xff] %vm289_vm0, %v1845_v30 }
 0x137   : > { %1858 = vtanh.f32 %v955_v31 }
 0x138   : > { %v1847_v33 = vpop.eup %1846  ;;  %1860 = vtanh.f32 %v971_v32  ;;  %v917_v34 = vld [vmem:[#allocation2 + $0x70] sm:$0xff] }
 0x139   : > { %v933_v35 = vld [vmem:[#allocation2 + $0xf0] sm:$0xff]  ;;  %v1849_v36 = vpop.eup %1848  ;;  %1016 = vst.msk [vmem:[%s2189_s12 + $0x50] sm:$0xff] %vm289_vm0, %v1847_v33  ;;  %v956_v37 = vadd.f32 %v2167_v13, %v917_v34 }
 0x13a   : > { %v972_v38 = vadd.f32 %v2167_v13, %v933_v35  ;;  %1032 = vst.msk [vmem:[%s2189_s12 + $0xd0] sm:$0xff] %vm289_vm0, %v1849_v36 }
 0x13b   : > { %1862 = vtanh.f32 %v956_v37 }
 0x13c   : > { %v1851_v39 = vpop.eup %1850  ;;  %1864 = vtanh.f32 %v972_v38  ;;  %v918_v40 = vld [vmem:[#allocation2 + $0x78] sm:$0xff] }
 0x13d   : > { %v934_v41 = vld [vmem:[#allocation2 + $0xf8] sm:$0xff]  ;;  %v1853_v42 = vpop.eup %1852  ;;  %1017 = vst.msk [vmem:[%s2189_s12 + $0x58] sm:$0xff] %vm289_vm0, %v1851_v39  ;;  %v957_v43 = vadd.f32 %v2167_v13, %v918_v40 }
 0x13e   : > { %v973_v44 = vadd.f32 %v2167_v13, %v934_v41  ;;  %1033 = vst.msk [vmem:[%s2189_s12 + $0xd8] sm:$0xff] %vm289_vm0, %v1853_v42 }
 0x13f   : > { %1866 = vtanh.f32 %v957_v43 }
 0x140   : > { %v1855_v45 = vpop.eup %1854  ;;  %1868 = vtanh.f32 %v973_v44 }
 0x141   : > { %v1857_v46 = vpop.eup %1856  ;;  %1018 = vst.msk [vmem:[%s2189_s12 + $0x60] sm:$0xff] %vm289_vm0, %v1855_v45 }
 0x142   : > { %1034 = vst.msk [vmem:[%s2189_s12 + $0xe0] sm:$0xff] %vm289_vm0, %v1857_v46 }
 0x144   : > { %v1859_v47 = vpop.eup %1858 }
 0x145   : > { %v1861_v48 = vpop.eup %1860  ;;  %1019 = vst.msk [vmem:[%s2189_s12 + $0x68] sm:$0xff] %vm289_vm0, %v1859_v47 }
 0x146   : > { %1035 = vst.msk [vmem:[%s2189_s12 + $0xe8] sm:$0xff] %vm289_vm0, %v1861_v48 }
 0x148   : > { %v1863_v49 = vpop.eup %1862 }
 0x149   : > { %v1865_v13 = vpop.eup %1864  ;;  %1020 = vst.msk [vmem:[%s2189_s12 + $0x70] sm:$0xff] %vm289_vm0, %v1863_v49 }
 0x14a   : > { %1036 = vst.msk [vmem:[%s2189_s12 + $0xf0] sm:$0xff] %vm289_vm0, %v1865_v13  ;;  %1044 = sbr.rel (!%p2027_p3) target bundleno = 383 (0x17f), region = 44 }
 0x14c   : > { %v1867_v50 = vpop.eup %1866 }
 0x14d   : > { %v1869_v51 = vpop.eup %1868  ;;  %1021 = vst.msk [vmem:[%s2189_s12 + $0x78] sm:$0xff] %vm289_vm0, %v1867_v50 }
 0x14e   : > { %1037 = vst.msk [vmem:[%s2189_s12 + $0xf8] sm:$0xff] %vm289_vm0, %v1869_v51 }
 0x14f   : > { %s2460_s29 = smov (!%p1047_p9, %s1046_s29), 32 }
 0x150   : > { %s1490_s7 = sshll.u32 %s2460_s29, 7 }
 0x151   : > { %p1493_p10 = scmp.eq.s32.totalorder %s1490_s7, 0 }
 0x152   : > { %s2312_s8 = sshrl.u32 (!%p1493_p10), %s2460_s29, 5 }
 0x153   : > { %1056 = sbr.rel (%p1493_p10) target bundleno = 383 (0x17f), region = 48  ;;  %p1494_p11 = scmp.le.s32.totalorder (!%p1493_p10), %s2312_s8, 0 }
 0x158   : > { %1355 = sbr.rel (%p1494_p11) target bundleno = 366 (0x16e), region = 130  ;;  %s2448_s14 = smov (!%p1494_p11), %s2306_s6 }
 0x159   : > { %s2449_s20 = smov (!%p1494_p11), %s2189_s12  ;;  %s2321_s25 = smov (!%p1494_p11), 0  }
 0x15a   : > { %s2323_s9 = smov (!%p1494_p11), 0  }
 0x15d LB: >> { %v1181_v52 = vld [vmem:[%s1948_s20] sm:$0xff]  ;;  %v1183_v53 = vld [vmem:[%s1948_s20 + $0x8] sm:$0xff]  ;;  %v1185_v54 = vld [vmem:[%s1948_s20 + $0x10] sm:$0xff]  ;;  %s1245_s10 = sadd.s32 1, %s1952_s25  ;;  %s1175_s9 = sadd.s32 1, %s1956_s9   ;;  %s1956_s9 = sphi %s2323_s9, %s1175_s9   ;;  %s1952_s25 = sphi %s2321_s25, %s2452_s25   ;;  %s1948_s20 = sphi %s2449_s20, %s2451_s20   ;;  %s1944_s14 = sphi %s2448_s14, %s2450_s14  }
 0x15e   : >> { %1182 = vst [vmem:[%s1944_s14] sm:$0xff] %v1181_v52  ;;  %1184 = vst [vmem:[%s1944_s14 + $0x8] sm:$0xff] %v1183_v53  ;;  %v1187_v55 = vld [vmem:[%s1948_s20 + $0x18] sm:$0xff]  ;;  %v1189_v56 = vld [vmem:[%s1948_s20 + $0x20] sm:$0xff]  ;;  %p1246_p12 = scmp.ge.s32.totalorder %s1245_s10, %s2312_s8  ;;  %p1174_p13 = scmp.ge.s32.totalorder %s1175_s9, %s2312_s8 }
 0x15f   : >> { %1186 = vst [vmem:[%s1944_s14 + $0x10] sm:$0xff] %v1185_v54  ;;  %v1191_v57 = vld [vmem:[%s1948_s20 + $0x28] sm:$0xff]  ;;  %1188 = vst [vmem:[%s1944_s14 + $0x18] sm:$0xff] %v1187_v55  ;;  %v1193_v58 = vld [vmem:[%s1948_s20 + $0x30] sm:$0xff] }
 0x160   : >> { %1190 = vst [vmem:[%s1944_s14 + $0x20] sm:$0xff] %v1189_v56  ;;  %1192 = vst [vmem:[%s1944_s14 + $0x28] sm:$0xff] %v1191_v57  ;;  %v1195_v59 = vld [vmem:[%s1948_s20 + $0x38] sm:$0xff]  ;;  %v1197_v60 = vld [vmem:[%s1948_s20 + $0x40] sm:$0xff]  ;;  %s2462_s10 = smov (%p1246_p12, %s1245_s10), 0 }
 0x161   : >> { %1194 = vst [vmem:[%s1944_s14 + $0x30] sm:$0xff] %v1193_v58  ;;  %1196 = vst [vmem:[%s1944_s14 + $0x38] sm:$0xff] %v1195_v59  ;;  %v1199_v61 = vld [vmem:[%s1948_s20 + $0x48] sm:$0xff]  ;;  %v1201_v62 = vld [vmem:[%s1948_s20 + $0x50] sm:$0xff]  ;;  %s1495_s11 = sshll.u32 %s2462_s10, 8  ;;  %s2452_s25 = smov %s2462_s10 }
 0x162   : >> { %1198 = vst [vmem:[%s1944_s14 + $0x40] sm:$0xff] %v1197_v60  ;;  %v1203_v63 = vld [vmem:[%s1948_s20 + $0x58] sm:$0xff]  ;;  %1200 = vst [vmem:[%s1944_s14 + $0x48] sm:$0xff] %v1199_v61  ;;  %v1205_v0 = vld [vmem:[%s1948_s20 + $0x60] sm:$0xff]  ;;  %s2379_s17 = scalar_lea.vmem %s2189_s12, %s1495_s11 [#allocation3]   ;;  %s1251_s19 = scalar_lea.vmem %s2306_s6, %s1495_s11  }
 0x163   : >> { %1202 = vst [vmem:[%s1944_s14 + $0x50] sm:$0xff] %v1201_v62  ;;  %1204 = vst [vmem:[%s1944_s14 + $0x58] sm:$0xff] %v1203_v63  ;;  %v1207_v1 = vld [vmem:[%s1948_s20 + $0x68] sm:$0xff]  ;;  %v1209_v2 = vld [vmem:[%s1948_s20 + $0x70] sm:$0xff] }
 0x164   : >> { %1206 = vst [vmem:[%s1944_s14 + $0x60] sm:$0xff] %v1205_v0  ;;  %1208 = vst [vmem:[%s1944_s14 + $0x68] sm:$0xff] %v1207_v1  ;;  %v1211_v3 = vld [vmem:[%s1948_s20 + $0x78] sm:$0xff]  ;;  %v1213_v4 = vld [vmem:[%s1948_s20 + $0x80] sm:$0xff] }
 0x165   : >> { %1210 = vst [vmem:[%s1944_s14 + $0x70] sm:$0xff] %v1209_v2  ;;  %v1215_v5 = vld [vmem:[%s1948_s20 + $0x88] sm:$0xff]  ;;  %1212 = vst [vmem:[%s1944_s14 + $0x78] sm:$0xff] %v1211_v3  ;;  %v1217_v6 = vld [vmem:[%s1948_s20 + $0x90] sm:$0xff] }
 0x166   : >> { %1214 = vst [vmem:[%s1944_s14 + $0x80] sm:$0xff] %v1213_v4  ;;  %1216 = vst [vmem:[%s1944_s14 + $0x88] sm:$0xff] %v1215_v5  ;;  %v1219_v7 = vld [vmem:[%s1948_s20 + $0x98] sm:$0xff]  ;;  %v1221_v8 = vld [vmem:[%s1948_s20 + $0xa0] sm:$0xff] }
 0x167   : >> { %1218 = vst [vmem:[%s1944_s14 + $0x90] sm:$0xff] %v1217_v6  ;;  %1220 = vst [vmem:[%s1944_s14 + $0x98] sm:$0xff] %v1219_v7  ;;  %v1223_v9 = vld [vmem:[%s1948_s20 + $0xa8] sm:$0xff]  ;;  %v1225_v10 = vld [vmem:[%s1948_s20 + $0xb0] sm:$0xff] }
 0x168   : >> { %1222 = vst [vmem:[%s1944_s14 + $0xa0] sm:$0xff] %v1221_v8  ;;  %v1227_v11 = vld [vmem:[%s1948_s20 + $0xb8] sm:$0xff]  ;;  %1224 = vst [vmem:[%s1944_s14 + $0xa8] sm:$0xff] %v1223_v9  ;;  %v1229_v12 = vld [vmem:[%s1948_s20 + $0xc0] sm:$0xff] }
 0x169   : >> { %1226 = vst [vmem:[%s1944_s14 + $0xb0] sm:$0xff] %v1225_v10  ;;  %1228 = vst [vmem:[%s1944_s14 + $0xb8] sm:$0xff] %v1227_v11  ;;  %v1231_v14 = vld [vmem:[%s1948_s20 + $0xc8] sm:$0xff]  ;;  %v1233_v15 = vld [vmem:[%s1948_s20 + $0xd0] sm:$0xff]  ;;  %1177 = sbr.rel (!%p1174_p13) target bundleno = 349 (0x15d), region = 136 }
 0x16a   : >> { %1230 = vst [vmem:[%s1944_s14 + $0xc0] sm:$0xff] %v1229_v12  ;;  %1232 = vst [vmem:[%s1944_s14 + $0xc8] sm:$0xff] %v1231_v14  ;;  %v1235_v16 = vld [vmem:[%s1948_s20 + $0xd8] sm:$0xff]  ;;  %v1237_v17 = vld [vmem:[%s1948_s20 + $0xe0] sm:$0xff] }
 0x16b   : >> { %1234 = vst [vmem:[%s1944_s14 + $0xd0] sm:$0xff] %v1233_v15  ;;  %v1239_v18 = vld [vmem:[%s1948_s20 + $0xe8] sm:$0xff]  ;;  %1236 = vst [vmem:[%s1944_s14 + $0xd8] sm:$0xff] %v1235_v16  ;;  %v1241_v19 = vld [vmem:[%s1948_s20 + $0xf0] sm:$0xff] }
 0x16c   : >> { %1238 = vst [vmem:[%s1944_s14 + $0xe0] sm:$0xff] %v1237_v17  ;;  %1240 = vst [vmem:[%s1944_s14 + $0xe8] sm:$0xff] %v1239_v18  ;;  %v1243_v20 = vld [vmem:[%s1948_s20 + $0xf8] sm:$0xff]  ;;  %s2451_s20 = smov %s2379_s17 }
 0x16d   : >> { %1242 = vst [vmem:[%s1944_s14 + $0xf0] sm:$0xff] %v1241_v19  ;;  %1244 = vst [vmem:[%s1944_s14 + $0xf8] sm:$0xff] %v1243_v20  ;;  %s2450_s14 = smov %s1251_s19 }
 0x16e PF: > { %s2420_s21 = sand.u32 31, %s2460_s29   ;;  %s1507_s23 = sshll.u32 %s2312_s8, 8 }
 0x16f   : > { %s1256_s24 = scalar_lea.vmem %s2189_s12, %s1507_s23 [#allocation3]   ;;  %s1258_s26 = scalar_lea.vmem %s2306_s6, %s1507_s23  }
 0x170   : > { %p1500_p0 = scmp.le.s32.totalorder %s2420_s21, 0 }
 0x171   : > { %s1958_s27 = smov (!%p1500_p0), %s1258_s26   ;;  %s1962_s28 = smov (!%p1500_p0), %s1256_s24  }
 0x172   : > { %1369 = sbr.rel (%p1500_p0) target bundleno = 383 (0x17f), region = 141  ;;  %s1966_s30 = smov (!%p1500_p0), 0  }
 0x173   : > { %s1970_s4 = smov (!%p1500_p0), 0  }
 0x177 LB: >> { %v1268_v21 = vld [vmem:[%s1964_s28] sm:$0xff]  ;;  %s1270_s29 = sadd.s32 1, %s1968_s30  ;;  %s1262_s4 = sadd.s32 1, %s1972_s4   ;;  %s1972_s4 = sphi %s1970_s4, %s1262_s4   ;;  %s1968_s30 = sphi %s1966_s30, %s1967_s30   ;;  %s1964_s28 = sphi %s1962_s28, %s1275_s28   ;;  %s1960_s27 = sphi %s1958_s27, %s1276_s27  }
 0x178   : >> { %1269 = vst [vmem:[%s1960_s27] sm:$0xff] %v1268_v21  ;;  %p1271_p1 = scmp.ge.s32.totalorder %s1270_s29, %s2420_s21  ;;  %p1261_p2 = scmp.ge.s32.totalorder %s1262_s4, %s2420_s21 }
 0x17a   : >> { %s2464_s29 = smov (%p1271_p1, %s1270_s29), 0  ;;  %1264 = sbr.rel (!%p1261_p2) target bundleno = 375 (0x177), region = 147 }
 0x17b   : >> { %s1501_s12 = sshll.u32 %s2464_s29, 3  ;;  %s1967_s30 = smov %s2464_s29  }
 0x17c   : >> { %s1275_s28 = scalar_lea.vmem %s1256_s24, %s1501_s12 [#allocation3]   ;;  %s1276_s27 = scalar_lea.vmem %s1258_s26, %s1501_s12  }
 0x17f PF: > { %s13_s16 = sadd.s32 1, %s1940_s16   ;;  %s2453_s12 = smov %s1928_s13 }
 0x180   : > { %p10_p3 = scmp.ge.s32.totalorder %s13_s16, 11   ;;  %s2454_s13 = smov %s2036_s22 }
 0x181   : > { %s2455_s14 = smov %s1936_s15  ;;  %s2456_s15 = smov %s2458_s18 }
 0x182   :  { %12 = sbr.rel (!%p10_p3) target bundleno = 3 (0x3), region = 158 }

</bundles_post_ra>
